<compile_context>
chip_gen: v6e
topology: v6e:2x2x1
jax: 0.10.0
libtpu: 0.0.40
codegen_flags: <defaults>
</compile_context>

<pallas_src>
import functools

import jax
import jax.numpy as jnp
from jax.experimental import pallas as pl
from jax.experimental.pallas import tpu as pltpu


def _head_kernel(x_ref, wcat_ref, b1_ref, vcat_ref, a0_ref, a1_ref, c_ref,
                 o_ref):
    """One batch element, sequence-major layout.

    x_ref   : (1, S, C_in)        native BERT layout
    wcat    : (C_in, 2*C_mid)     conv1 taps [W0.T | W1.T], bf16
    b1      : (1, C_mid)          conv1 bias
    vcat    : (C_mid, 2)          conv2 taps stacked [v0 | v1], bf16
    a0      : (S+1, C_out)        hid_w.T rows 1..S+1 (pairs with conv2 tap 0)
    a1      : (S+1, C_out)        hid_w.T rows 0..S   (pairs with conv2 tap 1)
    c       : (1, C_out)          hid_b + cnn2_b * sum_t hid_w[:, t]
    o_ref   : (1, 1, C_out)
    """
    c_mid = b1_ref.shape[1]
    x = x_ref[0].astype(jnp.bfloat16)                        # (S, C_in)

    # --- Conv1d(C_in -> C_mid, k=2, pad=1): both taps in one MXU matmul ---
    p = jnp.dot(x, wcat_ref[...], preferred_element_type=jnp.float32)
    p0 = p[:, 0:c_mid]                                       # tap k=0  (S, C_mid)
    p1 = p[:, c_mid:2 * c_mid]                               # tap k=1  (S, C_mid)

    # Shift the small 256-wide results by one row (the conv padding), not the
    # 768-wide input:  y1[t] = relu(p0[t-1] + p1[t] + b1), t = 0..S.
    zrow = jnp.zeros((1, c_mid), jnp.float32)
    p0s = jnp.concatenate([zrow, p0], axis=0)                # (S+1, C_mid)
    p1s = jnp.concatenate([p1, zrow], axis=0)                # (S+1, C_mid)
    y1 = jnp.maximum(p0s + p1s + b1_ref[...], 0.0)           # (S+1, C_mid)

    # --- Conv1d(C_mid -> 1, k=2, pad=1): both taps in one matmul ---
    q = jnp.dot(y1.astype(jnp.bfloat16), vcat_ref[...],
                preferred_element_type=jnp.float32)          # (S+1, 2)
    q0 = q[:, 0:1]                                           # tap k=0 responses
    q1 = q[:, 1:2]                                           # tap k=1 responses

    # --- fused flatten + Linear(S+2, C_out): broadcast-mul + sublane reduce ---
    # out = sum_t q0[t]*hid_w[:, t+1] + q1[t]*hid_w[:, t] + (hid_b + b2*sum hid_w)
    out = jnp.sum(a0_ref[...] * q0, axis=0, keepdims=True)   # (1, C_out)
    out = out + jnp.sum(a1_ref[...] * q1, axis=0, keepdims=True)
    o_ref[0] = (out + c_ref[...]).astype(o_ref.dtype)


@functools.partial(jax.jit)
def embedding_head(last_hidden, cnn1_w, cnn1_b, cnn2_w, cnn2_b, hid_w, hid_b):
    """last_hidden: (B, S, C_in) float32 (simulated BERT last_hidden_states)."""
    B, S, C_in = last_hidden.shape
    C_mid = cnn1_w.shape[0]
    C_out = hid_w.shape[0]
    assert hid_w.shape[1] == S + 2, "Linear in_features must equal S + 2"

    f32 = jnp.float32
    bf16 = jnp.bfloat16

    # Loop-invariant weight preparation (done once, outside the kernel).
    wcat = jnp.concatenate([cnn1_w[:, :, 0].T, cnn1_w[:, :, 1].T],
                           axis=1).astype(bf16)              # (C_in, 2*C_mid)
    b1row = cnn1_b.reshape(1, C_mid).astype(f32)             # (1, C_mid)
    vcat = cnn2_w[0].astype(bf16)                            # (C_mid, 2)
    wht = hid_w.T.astype(f32)                                # (S+2, C_out)
    a0 = wht[1:S + 2, :]                                     # (S+1, C_out)
    a1 = wht[0:S + 1, :]                                     # (S+1, C_out)
    crow = (hid_b + cnn2_b[0] * jnp.sum(hid_w, axis=1)).reshape(1, C_out)
    crow = crow.astype(f32)                                  # (1, C_out)

    out = pl.pallas_call(
        _head_kernel,
        out_shape=jax.ShapeDtypeStruct((B, 1, C_out), f32),
        grid=(B,),
        in_specs=[
            pl.BlockSpec((1, S, C_in), lambda b: (b, 0, 0)),       # last_hidden
            pl.BlockSpec((C_in, 2 * C_mid), lambda b: (0, 0)),     # wcat (bf16)
            pl.BlockSpec((1, C_mid), lambda b: (0, 0)),            # conv1 bias
            pl.BlockSpec((C_mid, 2), lambda b: (0, 0)),            # vcat (bf16)
            pl.BlockSpec((S + 1, C_out), lambda b: (0, 0)),        # a0
            pl.BlockSpec((S + 1, C_out), lambda b: (0, 0)),        # a1
            pl.BlockSpec((1, C_out), lambda b: (0, 0)),            # folded bias
        ],
        out_specs=pl.BlockSpec((1, 1, C_out), lambda b: (b, 0, 0)),
        compiler_params=pltpu.CompilerParams(
            dimension_semantics=("parallel",),
            vmem_limit_bytes=32 * 1024 * 1024,
        ),
    )(last_hidden, wcat, b1row, vcat, a0, a1, crow)
    return out.reshape(B, C_out)


def reference(last_hidden, cnn1_w, cnn1_b, cnn2_w, cnn2_b, hid_w, hid_b):
    """Pure-JAX reference mirroring the PyTorch forward exactly (f32)."""
    B, S, _ = last_hidden.shape
    x = jnp.transpose(last_hidden, (0, 2, 1))
    xp = jnp.pad(x, ((0, 0), (0, 0), (1, 1)))
    y1 = (jnp.einsum('oc,bcl->bol', cnn1_w[:, :, 0], xp[:, :, 0:S + 1])
          + jnp.einsum('oc,bcl->bol', cnn1_w[:, :, 1], xp[:, :, 1:S + 2])
          + cnn1_b[None, :, None])
    y1 = jnp.maximum(y1, 0.0)
    y1p = jnp.pad(y1, ((0, 0), (0, 0), (1, 1)))
    y2 = (jnp.einsum('oc,bcl->bol', cnn2_w[:, :, 0], y1p[:, :, 0:S + 2])
          + jnp.einsum('oc,bcl->bol', cnn2_w[:, :, 1], y1p[:, :, 1:S + 3])
          + cnn2_b[None, :, None])
    flat = y2.reshape(B, -1)                                 # (B, S+2)
    return flat @ hid_w.T + hid_b[None, :]


if __name__ == "__main__":
    # Shapes implied by the module: Linear(514, 256) => seq_len S = 512,
    # BERT hidden = 768, conv channels 768 -> 256 -> 1.
    B, S, C_IN, C_MID, C_OUT = 2, 512, 768, 256, 256

    key = jax.random.PRNGKey(0)
    k_x, k1w, k1b, k2w, k2b, khw, khb = jax.random.split(key, 7)

    # Simulated BERT last_hidden_states (the real backbone is not reproduced).
    last_hidden = jax.random.normal(k_x, (B, S, C_IN), jnp.float32)

    # Deterministic PyTorch-default-style init (uniform(-k, k), k = 1/sqrt(fan_in)).
    bound1 = 1.0 / (C_IN * 2) ** 0.5
    cnn1_w = jax.random.uniform(k1w, (C_MID, C_IN, 2), jnp.float32, -bound1, bound1)
    cnn1_b = jax.random.uniform(k1b, (C_MID,), jnp.float32, -bound1, bound1)
    bound2 = 1.0 / (C_MID * 2) ** 0.5
    cnn2_w = jax.random.uniform(k2w, (1, C_MID, 2), jnp.float32, -bound2, bound2)
    cnn2_b = jax.random.uniform(k2b, (1,), jnp.float32, -bound2, bound2)
    boundh = 1.0 / (S + 2) ** 0.5
    hid_w = jax.random.uniform(khw, (C_OUT, S + 2), jnp.float32, -boundh, boundh)
    hid_b = jax.random.uniform(khb, (C_OUT,), jnp.float32, -boundh, boundh)

    out = embedding_head(last_hidden, cnn1_w, cnn1_b, cnn2_w, cnn2_b, hid_w, hid_b)
    out = jax.block_until_ready(out)
    assert out.shape == (B, C_OUT), out.shape

    ref = reference(last_hidden, cnn1_w, cnn1_b, cnn2_w, cnn2_b, hid_w, hid_b)
    ref = jax.block_until_ready(ref)
    err = float(jnp.max(jnp.abs(out - ref)))
    assert err < 2e-2, f"max abs error {err}"

    print("KERNEL_OK")
</pallas_src>

<mosaic_0001>
module attributes {stable_mosaic.version = 11 : i64} {
  func.func @_head_kernel(%arg0: i32, %arg1: memref<1x512x768xf32, #tpu.memory_space<vmem>>, %arg2: memref<768x512xbf16, #tpu.memory_space<vmem>>, %arg3: memref<1x256xf32, #tpu.memory_space<vmem>>, %arg4: memref<256x2xbf16, #tpu.memory_space<vmem>>, %arg5: memref<513x256xf32, #tpu.memory_space<vmem>>, %arg6: memref<513x256xf32, #tpu.memory_space<vmem>>, %arg7: memref<1x256xf32, #tpu.memory_space<vmem>>, %arg8: memref<1x1x256xf32, #tpu.memory_space<vmem>>) attributes {dimension_semantics = [#tpu.dimension_semantics<parallel>], iteration_bounds = array<i64: 2>, scalar_prefetch = 0 : i64, scratch_operands = 0 : i64, tpu.core_type = #tpu.core_type<tc>, window_params = [{transform_indices = @transform_0, window_bounds = array<i64: 1, 512, 768>}, {pipeline_mode = #tpu.pipeline_mode<synchronous>, transform_indices = @transform_1, window_bounds = array<i64: 768, 512>}, {pipeline_mode = #tpu.pipeline_mode<synchronous>, transform_indices = @transform_2, window_bounds = array<i64: 1, 256>}, {pipeline_mode = #tpu.pipeline_mode<synchronous>, transform_indices = @transform_3, window_bounds = array<i64: 256, 2>}, {pipeline_mode = #tpu.pipeline_mode<synchronous>, transform_indices = @transform_4, window_bounds = array<i64: 513, 256>}, {pipeline_mode = #tpu.pipeline_mode<synchronous>, transform_indices = @transform_5, window_bounds = array<i64: 513, 256>}, {pipeline_mode = #tpu.pipeline_mode<synchronous>, transform_indices = @transform_6, window_bounds = array<i64: 1, 256>}, {transform_indices = @transform_7, window_bounds = array<i64: 1, 1, 256>}]} {
    %c0 = arith.constant 0 : index
    %c0_0 = arith.constant 0 : index
    %c0_1 = arith.constant 0 : index
    %0 = vector.load %arg1[%c0, %c0_0, %c0_1] : memref<1x512x768xf32, #tpu.memory_space<vmem>>, vector<1x512x768xf32>
    %1 = vector.shape_cast %0 : vector<1x512x768xf32> to vector<512x768xf32>
    %2 = arith.truncf %1 : vector<512x768xf32> to vector<512x768xbf16>
    %c0_2 = arith.constant 0 : index
    %c0_3 = arith.constant 0 : index
    %3 = vector.load %arg2[%c0_2, %c0_3] : memref<768x512xbf16, #tpu.memory_space<vmem>>, vector<768x512xbf16>
    %cst = arith.constant dense<0.000000e+00> : vector<512x512xf32>
    %4 = tpu.matmul %2, %3, %cst {dimension_numbers = #tpu.dot_dimension_numbers<[1], [0], [0], [1], [0, 0, 1, 1], [], []>} : vector<512x768xbf16>, vector<768x512xbf16>, vector<512x512xf32> -> vector<512x512xf32>
    %5 = vector.extract_strided_slice %4 {offsets = [0, 0], sizes = [512, 256], strides = [1, 1]} : vector<512x512xf32> to vector<512x256xf32>
    %6 = vector.extract_strided_slice %4 {offsets = [0, 256], sizes = [512, 256], strides = [1, 1]} : vector<512x512xf32> to vector<512x256xf32>
    %cst_4 = arith.constant 0.000000e+00 : f32
    %7 = vector.broadcast %cst_4 : f32 to vector<1x256xf32>
    %8 = tpu.concatenate %7, %5 in 0 : vector<1x256xf32>, vector<512x256xf32> -> vector<513x256xf32>
    %9 = tpu.concatenate %6, %7 in 0 : vector<512x256xf32>, vector<1x256xf32> -> vector<513x256xf32>
    %10 = arith.addf %8, %9 : vector<513x256xf32>
    %c0_5 = arith.constant 0 : index
    %c0_6 = arith.constant 0 : index
    %11 = vector.load %arg3[%c0_5, %c0_6] : memref<1x256xf32, #tpu.memory_space<vmem>>, vector<1x256xf32>
    %12 = vector.broadcast %11 : vector<1x256xf32> to vector<513x256xf32>
    %13 = arith.addf %10, %12 : vector<513x256xf32>
    %cst_7 = arith.constant 0.000000e+00 : f32
    %14 = vector.broadcast %cst_7 : f32 to vector<513x256xf32>
    %15 = arith.maximumf %13, %14 : vector<513x256xf32>
    %16 = arith.truncf %15 : vector<513x256xf32> to vector<513x256xbf16>
    %c0_8 = arith.constant 0 : index
    %c0_9 = arith.constant 0 : index
    %17 = vector.load %arg4[%c0_8, %c0_9] : memref<256x2xbf16, #tpu.memory_space<vmem>>, vector<256x2xbf16>
    %cst_10 = arith.constant dense<0.000000e+00> : vector<513x2xf32>
    %18 = tpu.matmul %16, %17, %cst_10 {dimension_numbers = #tpu.dot_dimension_numbers<[1], [0], [0], [1], [0, 0, 1, 1], [], []>} : vector<513x256xbf16>, vector<256x2xbf16>, vector<513x2xf32> -> vector<513x2xf32>
    %19 = vector.extract_strided_slice %18 {offsets = [0, 0], sizes = [513, 1], strides = [1, 1]} : vector<513x2xf32> to vector<513x1xf32>
    %20 = vector.extract_strided_slice %18 {offsets = [0, 1], sizes = [513, 1], strides = [1, 1]} : vector<513x2xf32> to vector<513x1xf32>
    %c0_11 = arith.constant 0 : index
    %c0_12 = arith.constant 0 : index
    %21 = vector.load %arg5[%c0_11, %c0_12] : memref<513x256xf32, #tpu.memory_space<vmem>>, vector<513x256xf32>
    %22 = vector.broadcast %19 : vector<513x1xf32> to vector<513x256xf32>
    %23 = arith.mulf %21, %22 : vector<513x256xf32>
    %cst_13 = arith.constant dense<0.000000e+00> : vector<256xf32>
    %24 = vector.multi_reduction <add>, %23, %cst_13 [0] : vector<513x256xf32> to vector<256xf32>
    %25 = vector.shape_cast %24 : vector<256xf32> to vector<1x256xf32>
    %c0_14 = arith.constant 0 : index
    %c0_15 = arith.constant 0 : index
    %26 = vector.load %arg6[%c0_14, %c0_15] : memref<513x256xf32, #tpu.memory_space<vmem>>, vector<513x256xf32>
    %27 = vector.broadcast %20 : vector<513x1xf32> to vector<513x256xf32>
    %28 = arith.mulf %26, %27 : vector<513x256xf32>
    %cst_16 = arith.constant dense<0.000000e+00> : vector<256xf32>
    %29 = vector.multi_reduction <add>, %28, %cst_16 [0] : vector<513x256xf32> to vector<256xf32>
    %30 = vector.shape_cast %29 : vector<256xf32> to vector<1x256xf32>
    %31 = arith.addf %25, %30 : vector<1x256xf32>
    %c0_17 = arith.constant 0 : index
    %c0_18 = arith.constant 0 : index
    %32 = vector.load %arg7[%c0_17, %c0_18] : memref<1x256xf32, #tpu.memory_space<vmem>>, vector<1x256xf32>
    %33 = arith.addf %31, %32 : vector<1x256xf32>
    %c0_19 = arith.constant 0 : index
    %c0_20 = arith.constant 0 : index
    %c0_21 = arith.constant 0 : index
    %34 = vector.load %arg8[%c0_19, %c0_20, %c0_21] : memref<1x1x256xf32, #tpu.memory_space<vmem>>, vector<1x1x256xf32>
    %35 = vector.shape_cast %34 : vector<1x1x256xf32> to vector<1x256xf32>
    %36 = vector.shape_cast %33 : vector<1x256xf32> to vector<1x1x256xf32>
    tpu.vector_store %arg8[%c0_19, %c0_20, %c0_21], %36 {strides = array<i32>} : memref<1x1x256xf32, #tpu.memory_space<vmem>>, vector<1x1x256xf32>,
    return
  }
  func.func @transform_0(%arg0: i32) -> (i32, i32, i32) {
    %c0_i32 = arith.constant 0 : i32
    %c0_i32_0 = arith.constant 0 : i32
    %c0_i32_1 = arith.constant 0 : i32
    return %arg0, %c0_i32, %c0_i32_0 : i32, i32, i32
  }
  func.func @transform_1(%arg0: i32) -> (i32, i32) {
    %c0_i32 = arith.constant 0 : i32
    %c0_i32_0 = arith.constant 0 : i32
    %c0_i32_1 = arith.constant 0 : i32
    return %c0_i32, %c0_i32_0 : i32, i32
  }
  func.func @transform_2(%arg0: i32) -> (i32, i32) {
    %c0_i32 = arith.constant 0 : i32
    %c0_i32_0 = arith.constant 0 : i32
    %c0_i32_1 = arith.constant 0 : i32
    return %c0_i32, %c0_i32_0 : i32, i32
  }
  func.func @transform_3(%arg0: i32) -> (i32, i32) {
    %c0_i32 = arith.constant 0 : i32
    %c0_i32_0 = arith.constant 0 : i32
    %c0_i32_1 = arith.constant 0 : i32
    return %c0_i32, %c0_i32_0 : i32, i32
  }
  func.func @transform_4(%arg0: i32) -> (i32, i32) {
    %c0_i32 = arith.constant 0 : i32
    %c0_i32_0 = arith.constant 0 : i32
    %c0_i32_1 = arith.constant 0 : i32
    return %c0_i32, %c0_i32_0 : i32, i32
  }
  func.func @transform_5(%arg0: i32) -> (i32, i32) {
    %c0_i32 = arith.constant 0 : i32
    %c0_i32_0 = arith.constant 0 : i32
    %c0_i32_1 = arith.constant 0 : i32
    return %c0_i32, %c0_i32_0 : i32, i32
  }
  func.func @transform_6(%arg0: i32) -> (i32, i32) {
    %c0_i32 = arith.constant 0 : i32
    %c0_i32_0 = arith.constant 0 : i32
    %c0_i32_1 = arith.constant 0 : i32
    return %c0_i32, %c0_i32_0 : i32, i32
  }
  func.func @transform_7(%arg0: i32) -> (i32, i32, i32) {
    %c0_i32 = arith.constant 0 : i32
    %c0_i32_0 = arith.constant 0 : i32
    %c0_i32_1 = arith.constant 0 : i32
    return %arg0, %c0_i32, %c0_i32_0 : i32, i32, i32
  }
}

</mosaic_0001>

<bundles_post_ra>
// kernel: embedding_head.1
= control target key start
LH: loop header
LB: loop body
LE: loop exit
PB: predicated region body
PF: predicated region fallthrough
CT: control target
= control target key end

     0   :  { %s7757_s24 = smov 0   ;;  %s12706_s0 = inlined_call_operand.vmem [shape: f32[2,512,768], index: 0, kind: input, shape index: {}]   ;;  %s12707_s1 = inlined_call_operand.vmem [shape: bf16[768,512], index: 1, kind: input, shape index: {}]   ;;  %s12708_s2 = inlined_call_operand.vmem [shape: f32[1,256], index: 2, kind: input, shape index: {}]   ;;  %s12709_s3 = inlined_call_operand.vmem [shape: bf16[256,2], index: 3, kind: input, shape index: {}]   ;;  %s12710_s4 = inlined_call_operand.vmem [shape: f32[513,256], index: 4, kind: input, shape index: {}]   ;;  %s12711_s5 = inlined_call_operand.vmem [shape: f32[513,256], index: 5, kind: input, shape index: {}]   ;;  %s12712_s6 = inlined_call_operand.vmem [shape: f32[1,256], index: 6, kind: input, shape index: {}]   ;;  %s12713_s7 = inlined_call_operand.vmem [shape: f32[2,1,256], index: 7, kind: output, shape index: {}]  }
   0x1 LB: > { %s7012_s25 = sadd.s32 4294967295, %s7712_s24   ;;  %p7016_p0 = scmp.ge.s32.totalorder %s7712_s24, 1  ;;  %s7712_s24 = sphi %s7757_s24, %s17_s24  }
   0x2   : > { %p237_p1 = scmp.lt.s32.totalorder %s7712_s24, 3 }
   0x4   : > { %p238_p2 = pnand %p7016_p0, %p237_p1 }
   0x6   : > { %241 = sbr.rel (%p238_p2) target bundleno = 1596 (0x63c), region = 48 }
   0xb   : > { %v7402_v0 = vld [vmem:[%s12707_s1 + $0xe4] ss:$16 sps:$4 sm:$0xff]   ;;  %v7404_v1 = vld [vmem:[%s12707_s1 + $0xe0] ss:$16 sps:$4 sm:$0xff]   ;;  %p268_p3 = scmp.lt.s32.totalorder %s7012_s25, 1  ;;  %vm4252_vm0 = vcmask 1040384  }
   0xc   : > { %2006 = vmatprep.subr.bf16.mxu0 %v7402_v0  ;;  %7229 = vmatprep.subr.bf16.mxu1 %v7402_v0  ;;  %v7405_v2 = vld [vmem:[%s12707_s1 + $0xc4] ss:$16 sps:$4 sm:$0xff]   ;;  %v7407_v3 = vld [vmem:[%s12707_s1 + $0xc0] ss:$16 sps:$4 sm:$0xff]  }
   0xd   : > { %2007 = vmatpush1.bf16.msra.mxu0 %v7404_v1  ;;  %7245 = vmatpush1.bf16.msra.mxu1 %v7404_v1  ;;  %v7408_v4 = vld [vmem:[%s12707_s1 + $0xa4] ss:$16 sps:$4 sm:$0xff]   ;;  %v7410_v5 = vld [vmem:[%s12707_s1 + $0xa0] ss:$16 sps:$4 sm:$0xff]   ;;  %s13997_s25 = smov (!%p268_p3, %s7012_s25), 1 }
   0xe   : > { %2008 = vmatprep.subr.bf16.mxu0 %v7405_v2  ;;  %7230 = vmatprep.subr.bf16.mxu1 %v7405_v2  ;;  %v7411_v6 = vld [vmem:[%s12707_s1 + $0x84] ss:$16 sps:$4 sm:$0xff]   ;;  %v7413_v7 = vld [vmem:[%s12707_s1 + $0x80] ss:$16 sps:$4 sm:$0xff]   ;;  %s7261_s21 = smul.u32 3072, %s13997_s25  ;;  %s7018_s16 = sshll.u32 %s13997_s25, 1 }
   0xf   : > { %v7414_v8 = vld [vmem:[%s12707_s1 + $0x64] ss:$16 sps:$4 sm:$0xff]   ;;  %v7416_v9 = vld [vmem:[%s12707_s1 + $0x60] ss:$16 sps:$4 sm:$0xff]   ;;  %s276_s19 = scalar_lea.vmem %s12713_s7, %s7018_s16 }
  0x10   : > { %v7417_v10 = vld [vmem:[%s12707_s1 + $0x44] ss:$16 sps:$4 sm:$0xff]   ;;  %s7804_s30 = scalar_lea.vmem %s12706_s0, %s7261_s21  ;;  %v7419_v11 = vld [vmem:[%s12707_s1 + $0x40] ss:$16 sps:$4 sm:$0xff]  }
  0x11   : > { %2009 = vmatpush1.bf16.msra.mxu0 %v7407_v3  ;;  %7246 = vmatpush1.bf16.msra.mxu1 %v7407_v3  ;;  %v7420_v12 = vld [vmem:[%s12707_s1 + $0x24] ss:$16 sps:$4 sm:$0xff]   ;;  %v279_v13 = vld [vmem:[%s7804_s30 + $0x8] sm:$0xff]  ;;  %v285_v14 = vld [vmem:[%s7804_s30 + $0x38] sm:$0xff] }
  0x12   : > { %2010 = vmatprep.subr.bf16.mxu0 %v7408_v4  ;;  %7231 = vmatprep.subr.bf16.mxu1 %v7408_v4  ;;  %v7814_v15 = vpack.c.bf16 %v285_v14, %v279_v13  ;;  %v471_v16 = vld [vmem:[%s7804_s30 + $0x608] sm:$0xff]  ;;  %v477_v17 = vld [vmem:[%s7804_s30 + $0x638] sm:$0xff]  ;;  %v7422_v18 = vld [vmem:[%s12707_s1 + $0x20] ss:$16 sps:$4 sm:$0xff]  }
  0x13   : > { %v7821_v19 = vpack.c.bf16 %v477_v17, %v471_v16  ;;  %v7423_v20 = vld [vmem:[%s12707_s1 + $0x4] ss:$16 sps:$4 sm:$0xff]   ;;  %v7425_v21 = vld [vmem:[%s12707_s1] ss:$16 sps:$4 sm:$0xff]   ;;  %v291_v43 = vld [vmem:[%s7804_s30 + $0x68] sm:$0xff] }
  0x14   : > { %2038 = vmatprep.mubr.bf16.mxu0 %v7814_v15  ;;  %v7426_v22 = vld [vmem:[%s12707_s1 + $0x1e4] ss:$16 sps:$4 sm:$0xff]   ;;  %v7428_v23 = vld [vmem:[%s12707_s1 + $0x1e0] ss:$16 sps:$4 sm:$0xff]   ;;  %v297_v44 = vld [vmem:[%s7804_s30 + $0x98] sm:$0xff] }
  0x15   : > { %2011 = vmatpush1.bf16.msra.mxu0 %v7410_v5  ;;  %7247 = vmatpush1.bf16.msra.mxu1 %v7410_v5  ;;  %12901 = vst [vmem:[#allocation2_spill] sm:$0xff] %v7821_v19  ;;  %v7429_v24 = vld [vmem:[%s12707_s1 + $0x1c4] ss:$16 sps:$4 sm:$0xff]   ;;  %v7431_v25 = vld [vmem:[%s12707_s1 + $0x1c0] ss:$16 sps:$4 sm:$0xff]   ;;  %v483_v46 = vld [vmem:[%s7804_s30 + $0x668] sm:$0xff]  ;;  %v7900_v51 = vpack.c.bf16 %v297_v44, %v291_v43 }
  0x16   : > { %2012 = vmatprep.subr.bf16.mxu0 %v7411_v6  ;;  %7232 = vmatprep.subr.bf16.mxu1 %v7411_v6  ;;  %v7432_v26 = vld [vmem:[%s12707_s1 + $0x1a4] ss:$16 sps:$4 sm:$0xff]   ;;  %v7434_v27 = vld [vmem:[%s12707_s1 + $0x1a0] ss:$16 sps:$4 sm:$0xff]   ;;  %v489_v47 = vld [vmem:[%s7804_s30 + $0x698] sm:$0xff] }
  0x17   : > { %2198 = vmatprep.mubr.bf16.mxu1 %v7821_v19  ;;  %v7435_v28 = vld [vmem:[%s12707_s1 + $0x184] ss:$16 sps:$4 sm:$0xff]   ;;  %v7437_v29 = vld [vmem:[%s12707_s1 + $0x180] ss:$16 sps:$4 sm:$0xff]   ;;  %v7902_v52 = vpack.c.bf16 %v489_v47, %v483_v46  ;;  %v303_v61 = vld [vmem:[%s7804_s30 + $0xc8] sm:$0xff] }
  0x18   : > { %v7438_v30 = vld [vmem:[%s12707_s1 + $0x164] ss:$16 sps:$4 sm:$0xff]   ;;  %v7440_v31 = vld [vmem:[%s12707_s1 + $0x160] ss:$16 sps:$4 sm:$0xff]   ;;  %v309_v62 = vld [vmem:[%s7804_s30 + $0xf8] sm:$0xff] }
  0x19   : > { %2013 = vmatpush1.bf16.msra.mxu0 %v7413_v7  ;;  %7248 = vmatpush1.bf16.msra.mxu1 %v7413_v7  ;;  %v7441_v32 = vld [vmem:[%s12707_s1 + $0x144] ss:$16 sps:$4 sm:$0xff]   ;;  %v7443_v33 = vld [vmem:[%s12707_s1 + $0x140] ss:$16 sps:$4 sm:$0xff]   ;;  %12903 = vst [vmem:[#allocation4_spill] sm:$0xff] %v7902_v52  ;;  %v495_v63 = vld [vmem:[%s7804_s30 + $0x6c8] sm:$0xff]  ;;  %v7938_v5 = vpack.c.bf16 %v309_v62, %v303_v61 }
  0x1a   : > { %2014 = vmatprep.subr.bf16.mxu0 %v7414_v8  ;;  %7233 = vmatprep.subr.bf16.mxu1 %v7414_v8  ;;  %v7444_v34 = vld [vmem:[%s12707_s1 + $0x124] ss:$16 sps:$4 sm:$0xff]   ;;  %v7446_v35 = vld [vmem:[%s12707_s1 + $0x120] ss:$16 sps:$4 sm:$0xff]   ;;  %v501_v0 = vld [vmem:[%s7804_s30 + $0x6f8] sm:$0xff] }
  0x1b   : > { %v7447_v36 = vld [vmem:[%s12707_s1 + $0x104] ss:$16 sps:$4 sm:$0xff]   ;;  %v7449_v37 = vld [vmem:[%s12707_s1 + $0x100] ss:$16 sps:$4 sm:$0xff]   ;;  %12906 = vst [vmem:[#allocation7_spill] sm:$0xff] %v7938_v5  ;;  %v7940_v6 = vpack.c.bf16 %v501_v0, %v495_v63  ;;  %v315_v16 = vld [vmem:[%s7804_s30 + $0x128] sm:$0xff] }
  0x1c   : > { %v278_v38 = vld [vmem:[%s7804_s30] sm:$0xff]  ;;  %v284_v39 = vld [vmem:[%s7804_s30 + $0x30] sm:$0xff]  ;;  %v321_v17 = vld [vmem:[%s7804_s30 + $0x158] sm:$0xff] }
  0x1d   : > { %2015 = vmatpush1.bf16.msra.mxu0 %v7416_v9  ;;  %7249 = vmatpush1.bf16.msra.mxu1 %v7416_v9  ;;  %v470_v40 = vld [vmem:[%s7804_s30 + $0x600] sm:$0xff]  ;;  %v476_v41 = vld [vmem:[%s7804_s30 + $0x630] sm:$0xff]  ;;  %v7893_v48 = vpack.c.bf16 %v284_v39, %v278_v38  ;;  %12907 = vst [vmem:[#allocation8_spill] sm:$0xff] %v7940_v6  ;;  %v333_v38 = vld [vmem:[%s7804_s30 + $0x1b8] sm:$0xff] }
  0x1e   : > { %2016 = vmatprep.subr.bf16.mxu0 %v7417_v10  ;;  %7234 = vmatprep.subr.bf16.mxu1 %v7417_v10  ;;  %v7452_v42 = vld [vmem:[%s12707_s1 + $0x2e4] ss:$16 sps:$4 sm:$0xff]   ;;  %v7895_v49 = vpack.c.bf16 %v476_v41, %v470_v40  ;;  %v7450_v50 = vld [vmem:[%s12707_s1 + $0x2e0] ss:$16 sps:$4 sm:$0xff]   ;;  %v519_v39 = vld [vmem:[%s7804_s30 + $0x788] sm:$0xff] }
  0x1f   : > { %v7479_v45 = vld [vmem:[%s12707_s1 + $0x4e4] ss:$16 sps:$4 sm:$0xff]   ;;  %v7477_v56 = vld [vmem:[%s12707_s1 + $0x4e0] ss:$16 sps:$4 sm:$0xff]   ;;  %v525_v41 = vld [vmem:[%s7804_s30 + $0x7b8] sm:$0xff] }
  0x20   : > { %12902 = vst [vmem:[#allocation3_spill] sm:$0xff] %v7895_v49  ;;  %v7455_v53 = vld [vmem:[%s12707_s1 + $0x2c4] ss:$16 sps:$4 sm:$0xff]   ;;  %v7453_v60 = vld [vmem:[%s12707_s1 + $0x2c0] ss:$16 sps:$4 sm:$0xff]   ;;  %v339_v61 = vld [vmem:[%s7804_s30 + $0x1e8] sm:$0xff] }
  0x21   : > { %2017 = vmatpush1.bf16.msra.mxu0 %v7419_v11  ;;  %7250 = vmatpush1.bf16.msra.mxu1 %v7419_v11  ;;  %v290_v54 = vld [vmem:[%s7804_s30 + $0x60] sm:$0xff]  ;;  %v296_v55 = vld [vmem:[%s7804_s30 + $0x90] sm:$0xff]  ;;  %v345_v62 = vld [vmem:[%s7804_s30 + $0x218] sm:$0xff] }
  0x22   : > { %2018 = vmatprep.subr.bf16.mxu0 %v7420_v12  ;;  %7235 = vmatprep.subr.bf16.mxu1 %v7420_v12  ;;  %v482_v57 = vld [vmem:[%s7804_s30 + $0x660] sm:$0xff]  ;;  %v488_v58 = vld [vmem:[%s7804_s30 + $0x690] sm:$0xff]  ;;  %v7934_v3 = vpack.c.bf16 %v296_v55, %v290_v54  ;;  %v531_v0 = vld [vmem:[%s7804_s30 + $0x7e8] sm:$0xff] }
  0x23   : > { %v7482_v59 = vld [vmem:[%s12707_s1 + $0x4c4] ss:$16 sps:$4 sm:$0xff]   ;;  %v7480_v2 = vld [vmem:[%s12707_s1 + $0x4c0] ss:$16 sps:$4 sm:$0xff]   ;;  %v7936_v4 = vpack.c.bf16 %v488_v58, %v482_v57 }
  0x24   : > { %v7458_v1 = vld [vmem:[%s12707_s1 + $0x2a4] ss:$16 sps:$4 sm:$0xff]   ;;  %12904 = vst [vmem:[#allocation5_spill] sm:$0xff] %v7934_v3  ;;  %v7456_v7 = vld [vmem:[%s12707_s1 + $0x2a0] ss:$16 sps:$4 sm:$0xff]  }
  0x25   : > { %2019 = vmatpush1.bf16.msra.mxu0 %v7422_v18  ;;  %7251 = vmatpush1.bf16.msra.mxu1 %v7422_v18  ;;  %12905 = vst [vmem:[#allocation6_spill] sm:$0xff] %v7936_v4  ;;  %v7488_v8 = vld [vmem:[%s12707_s1 + $0x4a4] ss:$16 sps:$4 sm:$0xff]   ;;  %v7486_v14 = vld [vmem:[%s12707_s1 + $0x4a0] ss:$16 sps:$4 sm:$0xff]  }
  0x26   : > { %2020 = vmatprep.subr.bf16.mxu0 %v7423_v20  ;;  %7236 = vmatprep.subr.bf16.mxu1 %v7423_v20  ;;  %v302_v9 = vld [vmem:[%s7804_s30 + $0xc0] sm:$0xff]  ;;  %v308_v10 = vld [vmem:[%s7804_s30 + $0xf0] sm:$0xff]  ;;  %v507_v20 = vld [vmem:[%s7804_s30 + $0x728] sm:$0xff] }
  0x27   : > { %v494_v11 = vld [vmem:[%s7804_s30 + $0x6c0] sm:$0xff]  ;;  %v500_v12 = vld [vmem:[%s7804_s30 + $0x6f0] sm:$0xff] }
  0x28   : > { %v7461_v13 = vld [vmem:[%s12707_s1 + $0x284] ss:$16 sps:$4 sm:$0xff]   ;;  %v7498_v44 = vld [vmem:[%s12707_s1 + $0x440] ss:$16 sps:$4 sm:$0xff]  }
  0x29   : > { %2021 = vmatpush1.bf16.msra.mxu0 %v7425_v21  ;;  %7252 = vmatpush1.bf16.msra.mxu1 %v7425_v21  ;;  %v7491_v18 = vld [vmem:[%s12707_s1 + $0x484] ss:$16 sps:$4 sm:$0xff]   ;;  %v513_v21 = vld [vmem:[%s7804_s30 + $0x758] sm:$0xff] }
  0x2a   : > { %2022 = vmatprep.subr.bf16.mxu0 %v7426_v22  ;;  %7237 = vmatprep.subr.bf16.mxu1 %v7426_v22  ;;  %v7459_v22 = vld [vmem:[%s12707_s1 + $0x280] ss:$16 sps:$4 sm:$0xff]   ;;  %v7500_v40 = vld [vmem:[%s12707_s1 + $0x444] ss:$16 sps:$4 sm:$0xff]  }
  0x2b   : > { %v7470_v43 = vld [vmem:[%s12707_s1 + $0x224] ss:$16 sps:$4 sm:$0xff]  }
  0x2c   : > { %v7473_v54 = vld [vmem:[%s12707_s1 + $0x204] ss:$16 sps:$4 sm:$0xff]  }
  0x2d   : > { %2023 = vmatpush2.bf16.msra.mxu0 %v7428_v23  ;;  %7253 = vmatpush2.bf16.msra.mxu1 %v7428_v23  ;;  %v7464_v23 = vld [vmem:[%s12707_s1 + $0x264] ss:$16 sps:$4 sm:$0xff]  }
  0x2e   : > { %2024 = vmatprep.subr.bf16.mxu0 %v7429_v24  ;;  %7238 = vmatprep.subr.bf16.mxu1 %v7429_v24  ;;  %v7489_v24 = vld [vmem:[%s12707_s1 + $0x480] ss:$16 sps:$4 sm:$0xff]   ;;  %v7506_v55 = vld [vmem:[%s12707_s1 + $0x424] ss:$16 sps:$4 sm:$0xff]  }
  0x2f   : > { %v332_v57 = vld [vmem:[%s7804_s30 + $0x1b0] sm:$0xff]  ;;  %v518_v58 = vld [vmem:[%s7804_s30 + $0x780] sm:$0xff] }
  0x30   : > { %v7509_v63 = vld [vmem:[%s12707_s1 + $0x404] ss:$16 sps:$4 sm:$0xff]  }
  0x31   : > { %2025 = vmatpush2.bf16.msra.mxu0 %v7431_v25  ;;  %7254 = vmatpush2.bf16.msra.mxu1 %v7431_v25  ;;  %v7978_v25 = vpack.c.bf16 %v308_v10, %v302_v9 }
  0x32   : > { %2026 = vmatprep.subr.bf16.mxu0 %v7432_v26  ;;  %7239 = vmatprep.subr.bf16.mxu1 %v7432_v26  ;;  %v7980_v26 = vpack.c.bf16 %v500_v12, %v494_v11  ;;  %v8070_v11 = vpack.c.bf16 %v345_v62, %v339_v61  ;;  %v7512_v61 = vld [vmem:[%s12707_s1 + $0x364] ss:$16 sps:$4 sm:$0xff]   ;;  %v7525_v62 = vld [vmem:[%s12707_s1 + $0x580] ss:$16 sps:$4 sm:$0xff]  }
  0x33   : > { %12908 = vst [vmem:[#allocation9_spill] sm:$0xff] %v7978_v25 }
  0x34   : > { %12909 = vst [vmem:[#allocation10_spill] sm:$0xff] %v7980_v26  ;;  %12918 = vst [vmem:[#allocation19_spill] sm:$0xff] %v8070_v11 }
  0x35   : > { %2027 = vmatpush2.bf16.msra.mxu0 %v7434_v27  ;;  %7255 = vmatpush2.bf16.msra.mxu1 %v7434_v27  ;;  %v7982_v27 = vpack.c.bf16 %v321_v17, %v315_v16  ;;  %v7515_v16 = vld [vmem:[%s12707_s1 + $0x5e4] ss:$16 sps:$4 sm:$0xff]  }
  0x36   : > { %2028 = vmatprep.subr.bf16.mxu0 %v7435_v28  ;;  %7240 = vmatprep.subr.bf16.mxu1 %v7435_v28  ;;  %v7984_v28 = vpack.c.bf16 %v513_v21, %v507_v20  ;;  %v338_v17 = vld [vmem:[%s7804_s30 + $0x1e0] sm:$0xff] }
  0x37   : > { %12910 = vst [vmem:[#allocation11_spill] sm:$0xff] %v7982_v27  ;;  %v530_v20 = vld [vmem:[%s7804_s30 + $0x7e0] sm:$0xff] }
  0x38   : > { %12911 = vst [vmem:[#allocation12_spill] sm:$0xff] %v7984_v28  ;;  %v7513_v21 = vld [vmem:[%s12707_s1 + $0x5e0] ss:$16 sps:$4 sm:$0xff]  }
  0x39   : > { %2029 = vmatpush2.bf16.msra.mxu0 %v7437_v29  ;;  %7256 = vmatpush2.bf16.msra.mxu1 %v7437_v29  ;;  %v7462_v29 = vld [vmem:[%s12707_s1 + $0x260] ss:$16 sps:$4 sm:$0xff]  }
  0x3a   : > { %2030 = vmatprep.subr.bf16.mxu0 %v7438_v30  ;;  %7241 = vmatprep.subr.bf16.mxu1 %v7438_v30  ;;  %v7497_v30 = vld [vmem:[%s12707_s1 + $0x464] ss:$16 sps:$4 sm:$0xff]  }
  0x3d   : > { %2031 = vmatpush2.bf16.msra.mxu0 %v7440_v31  ;;  %7257 = vmatpush2.bf16.msra.mxu1 %v7440_v31  ;;  %v314_v31 = vld [vmem:[%s7804_s30 + $0x120] sm:$0xff] }
  0x3e   : > { %2032 = vmatprep.subr.bf16.mxu0 %v7441_v32  ;;  %7242 = vmatprep.subr.bf16.mxu1 %v7441_v32  ;;  %v320_v32 = vld [vmem:[%s7804_s30 + $0x150] sm:$0xff] }
  0x41   : > { %2033 = vmatpush2.bf16.msra.mxu0 %v7443_v33  ;;  %7258 = vmatpush2.bf16.msra.mxu1 %v7443_v33  ;;  %v506_v33 = vld [vmem:[%s7804_s30 + $0x720] sm:$0xff] }
  0x42   : > { %2034 = vmatprep.subr.bf16.mxu0 %v7444_v34  ;;  %7243 = vmatprep.subr.bf16.mxu1 %v7444_v34  ;;  %v512_v34 = vld [vmem:[%s7804_s30 + $0x750] sm:$0xff] }
  0x43   : > { %v8024_v46 = vpack.c.bf16 %v512_v34, %v506_v33  ;;  %v7494_v33 = vld [vmem:[%s12707_s1 + $0x3a4] ss:$16 sps:$4 sm:$0xff]   ;;  %v7516_v34 = vld [vmem:[%s12707_s1 + $0x5c0] ss:$16 sps:$4 sm:$0xff]  }
  0x45   : > { %2035 = vmatpush2.bf16.msra.mxu0 %v7446_v35  ;;  %7259 = vmatpush2.bf16.msra.mxu1 %v7446_v35  ;;  %v7467_v35 = vld [vmem:[%s12707_s1 + $0x244] ss:$16 sps:$4 sm:$0xff]   ;;  %12913 = vst [vmem:[#allocation14_spill] sm:$0xff] %v8024_v46 }
  0x46   : > { %2036 = vmatprep.subr.bf16.mxu0 %v7447_v36  ;;  %7244 = vmatprep.subr.bf16.mxu1 %v7447_v36  ;;  %v7495_v36 = vld [vmem:[%s12707_s1 + $0x460] ss:$16 sps:$4 sm:$0xff]  }
  0x49   : > { %2037 = vmatpush2.bf16.msra.mxu0 %v7449_v37  ;;  %7260 = vmatpush2.bf16.msra.mxu1 %v7449_v37  ;;  %v327_v37 = vld [vmem:[%s7804_s30 + $0x188] sm:$0xff] }
  0x4a   : > { %2359 = vmatprep.subr.bf16.mxu1 %v7452_v42  ;;  %2712 = vmatprep.subr.bf16.mxu0 %v7479_v45  ;;  %v7465_v42 = vld [vmem:[%s12707_s1 + $0x240] ss:$16 sps:$4 sm:$0xff]   ;;  %v8022_v45 = vpack.c.bf16 %v320_v32, %v314_v31  ;;  %v8026_v47 = vpack.c.bf16 %v333_v38, %v327_v37  ;;  %v549_v31 = vld [vmem:[%s7804_s30 + $0x878] sm:$0xff] }
  0x4b   : > { %v7483_v32 = vld [vmem:[%s12707_s1 + $0x3c0] ss:$16 sps:$4 sm:$0xff]  }
  0x4c   : > { %2039 = vmatmul.mubr.bf16.vlgmr.msra.gmra.mxu0 %v7893_v48  ;;  %2199 = vmatmul.mubr.bf16.vlgmr.msra.gmra.mxu1 %v7895_v49  ;;  %12912 = vst [vmem:[#allocation13_spill] sm:$0xff] %v8022_v45  ;;  %12914 = vst [vmem:[#allocation15_spill] sm:$0xff] %v8026_v47  ;;  %v382_v49 = vld [vmem:[%s7804_s30 + $0x340] sm:$0xff] }
  0x4d   : > { %2360 = vmatpush1.bf16.msra.mxu1 %v7450_v50  ;;  %2048 = vmatprep.mubr.bf16.mxu0 %v7900_v51  ;;  %v8028_v50 = vpack.c.bf16 %v525_v41, %v519_v39  ;;  %v7492_v39 = vld [vmem:[%s12707_s1 + $0x3a0] ss:$16 sps:$4 sm:$0xff]   ;;  %v7524_v41 = vld [vmem:[%s12707_s1 + $0x5a4] ss:$16 sps:$4 sm:$0xff]  }
  0x4e   : > { %2208 = vmatprep.mubr.bf16.mxu1 %v7902_v52  ;;  %2361 = vmatprep.subr.bf16.mxu1 %v7455_v53  ;;  %v7468_v53 = vld [vmem:[%s12707_s1 + $0x220] ss:$16 sps:$4 sm:$0xff]  }
  0x4f   : > { %2713 = vmatpush1.bf16.msra.mxu0 %v7477_v56  ;;  %12915 = vst [vmem:[#allocation16_spill] sm:$0xff] %v8028_v50  ;;  %v326_v56 = vld [vmem:[%s7804_s30 + $0x180] sm:$0xff]  ;;  %v376_v52 = vld [vmem:[%s7804_s30 + $0x310] sm:$0xff] }
  0x50   : > { %2714 = vmatprep.subr.bf16.mxu0 %v7482_v59  ;;  %v524_v59 = vld [vmem:[%s7804_s30 + $0x7b0] sm:$0xff]  ;;  %v8066_v9 = vpack.c.bf16 %v332_v57, %v326_v56  ;;  %v363_v56 = vld [vmem:[%s7804_s30 + $0x2a8] sm:$0xff]  ;;  %v369_v57 = vld [vmem:[%s7804_s30 + $0x2d8] sm:$0xff] }
  0x51   : > { %2362 = vmatpush1.bf16.msra.mxu1 %v7453_v60  ;;  %v7504_v60 = vld [vmem:[%s12707_s1 + $0x420] ss:$16 sps:$4 sm:$0xff]   ;;  %v8068_v10 = vpack.c.bf16 %v524_v59, %v518_v58  ;;  %v555_v58 = vld [vmem:[%s7804_s30 + $0x8a8] sm:$0xff]  ;;  %v561_v59 = vld [vmem:[%s7804_s30 + $0x8d8] sm:$0xff] }
  0x52   : > { %2363 = vmatprep.subr.bf16.mxu1 %v7458_v1  ;;  %v537_v1 = vld [vmem:[%s7804_s30 + $0x818] sm:$0xff]  ;;  %12916 = vst [vmem:[#allocation17_spill] sm:$0xff] %v8066_v9 }
  0x53   : > { %2715 = vmatpush1.bf16.msra.mxu0 %v7480_v2  ;;  %v7471_v2 = vld [vmem:[%s12707_s1 + $0x200] ss:$16 sps:$4 sm:$0xff]   ;;  %12917 = vst [vmem:[#allocation18_spill] sm:$0xff] %v8068_v10  ;;  %v8072_v12 = vpack.c.bf16 %v537_v1, %v531_v0  ;;  %v8158_v1 = vpack.c.bf16 %v369_v57, %v363_v56  ;;  %v7545_v57 = vld [vmem:[%s12707_s1 + $0x504] ss:$16 sps:$4 sm:$0xff]  }
  0x54   : > { %2049 = vmatmul.mubr.bf16.gmra.mxu0 %v7934_v3  ;;  %2209 = vmatmul.mubr.bf16.gmra.mxu1 %v7936_v4  ;;  %v572_v56 = vld [vmem:[%s7804_s30 + $0x930] sm:$0xff] }
  0x55   : > { %2058 = vmatprep.mubr.bf16.mxu0 %v7938_v5  ;;  %2218 = vmatprep.mubr.bf16.mxu1 %v7940_v6  ;;  %12919 = vst [vmem:[#allocation20_spill] sm:$0xff] %v8072_v12  ;;  %12926 = vst [vmem:[#allocation27_spill] sm:$0xff] %v8158_v1  ;;  %v370_v6 = vld [vmem:[%s7804_s30 + $0x2e0] sm:$0xff] }
  0x56   : > { %2364 = vmatpush1.bf16.msra.mxu1 %v7456_v7  ;;  %2716 = vmatprep.subr.bf16.mxu0 %v7488_v8  ;;  %v7476_v7 = vld [vmem:[%s12707_s1 + $0x3e4] ss:$16 sps:$4 sm:$0xff]   ;;  %v7507_v8 = vld [vmem:[%s12707_s1 + $0x400] ss:$16 sps:$4 sm:$0xff]  }
  0x57   : > { %2365 = vmatprep.subr.bf16.mxu1 %v7461_v13  ;;  %2717 = vmatpush1.bf16.msra.mxu0 %v7486_v14  ;;  %v7474_v13 = vld [vmem:[%s12707_s1 + $0x3e0] ss:$16 sps:$4 sm:$0xff]   ;;  %v7485_v14 = vld [vmem:[%s12707_s1 + $0x3c4] ss:$16 sps:$4 sm:$0xff]  }
  0x58   : > { %2718 = vmatprep.subr.bf16.mxu0 %v7491_v18  ;;  %v344_v18 = vld [vmem:[%s7804_s30 + $0x210] sm:$0xff] }
  0x5a   : > { %2366 = vmatpush1.bf16.msra.mxu1 %v7459_v22  ;;  %v536_v22 = vld [vmem:[%s7804_s30 + $0x810] sm:$0xff] }
  0x5b   : > { %2367 = vmatprep.subr.bf16.mxu1 %v7464_v23  ;;  %2719 = vmatpush1.bf16.msra.mxu0 %v7489_v24  ;;  %v7518_v23 = vld [vmem:[%s12707_s1 + $0x5c4] ss:$16 sps:$4 sm:$0xff]   ;;  %v351_v24 = vld [vmem:[%s7804_s30 + $0x248] sm:$0xff] }
  0x5c   : > { %2059 = vmatmul.mubr.bf16.gmra.mxu0 %v7978_v25  ;;  %2219 = vmatmul.mubr.bf16.gmra.mxu1 %v7980_v26  ;;  %v364_v26 = vld [vmem:[%s7804_s30 + $0x2b0] sm:$0xff] }
  0x5d   : > { %2068 = vmatprep.mubr.bf16.mxu0 %v7982_v27  ;;  %2228 = vmatprep.mubr.bf16.mxu1 %v7984_v28 }
  0x5e   : > { %2368 = vmatpush1.bf16.msra.mxu1 %v7462_v29  ;;  %2720 = vmatprep.subr.bf16.mxu0 %v7497_v30  ;;  %v357_v29 = vld [vmem:[%s7804_s30 + $0x278] sm:$0xff]  ;;  %v543_v30 = vld [vmem:[%s7804_s30 + $0x848] sm:$0xff] }
  0x5f   : > { %2369 = vmatprep.subr.bf16.mxu1 %v7467_v35  ;;  %2721 = vmatpush1.bf16.msra.mxu0 %v7495_v36  ;;  %v8110_v35 = vpack.c.bf16 %v344_v18, %v338_v17  ;;  %v8112_v36 = vpack.c.bf16 %v536_v22, %v530_v20  ;;  %v8114_v37 = vpack.c.bf16 %v357_v29, %v351_v24  ;;  %v7521_v17 = vld [vmem:[%s12707_s1 + $0x344] ss:$16 sps:$4 sm:$0xff]   ;;  %v7531_v18 = vld [vmem:[%s12707_s1 + $0x560] ss:$16 sps:$4 sm:$0xff]   ;;  %v567_v24 = vld [vmem:[%s7804_s30 + $0x908] sm:$0xff] }
  0x60   : > { %2722 = vmatprep.subr.bf16.mxu0 %v7500_v40  ;;  %v8116_v38 = vpack.c.bf16 %v549_v31, %v543_v30  ;;  %v7503_v40 = vld [vmem:[%s12707_s1 + $0x384] ss:$16 sps:$4 sm:$0xff]   ;;  %v573_v29 = vld [vmem:[%s7804_s30 + $0x938] sm:$0xff]  ;;  %v7519_v30 = vld [vmem:[%s12707_s1 + $0x340] ss:$16 sps:$4 sm:$0xff]  }
  0x61   : > { %12920 = vst [vmem:[#allocation21_spill] sm:$0xff] %v8110_v35  ;;  %12921 = vst [vmem:[#allocation22_spill] sm:$0xff] %v8112_v36  ;;  %v560_v20 = vld [vmem:[%s7804_s30 + $0x8d0] sm:$0xff] }
  0x62   : > { %2370 = vmatpush1.bf16.msra.mxu1 %v7465_v42  ;;  %12922 = vst [vmem:[#allocation23_spill] sm:$0xff] %v8114_v37  ;;  %12923 = vst [vmem:[#allocation24_spill] sm:$0xff] %v8116_v38  ;;  %v350_v42 = vld [vmem:[%s7804_s30 + $0x240] sm:$0xff] }
  0x63   : > { %2371 = vmatprep.subr.bf16.mxu1 %v7470_v43  ;;  %2723 = vmatpush1.bf16.msra.mxu0 %v7498_v44  ;;  %v356_v43 = vld [vmem:[%s7804_s30 + $0x270] sm:$0xff] }
  0x64   : > { %2069 = vmatmul.mubr.bf16.gmra.mxu0 %v8022_v45  ;;  %2229 = vmatmul.mubr.bf16.gmra.mxu1 %v8024_v46  ;;  %v7522_v44 = vld [vmem:[%s12707_s1 + $0x5a0] ss:$16 sps:$4 sm:$0xff]   ;;  %v7536_v22 = vld [vmem:[%s12707_s1 + $0x544] ss:$16 sps:$4 sm:$0xff]  }
  0x65   : > { %2078 = vmatprep.mubr.bf16.mxu0 %v8026_v47  ;;  %2238 = vmatprep.mubr.bf16.mxu1 %v8028_v50  ;;  %v7530_v31 = vld [vmem:[%s12707_s1 + $0x324] ss:$16 sps:$4 sm:$0xff]  }
  0x66   : > { %2372 = vmatpush1.bf16.msra.mxu1 %v7468_v53  ;;  %2724 = vmatprep.subr.bf16.mxu0 %v7506_v55  ;;  %v542_v53 = vld [vmem:[%s7804_s30 + $0x840] sm:$0xff] }
  0x67   : > { %2373 = vmatprep.subr.bf16.mxu1 %v7473_v54  ;;  %2725 = vmatpush1.bf16.msra.mxu0 %v7504_v60  ;;  %v548_v54 = vld [vmem:[%s7804_s30 + $0x870] sm:$0xff] }
  0x68   : > { %2726 = vmatprep.subr.bf16.mxu0 %v7509_v63  ;;  %v7527_v55 = vld [vmem:[%s12707_s1 + $0x584] ss:$16 sps:$4 sm:$0xff]   ;;  %v7501_v60 = vld [vmem:[%s12707_s1 + $0x380] ss:$16 sps:$4 sm:$0xff]   ;;  %v8154_v63 = vpack.c.bf16 %v356_v43, %v350_v42  ;;  %v8156_v0 = vpack.c.bf16 %v548_v54, %v542_v53 }
  0x69   : > { %v7542_v42 = vld [vmem:[%s12707_s1 + $0x524] ss:$16 sps:$4 sm:$0xff]  }
  0x6a   : > { %2374 = vmatpush1.bf16.msra.mxu1 %v7471_v2  ;;  %12924 = vst [vmem:[#allocation25_spill] sm:$0xff] %v8154_v63  ;;  %12925 = vst [vmem:[#allocation26_spill] sm:$0xff] %v8156_v0  ;;  %v8160_v2 = vpack.c.bf16 %v561_v59, %v555_v58  ;;  %v374_v43 = vld [vmem:[%s7804_s30 + $0x300] sm:$0xff]  ;;  %v387_v58 = vld [vmem:[%s7804_s30 + $0x368] sm:$0xff] }
  0x6b   : > { %2375 = vmatprep.subr.bf16.mxu1 %v7476_v7  ;;  %2727 = vmatpush1.bf16.msra.mxu0 %v7507_v8  ;;  %v7510_v7 = vld [vmem:[%s12707_s1 + $0x360] ss:$16 sps:$4 sm:$0xff]   ;;  %v7533_v8 = vld [vmem:[%s12707_s1 + $0x564] ss:$16 sps:$4 sm:$0xff]   ;;  %v393_v59 = vld [vmem:[%s7804_s30 + $0x398] sm:$0xff] }
  0x6c   : > { %2079 = vmatmul.mubr.bf16.gmra.mxu0 %v8066_v9  ;;  %2239 = vmatmul.mubr.bf16.gmra.mxu1 %v8068_v10  ;;  %12927 = vst [vmem:[#allocation28_spill] sm:$0xff] %v8160_v2  ;;  %v566_v53 = vld [vmem:[%s7804_s30 + $0x900] sm:$0xff]  ;;  %v487_v9 = vld [vmem:[%s7804_s30 + $0x688] sm:$0xff] }
  0x6d   : > { %2088 = vmatprep.mubr.bf16.mxu0 %v8070_v11  ;;  %2248 = vmatprep.mubr.bf16.mxu1 %v8072_v12  ;;  %v7539_v54 = vld [vmem:[%s12707_s1 + $0x304] ss:$16 sps:$4 sm:$0xff]  }
  0x6e   : > { %2376 = vmatpush2.bf16.msra.mxu1 %v7474_v13  ;;  %2728 = vmatprep.subr.bf16.mxu0 %v7515_v16  ;;  %v362_v13 = vld [vmem:[%s7804_s30 + $0x2a0] sm:$0xff] }
  0x6f   : > { %2377 = vmatprep.subr.bf16.mxu1 %v7485_v14  ;;  %2729 = vmatpush2.bf16.msra.mxu0 %v7513_v21  ;;  %v368_v14 = vld [vmem:[%s7804_s30 + $0x2d0] sm:$0xff]  ;;  %v554_v16 = vld [vmem:[%s7804_s30 + $0x8a0] sm:$0xff]  ;;  %v375_v21 = vld [vmem:[%s7804_s30 + $0x308] sm:$0xff] }
  0x70   : > { %2730 = vmatprep.subr.bf16.mxu0 %v7518_v23  ;;  %v381_v23 = vld [vmem:[%s7804_s30 + $0x338] sm:$0xff] }
  0x72   : > { %2378 = vmatpush2.bf16.msra.mxu1 %v7483_v32  ;;  %v7534_v32 = vld [vmem:[%s12707_s1 + $0x540] ss:$16 sps:$4 sm:$0xff]  }
  0x73   : > { %2379 = vmatprep.subr.bf16.mxu1 %v7494_v33  ;;  %2731 = vmatpush2.bf16.msra.mxu0 %v7516_v34  ;;  %v8198_v33 = vpack.c.bf16 %v368_v14, %v362_v13  ;;  %v8200_v34 = vpack.c.bf16 %v560_v20, %v554_v16  ;;  %v8244_v14 = vpack.c.bf16 %v572_v56, %v566_v53  ;;  %v392_v20 = vld [vmem:[%s7804_s30 + $0x390] sm:$0xff]  ;;  %v590_v53 = vld [vmem:[%s7804_s30 + $0x9c0] sm:$0xff]  ;;  %v417_v56 = vld [vmem:[%s7804_s30 + $0x458] sm:$0xff] }
  0x74   : > { %2089 = vmatmul.mubr.bf16.gmra.mxu0 %v8110_v35  ;;  %2249 = vmatmul.mubr.bf16.gmra.mxu1 %v8112_v36  ;;  %v8246_v16 = vpack.c.bf16 %v393_v59, %v387_v58  ;;  %v609_v58 = vld [vmem:[%s7804_s30 + $0xa58] sm:$0xff] }
  0x75   : > { %2098 = vmatprep.mubr.bf16.mxu0 %v8114_v37  ;;  %2258 = vmatprep.mubr.bf16.mxu1 %v8116_v38  ;;  %12928 = vst [vmem:[#allocation29_spill] sm:$0xff] %v8198_v33  ;;  %12929 = vst [vmem:[#allocation30_spill] sm:$0xff] %v8200_v34 }
  0x76   : > { %2380 = vmatpush2.bf16.msra.mxu1 %v7492_v39  ;;  %2732 = vmatprep.subr.bf16.mxu0 %v7524_v41  ;;  %v8202_v39 = vpack.c.bf16 %v381_v23, %v375_v21  ;;  %v7528_v41 = vld [vmem:[%s12707_s1 + $0x320] ss:$16 sps:$4 sm:$0xff]   ;;  %12933 = vst [vmem:[#allocation34_spill] sm:$0xff] %v8244_v14  ;;  %12934 = vst [vmem:[#allocation35_spill] sm:$0xff] %v8246_v16  ;;  %v399_v23 = vld [vmem:[%s7804_s30 + $0x3c8] sm:$0xff] }
  0x77   : > { %2381 = vmatprep.subr.bf16.mxu1 %v7503_v40  ;;  %2733 = vmatpush2.bf16.msra.mxu0 %v7522_v44  ;;  %v8204_v40 = vpack.c.bf16 %v573_v29, %v567_v24  ;;  %v380_v44 = vld [vmem:[%s7804_s30 + $0x330] sm:$0xff]  ;;  %v578_v21 = vld [vmem:[%s7804_s30 + $0x960] sm:$0xff]  ;;  %v405_v24 = vld [vmem:[%s7804_s30 + $0x3f8] sm:$0xff] }
  0x78   : > { %2734 = vmatprep.subr.bf16.mxu0 %v7527_v55  ;;  %12930 = vst [vmem:[#allocation31_spill] sm:$0xff] %v8202_v39  ;;  %v7540_v55 = vld [vmem:[%s12707_s1 + $0x520] ss:$16 sps:$4 sm:$0xff]   ;;  %v8242_v13 = vpack.c.bf16 %v380_v44, %v374_v43  ;;  %v591_v29 = vld [vmem:[%s7804_s30 + $0x9c8] sm:$0xff] }
  0x79   : > { %12931 = vst [vmem:[#allocation32_spill] sm:$0xff] %v8204_v40  ;;  %v398_v43 = vld [vmem:[%s7804_s30 + $0x3c0] sm:$0xff]  ;;  %v404_v44 = vld [vmem:[%s7804_s30 + $0x3f0] sm:$0xff] }
  0x7a   : > { %2382 = vmatpush2.bf16.msra.mxu1 %v7501_v60  ;;  %v579_v60 = vld [vmem:[%s7804_s30 + $0x968] sm:$0xff]  ;;  %12932 = vst [vmem:[#allocation33_spill] sm:$0xff] %v8242_v13  ;;  %v8282_v59 = vpack.c.bf16 %v404_v44, %v398_v43 }
  0x7b   : > { %2383 = vmatprep.subr.bf16.mxu1 %v7512_v61  ;;  %2735 = vmatpush2.bf16.msra.mxu0 %v7525_v62  ;;  %v585_v61 = vld [vmem:[%s7804_s30 + $0x998] sm:$0xff]  ;;  %v7537_v62 = vld [vmem:[%s12707_s1 + $0x300] ss:$16 sps:$4 sm:$0xff]  }
  0x7c   : > { %2099 = vmatmul.mubr.bf16.gmra.mxu0 %v8154_v63  ;;  %2259 = vmatmul.mubr.bf16.gmra.mxu1 %v8156_v0  ;;  %12940 = vst [vmem:[#allocation41_spill] sm:$0xff] %v8282_v59  ;;  %v300_v0 = vld [vmem:[%s7804_s30 + $0xb0] sm:$0xff]  ;;  %v463_v63 = vld [vmem:[%s7804_s30 + $0x5c8] sm:$0xff] }
  0x7d   : > { %2108 = vmatprep.mubr.bf16.mxu0 %v8158_v1  ;;  %2268 = vmatprep.mubr.bf16.mxu1 %v8160_v2  ;;  %v294_v2 = vld [vmem:[%s7804_s30 + $0x80] sm:$0xff] }
  0x7e   : > { %2384 = vmatpush2.bf16.msra.mxu1 %v7510_v7  ;;  %2736 = vmatprep.subr.bf16.mxu0 %v7533_v8  ;;  %v7543_v7 = vld [vmem:[%s12707_s1 + $0x500] ss:$16 sps:$4 sm:$0xff]   ;;  %v7548_v8 = vld [vmem:[%s12707_s1 + $0xec] ss:$16 sps:$4 sm:$0xff]  }
  0x7f   : > { %2385 = vmatprep.subr.bf16.mxu1 %v7521_v17  ;;  %2737 = vmatpush2.bf16.msra.mxu0 %v7531_v18  ;;  %v8248_v17 = vpack.c.bf16 %v585_v61, %v579_v60  ;;  %v386_v18 = vld [vmem:[%s7804_s30 + $0x360] sm:$0xff] }
  0x80   : > { %2738 = vmatprep.subr.bf16.mxu0 %v7536_v22  ;;  %v584_v22 = vld [vmem:[%s7804_s30 + $0x990] sm:$0xff] }
  0x81   : > { %12935 = vst [vmem:[#allocation36_spill] sm:$0xff] %v8248_v17 }
  0x82   : > { %2386 = vmatpush2.bf16.msra.mxu1 %v7519_v30  ;;  %v597_v30 = vld [vmem:[%s7804_s30 + $0x9f8] sm:$0xff] }
  0x83   : > { %2387 = vmatprep.subr.bf16.mxu1 %v7530_v31  ;;  %2739 = vmatpush2.bf16.msra.mxu0 %v7534_v32  ;;  %v8262_v31 = vpack.c.bf16 %v392_v20, %v386_v18  ;;  %v8264_v32 = vpack.c.bf16 %v584_v22, %v578_v21  ;;  %v602_v18 = vld [vmem:[%s7804_s30 + $0xa20] sm:$0xff]  ;;  %v608_v20 = vld [vmem:[%s7804_s30 + $0xa50] sm:$0xff]  ;;  %v423_v21 = vld [vmem:[%s7804_s30 + $0x488] sm:$0xff] }
  0x84   : > { %2109 = vmatmul.mubr.bf16.gmra.mxu0 %v8198_v33  ;;  %2269 = vmatmul.mubr.bf16.gmra.mxu1 %v8200_v34  ;;  %v429_v22 = vld [vmem:[%s7804_s30 + $0x4b8] sm:$0xff]  ;;  %v298_v34 = vld [vmem:[%s7804_s30 + $0xa0] sm:$0xff] }
  0x85   : > { %2118 = vmatprep.mubr.bf16.mxu0 %v8202_v39  ;;  %2278 = vmatprep.mubr.bf16.mxu1 %v8204_v40  ;;  %12936 = vst [vmem:[#allocation37_spill] sm:$0xff] %v8262_v31  ;;  %12937 = vst [vmem:[#allocation38_spill] sm:$0xff] %v8264_v32  ;;  %v8306_v43 = vpack.c.bf16 %v429_v22, %v423_v21  ;;  %v288_v40 = vld [vmem:[%s7804_s30 + $0x50] sm:$0xff] }
  0x86   : > { %2388 = vmatpush2.bf16.msra.mxu1 %v7528_v41  ;;  %2740 = vmatprep.subr.bf16.mxu0 %v7542_v42  ;;  %v8266_v41 = vpack.c.bf16 %v405_v24, %v399_v23  ;;  %v8268_v42 = vpack.c.bf16 %v597_v30, %v591_v29  ;;  %v615_v23 = vld [vmem:[%s7804_s30 + $0xa88] sm:$0xff]  ;;  %v621_v24 = vld [vmem:[%s7804_s30 + $0xab8] sm:$0xff]  ;;  %v8304_v30 = vpack.c.bf16 %v608_v20, %v602_v18 }
  0x87   : > { %2389 = vmatprep.subr.bf16.mxu1 %v7539_v54  ;;  %2741 = vmatpush2.bf16.msra.mxu0 %v7540_v55  ;;  %v596_v54 = vld [vmem:[%s7804_s30 + $0x9f0] sm:$0xff]  ;;  %v411_v55 = vld [vmem:[%s7804_s30 + $0x428] sm:$0xff]  ;;  %12946 = vst [vmem:[#allocation47_spill] sm:$0xff] %v8306_v43  ;;  %v8308_v44 = vpack.c.bf16 %v621_v24, %v615_v23  ;;  %v434_v23 = vld [vmem:[%s7804_s30 + $0x4e0] sm:$0xff] }
  0x88   : > { %2742 = vmatprep.subr.bf16.mxu0 %v7545_v57  ;;  %12938 = vst [vmem:[#allocation39_spill] sm:$0xff] %v8266_v41  ;;  %12939 = vst [vmem:[#allocation40_spill] sm:$0xff] %v8268_v42  ;;  %v603_v57 = vld [vmem:[%s7804_s30 + $0xa28] sm:$0xff]  ;;  %v8284_v60 = vpack.c.bf16 %v596_v54, %v590_v53  ;;  %v8286_v61 = vpack.c.bf16 %v417_v56, %v411_v55  ;;  %v422_v53 = vld [vmem:[%s7804_s30 + $0x480] sm:$0xff] }
  0x89   : > { %12945 = vst [vmem:[#allocation46_spill] sm:$0xff] %v8304_v30  ;;  %12947 = vst [vmem:[#allocation48_spill] sm:$0xff] %v8308_v44  ;;  %v428_v54 = vld [vmem:[%s7804_s30 + $0x4b0] sm:$0xff]  ;;  %v614_v55 = vld [vmem:[%s7804_s30 + $0xa80] sm:$0xff] }
  0x8a   : > { %2390 = vmatpush2.bf16.msra.mxu1 %v7537_v62  ;;  %12941 = vst [vmem:[#allocation42_spill] sm:$0xff] %v8284_v60  ;;  %12942 = vst [vmem:[#allocation43_spill] sm:$0xff] %v8286_v61  ;;  %v8288_v62 = vpack.c.bf16 %v609_v58, %v603_v57  ;;  %v620_v56 = vld [vmem:[%s7804_s30 + $0xab0] sm:$0xff]  ;;  %v435_v57 = vld [vmem:[%s7804_s30 + $0x4e8] sm:$0xff]  ;;  %v8322_v18 = vpack.c.bf16 %v428_v54, %v422_v53 }
  0x8b   : > { %2743 = vmatpush2.bf16.msra.mxu0 %v7543_v7  ;;  %3065 = vmatprep.subr.bf16.mxu1 %v7548_v8  ;;  %v410_v7 = vld [vmem:[%s7804_s30 + $0x420] sm:$0xff]  ;;  %v416_v8 = vld [vmem:[%s7804_s30 + $0x450] sm:$0xff]  ;;  %v441_v58 = vld [vmem:[%s7804_s30 + $0x518] sm:$0xff]  ;;  %v8324_v20 = vpack.c.bf16 %v620_v56, %v614_v55 }
  0x8c   : > { %2119 = vmatmul.mubr.bf16.gmra.mxu0 %v8242_v13  ;;  %2279 = vmatmul.mubr.bf16.gmra.mxu1 %v8244_v14  ;;  %12943 = vst [vmem:[#allocation44_spill] sm:$0xff] %v8288_v62  ;;  %v8302_v29 = vpack.c.bf16 %v416_v8, %v410_v7  ;;  %v627_v7 = vld [vmem:[%s7804_s30 + $0xae8] sm:$0xff]  ;;  %v633_v8 = vld [vmem:[%s7804_s30 + $0xb18] sm:$0xff]  ;;  %12948 = vst [vmem:[#allocation49_spill] sm:$0xff] %v8322_v18  ;;  %v8326_v21 = vpack.c.bf16 %v441_v58, %v435_v57 }
  0x8d   : > { %2128 = vmatprep.mubr.bf16.mxu0 %v8246_v16  ;;  %2288 = vmatprep.mubr.bf16.mxu1 %v8248_v17  ;;  %12949 = vst [vmem:[#allocation50_spill] sm:$0xff] %v8324_v20  ;;  %v8328_v22 = vpack.c.bf16 %v633_v8, %v627_v7  ;;  %v440_v24 = vld [vmem:[%s7804_s30 + $0x510] sm:$0xff]  ;;  %v447_v53 = vld [vmem:[%s7804_s30 + $0x548] sm:$0xff]  ;;  %v453_v54 = vld [vmem:[%s7804_s30 + $0x578] sm:$0xff] }
  0x8e   : > { %12944 = vst [vmem:[#allocation45_spill] sm:$0xff] %v8302_v29  ;;  %12950 = vst [vmem:[#allocation51_spill] sm:$0xff] %v8326_v21  ;;  %v639_v55 = vld [vmem:[%s7804_s30 + $0xb48] sm:$0xff]  ;;  %v645_v56 = vld [vmem:[%s7804_s30 + $0xb78] sm:$0xff]  ;;  %v8342_v57 = vpack.c.bf16 %v440_v24, %v434_v23  ;;  %v8346_v7 = vpack.c.bf16 %v453_v54, %v447_v53 }
  0x8f   : > { %12951 = vst [vmem:[#allocation52_spill] sm:$0xff] %v8328_v22  ;;  %v8348_v8 = vpack.c.bf16 %v645_v56, %v639_v55  ;;  %v459_v23 = vld [vmem:[%s7804_s30 + $0x5a8] sm:$0xff]  ;;  %v657_v24 = vld [vmem:[%s7804_s30 + $0xbd8] sm:$0xff]  ;;  %v656_v17 = vld [vmem:[%s7804_s30 + $0xbd0] sm:$0xff] }
  0x90   : > { %12952 = vst [vmem:[#allocation53_spill] sm:$0xff] %v8342_v57  ;;  %12954 = vst [vmem:[#allocation55_spill] sm:$0xff] %v8346_v7  ;;  %v282_v14 = vld [vmem:[%s7804_s30 + $0x20] sm:$0xff]  ;;  %v439_v13 = vld [vmem:[%s7804_s30 + $0x508] sm:$0xff] }
  0x91   : > { %12955 = vst [vmem:[#allocation56_spill] sm:$0xff] %v8348_v8 }
  0x94   : > { %2129 = vmatmul.mubr.bf16.gmra.mxu0 %v8262_v31  ;;  %2289 = vmatmul.mubr.bf16.gmra.mxu1 %v8264_v32  ;;  %v650_v32 = vld [vmem:[%s7804_s30 + $0xba0] sm:$0xff] }
  0x95   : > { %2138 = vmatprep.mubr.bf16.mxu0 %v8266_v41  ;;  %2298 = vmatprep.mubr.bf16.mxu1 %v8268_v42  ;;  %v644_v42 = vld [vmem:[%s7804_s30 + $0xb70] sm:$0xff] }
  0x9c   : > { %2139 = vmatmul.mubr.bf16.gmra.mxu0 %v8282_v59  ;;  %2299 = vmatmul.mubr.bf16.gmra.mxu1 %v8284_v60  ;;  %v638_v60 = vld [vmem:[%s7804_s30 + $0xb40] sm:$0xff]  ;;  %v419_v59 = vld [vmem:[%s7804_s30 + $0x468] sm:$0xff] }
  0x9d   : > { %2148 = vmatprep.mubr.bf16.mxu0 %v8286_v61  ;;  %2308 = vmatprep.mubr.bf16.mxu1 %v8288_v62  ;;  %v632_v62 = vld [vmem:[%s7804_s30 + $0xb10] sm:$0xff]  ;;  %v8364_v54 = vpack.c.bf16 %v644_v42, %v638_v60  ;;  %v287_v42 = vld [vmem:[%s7804_s30 + $0x48] sm:$0xff]  ;;  %v413_v61 = vld [vmem:[%s7804_s30 + $0x438] sm:$0xff] }
  0x9e   : > { %v283_v60 = vld [vmem:[%s7804_s30 + $0x28] sm:$0xff] }
  0x9f   : > { %12957 = vst [vmem:[#allocation58_spill] sm:$0xff] %v8364_v54 }
  0xa4   : > { %2149 = vmatmul.mubr.bf16.gmra.mxu0 %v8302_v29  ;;  %2309 = vmatmul.mubr.bf16.gmra.mxu1 %v8304_v30  ;;  %v626_v30 = vld [vmem:[%s7804_s30 + $0xae0] sm:$0xff] }
  0xa5   : > { %2158 = vmatprep.mubr.bf16.mxu0 %v8306_v43  ;;  %2318 = vmatprep.mubr.bf16.mxu1 %v8308_v44  ;;  %v8344_v58 = vpack.c.bf16 %v632_v62, %v626_v30  ;;  %v452_v44 = vld [vmem:[%s7804_s30 + $0x570] sm:$0xff]  ;;  %v465_v62 = vld [vmem:[%s7804_s30 + $0x5d8] sm:$0xff]  ;;  %v651_v30 = vld [vmem:[%s7804_s30 + $0xba8] sm:$0xff] }
  0xa6   : > { %v8366_v55 = vpack.c.bf16 %v465_v62, %v459_v23  ;;  %v8368_v56 = vpack.c.bf16 %v657_v24, %v651_v30  ;;  %v8384_v62 = vpack.c.bf16 %v656_v17, %v650_v32  ;;  %v295_v17 = vld [vmem:[%s7804_s30 + $0x88] sm:$0xff]  ;;  %v301_v32 = vld [vmem:[%s7804_s30 + $0xb8] sm:$0xff] }
  0xa7   : > { %12953 = vst [vmem:[#allocation54_spill] sm:$0xff] %v8344_v58 }
  0xa8   : > { %12958 = vst [vmem:[#allocation59_spill] sm:$0xff] %v8366_v55  ;;  %12959 = vst [vmem:[#allocation60_spill] sm:$0xff] %v8368_v56 }
  0xa9   : > { %12961 = vst [vmem:[#allocation62_spill] sm:$0xff] %v8384_v62 }
  0xac   : > { %2159 = vmatmul.mubr.bf16.gmra.mxu0 %v8322_v18  ;;  %2319 = vmatmul.mubr.bf16.gmra.mxu1 %v8324_v20  ;;  %v446_v20 = vld [vmem:[%s7804_s30 + $0x540] sm:$0xff] }
  0xad   : > { %2168 = vmatprep.mubr.bf16.mxu0 %v8326_v21  ;;  %2328 = vmatprep.mubr.bf16.mxu1 %v8328_v22  ;;  %v8362_v53 = vpack.c.bf16 %v452_v44, %v446_v20  ;;  %v464_v22 = vld [vmem:[%s7804_s30 + $0x5d0] sm:$0xff]  ;;  %v281_v44 = vld [vmem:[%s7804_s30 + $0x18] sm:$0xff] }
  0xae   : > { %v289_v20 = vld [vmem:[%s7804_s30 + $0x58] sm:$0xff]  ;;  %v8386_v30 = vpack.c.bf16 %v287_v42, %v281_v44  ;;  %v8404_v42 = vpack.c.bf16 %v288_v40, %v282_v14  ;;  %v311_v14 = vld [vmem:[%s7804_s30 + $0x108] sm:$0xff] }
  0xaf   : > { %12956 = vst [vmem:[#allocation57_spill] sm:$0xff] %v8362_v53  ;;  %v8388_v24 = vpack.c.bf16 %v289_v20, %v283_v60  ;;  %v7546_v60 = vld [vmem:[%s12707_s1 + $0xe8] ss:$16 sps:$4 sm:$0xff]  }
  0xb0   : > { %12963 = vst [vmem:[#allocation64_spill] sm:$0xff] %v8404_v42  ;;  %v305_v40 = vld [vmem:[%s7804_s30 + $0xd8] sm:$0xff] }
  0xb1   : > { %12962 = vst [vmem:[#allocation63_spill] sm:$0xff] %v8388_v24 }
  0xb4   : > { %2169 = vmatmul.mubr.bf16.gmra.mxu0 %v8342_v57  ;;  %2329 = vmatmul.mubr.bf16.gmra.mxu1 %v8344_v58  ;;  %v458_v58 = vld [vmem:[%s7804_s30 + $0x5a0] sm:$0xff] }
  0xb5   : > { %2178 = vmatprep.mubr.bf16.mxu0 %v8346_v7  ;;  %2338 = vmatprep.mubr.bf16.mxu1 %v8348_v8  ;;  %v8382_v23 = vpack.c.bf16 %v464_v22, %v458_v58  ;;  %v286_v8 = vld [vmem:[%s7804_s30 + $0x40] sm:$0xff]  ;;  %v293_v22 = vld [vmem:[%s7804_s30 + $0x78] sm:$0xff]  ;;  %v299_v58 = vld [vmem:[%s7804_s30 + $0xa8] sm:$0xff] }
  0xb6   : > { %v8409_v20 = vpack.c.bf16 %v299_v58, %v293_v22  ;;  %v7549_v22 = vld [vmem:[%s12707_s1 + $0xc8] ss:$16 sps:$4 sm:$0xff]   ;;  %v7554_v58 = vld [vmem:[%s12707_s1 + $0xac] ss:$16 sps:$4 sm:$0xff]  }
  0xb7   : > { %12960 = vst [vmem:[#allocation61_spill] sm:$0xff] %v8382_v23  ;;  %v7588_v7 = vld [vmem:[%s12707_s1 + $0x2c8] ss:$16 sps:$4 sm:$0xff]  }
  0xbc   : > { %2179 = vmatmul.mubr.bf16.gmra.mxu0 %v8362_v53  ;;  %2339 = vmatmul.mubr.bf16.gmra.mxu1 %v8364_v54  ;;  %v280_v54 = vld [vmem:[%s7804_s30 + $0x10] sm:$0xff]  ;;  %v409_v53 = vld [vmem:[%s7804_s30 + $0x418] sm:$0xff] }
  0xbd   : > { %2188 = vmatprep.mubr.bf16.mxu0 %v8366_v55  ;;  %2348 = vmatprep.mubr.bf16.mxu1 %v8368_v56  ;;  %v8402_v44 = vpack.c.bf16 %v286_v8, %v280_v54  ;;  %v292_v56 = vld [vmem:[%s7804_s30 + $0x70] sm:$0xff]  ;;  %v307_v8 = vld [vmem:[%s7804_s30 + $0xe8] sm:$0xff]  ;;  %v313_v54 = vld [vmem:[%s7804_s30 + $0x118] sm:$0xff] }
  0xbe   : > { %v8440_v38 = vpack.c.bf16 %v313_v54, %v307_v8  ;;  %v319_v8 = vld [vmem:[%s7804_s30 + $0x148] sm:$0xff]  ;;  %v325_v54 = vld [vmem:[%s7804_s30 + $0x178] sm:$0xff] }
  0xbf   : > { %v403_v55 = vld [vmem:[%s7804_s30 + $0x3e8] sm:$0xff] }
  0xc0   : > { %12968 = vst [vmem:[#allocation69_spill] sm:$0xff] %v8440_v38  ;;  %v8681_v43 = vpack.c.bf16 %v409_v53, %v403_v55  ;;  %v7584_v53 = vld [vmem:[%s12707_s1 + $0x16c] ss:$16 sps:$4 sm:$0xff]   ;;  %v7591_v55 = vld [vmem:[%s12707_s1 + $0x2a8] ss:$16 sps:$4 sm:$0xff]  }
  0xc2   : > { %13003 = vst [vmem:[#allocation104_spill] sm:$0xff] %v8681_v43 }
  0xc4   : > { %2189 = vmatmul.mubr.bf16.gmra.mxu0 %v8382_v23  ;;  %2349 = vmatmul.mubr.bf16.gmra.mxu1 %v8384_v62  ;;  %v8411_v62 = vpack.c.bf16 %v301_v32, %v295_v17  ;;  %v8434_v17 = vpack.c.bf16 %v298_v34, %v292_v56  ;;  %v8436_v32 = vpack.c.bf16 %v300_v0, %v294_v2  ;;  %v7557_v34 = vld [vmem:[%s12707_s1 + $0x8c] ss:$16 sps:$4 sm:$0xff]   ;;  %v304_v56 = vld [vmem:[%s7804_s30 + $0xd0] sm:$0xff]  ;;  %v310_v0 = vld [vmem:[%s7804_s30 + $0x100] sm:$0xff] }
  0xc5   : > { %2391 = vmatprep.mubr.bf16.mxu1 %v8386_v30  ;;  %2744 = vmatprep.mubr.bf16.mxu0 %v8388_v24  ;;  %v7551_v24 = vld [vmem:[%s12707_s1 + $0xcc] ss:$16 sps:$4 sm:$0xff]   ;;  %v306_v2 = vld [vmem:[%s7804_s30 + $0xe0] sm:$0xff] }
  0xc6   : > { %12964 = vst [vmem:[#allocation65_spill] sm:$0xff] %v8411_v62  ;;  %12965 = vst [vmem:[#allocation66_spill] sm:$0xff] %v8434_v17 }
  0xc7   : > { %12966 = vst [vmem:[#allocation67_spill] sm:$0xff] %v8436_v32 }
  0xcc   : > { %2392 = vmatmul.mubr.bf16.vlgmr.msra.gmra.mxu1 %v8402_v44  ;;  %2745 = vmatmul.mubr.bf16.vlgmr.msra.gmra.mxu0 %v8404_v42  ;;  %v8438_v42 = vpack.c.bf16 %v311_v14, %v305_v40  ;;  %v317_v40 = vld [vmem:[%s7804_s30 + $0x138] sm:$0xff]  ;;  %v323_v14 = vld [vmem:[%s7804_s30 + $0x168] sm:$0xff] }
  0xcd   : > { %3066 = vmatpush1.bf16.msra.mxu1 %v7546_v60  ;;  %2401 = vmatprep.mubr.bf16.mxu1 %v8409_v20  ;;  %v7552_v60 = vld [vmem:[%s12707_s1 + $0xa8] ss:$16 sps:$4 sm:$0xff]  }
  0xce   : > { %2754 = vmatprep.mubr.bf16.mxu0 %v8411_v62  ;;  %3067 = vmatprep.subr.bf16.mxu1 %v7551_v24  ;;  %12967 = vst [vmem:[#allocation68_spill] sm:$0xff] %v8438_v42  ;;  %v312_v24 = vld [vmem:[%s7804_s30 + $0x110] sm:$0xff]  ;;  %v8470_v62 = vpack.c.bf16 %v323_v14, %v317_v40  ;;  %v329_v14 = vld [vmem:[%s7804_s30 + $0x198] sm:$0xff] }
  0xcf   : > { %v324_v40 = vld [vmem:[%s7804_s30 + $0x170] sm:$0xff] }
  0xd0   : > { %12971 = vst [vmem:[#allocation72_spill] sm:$0xff] %v8470_v62 }
  0xd1   : > { %3068 = vmatpush1.bf16.msra.mxu1 %v7549_v22  ;;  %v7555_v22 = vld [vmem:[%s12707_s1 + $0x88] ss:$16 sps:$4 sm:$0xff]  }
  0xd2   : > { %3069 = vmatprep.subr.bf16.mxu1 %v7554_v58  ;;  %v7560_v58 = vld [vmem:[%s12707_s1 + $0x6c] ss:$16 sps:$4 sm:$0xff]  }
  0xd4   : > { %2402 = vmatmul.mubr.bf16.gmra.mxu1 %v8434_v17  ;;  %2755 = vmatmul.mubr.bf16.gmra.mxu0 %v8436_v32  ;;  %v8466_v32 = vpack.c.bf16 %v310_v0, %v304_v56  ;;  %v7563_v56 = vld [vmem:[%s12707_s1 + $0x4c] ss:$16 sps:$4 sm:$0xff]   ;;  %v316_v0 = vld [vmem:[%s7804_s30 + $0x130] sm:$0xff] }
  0xd5   : > { %2411 = vmatprep.mubr.bf16.mxu1 %v8438_v42  ;;  %2764 = vmatprep.mubr.bf16.mxu0 %v8440_v38  ;;  %v8468_v38 = vpack.c.bf16 %v312_v24, %v306_v2  ;;  %v322_v2 = vld [vmem:[%s7804_s30 + $0x160] sm:$0xff] }
  0xd6   : > { %3070 = vmatpush1.bf16.msra.mxu1 %v7552_v60  ;;  %12969 = vst [vmem:[#allocation70_spill] sm:$0xff] %v8466_v32  ;;  %v8472_v60 = vpack.c.bf16 %v325_v54, %v319_v8  ;;  %v318_v24 = vld [vmem:[%s7804_s30 + $0x140] sm:$0xff]  ;;  %v335_v8 = vld [vmem:[%s7804_s30 + $0x1c8] sm:$0xff] }
  0xd7   : > { %3071 = vmatprep.subr.bf16.mxu1 %v7557_v34  ;;  %12970 = vst [vmem:[#allocation71_spill] sm:$0xff] %v8468_v38  ;;  %v7558_v34 = vld [vmem:[%s12707_s1 + $0x68] ss:$16 sps:$4 sm:$0xff]   ;;  %v8500_v36 = vpack.c.bf16 %v324_v40, %v318_v24  ;;  %v8502_v12 = vpack.c.bf16 %v335_v8, %v329_v14  ;;  %v334_v24 = vld [vmem:[%s7804_s30 + $0x1c0] sm:$0xff]  ;;  %v336_v14 = vld [vmem:[%s7804_s30 + $0x1d0] sm:$0xff] }
  0xd8   : > { %12972 = vst [vmem:[#allocation73_spill] sm:$0xff] %v8472_v60  ;;  %v331_v54 = vld [vmem:[%s7804_s30 + $0x1a8] sm:$0xff]  ;;  %v330_v40 = vld [vmem:[%s7804_s30 + $0x1a0] sm:$0xff]  ;;  %v341_v8 = vld [vmem:[%s7804_s30 + $0x1f8] sm:$0xff] }
  0xd9   : > { %12974 = vst [vmem:[#allocation75_spill] sm:$0xff] %v8500_v36  ;;  %12975 = vst [vmem:[#allocation76_spill] sm:$0xff] %v8502_v12  ;;  %v8532_v10 = vpack.c.bf16 %v336_v14, %v330_v40  ;;  %v346_v40 = vld [vmem:[%s7804_s30 + $0x220] sm:$0xff] }
  0xda   : > { %3072 = vmatpush1.bf16.msra.mxu1 %v7555_v22  ;;  %v337_v22 = vld [vmem:[%s7804_s30 + $0x1d8] sm:$0xff]  ;;  %v342_v14 = vld [vmem:[%s7804_s30 + $0x200] sm:$0xff] }
  0xdb   : > { %3073 = vmatprep.subr.bf16.mxu1 %v7560_v58  ;;  %v7561_v58 = vld [vmem:[%s12707_s1 + $0x48] ss:$16 sps:$4 sm:$0xff]   ;;  %12978 = vst [vmem:[#allocation79_spill] sm:$0xff] %v8532_v10 }
  0xdc   : > { %2412 = vmatmul.mubr.bf16.gmra.mxu1 %v8466_v32  ;;  %2765 = vmatmul.mubr.bf16.gmra.mxu0 %v8468_v38  ;;  %v7566_v38 = vld [vmem:[%s12707_s1 + $0x2c] ss:$16 sps:$4 sm:$0xff]  }
  0xdd   : > { %2421 = vmatprep.mubr.bf16.mxu1 %v8470_v62  ;;  %2774 = vmatprep.mubr.bf16.mxu0 %v8472_v60  ;;  %v8498_v60 = vpack.c.bf16 %v322_v2, %v316_v0  ;;  %v7569_v0 = vld [vmem:[%s12707_s1 + $0xc] ss:$16 sps:$4 sm:$0xff]   ;;  %v328_v2 = vld [vmem:[%s7804_s30 + $0x190] sm:$0xff] }
  0xde   : > { %3074 = vmatpush1.bf16.msra.mxu1 %v7558_v34  ;;  %v8504_v34 = vpack.c.bf16 %v337_v22, %v331_v54  ;;  %v347_v54 = vld [vmem:[%s7804_s30 + $0x228] sm:$0xff] }
  0xdf   : > { %3075 = vmatprep.subr.bf16.mxu1 %v7563_v56  ;;  %12973 = vst [vmem:[#allocation74_spill] sm:$0xff] %v8498_v60  ;;  %v7564_v56 = vld [vmem:[%s12707_s1 + $0x28] ss:$16 sps:$4 sm:$0xff]   ;;  %v8534_v50 = vpack.c.bf16 %v347_v54, %v341_v8  ;;  %v348_v8 = vld [vmem:[%s7804_s30 + $0x230] sm:$0xff] }
  0xe0   : > { %12976 = vst [vmem:[#allocation77_spill] sm:$0xff] %v8504_v34  ;;  %v343_v22 = vld [vmem:[%s7804_s30 + $0x208] sm:$0xff]  ;;  %v353_v54 = vld [vmem:[%s7804_s30 + $0x258] sm:$0xff]  ;;  %v8564_v46 = vpack.c.bf16 %v348_v8, %v342_v14  ;;  %v354_v14 = vld [vmem:[%s7804_s30 + $0x260] sm:$0xff] }
  0xe1   : > { %12979 = vst [vmem:[#allocation80_spill] sm:$0xff] %v8534_v50  ;;  %v360_v8 = vld [vmem:[%s7804_s30 + $0x290] sm:$0xff] }
  0xe2   : > { %3076 = vmatpush1.bf16.msra.mxu1 %v7561_v58  ;;  %v7567_v58 = vld [vmem:[%s12707_s1 + $0x8] ss:$16 sps:$4 sm:$0xff]   ;;  %12982 = vst [vmem:[#allocation83_spill] sm:$0xff] %v8564_v46 }
  0xe3   : > { %3077 = vmatprep.subr.bf16.mxu1 %v7566_v38  ;;  %v349_v38 = vld [vmem:[%s7804_s30 + $0x238] sm:$0xff] }
  0xe4   : > { %2422 = vmatmul.mubr.bf16.gmra.mxu1 %v8498_v60  ;;  %2775 = vmatmul.mubr.bf16.gmra.mxu0 %v8500_v36  ;;  %v7572_v36 = vld [vmem:[%s12707_s1 + $0x1ec] ss:$16 sps:$4 sm:$0xff]  }
  0xe5   : > { %2431 = vmatprep.mubr.bf16.mxu1 %v8502_v12  ;;  %2784 = vmatprep.mubr.bf16.mxu0 %v8504_v34  ;;  %v8530_v34 = vpack.c.bf16 %v334_v24, %v328_v2  ;;  %v7575_v2 = vld [vmem:[%s12707_s1 + $0x1cc] ss:$16 sps:$4 sm:$0xff]   ;;  %v340_v24 = vld [vmem:[%s7804_s30 + $0x1f0] sm:$0xff] }
  0xe6   : > { %3078 = vmatpush1.bf16.msra.mxu1 %v7564_v56  ;;  %v8536_v56 = vpack.c.bf16 %v349_v38, %v343_v22  ;;  %v359_v22 = vld [vmem:[%s7804_s30 + $0x288] sm:$0xff]  ;;  %v361_v38 = vld [vmem:[%s7804_s30 + $0x298] sm:$0xff] }
  0xe7   : > { %3079 = vmatprep.subr.bf16.mxu1 %v7569_v0  ;;  %12977 = vst [vmem:[#allocation78_spill] sm:$0xff] %v8530_v34  ;;  %v7570_v0 = vld [vmem:[%s12707_s1 + $0x1e8] ss:$16 sps:$4 sm:$0xff]   ;;  %v8566_v28 = vpack.c.bf16 %v359_v22, %v353_v54 }
  0xe8   : > { %12980 = vst [vmem:[#allocation81_spill] sm:$0xff] %v8536_v56  ;;  %v365_v54 = vld [vmem:[%s7804_s30 + $0x2b8] sm:$0xff]  ;;  %v371_v22 = vld [vmem:[%s7804_s30 + $0x2e8] sm:$0xff] }
  0xe9   : > { %12983 = vst [vmem:[#allocation84_spill] sm:$0xff] %v8566_v28 }
  0xea   : > { %3080 = vmatpush1.bf16.msra.mxu1 %v7567_v58  ;;  %v7573_v58 = vld [vmem:[%s12707_s1 + $0x1c8] ss:$16 sps:$4 sm:$0xff]  }
  0xeb   : > { %3081 = vmatprep.subr.bf16.mxu1 %v7572_v36  ;;  %v355_v36 = vld [vmem:[%s7804_s30 + $0x268] sm:$0xff] }
  0xec   : > { %2432 = vmatmul.mubr.bf16.gmra.mxu1 %v8530_v34  ;;  %2785 = vmatmul.mubr.bf16.gmra.mxu0 %v8532_v10  ;;  %v7578_v10 = vld [vmem:[%s12707_s1 + $0x1ac] ss:$16 sps:$4 sm:$0xff]  }
  0xed   : > { %2441 = vmatprep.mubr.bf16.mxu1 %v8534_v50  ;;  %2794 = vmatprep.mubr.bf16.mxu0 %v8536_v56  ;;  %v8562_v56 = vpack.c.bf16 %v346_v40, %v340_v24  ;;  %v352_v24 = vld [vmem:[%s7804_s30 + $0x250] sm:$0xff]  ;;  %v358_v40 = vld [vmem:[%s7804_s30 + $0x280] sm:$0xff] }
  0xee   : > { %3082 = vmatpush2.bf16.msra.mxu1 %v7570_v0  ;;  %v8568_v0 = vpack.c.bf16 %v361_v38, %v355_v36  ;;  %v367_v36 = vld [vmem:[%s7804_s30 + $0x2c8] sm:$0xff]  ;;  %v8585_v38 = vpack.c.bf16 %v358_v40, %v352_v24  ;;  %v366_v40 = vld [vmem:[%s7804_s30 + $0x2c0] sm:$0xff] }
  0xef   : > { %3083 = vmatprep.subr.bf16.mxu1 %v7575_v2  ;;  %12981 = vst [vmem:[#allocation82_spill] sm:$0xff] %v8562_v56  ;;  %v7576_v2 = vld [vmem:[%s12707_s1 + $0x1a8] ss:$16 sps:$4 sm:$0xff]   ;;  %v7581_v24 = vld [vmem:[%s12707_s1 + $0x18c] ss:$16 sps:$4 sm:$0xff]  }
  0xf0   : > { %12984 = vst [vmem:[#allocation85_spill] sm:$0xff] %v8568_v0  ;;  %12985 = vst [vmem:[#allocation86_spill] sm:$0xff] %v8585_v38 }
  0xf2   : > { %3084 = vmatpush2.bf16.msra.mxu1 %v7573_v58  ;;  %v8587_v58 = vpack.c.bf16 %v360_v8, %v354_v14  ;;  %v372_v14 = vld [vmem:[%s7804_s30 + $0x2f0] sm:$0xff]  ;;  %v377_v8 = vld [vmem:[%s7804_s30 + $0x318] sm:$0xff] }
  0xf3   : > { %3085 = vmatprep.subr.bf16.mxu1 %v7578_v10  ;;  %v373_v10 = vld [vmem:[%s7804_s30 + $0x2f8] sm:$0xff] }
  0xf4   : > { %2442 = vmatmul.mubr.bf16.gmra.mxu1 %v8562_v56  ;;  %2795 = vmatmul.mubr.bf16.gmra.mxu0 %v8564_v46  ;;  %12986 = vst [vmem:[#allocation87_spill] sm:$0xff] %v8587_v58  ;;  %v8589_v46 = vpack.c.bf16 %v371_v22, %v365_v54  ;;  %v383_v54 = vld [vmem:[%s7804_s30 + $0x348] sm:$0xff] }
  0xf5   : > { %2451 = vmatprep.mubr.bf16.mxu1 %v8566_v28  ;;  %2804 = vmatprep.mubr.bf16.mxu0 %v8568_v0  ;;  %v8591_v0 = vpack.c.bf16 %v373_v10, %v367_v36  ;;  %v379_v22 = vld [vmem:[%s7804_s30 + $0x328] sm:$0xff]  ;;  %v385_v36 = vld [vmem:[%s7804_s30 + $0x358] sm:$0xff]  ;;  %v8611_v10 = vpack.c.bf16 %v370_v6, %v364_v26  ;;  %v384_v6 = vld [vmem:[%s7804_s30 + $0x350] sm:$0xff] }
  0xf6   : > { %3086 = vmatpush2.bf16.msra.mxu1 %v7576_v2  ;;  %12987 = vst [vmem:[#allocation88_spill] sm:$0xff] %v8589_v46  ;;  %v7579_v2 = vld [vmem:[%s12707_s1 + $0x188] ss:$16 sps:$4 sm:$0xff]   ;;  %v8617_v4 = vpack.c.bf16 %v385_v36, %v379_v22 }
  0xf7   : > { %12988 = vst [vmem:[#allocation89_spill] sm:$0xff] %v8591_v0  ;;  %3087 = vmatprep.subr.bf16.mxu1 %v7581_v24  ;;  %12989 = vst [vmem:[#allocation90_spill] sm:$0xff] %v8611_v10  ;;  %v389_v26 = vld [vmem:[%s7804_s30 + $0x378] sm:$0xff]  ;;  %v395_v24 = vld [vmem:[%s7804_s30 + $0x3a8] sm:$0xff] }
  0xf8   : > { %12992 = vst [vmem:[#allocation93_spill] sm:$0xff] %v8617_v4  ;;  %v8635_v22 = vpack.c.bf16 %v395_v24, %v389_v26  ;;  %v390_v26 = vld [vmem:[%s7804_s30 + $0x380] sm:$0xff]  ;;  %v396_v24 = vld [vmem:[%s7804_s30 + $0x3b0] sm:$0xff]  ;;  %v475_v56 = vld [vmem:[%s7804_s30 + $0x628] sm:$0xff] }
  0xf9   : > { %v8677_v18 = vpack.c.bf16 %v396_v24, %v390_v26  ;;  %v400_v24 = vld [vmem:[%s7804_s30 + $0x3d0] sm:$0xff] }
  0xfa   : > { %3088 = vmatpush2.bf16.msra.mxu1 %v7579_v2  ;;  %v378_v2 = vld [vmem:[%s7804_s30 + $0x320] sm:$0xff]  ;;  %12995 = vst [vmem:[#allocation96_spill] sm:$0xff] %v8635_v22 }
  0xfb   : > { %13001 = vst [vmem:[#allocation102_spill] sm:$0xff] %v8677_v18  ;;  %3089 = vmatprep.subr.bf16.mxu1 %v7584_v53  ;;  %v8733_v53 = vpack.c.bf16 %v419_v59, %v413_v61  ;;  %v7600_v59 = vld [vmem:[%s12707_s1 + $0x268] ss:$16 sps:$4 sm:$0xff]  }
  0xfc   : > { %2452 = vmatmul.mubr.bf16.gmra.mxu1 %v8585_v38  ;;  %2805 = vmatmul.mubr.bf16.gmra.mxu0 %v8587_v58  ;;  %v8613_v58 = vpack.c.bf16 %v372_v14, %v366_v40  ;;  %v391_v40 = vld [vmem:[%s7804_s30 + $0x388] sm:$0xff]  ;;  %v397_v14 = vld [vmem:[%s7804_s30 + $0x3b8] sm:$0xff] }
  0xfd   : > { %2461 = vmatprep.mubr.bf16.mxu1 %v8589_v46  ;;  %2814 = vmatprep.mubr.bf16.mxu0 %v8591_v0  ;;  %v8615_v0 = vpack.c.bf16 %v383_v54, %v377_v8  ;;  %v8631_v8 = vpack.c.bf16 %v382_v49, %v376_v52  ;;  %v8633_v54 = vpack.c.bf16 %v384_v6, %v378_v2  ;;  %v388_v2 = vld [vmem:[%s7804_s30 + $0x370] sm:$0xff]  ;;  %v394_v6 = vld [vmem:[%s7804_s30 + $0x3a0] sm:$0xff] }
  0xfe   : > { %12990 = vst [vmem:[#allocation91_spill] sm:$0xff] %v8613_v58  ;;  %v8637_v36 = vpack.c.bf16 %v397_v14, %v391_v40  ;;  %v401_v40 = vld [vmem:[%s7804_s30 + $0x3d8] sm:$0xff]  ;;  %v407_v14 = vld [vmem:[%s7804_s30 + $0x408] sm:$0xff]  ;;  %v8675_v21 = vpack.c.bf16 %v394_v6, %v388_v2  ;;  %13010 = vst [vmem:[#allocation111_spill] sm:$0xff] %v8733_v53 }
  0xff   : > { %12991 = vst [vmem:[#allocation92_spill] sm:$0xff] %v8615_v0  ;;  %12993 = vst [vmem:[#allocation94_spill] sm:$0xff] %v8631_v8  ;;  %v7593_v2 = vld [vmem:[%s12707_s1 + $0x2ac] ss:$16 sps:$4 sm:$0xff]  }
 0x100   : > { %12994 = vst [vmem:[#allocation95_spill] sm:$0xff] %v8633_v54  ;;  %12996 = vst [vmem:[#allocation97_spill] sm:$0xff] %v8637_v36 }
 0x101   : > { %13000 = vst [vmem:[#allocation101_spill] sm:$0xff] %v8675_v21 }
 0x104   : > { %2462 = vmatmul.mubr.bf16.gmra.mxu1 %v8611_v10  ;;  %2815 = vmatmul.mubr.bf16.gmra.mxu0 %v8613_v58  ;;  %v7585_v58 = vld [vmem:[%s12707_s1 + $0x2e8] ss:$16 sps:$4 sm:$0xff]  }
 0x105   : > { %2471 = vmatprep.mubr.bf16.mxu1 %v8615_v0  ;;  %2824 = vmatprep.mubr.bf16.mxu0 %v8617_v4  ;;  %v7587_v4 = vld [vmem:[%s12707_s1 + $0x2ec] ss:$16 sps:$4 sm:$0xff]  }
 0x106   : > { %3418 = vmatprep.subr.bf16.mxu0 %v7587_v4  ;;  %v8679_v4 = vpack.c.bf16 %v407_v14, %v401_v40  ;;  %v406_v40 = vld [vmem:[%s7804_s30 + $0x400] sm:$0xff]  ;;  %v451_v10 = vld [vmem:[%s7804_s30 + $0x568] sm:$0xff] }
 0x107   : > { %3419 = vmatpush1.bf16.msra.mxu0 %v7585_v58  ;;  %v402_v14 = vld [vmem:[%s7804_s30 + $0x3e0] sm:$0xff] }
 0x108   : > { %13002 = vst [vmem:[#allocation103_spill] sm:$0xff] %v8679_v4 }
 0x10c   : > { %v8645_v49 = vpop.f32.mrf.mxu0  ;;  %v8647_v52 = vpop.f32.mrf.mxu1  ;;  %2472 = vmatmul.mubr.bf16.gmra.mxu1 %v8631_v8  ;;  %2825 = vmatmul.mubr.bf16.gmra.mxu0 %v8633_v54  ;;  %v7590_v54 = vld [vmem:[%s12707_s1 + $0x2cc] ss:$16 sps:$4 sm:$0xff]  }
 0x10d   : > { %12997 = vst [vmem:[#allocation98_spill] sm:$0xff] %v8647_v52  ;;  %2481 = vmatprep.mubr.bf16.mxu1 %v8635_v22  ;;  %2834 = vmatprep.mubr.bf16.mxu0 %v8637_v36 }
 0x10e   : > { %v8659_v19 = vpop.f32.mrf.mxu0  ;;  %v8661_v23 = vpop.f32.mrf.mxu1  ;;  %3420 = vmatprep.subr.bf16.mxu0 %v7590_v54  ;;  %v7582_v54 = vld [vmem:[%s12707_s1 + $0x168] ss:$16 sps:$4 sm:$0xff]  }
 0x10f   : > { %12998 = vst [vmem:[#allocation99_spill] sm:$0xff] %v8661_v23  ;;  %3421 = vmatpush1.bf16.msra.mxu0 %v7588_v7  ;;  %v408_v7 = vld [vmem:[%s7804_s30 + $0x410] sm:$0xff]  ;;  %3090 = vmatpush2.bf16.msra.mxu1 %v7582_v54  ;;  %v427_v23 = vld [vmem:[%s7804_s30 + $0x4a8] sm:$0xff] }
 0x110   : > { %v8671_v36 = vpop.f32.mrf.mxu0  ;;  %v8673_v57 = vpop.f32.mrf.mxu1  ;;  %3422 = vmatprep.subr.bf16.mxu0 %v7593_v2  ;;  %v8731_v2 = vpack.c.bf16 %v408_v7, %v402_v14  ;;  %v425_v14 = vld [vmem:[%s7804_s30 + $0x498] sm:$0xff]  ;;  %v431_v7 = vld [vmem:[%s7804_s30 + $0x4c8] sm:$0xff] }
 0x111   : > { %12999 = vst [vmem:[#allocation100_spill] sm:$0xff] %v8673_v57 }
 0x112   : > { %v8683_v58 = vpop.f32.mrf.mxu0  ;;  %v8685_v29 = vpop.f32.mrf.mxu1  ;;  %13009 = vst [vmem:[#allocation110_spill] sm:$0xff] %v8731_v2 }
 0x113   : > { %13004 = vst [vmem:[#allocation105_spill] sm:$0xff] %v8685_v29  ;;  %v415_v29 = vld [vmem:[%s7804_s30 + $0x448] sm:$0xff]  ;;  %3423 = vmatpush1.bf16.msra.mxu0 %v7591_v55 }
 0x114   : > { %v8699_v6 = vpop.f32.mrf.mxu0  ;;  %v8701_v26 = vpop.f32.mrf.mxu1  ;;  %2482 = vmatmul.mubr.bf16.gmra.mxu1 %v8675_v21  ;;  %2835 = vmatmul.mubr.bf16.gmra.mxu0 %v8677_v18  ;;  %v7596_v18 = vld [vmem:[%s12707_s1 + $0x28c] ss:$16 sps:$4 sm:$0xff]  }
 0x115   : > { %13005 = vst [vmem:[#allocation106_spill] sm:$0xff] %v8701_v26  ;;  %2491 = vmatprep.mubr.bf16.mxu1 %v8679_v4  ;;  %2844 = vmatprep.mubr.bf16.mxu0 %v8681_v43  ;;  %v421_v26 = vld [vmem:[%s7804_s30 + $0x478] sm:$0xff] }
 0x116   : > { %v8713_v41 = vpop.f32.mrf.mxu0  ;;  %v8715_v31 = vpop.f32.mrf.mxu1  ;;  %v7594_v43 = vld [vmem:[%s12707_s1 + $0x288] ss:$16 sps:$4 sm:$0xff]   ;;  %3424 = vmatprep.subr.bf16.mxu0 %v7596_v18  ;;  %v8735_v54 = vpack.c.bf16 %v421_v26, %v415_v29  ;;  %v412_v18 = vld [vmem:[%s7804_s30 + $0x430] sm:$0xff]  ;;  %v418_v26 = vld [vmem:[%s7804_s30 + $0x460] sm:$0xff] }
 0x117   : > { %13006 = vst [vmem:[#allocation107_spill] sm:$0xff] %v8715_v31  ;;  %v8729_v31 = vpack.c.bf16 %v406_v40, %v400_v24  ;;  %v7602_v24 = vld [vmem:[%s12707_s1 + $0x26c] ss:$16 sps:$4 sm:$0xff]   ;;  %3425 = vmatpush1.bf16.msra.mxu0 %v7594_v43  ;;  %v414_v40 = vld [vmem:[%s7804_s30 + $0x440] sm:$0xff]  ;;  %v420_v43 = vld [vmem:[%s7804_s30 + $0x470] sm:$0xff]  ;;  %v8777_v22 = vpack.c.bf16 %v418_v26, %v412_v18 }
 0x118   : > { %v8725_v4 = vpop.f32.mrf.mxu0  ;;  %v8727_v21 = vpop.f32.mrf.mxu1  ;;  %13011 = vst [vmem:[#allocation112_spill] sm:$0xff] %v8735_v54  ;;  %3426 = vmatprep.subr.bf16.mxu0 %v7602_v24  ;;  %v8779_v16 = vpack.c.bf16 %v420_v43, %v414_v40  ;;  %v8781_v24 = vpack.c.bf16 %v431_v7, %v425_v14  ;;  %v424_v40 = vld [vmem:[%s7804_s30 + $0x490] sm:$0xff]  ;;  %v426_v43 = vld [vmem:[%s7804_s30 + $0x4a0] sm:$0xff]  ;;  %v437_v7 = vld [vmem:[%s7804_s30 + $0x4f8] sm:$0xff] }
 0x119   : > { %13007 = vst [vmem:[#allocation108_spill] sm:$0xff] %v8727_v21  ;;  %13008 = vst [vmem:[#allocation109_spill] sm:$0xff] %v8729_v31  ;;  %v432_v14 = vld [vmem:[%s7804_s30 + $0x4d0] sm:$0xff] }
 0x11a   : > { %v8737_v55 = vpop.f32.mrf.mxu0  ;;  %v8739_v57 = vpop.f32.mrf.mxu1  ;;  %13016 = vst [vmem:[#allocation117_spill] sm:$0xff] %v8777_v22  ;;  %13017 = vst [vmem:[#allocation118_spill] sm:$0xff] %v8779_v16 }
 0x11b   : > { %13012 = vst [vmem:[#allocation113_spill] sm:$0xff] %v8739_v57  ;;  %3427 = vmatpush1.bf16.msra.mxu0 %v7600_v59  ;;  %13018 = vst [vmem:[#allocation119_spill] sm:$0xff] %v8781_v24  ;;  %v7599_v59 = vld [vmem:[%s12707_s1 + $0x14c] ss:$16 sps:$4 sm:$0xff]  }
 0x11c   : > { %v8747_v61 = vpop.f32.mrf.mxu0  ;;  %v8749_v29 = vpop.f32.mrf.mxu1  ;;  %2492 = vmatmul.mubr.bf16.gmra.mxu1 %v8729_v31  ;;  %2845 = vmatmul.mubr.bf16.gmra.mxu0 %v8731_v2  ;;  %v7605_v2 = vld [vmem:[%s12707_s1 + $0x24c] ss:$16 sps:$4 sm:$0xff]  }
 0x11d   : > { %13013 = vst [vmem:[#allocation114_spill] sm:$0xff] %v8749_v29  ;;  %2501 = vmatprep.mubr.bf16.mxu1 %v8733_v53  ;;  %2854 = vmatprep.mubr.bf16.mxu0 %v8735_v54  ;;  %v433_v29 = vld [vmem:[%s7804_s30 + $0x4d8] sm:$0xff] }
 0x11e   : > { %v8761_v57 = vpop.f32.mrf.mxu0  ;;  %v8763_v21 = vpop.f32.mrf.mxu1  ;;  %v7603_v53 = vld [vmem:[%s12707_s1 + $0x248] ss:$16 sps:$4 sm:$0xff]   ;;  %3428 = vmatprep.subr.bf16.mxu0 %v7605_v2  ;;  %3091 = vmatprep.subr.bf16.mxu1 %v7599_v59 }
 0x11f   : > { %13014 = vst [vmem:[#allocation115_spill] sm:$0xff] %v8763_v21  ;;  %v8783_v21 = vpack.c.bf16 %v433_v29, %v427_v23  ;;  %v7597_v2 = vld [vmem:[%s12707_s1 + $0x148] ss:$16 sps:$4 sm:$0xff]   ;;  %3429 = vmatpush1.bf16.msra.mxu0 %v7603_v53  ;;  %v7608_v29 = vld [vmem:[%s12707_s1 + $0x22c] ss:$16 sps:$4 sm:$0xff]   ;;  %v430_v53 = vld [vmem:[%s7804_s30 + $0x4c0] sm:$0xff] }
 0x120   : > { %v8773_v54 = vpop.f32.mrf.mxu0  ;;  %v8775_v31 = vpop.f32.mrf.mxu1  ;;  %v7606_v23 = vld [vmem:[%s12707_s1 + $0x228] ss:$16 sps:$4 sm:$0xff]   ;;  %3092 = vmatpush2.bf16.msra.mxu1 %v7597_v2  ;;  %3430 = vmatprep.subr.bf16.mxu0 %v7608_v29  ;;  %v8833_v2 = vpack.c.bf16 %v432_v14, %v426_v43  ;;  %v442_v43 = vld [vmem:[%s7804_s30 + $0x520] sm:$0xff] }
 0x121   : > { %13015 = vst [vmem:[#allocation116_spill] sm:$0xff] %v8775_v31  ;;  %13019 = vst [vmem:[#allocation120_spill] sm:$0xff] %v8783_v21  ;;  %v443_v59 = vld [vmem:[%s7804_s30 + $0x528] sm:$0xff]  ;;  %v438_v14 = vld [vmem:[%s7804_s30 + $0x500] sm:$0xff] }
 0x122   : > { %v8788_v52 = vpop.f32.mrf.mxu0  ;;  %v8790_v31 = vpop.f32.mrf.mxu1  ;;  %13025 = vst [vmem:[#allocation126_spill] sm:$0xff] %v8833_v2  ;;  %v8835_v29 = vpack.c.bf16 %v443_v59, %v437_v7  ;;  %v449_v7 = vld [vmem:[%s7804_s30 + $0x558] sm:$0xff]  ;;  %v455_v59 = vld [vmem:[%s7804_s30 + $0x588] sm:$0xff] }
 0x123   : > { %13020 = vst [vmem:[#allocation121_spill] sm:$0xff] %v8790_v31  ;;  %3431 = vmatpush1.bf16.msra.mxu0 %v7606_v23 }
 0x124   : > { %v8801_v18 = vpop.f32.mrf.mxu0  ;;  %v8803_v26 = vpop.f32.mrf.mxu1  ;;  %2502 = vmatmul.mubr.bf16.gmra.mxu1 %v8777_v22  ;;  %2855 = vmatmul.mubr.bf16.gmra.mxu0 %v8779_v16  ;;  %v7611_v16 = vld [vmem:[%s12707_s1 + $0x20c] ss:$16 sps:$4 sm:$0xff]   ;;  %13026 = vst [vmem:[#allocation127_spill] sm:$0xff] %v8835_v29 }
 0x125   : > { %13021 = vst [vmem:[#allocation122_spill] sm:$0xff] %v8803_v26  ;;  %2511 = vmatprep.mubr.bf16.mxu1 %v8781_v24  ;;  %2864 = vmatprep.mubr.bf16.mxu0 %v8783_v21  ;;  %v445_v26 = vld [vmem:[%s7804_s30 + $0x538] sm:$0xff] }
 0x126   : > { %v8815_v31 = vpop.f32.mrf.mxu0  ;;  %v8817_v8 = vpop.f32.mrf.mxu1  ;;  %v7609_v21 = vld [vmem:[%s12707_s1 + $0x208] ss:$16 sps:$4 sm:$0xff]   ;;  %3432 = vmatprep.subr.bf16.mxu0 %v7611_v16  ;;  %v8837_v23 = vpack.c.bf16 %v445_v26, %v439_v13  ;;  %v436_v26 = vld [vmem:[%s7804_s30 + $0x4f0] sm:$0xff] }
 0x127   : > { %13022 = vst [vmem:[#allocation123_spill] sm:$0xff] %v8817_v8  ;;  %v8831_v8 = vpack.c.bf16 %v430_v53, %v424_v40  ;;  %v7617_v40 = vld [vmem:[%s12707_s1 + $0x3ec] ss:$16 sps:$4 sm:$0xff]   ;;  %3433 = vmatpush1.bf16.msra.mxu0 %v7609_v21  ;;  %v7615_v16 = vld [vmem:[%s12707_s1 + $0x3e8] ss:$16 sps:$4 sm:$0xff]   ;;  %v444_v21 = vld [vmem:[%s7804_s30 + $0x530] sm:$0xff]  ;;  %v8879_v33 = vpack.c.bf16 %v442_v43, %v436_v26 }
 0x128   : > { %v8827_v24 = vpop.f32.mrf.mxu0  ;;  %v8829_v22 = vpop.f32.mrf.mxu1  ;;  %13027 = vst [vmem:[#allocation128_spill] sm:$0xff] %v8837_v23  ;;  %3434 = vmatprep.subr.bf16.mxu0 %v7617_v40  ;;  %v8881_v46 = vpack.c.bf16 %v444_v21, %v438_v14  ;;  %v8883_v40 = vpack.c.bf16 %v455_v59, %v449_v7  ;;  %v448_v14 = vld [vmem:[%s7804_s30 + $0x550] sm:$0xff]  ;;  %v450_v21 = vld [vmem:[%s7804_s30 + $0x560] sm:$0xff]  ;;  %v461_v59 = vld [vmem:[%s7804_s30 + $0x5b8] sm:$0xff] }
 0x129   : > { %13023 = vst [vmem:[#allocation124_spill] sm:$0xff] %v8829_v22  ;;  %13024 = vst [vmem:[#allocation125_spill] sm:$0xff] %v8831_v8  ;;  %v456_v7 = vld [vmem:[%s7804_s30 + $0x590] sm:$0xff] }
 0x12a   : > { %v8839_v0 = vpop.f32.mrf.mxu0  ;;  %v8841_v39 = vpop.f32.mrf.mxu1  ;;  %13032 = vst [vmem:[#allocation133_spill] sm:$0xff] %v8879_v33  ;;  %13033 = vst [vmem:[#allocation134_spill] sm:$0xff] %v8881_v46 }
 0x12b   : > { %13028 = vst [vmem:[#allocation129_spill] sm:$0xff] %v8841_v39  ;;  %3435 = vmatpush2.bf16.msra.mxu0 %v7615_v16  ;;  %13034 = vst [vmem:[#allocation135_spill] sm:$0xff] %v8883_v40  ;;  %v7614_v16 = vld [vmem:[%s12707_s1 + $0x12c] ss:$16 sps:$4 sm:$0xff]  }
 0x12c   : > { %v8849_v53 = vpop.f32.mrf.mxu0  ;;  %v8851_v13 = vpop.f32.mrf.mxu1  ;;  %2512 = vmatmul.mubr.bf16.gmra.mxu1 %v8831_v8  ;;  %2865 = vmatmul.mubr.bf16.gmra.mxu0 %v8833_v2  ;;  %v7620_v2 = vld [vmem:[%s12707_s1 + $0x3cc] ss:$16 sps:$4 sm:$0xff]  }
 0x12d   : > { %13029 = vst [vmem:[#allocation130_spill] sm:$0xff] %v8851_v13  ;;  %2521 = vmatprep.mubr.bf16.mxu1 %v8835_v29  ;;  %2874 = vmatprep.mubr.bf16.mxu0 %v8837_v23  ;;  %v457_v13 = vld [vmem:[%s7804_s30 + $0x598] sm:$0xff] }
 0x12e   : > { %v8863_v39 = vpop.f32.mrf.mxu0  ;;  %v8865_v22 = vpop.f32.mrf.mxu1  ;;  %v7618_v29 = vld [vmem:[%s12707_s1 + $0x3c8] ss:$16 sps:$4 sm:$0xff]   ;;  %3436 = vmatprep.subr.bf16.mxu0 %v7620_v2  ;;  %3093 = vmatprep.subr.bf16.mxu1 %v7614_v16 }
 0x12f   : > { %13030 = vst [vmem:[#allocation131_spill] sm:$0xff] %v8865_v22  ;;  %v8885_v22 = vpack.c.bf16 %v457_v13, %v451_v10  ;;  %v7612_v2 = vld [vmem:[%s12707_s1 + $0x128] ss:$16 sps:$4 sm:$0xff]   ;;  %3437 = vmatpush2.bf16.msra.mxu0 %v7618_v29  ;;  %v7623_v13 = vld [vmem:[%s12707_s1 + $0x3ac] ss:$16 sps:$4 sm:$0xff]   ;;  %v454_v29 = vld [vmem:[%s7804_s30 + $0x580] sm:$0xff] }
 0x130   : > { %v8875_v23 = vpop.f32.mrf.mxu0  ;;  %v8877_v8 = vpop.f32.mrf.mxu1  ;;  %v7621_v10 = vld [vmem:[%s12707_s1 + $0x3a8] ss:$16 sps:$4 sm:$0xff]   ;;  %3094 = vmatpush2.bf16.msra.mxu1 %v7612_v2  ;;  %3438 = vmatprep.subr.bf16.mxu0 %v7623_v13  ;;  %v8935_v2 = vpack.c.bf16 %v456_v7, %v450_v21  ;;  %v466_v21 = vld [vmem:[%s7804_s30 + $0x5e0] sm:$0xff] }
 0x131   : > { %13031 = vst [vmem:[#allocation132_spill] sm:$0xff] %v8877_v8  ;;  %13035 = vst [vmem:[#allocation136_spill] sm:$0xff] %v8885_v22  ;;  %v467_v16 = vld [vmem:[%s7804_s30 + $0x5e8] sm:$0xff]  ;;  %v462_v7 = vld [vmem:[%s7804_s30 + $0x5c0] sm:$0xff] }
 0x132   : > { %v8890_v1 = vpop.f32.mrf.mxu0  ;;  %v8892_v8 = vpop.f32.mrf.mxu1  ;;  %13041 = vst [vmem:[#allocation142_spill] sm:$0xff] %v8935_v2  ;;  %v8937_v13 = vpack.c.bf16 %v467_v16, %v461_v59  ;;  %v473_v59 = vld [vmem:[%s7804_s30 + $0x618] sm:$0xff]  ;;  %v479_v16 = vld [vmem:[%s7804_s30 + $0x648] sm:$0xff] }
 0x133   : > { %13036 = vst [vmem:[#allocation137_spill] sm:$0xff] %v8892_v8  ;;  %3439 = vmatpush2.bf16.msra.mxu0 %v7621_v10 }
 0x134   : > { %v8903_v26 = vpop.f32.mrf.mxu0  ;;  %v8905_v43 = vpop.f32.mrf.mxu1  ;;  %2522 = vmatmul.mubr.bf16.gmra.mxu1 %v8879_v33  ;;  %2875 = vmatmul.mubr.bf16.gmra.mxu0 %v8881_v46  ;;  %v7626_v46 = vld [vmem:[%s12707_s1 + $0x38c] ss:$16 sps:$4 sm:$0xff]   ;;  %13042 = vst [vmem:[#allocation143_spill] sm:$0xff] %v8937_v13 }
 0x135   : > { %13037 = vst [vmem:[#allocation138_spill] sm:$0xff] %v8905_v43  ;;  %2531 = vmatprep.mubr.bf16.mxu1 %v8883_v40  ;;  %2884 = vmatprep.mubr.bf16.mxu0 %v8885_v22  ;;  %v469_v43 = vld [vmem:[%s7804_s30 + $0x5f8] sm:$0xff] }
 0x136   : > { %v8917_v8 = vpop.f32.mrf.mxu0  ;;  %v8919_v38 = vpop.f32.mrf.mxu1  ;;  %v7624_v22 = vld [vmem:[%s12707_s1 + $0x388] ss:$16 sps:$4 sm:$0xff]   ;;  %3440 = vmatprep.subr.bf16.mxu0 %v7626_v46  ;;  %v8939_v10 = vpack.c.bf16 %v469_v43, %v463_v63  ;;  %v460_v43 = vld [vmem:[%s7804_s30 + $0x5b0] sm:$0xff] }
 0x137   : > { %13038 = vst [vmem:[#allocation139_spill] sm:$0xff] %v8919_v38  ;;  %v8933_v38 = vpack.c.bf16 %v454_v29, %v448_v14  ;;  %v7632_v14 = vld [vmem:[%s12707_s1 + $0x36c] ss:$16 sps:$4 sm:$0xff]   ;;  %3441 = vmatpush2.bf16.msra.mxu0 %v7624_v22  ;;  %v7630_v46 = vld [vmem:[%s12707_s1 + $0x368] ss:$16 sps:$4 sm:$0xff]   ;;  %v468_v22 = vld [vmem:[%s7804_s30 + $0x5f0] sm:$0xff]  ;;  %v8981_v35 = vpack.c.bf16 %v466_v21, %v460_v43 }
 0x138   : > { %v8929_v40 = vpop.f32.mrf.mxu0  ;;  %v8931_v33 = vpop.f32.mrf.mxu1  ;;  %13043 = vst [vmem:[#allocation144_spill] sm:$0xff] %v8939_v10  ;;  %3442 = vmatprep.subr.bf16.mxu0 %v7632_v14  ;;  %v8983_v50 = vpack.c.bf16 %v468_v22, %v462_v7  ;;  %v8985_v14 = vpack.c.bf16 %v479_v16, %v473_v59  ;;  %v472_v7 = vld [vmem:[%s7804_s30 + $0x610] sm:$0xff]  ;;  %v474_v22 = vld [vmem:[%s7804_s30 + $0x620] sm:$0xff]  ;;  %v485_v16 = vld [vmem:[%s7804_s30 + $0x678] sm:$0xff] }
 0x139   : > { %13039 = vst [vmem:[#allocation140_spill] sm:$0xff] %v8931_v33  ;;  %13040 = vst [vmem:[#allocation141_spill] sm:$0xff] %v8933_v38  ;;  %v480_v59 = vld [vmem:[%s7804_s30 + $0x650] sm:$0xff] }
 0x13a   : > { %v8941_v28 = vpop.f32.mrf.mxu0  ;;  %v8943_v37 = vpop.f32.mrf.mxu1  ;;  %13048 = vst [vmem:[#allocation149_spill] sm:$0xff] %v8981_v35  ;;  %13049 = vst [vmem:[#allocation150_spill] sm:$0xff] %v8983_v50 }
 0x13b   : > { %13044 = vst [vmem:[#allocation145_spill] sm:$0xff] %v8943_v37  ;;  %3443 = vmatpush2.bf16.msra.mxu0 %v7630_v46  ;;  %13050 = vst [vmem:[#allocation151_spill] sm:$0xff] %v8985_v14  ;;  %v7629_v46 = vld [vmem:[%s12707_s1 + $0x10c] ss:$16 sps:$4 sm:$0xff]  }
 0x13c   : > { %v8951_v29 = vpop.f32.mrf.mxu0  ;;  %v8953_v63 = vpop.f32.mrf.mxu1  ;;  %2532 = vmatmul.mubr.bf16.gmra.mxu1 %v8933_v38  ;;  %2885 = vmatmul.mubr.bf16.gmra.mxu0 %v8935_v2  ;;  %v7635_v2 = vld [vmem:[%s12707_s1 + $0x34c] ss:$16 sps:$4 sm:$0xff]  }
 0x13d   : > { %13045 = vst [vmem:[#allocation146_spill] sm:$0xff] %v8953_v63  ;;  %2541 = vmatprep.mubr.bf16.mxu1 %v8937_v13  ;;  %2894 = vmatprep.mubr.bf16.mxu0 %v8939_v10  ;;  %v481_v63 = vld [vmem:[%s7804_s30 + $0x658] sm:$0xff] }
 0x13e   : > { %v8965_v37 = vpop.f32.mrf.mxu0  ;;  %v8967_v33 = vpop.f32.mrf.mxu1  ;;  %v7633_v13 = vld [vmem:[%s12707_s1 + $0x348] ss:$16 sps:$4 sm:$0xff]   ;;  %3444 = vmatprep.subr.bf16.mxu0 %v7635_v2  ;;  %3095 = vmatprep.subr.bf16.mxu1 %v7629_v46 }
 0x13f   : > { %13046 = vst [vmem:[#allocation147_spill] sm:$0xff] %v8967_v33  ;;  %v8987_v33 = vpack.c.bf16 %v481_v63, %v475_v56  ;;  %v7627_v2 = vld [vmem:[%s12707_s1 + $0x108] ss:$16 sps:$4 sm:$0xff]   ;;  %3445 = vmatpush2.bf16.msra.mxu0 %v7633_v13  ;;  %v7638_v63 = vld [vmem:[%s12707_s1 + $0x32c] ss:$16 sps:$4 sm:$0xff]   ;;  %v478_v13 = vld [vmem:[%s7804_s30 + $0x640] sm:$0xff] }
 0x140   : > { %v8977_v10 = vpop.f32.mrf.mxu0  ;;  %v8979_v38 = vpop.f32.mrf.mxu1  ;;  %v7636_v56 = vld [vmem:[%s12707_s1 + $0x328] ss:$16 sps:$4 sm:$0xff]   ;;  %3096 = vmatpush2.bf16.msra.mxu1 %v7627_v2  ;;  %3446 = vmatprep.subr.bf16.mxu0 %v7638_v63  ;;  %v9037_v2 = vpack.c.bf16 %v480_v59, %v474_v22  ;;  %v490_v22 = vld [vmem:[%s7804_s30 + $0x6a0] sm:$0xff] }
 0x141   : > { %13047 = vst [vmem:[#allocation148_spill] sm:$0xff] %v8979_v38  ;;  %13051 = vst [vmem:[#allocation152_spill] sm:$0xff] %v8987_v33  ;;  %v491_v46 = vld [vmem:[%s7804_s30 + $0x6a8] sm:$0xff]  ;;  %v497_v59 = vld [vmem:[%s7804_s30 + $0x6d8] sm:$0xff] }
 0x142   : > { %v8992_v11 = vpop.f32.mrf.mxu0  ;;  %v8994_v38 = vpop.f32.mrf.mxu1  ;;  %13057 = vst [vmem:[#allocation158_spill] sm:$0xff] %v9037_v2  ;;  %v9039_v63 = vpack.c.bf16 %v491_v46, %v485_v16  ;;  %v503_v46 = vld [vmem:[%s7804_s30 + $0x708] sm:$0xff] }
 0x143   : > { %13052 = vst [vmem:[#allocation153_spill] sm:$0xff] %v8994_v38  ;;  %3447 = vmatpush2.bf16.msra.mxu0 %v7636_v56 }
 0x144   : > { %v9005_v43 = vpop.f32.mrf.mxu0  ;;  %v9007_v21 = vpop.f32.mrf.mxu1  ;;  %2542 = vmatmul.mubr.bf16.gmra.mxu1 %v8981_v35  ;;  %2895 = vmatmul.mubr.bf16.gmra.mxu0 %v8983_v50  ;;  %v7641_v50 = vld [vmem:[%s12707_s1 + $0x30c] ss:$16 sps:$4 sm:$0xff]   ;;  %13058 = vst [vmem:[#allocation159_spill] sm:$0xff] %v9039_v63 }
 0x145   : > { %13053 = vst [vmem:[#allocation154_spill] sm:$0xff] %v9007_v21  ;;  %2551 = vmatprep.mubr.bf16.mxu1 %v8985_v14  ;;  %2904 = vmatprep.mubr.bf16.mxu0 %v8987_v33  ;;  %v493_v21 = vld [vmem:[%s7804_s30 + $0x6b8] sm:$0xff] }
 0x146   : > { %v9019_v38 = vpop.f32.mrf.mxu0  ;;  %v9021_v34 = vpop.f32.mrf.mxu1  ;;  %v7639_v33 = vld [vmem:[%s12707_s1 + $0x308] ss:$16 sps:$4 sm:$0xff]   ;;  %3448 = vmatprep.subr.bf16.mxu0 %v7641_v50  ;;  %v9041_v56 = vpack.c.bf16 %v493_v21, %v487_v9  ;;  %v484_v50 = vld [vmem:[%s7804_s30 + $0x670] sm:$0xff]  ;;  %v486_v9 = vld [vmem:[%s7804_s30 + $0x680] sm:$0xff] }
 0x147   : > { %13054 = vst [vmem:[#allocation155_spill] sm:$0xff] %v9021_v34  ;;  %v9035_v34 = vpack.c.bf16 %v478_v13, %v472_v7  ;;  %3449 = vmatpush2.bf16.msra.mxu0 %v7639_v33  ;;  %v492_v21 = vld [vmem:[%s7804_s30 + $0x6b0] sm:$0xff] }
 0x148   : > { %v9031_v14 = vpop.f32.mrf.mxu0  ;;  %v9033_v35 = vpop.f32.mrf.mxu1  ;;  %13059 = vst [vmem:[#allocation160_spill] sm:$0xff] %v9041_v56 }
 0x149   : > { %13055 = vst [vmem:[#allocation156_spill] sm:$0xff] %v9033_v35  ;;  %13056 = vst [vmem:[#allocation157_spill] sm:$0xff] %v9035_v34  ;;  %v9071_v35 = vpack.c.bf16 %v490_v22, %v484_v50 }
 0x14a   : > { %v9043_v12 = vpop.f32.mrf.mxu0  ;;  %v9045_v47 = vpop.f32.mrf.mxu1 }
 0x14b   : > { %13060 = vst [vmem:[#allocation161_spill] sm:$0xff] %v9045_v47  ;;  %v499_v47 = vld [vmem:[%s7804_s30 + $0x6e8] sm:$0xff]  ;;  %13064 = vst [vmem:[#allocation165_spill] sm:$0xff] %v9071_v35 }
 0x14c   : > { %v9047_v7 = vpop.f32.mrf.mxu0  ;;  %v9049_v13 = vpop.f32.mrf.mxu1  ;;  %2552 = vmatmul.mubr.bf16.gmra.mxu1 %v9035_v34  ;;  %2905 = vmatmul.mubr.bf16.gmra.mxu0 %v9037_v2 }
 0x14d   : > { %13061 = vst [vmem:[#allocation162_spill] sm:$0xff] %v9049_v13  ;;  %2561 = vmatprep.mubr.bf16.mxu1 %v9039_v63  ;;  %2914 = vmatprep.mubr.bf16.mxu0 %v9041_v56  ;;  %v505_v13 = vld [vmem:[%s7804_s30 + $0x718] sm:$0xff]  ;;  %v9073_v56 = vpack.c.bf16 %v492_v21, %v486_v9  ;;  %v9075_v63 = vpack.c.bf16 %v503_v46, %v497_v59  ;;  %v498_v9 = vld [vmem:[%s7804_s30 + $0x6e0] sm:$0xff]  ;;  %v504_v21 = vld [vmem:[%s7804_s30 + $0x710] sm:$0xff] }
 0x14e   : > { %v9060_v16 = vpop.f32.mrf.mxu0  ;;  %v9062_v33 = vpop.f32.mrf.mxu1  ;;  %v9077_v60 = vpack.c.bf16 %v505_v13, %v499_v47  ;;  %v496_v47 = vld [vmem:[%s7804_s30 + $0x6d0] sm:$0xff]  ;;  %v502_v13 = vld [vmem:[%s7804_s30 + $0x700] sm:$0xff]  ;;  %v509_v59 = vld [vmem:[%s7804_s30 + $0x738] sm:$0xff] }
 0x14f   : > { %13062 = vst [vmem:[#allocation163_spill] sm:$0xff] %v9062_v33  ;;  %13065 = vst [vmem:[#allocation166_spill] sm:$0xff] %v9073_v56  ;;  %v7644_v33 = vld [vmem:[%s12707_s1 + $0x4ec] ss:$16 sps:$4 sm:$0xff]  }
 0x150   : > { %v9067_v34 = vpop.f32.mrf.mxu0  ;;  %v9069_v2 = vpop.f32.mrf.mxu1  ;;  %13066 = vst [vmem:[#allocation167_spill] sm:$0xff] %v9075_v63  ;;  %13067 = vst [vmem:[#allocation168_spill] sm:$0xff] %v9077_v60  ;;  %3771 = vmatprep.subr.bf16.mxu1 %v7644_v33 }
 0x151   : > { %13063 = vst [vmem:[#allocation164_spill] sm:$0xff] %v9069_v2 }
 0x152   : > { %v9082_v45 = vpop.f32.mrf.mxu0  ;;  %v9084_v62 = vpop.f32.mrf.mxu1 }
 0x153   : > { %13068 = vst [vmem:[#allocation169_spill] sm:$0xff] %v9084_v62  ;;  %v515_v62 = vld [vmem:[%s7804_s30 + $0x768] sm:$0xff] }
 0x154   : > { %v9086_v50 = vpop.f32.mrf.mxu0  ;;  %v9088_v22 = vpop.f32.mrf.mxu1  ;;  %2562 = vmatmul.mubr.bf16.gmra.mxu1 %v9071_v35  ;;  %2915 = vmatmul.mubr.bf16.gmra.mxu0 %v9073_v56  ;;  %v517_v35 = vld [vmem:[%s7804_s30 + $0x778] sm:$0xff]  ;;  %v9114_v27 = vpack.c.bf16 %v515_v62, %v509_v59  ;;  %v514_v62 = vld [vmem:[%s7804_s30 + $0x760] sm:$0xff]  ;;  %v527_v59 = vld [vmem:[%s7804_s30 + $0x7c8] sm:$0xff] }
 0x155   : > { %13069 = vst [vmem:[#allocation170_spill] sm:$0xff] %v9086_v50  ;;  %13070 = vst [vmem:[#allocation171_spill] sm:$0xff] %v9088_v22  ;;  %2571 = vmatprep.mubr.bf16.mxu1 %v9075_v63  ;;  %2924 = vmatprep.mubr.bf16.mxu0 %v9077_v60  ;;  %v511_v22 = vld [vmem:[%s7804_s30 + $0x748] sm:$0xff]  ;;  %v9110_v63 = vpack.c.bf16 %v502_v13, %v496_v47  ;;  %v9112_v60 = vpack.c.bf16 %v504_v21, %v498_v9  ;;  %v508_v47 = vld [vmem:[%s7804_s30 + $0x730] sm:$0xff] }
 0x156   : > { %v9099_v46 = vpop.f32.mrf.mxu0  ;;  %v9101_v33 = vpop.f32.mrf.mxu1  ;;  %13077 = vst [vmem:[#allocation178_spill] sm:$0xff] %v9114_v27  ;;  %v9116_v32 = vpack.c.bf16 %v517_v35, %v511_v22  ;;  %v510_v35 = vld [vmem:[%s7804_s30 + $0x740] sm:$0xff]  ;;  %v516_v22 = vld [vmem:[%s7804_s30 + $0x770] sm:$0xff]  ;;  %v521_v13 = vld [vmem:[%s7804_s30 + $0x798] sm:$0xff] }
 0x157   : > { %13071 = vst [vmem:[#allocation172_spill] sm:$0xff] %v9099_v46  ;;  %13072 = vst [vmem:[#allocation173_spill] sm:$0xff] %v9101_v33 }
 0x158   : > { %v9106_v2 = vpop.f32.mrf.mxu0  ;;  %v9108_v56 = vpop.f32.mrf.mxu1  ;;  %13075 = vst [vmem:[#allocation176_spill] sm:$0xff] %v9110_v63  ;;  %13076 = vst [vmem:[#allocation177_spill] sm:$0xff] %v9112_v60 }
 0x159   : > { %13073 = vst [vmem:[#allocation174_spill] sm:$0xff] %v9106_v2  ;;  %13074 = vst [vmem:[#allocation175_spill] sm:$0xff] %v9108_v56 }
 0x15a   : > { %13078 = vst [vmem:[#allocation179_spill] sm:$0xff] %v9116_v32  ;;  %v9118_v33 = vpop.f32.mrf.mxu0  ;;  %v9120_v25 = vpop.f32.mrf.mxu1 }
 0x15b   : > { %13079 = vst [vmem:[#allocation180_spill] sm:$0xff] %v9118_v33  ;;  %13080 = vst [vmem:[#allocation181_spill] sm:$0xff] %v9120_v25 }
 0x15c   : > { %v9122_v2 = vpop.f32.mrf.mxu0  ;;  %v9124_v56 = vpop.f32.mrf.mxu1  ;;  %2572 = vmatmul.mubr.bf16.gmra.mxu1 %v9110_v63  ;;  %2925 = vmatmul.mubr.bf16.gmra.mxu0 %v9112_v60  ;;  %v529_v63 = vld [vmem:[%s7804_s30 + $0x7d8] sm:$0xff] }
 0x15d   : > { %13081 = vst [vmem:[#allocation182_spill] sm:$0xff] %v9122_v2  ;;  %13082 = vst [vmem:[#allocation183_spill] sm:$0xff] %v9124_v56  ;;  %2581 = vmatprep.mubr.bf16.mxu1 %v9114_v27  ;;  %2934 = vmatprep.mubr.bf16.mxu0 %v9116_v32  ;;  %v523_v56 = vld [vmem:[%s7804_s30 + $0x7a8] sm:$0xff]  ;;  %v9146_v27 = vpack.c.bf16 %v514_v62, %v508_v47  ;;  %v9148_v32 = vpack.c.bf16 %v516_v22, %v510_v35  ;;  %v520_v47 = vld [vmem:[%s7804_s30 + $0x790] sm:$0xff] }
 0x15e   : > { %v9135_v9 = vpop.f32.mrf.mxu0  ;;  %v9137_v21 = vpop.f32.mrf.mxu1  ;;  %v9150_v2 = vpack.c.bf16 %v527_v59, %v521_v13  ;;  %v526_v62 = vld [vmem:[%s7804_s30 + $0x7c0] sm:$0xff]  ;;  %v533_v35 = vld [vmem:[%s7804_s30 + $0x7f8] sm:$0xff]  ;;  %v539_v59 = vld [vmem:[%s7804_s30 + $0x828] sm:$0xff] }
 0x15f   : > { %13083 = vst [vmem:[#allocation184_spill] sm:$0xff] %v9135_v9  ;;  %13084 = vst [vmem:[#allocation185_spill] sm:$0xff] %v9137_v21  ;;  %v9152_v9 = vpack.c.bf16 %v529_v63, %v523_v56  ;;  %v522_v63 = vld [vmem:[%s7804_s30 + $0x7a0] sm:$0xff]  ;;  %v528_v56 = vld [vmem:[%s7804_s30 + $0x7d0] sm:$0xff] }
 0x160   : > { %v9142_v25 = vpop.f32.mrf.mxu0  ;;  %v9144_v60 = vpop.f32.mrf.mxu1  ;;  %13087 = vst [vmem:[#allocation188_spill] sm:$0xff] %v9146_v27  ;;  %13088 = vst [vmem:[#allocation189_spill] sm:$0xff] %v9148_v32 }
 0x161   : > { %13085 = vst [vmem:[#allocation186_spill] sm:$0xff] %v9142_v25  ;;  %13086 = vst [vmem:[#allocation187_spill] sm:$0xff] %v9144_v60 }
 0x162   : > { %13089 = vst [vmem:[#allocation190_spill] sm:$0xff] %v9150_v2  ;;  %13090 = vst [vmem:[#allocation191_spill] sm:$0xff] %v9152_v9  ;;  %v9154_v21 = vpop.f32.mrf.mxu0  ;;  %v9156_v33 = vpop.f32.mrf.mxu1 }
 0x163   : > { %13091 = vst [vmem:[#allocation192_spill] sm:$0xff] %v9154_v21  ;;  %13092 = vst [vmem:[#allocation193_spill] sm:$0xff] %v9156_v33 }
 0x164   : > { %v9158_v25 = vpop.f32.mrf.mxu0  ;;  %v9160_v60 = vpop.f32.mrf.mxu1  ;;  %2582 = vmatmul.mubr.bf16.gmra.mxu1 %v9146_v27  ;;  %2935 = vmatmul.mubr.bf16.gmra.mxu0 %v9148_v32  ;;  %v541_v27 = vld [vmem:[%s7804_s30 + $0x838] sm:$0xff] }
 0x165   : > { %13093 = vst [vmem:[#allocation194_spill] sm:$0xff] %v9158_v25  ;;  %13094 = vst [vmem:[#allocation195_spill] sm:$0xff] %v9160_v60  ;;  %2591 = vmatprep.mubr.bf16.mxu1 %v9150_v2  ;;  %2944 = vmatprep.mubr.bf16.mxu0 %v9152_v9  ;;  %v535_v60 = vld [vmem:[%s7804_s30 + $0x808] sm:$0xff]  ;;  %v9182_v2 = vpack.c.bf16 %v526_v62, %v520_v47  ;;  %v9184_v9 = vpack.c.bf16 %v528_v56, %v522_v63  ;;  %v532_v47 = vld [vmem:[%s7804_s30 + $0x7f0] sm:$0xff] }
 0x166   : > { %v9171_v22 = vpop.f32.mrf.mxu0  ;;  %v9173_v13 = vpop.f32.mrf.mxu1  ;;  %v9186_v25 = vpack.c.bf16 %v539_v59, %v533_v35  ;;  %v538_v62 = vld [vmem:[%s7804_s30 + $0x820] sm:$0xff]  ;;  %v545_v63 = vld [vmem:[%s7804_s30 + $0x858] sm:$0xff]  ;;  %v551_v59 = vld [vmem:[%s7804_s30 + $0x888] sm:$0xff] }
 0x167   : > { %13095 = vst [vmem:[#allocation196_spill] sm:$0xff] %v9171_v22  ;;  %13096 = vst [vmem:[#allocation197_spill] sm:$0xff] %v9173_v13  ;;  %v9188_v22 = vpack.c.bf16 %v541_v27, %v535_v60  ;;  %v534_v27 = vld [vmem:[%s7804_s30 + $0x800] sm:$0xff]  ;;  %v540_v60 = vld [vmem:[%s7804_s30 + $0x830] sm:$0xff] }
 0x168   : > { %v9178_v33 = vpop.f32.mrf.mxu0  ;;  %v9180_v32 = vpop.f32.mrf.mxu1  ;;  %13099 = vst [vmem:[#allocation200_spill] sm:$0xff] %v9182_v2  ;;  %13100 = vst [vmem:[#allocation201_spill] sm:$0xff] %v9184_v9 }
 0x169   : > { %13097 = vst [vmem:[#allocation198_spill] sm:$0xff] %v9178_v33  ;;  %13098 = vst [vmem:[#allocation199_spill] sm:$0xff] %v9180_v32 }
 0x16a   : > { %13101 = vst [vmem:[#allocation202_spill] sm:$0xff] %v9186_v25  ;;  %13102 = vst [vmem:[#allocation203_spill] sm:$0xff] %v9188_v22  ;;  %v9190_v13 = vpop.f32.mrf.mxu0  ;;  %v9192_v21 = vpop.f32.mrf.mxu1 }
 0x16b   : > { %13103 = vst [vmem:[#allocation204_spill] sm:$0xff] %v9190_v13  ;;  %13104 = vst [vmem:[#allocation205_spill] sm:$0xff] %v9192_v21 }
 0x16c   : > { %v9194_v33 = vpop.f32.mrf.mxu0  ;;  %v9196_v32 = vpop.f32.mrf.mxu1  ;;  %2592 = vmatmul.mubr.bf16.gmra.mxu1 %v9182_v2  ;;  %2945 = vmatmul.mubr.bf16.gmra.mxu0 %v9184_v9  ;;  %v553_v2 = vld [vmem:[%s7804_s30 + $0x898] sm:$0xff] }
 0x16d   : > { %13105 = vst [vmem:[#allocation206_spill] sm:$0xff] %v9194_v33  ;;  %13106 = vst [vmem:[#allocation207_spill] sm:$0xff] %v9196_v32  ;;  %2601 = vmatprep.mubr.bf16.mxu1 %v9186_v25  ;;  %2954 = vmatprep.mubr.bf16.mxu0 %v9188_v22  ;;  %v547_v32 = vld [vmem:[%s7804_s30 + $0x868] sm:$0xff]  ;;  %v9218_v25 = vpack.c.bf16 %v538_v62, %v532_v47  ;;  %v9220_v22 = vpack.c.bf16 %v540_v60, %v534_v27  ;;  %v544_v47 = vld [vmem:[%s7804_s30 + $0x850] sm:$0xff] }
 0x16e   : > { %v9207_v56 = vpop.f32.mrf.mxu0  ;;  %v9209_v35 = vpop.f32.mrf.mxu1  ;;  %v9222_v33 = vpack.c.bf16 %v551_v59, %v545_v63  ;;  %v550_v62 = vld [vmem:[%s7804_s30 + $0x880] sm:$0xff]  ;;  %v557_v27 = vld [vmem:[%s7804_s30 + $0x8b8] sm:$0xff]  ;;  %v563_v59 = vld [vmem:[%s7804_s30 + $0x8e8] sm:$0xff] }
 0x16f   : > { %13107 = vst [vmem:[#allocation208_spill] sm:$0xff] %v9207_v56  ;;  %13108 = vst [vmem:[#allocation209_spill] sm:$0xff] %v9209_v35  ;;  %v9224_v56 = vpack.c.bf16 %v553_v2, %v547_v32  ;;  %v546_v32 = vld [vmem:[%s7804_s30 + $0x860] sm:$0xff]  ;;  %v552_v2 = vld [vmem:[%s7804_s30 + $0x890] sm:$0xff] }
 0x170   : > { %v9214_v21 = vpop.f32.mrf.mxu0  ;;  %v9216_v9 = vpop.f32.mrf.mxu1  ;;  %13111 = vst [vmem:[#allocation212_spill] sm:$0xff] %v9218_v25  ;;  %13112 = vst [vmem:[#allocation213_spill] sm:$0xff] %v9220_v22 }
 0x171   : > { %13109 = vst [vmem:[#allocation210_spill] sm:$0xff] %v9214_v21  ;;  %13110 = vst [vmem:[#allocation211_spill] sm:$0xff] %v9216_v9 }
 0x172   : > { %13113 = vst [vmem:[#allocation214_spill] sm:$0xff] %v9222_v33  ;;  %13114 = vst [vmem:[#allocation215_spill] sm:$0xff] %v9224_v56  ;;  %v9226_v35 = vpop.f32.mrf.mxu0  ;;  %v9228_v13 = vpop.f32.mrf.mxu1 }
 0x173   : > { %13115 = vst [vmem:[#allocation216_spill] sm:$0xff] %v9226_v35  ;;  %13116 = vst [vmem:[#allocation217_spill] sm:$0xff] %v9228_v13 }
 0x174   : > { %v9230_v21 = vpop.f32.mrf.mxu0  ;;  %v9232_v9 = vpop.f32.mrf.mxu1  ;;  %2602 = vmatmul.mubr.bf16.gmra.mxu1 %v9218_v25  ;;  %2955 = vmatmul.mubr.bf16.gmra.mxu0 %v9220_v22  ;;  %v565_v25 = vld [vmem:[%s7804_s30 + $0x8f8] sm:$0xff] }
 0x175   : > { %13117 = vst [vmem:[#allocation218_spill] sm:$0xff] %v9230_v21  ;;  %13118 = vst [vmem:[#allocation219_spill] sm:$0xff] %v9232_v9  ;;  %2611 = vmatprep.mubr.bf16.mxu1 %v9222_v33  ;;  %2964 = vmatprep.mubr.bf16.mxu0 %v9224_v56  ;;  %v559_v9 = vld [vmem:[%s7804_s30 + $0x8c8] sm:$0xff]  ;;  %v9254_v33 = vpack.c.bf16 %v550_v62, %v544_v47  ;;  %v9256_v56 = vpack.c.bf16 %v552_v2, %v546_v32  ;;  %v556_v47 = vld [vmem:[%s7804_s30 + $0x8b0] sm:$0xff] }
 0x176   : > { %v9243_v60 = vpop.f32.mrf.mxu0  ;;  %v9245_v63 = vpop.f32.mrf.mxu1  ;;  %v9258_v21 = vpack.c.bf16 %v563_v59, %v557_v27  ;;  %v562_v62 = vld [vmem:[%s7804_s30 + $0x8e0] sm:$0xff]  ;;  %v569_v32 = vld [vmem:[%s7804_s30 + $0x918] sm:$0xff]  ;;  %v575_v59 = vld [vmem:[%s7804_s30 + $0x948] sm:$0xff] }
 0x177   : > { %13119 = vst [vmem:[#allocation220_spill] sm:$0xff] %v9243_v60  ;;  %13120 = vst [vmem:[#allocation221_spill] sm:$0xff] %v9245_v63  ;;  %v9260_v60 = vpack.c.bf16 %v565_v25, %v559_v9  ;;  %v558_v25 = vld [vmem:[%s7804_s30 + $0x8c0] sm:$0xff]  ;;  %v564_v9 = vld [vmem:[%s7804_s30 + $0x8f0] sm:$0xff] }
 0x178   : > { %v9250_v13 = vpop.f32.mrf.mxu0  ;;  %v9252_v22 = vpop.f32.mrf.mxu1  ;;  %13123 = vst [vmem:[#allocation224_spill] sm:$0xff] %v9254_v33  ;;  %13124 = vst [vmem:[#allocation225_spill] sm:$0xff] %v9256_v56 }
 0x179   : > { %13121 = vst [vmem:[#allocation222_spill] sm:$0xff] %v9250_v13  ;;  %13122 = vst [vmem:[#allocation223_spill] sm:$0xff] %v9252_v22 }
 0x17a   : > { %13125 = vst [vmem:[#allocation226_spill] sm:$0xff] %v9258_v21  ;;  %13126 = vst [vmem:[#allocation227_spill] sm:$0xff] %v9260_v60  ;;  %v9262_v63 = vpop.f32.mrf.mxu0  ;;  %v9264_v35 = vpop.f32.mrf.mxu1 }
 0x17b   : > { %13127 = vst [vmem:[#allocation228_spill] sm:$0xff] %v9262_v63  ;;  %13128 = vst [vmem:[#allocation229_spill] sm:$0xff] %v9264_v35 }
 0x17c   : > { %v9266_v13 = vpop.f32.mrf.mxu0  ;;  %v9268_v22 = vpop.f32.mrf.mxu1  ;;  %2612 = vmatmul.mubr.bf16.gmra.mxu1 %v9254_v33  ;;  %2965 = vmatmul.mubr.bf16.gmra.mxu0 %v9256_v56  ;;  %v577_v33 = vld [vmem:[%s7804_s30 + $0x958] sm:$0xff] }
 0x17d   : > { %13129 = vst [vmem:[#allocation230_spill] sm:$0xff] %v9266_v13  ;;  %13130 = vst [vmem:[#allocation231_spill] sm:$0xff] %v9268_v22  ;;  %2621 = vmatprep.mubr.bf16.mxu1 %v9258_v21  ;;  %2974 = vmatprep.mubr.bf16.mxu0 %v9260_v60  ;;  %v571_v22 = vld [vmem:[%s7804_s30 + $0x928] sm:$0xff]  ;;  %v9290_v21 = vpack.c.bf16 %v562_v62, %v556_v47  ;;  %v9292_v60 = vpack.c.bf16 %v564_v9, %v558_v25  ;;  %v568_v47 = vld [vmem:[%s7804_s30 + $0x910] sm:$0xff] }
 0x17e   : > { %v9279_v2 = vpop.f32.mrf.mxu0  ;;  %v9281_v27 = vpop.f32.mrf.mxu1  ;;  %v9294_v13 = vpack.c.bf16 %v575_v59, %v569_v32  ;;  %v574_v62 = vld [vmem:[%s7804_s30 + $0x940] sm:$0xff]  ;;  %v581_v25 = vld [vmem:[%s7804_s30 + $0x978] sm:$0xff]  ;;  %v587_v59 = vld [vmem:[%s7804_s30 + $0x9a8] sm:$0xff] }
 0x17f   : > { %13131 = vst [vmem:[#allocation232_spill] sm:$0xff] %v9279_v2  ;;  %13132 = vst [vmem:[#allocation233_spill] sm:$0xff] %v9281_v27  ;;  %v9296_v2 = vpack.c.bf16 %v577_v33, %v571_v22  ;;  %v570_v33 = vld [vmem:[%s7804_s30 + $0x920] sm:$0xff]  ;;  %v576_v22 = vld [vmem:[%s7804_s30 + $0x950] sm:$0xff] }
 0x180   : > { %v9286_v35 = vpop.f32.mrf.mxu0  ;;  %v9288_v56 = vpop.f32.mrf.mxu1  ;;  %13135 = vst [vmem:[#allocation236_spill] sm:$0xff] %v9290_v21  ;;  %13136 = vst [vmem:[#allocation237_spill] sm:$0xff] %v9292_v60 }
 0x181   : > { %13133 = vst [vmem:[#allocation234_spill] sm:$0xff] %v9286_v35  ;;  %13134 = vst [vmem:[#allocation235_spill] sm:$0xff] %v9288_v56 }
 0x182   : > { %13137 = vst [vmem:[#allocation238_spill] sm:$0xff] %v9294_v13  ;;  %13138 = vst [vmem:[#allocation239_spill] sm:$0xff] %v9296_v2  ;;  %v9298_v27 = vpop.f32.mrf.mxu0  ;;  %v9300_v63 = vpop.f32.mrf.mxu1 }
 0x183   : > { %13139 = vst [vmem:[#allocation240_spill] sm:$0xff] %v9298_v27  ;;  %13140 = vst [vmem:[#allocation241_spill] sm:$0xff] %v9300_v63 }
 0x184   : > { %v9302_v35 = vpop.f32.mrf.mxu0  ;;  %v9304_v56 = vpop.f32.mrf.mxu1  ;;  %2622 = vmatmul.mubr.bf16.gmra.mxu1 %v9290_v21  ;;  %2975 = vmatmul.mubr.bf16.gmra.mxu0 %v9292_v60  ;;  %v589_v21 = vld [vmem:[%s7804_s30 + $0x9b8] sm:$0xff] }
 0x185   : > { %13141 = vst [vmem:[#allocation242_spill] sm:$0xff] %v9302_v35  ;;  %13142 = vst [vmem:[#allocation243_spill] sm:$0xff] %v9304_v56  ;;  %2631 = vmatprep.mubr.bf16.mxu1 %v9294_v13  ;;  %2984 = vmatprep.mubr.bf16.mxu0 %v9296_v2  ;;  %v583_v56 = vld [vmem:[%s7804_s30 + $0x988] sm:$0xff]  ;;  %v9326_v13 = vpack.c.bf16 %v574_v62, %v568_v47  ;;  %v9328_v2 = vpack.c.bf16 %v576_v22, %v570_v33  ;;  %v580_v62 = vld [vmem:[%s7804_s30 + $0x970] sm:$0xff] }
 0x186   : > { %v9315_v9 = vpop.f32.mrf.mxu0  ;;  %v9317_v32 = vpop.f32.mrf.mxu1  ;;  %v9330_v35 = vpack.c.bf16 %v587_v59, %v581_v25  ;;  %v586_v33 = vld [vmem:[%s7804_s30 + $0x9a0] sm:$0xff]  ;;  %v593_v25 = vld [vmem:[%s7804_s30 + $0x9d8] sm:$0xff] }
 0x187   : > { %13143 = vst [vmem:[#allocation244_spill] sm:$0xff] %v9315_v9  ;;  %13144 = vst [vmem:[#allocation245_spill] sm:$0xff] %v9317_v32  ;;  %v9332_v9 = vpack.c.bf16 %v589_v21, %v583_v56  ;;  %v582_v21 = vld [vmem:[%s7804_s30 + $0x980] sm:$0xff]  ;;  %v588_v56 = vld [vmem:[%s7804_s30 + $0x9b0] sm:$0xff] }
 0x188   : > { %v9322_v63 = vpop.f32.mrf.mxu0  ;;  %v9324_v60 = vpop.f32.mrf.mxu1  ;;  %13147 = vst [vmem:[#allocation248_spill] sm:$0xff] %v9326_v13  ;;  %13148 = vst [vmem:[#allocation249_spill] sm:$0xff] %v9328_v2 }
 0x189   : > { %13145 = vst [vmem:[#allocation246_spill] sm:$0xff] %v9322_v63  ;;  %13146 = vst [vmem:[#allocation247_spill] sm:$0xff] %v9324_v60  ;;  %v599_v60 = vld [vmem:[%s7804_s30 + $0xa08] sm:$0xff] }
 0x18a   : > { %13149 = vst [vmem:[#allocation250_spill] sm:$0xff] %v9330_v35  ;;  %13150 = vst [vmem:[#allocation251_spill] sm:$0xff] %v9332_v9  ;;  %v9334_v32 = vpop.f32.mrf.mxu0  ;;  %v9336_v27 = vpop.f32.mrf.mxu1  ;;  %v9361_v50 = vpack.c.bf16 %v599_v60, %v593_v25  ;;  %v613_v25 = vld [vmem:[%s7804_s30 + $0xa78] sm:$0xff] }
 0x18b   : > { %13151 = vst [vmem:[#allocation252_spill] sm:$0xff] %v9334_v32  ;;  %13152 = vst [vmem:[#allocation253_spill] sm:$0xff] %v9336_v27  ;;  %v595_v32 = vld [vmem:[%s7804_s30 + $0x9e8] sm:$0xff] }
 0x18c   : > { %v2393_v63 = vpop.f32.mrf.mxu1  ;;  %2632 = vmatmul.mubr.bf16.gmra.mxu1 %v9326_v13  ;;  %v2746_v47 = vpop.f32.mrf.mxu0  ;;  %2985 = vmatmul.mubr.bf16.gmra.mxu0 %v9328_v2  ;;  %v601_v13 = vld [vmem:[%s7804_s30 + $0xa18] sm:$0xff]  ;;  %13155 = vst [vmem:[#allocation256_spill] sm:$0xff] %v9361_v50 }
 0x18d   : > { %v2394_v22 = vadd.f32 %v2393_v63, %v8645_v49  ;;  %2641 = vmatprep.mubr.bf16.mxu1 %v9330_v35  ;;  %2994 = vmatprep.mubr.bf16.mxu0 %v9332_v9  ;;  %v9354_v63 = vpack.c.bf16 %v586_v33, %v580_v62  ;;  %v9356_v9 = vpack.c.bf16 %v588_v56, %v582_v21  ;;  %v592_v62 = vld [vmem:[%s7804_s30 + $0x9d0] sm:$0xff]  ;;  %v598_v33 = vld [vmem:[%s7804_s30 + $0xa00] sm:$0xff]  ;;  %v607_v56 = vld [vmem:[%s7804_s30 + $0xa48] sm:$0xff] }
 0x18e   : > { %v2395_v59 = vpop.f32.mrf.mxu1  ;;  %v2748_v27 = vpop.f32.mrf.mxu0  ;;  %v9363_v17 = vpack.c.bf16 %v601_v13, %v595_v32  ;;  %v605_v13 = vld [vmem:[%s7804_s30 + $0xa38] sm:$0xff]  ;;  %v611_v32 = vld [vmem:[%s7804_s30 + $0xa68] sm:$0xff] }
 0x18f   : > { %v9351_v46 = vadd.f32 %v2746_v47, %v2394_v22  ;;  %v2396_v2 = vadd.f32 %v2395_v59, %v8659_v19  ;;  %13153 = vst [vmem:[#allocation254_spill] sm:$0xff] %v9354_v63  ;;  %13154 = vst [vmem:[#allocation255_spill] sm:$0xff] %v9356_v9 }
 0x190   : > { %v2397_v42 = vpop.f32.mrf.mxu1  ;;  %v2750_v49 = vpop.f32.mrf.mxu0  ;;  %13156 = vst [vmem:[#allocation257_spill] sm:$0xff] %v9363_v17 }
 0x191   : > { %v9358_v35 = vadd.f32 %v2748_v27, %v2396_v2  ;;  %v2398_v5 = vadd.f32 %v2397_v42, %v8671_v36  ;;  %v594_v42 = vld [vmem:[%s7804_s30 + $0x9e0] sm:$0xff]  ;;  %v600_v36 = vld [vmem:[%s7804_s30 + $0xa10] sm:$0xff] }
 0x192   : > { %v2399_v47 = vpop.f32.mrf.mxu1  ;;  %v2752_v22 = vpop.f32.mrf.mxu0 }
 0x193   : > { %v2751_v19 = vadd.f32 %v2750_v49, %v2398_v5  ;;  %v2400_v59 = vadd.f32 %v2399_v47, %v8683_v58  ;;  %v9391_v49 = vpack.c.bf16 %v611_v32, %v605_v13  ;;  %v604_v32 = vld [vmem:[%s7804_s30 + $0xa30] sm:$0xff] }
 0x194   : > { %v2403_v21 = vpop.f32.mrf.mxu1  ;;  %2642 = vmatmul.mubr.bf16.gmra.mxu1 %v9354_v63  ;;  %v2756_v2 = vpop.f32.mrf.mxu0  ;;  %2995 = vmatmul.mubr.bf16.gmra.mxu0 %v9356_v9 }
 0x195   : > { %v4255_v27 = vrot.slane %v2751_v19, 7  ;;  %v2753_v5 = vadd.f32 %v2752_v22, %v2400_v59  ;;  %v2404_v58 = vadd.f32 %v2403_v21, %v8699_v6  ;;  %2651 = vmatprep.mubr.bf16.mxu1 %v9361_v50  ;;  %3004 = vmatprep.mubr.bf16.mxu0 %v9363_v17  ;;  %v13157_v22 = vrot.slane %v9351_v46, 7 }
 0x196   : > { %v2405_v47 = vpop.f32.mrf.mxu1  ;;  %v2758_v9 = vpop.f32.mrf.mxu0  ;;  %v9387_v21 = vpack.c.bf16 %v598_v33, %v592_v62  ;;  %v9389_v17 = vpack.c.bf16 %v600_v36, %v594_v42  ;;  %v9393_v50 = vpack.c.bf16 %v613_v25, %v607_v56  ;;  %v606_v56 = vld [vmem:[%s7804_s30 + $0xa40] sm:$0xff]  ;;  %v612_v25 = vld [vmem:[%s7804_s30 + $0xa70] sm:$0xff] }
 0x197   : > { %v4257_v63 = vrot.slane %v2753_v5, 7  ;;  %v2757_v3 = vadd.f32 %v2756_v2, %v2404_v58  ;;  %v2406_v60 = vadd.f32 %v2405_v47, %v8713_v41  ;;  %v9385_v6 = vsel %vm4252_vm0, %v13157_v22, %v4255_v27  ;;  %v617_v22 = vld [vmem:[%s7804_s30 + $0xa98] sm:$0xff] }
 0x198   : > { %13158 = vst [vmem:[#allocation258_spill] sm:$0xff] %v9385_v6  ;;  %v2407_v19 = vpop.f32.mrf.mxu1  ;;  %v2760_v59 = vpop.f32.mrf.mxu0  ;;  %13159 = vst [vmem:[#allocation259_spill] sm:$0xff] %v9389_v17  ;;  %v13161_v58 = vrot.slane %v9358_v35, 7 }
 0x199   : > { %13160 = vst [vmem:[#allocation260_spill] sm:$0xff] %v9393_v50  ;;  %v4259_v2 = vrot.slane %v2757_v3, 7  ;;  %v2759_v41 = vadd.f32 %v2758_v9, %v2406_v60  ;;  %v2408_v5 = vadd.f32 %v2407_v19, %v8725_v4  ;;  %v610_v3 = vld [vmem:[%s7804_s30 + $0xa60] sm:$0xff] }
 0x19a   : > { %v9399_v47 = vsel %vm4252_vm0, %v13161_v58, %v4257_v63  ;;  %v2409_v62 = vpop.f32.mrf.mxu1  ;;  %v2762_v33 = vpop.f32.mrf.mxu0 }
 0x19b   : > { %13162 = vst [vmem:[#allocation261_spill] sm:$0xff] %v9399_v47  ;;  %v4261_v42 = vrot.slane %v2759_v41, 7  ;;  %v2761_v36 = vadd.f32 %v2760_v59, %v2408_v5  ;;  %v2410_v13 = vadd.f32 %v2409_v62, %v8737_v55  ;;  %v9405_v9 = vsel %vm4252_vm0, %v4255_v27, %v4259_v2  ;;  %v623_v41 = vld [vmem:[%s7804_s30 + $0xac8] sm:$0xff]  ;;  %v625_v5 = vld [vmem:[%s7804_s30 + $0xad8] sm:$0xff] }
 0x19c   : > { %13163 = vst [vmem:[#allocation262_spill] sm:$0xff] %v9405_v9  ;;  %v2413_v4 = vpop.f32.mrf.mxu1  ;;  %2652 = vmatmul.mubr.bf16.gmra.mxu1 %v9387_v21  ;;  %v2766_v60 = vpop.f32.mrf.mxu0  ;;  %3005 = vmatmul.mubr.bf16.gmra.mxu0 %v9389_v17  ;;  %v619_v27 = vld [vmem:[%s7804_s30 + $0xaa8] sm:$0xff] }
 0x19d   : > { %v4263_v19 = vrot.slane %v2761_v36, 7  ;;  %v2763_v59 = vadd.f32 %v2762_v33, %v2410_v13  ;;  %v2414_v55 = vadd.f32 %v2413_v4, %v8747_v61  ;;  %2661 = vmatprep.mubr.bf16.mxu1 %v9391_v49  ;;  %3014 = vmatprep.mubr.bf16.mxu0 %v9393_v50  ;;  %v9419_v58 = vsel %vm4252_vm0, %v4257_v63, %v4261_v42 }
 0x19e   : > { %13164 = vst [vmem:[#allocation263_spill] sm:$0xff] %v9419_v58  ;;  %v2415_v62 = vpop.f32.mrf.mxu1  ;;  %v2768_v9 = vpop.f32.mrf.mxu0  ;;  %v9425_v13 = vpack.c.bf16 %v610_v3, %v604_v32  ;;  %v9427_v4 = vpack.c.bf16 %v612_v25, %v606_v56  ;;  %v9429_v50 = vpack.c.bf16 %v623_v41, %v617_v22  ;;  %v9431_v63 = vpack.c.bf16 %v625_v5, %v619_v27  ;;  %v616_v25 = vld [vmem:[%s7804_s30 + $0xa90] sm:$0xff]  ;;  %v622_v22 = vld [vmem:[%s7804_s30 + $0xac0] sm:$0xff]  ;;  %v629_v41 = vld [vmem:[%s7804_s30 + $0xaf8] sm:$0xff] }
 0x19f   : > { %v4265_v17 = vrot.slane %v2763_v59, 7  ;;  %v2767_v47 = vadd.f32 %v2766_v60, %v2414_v55  ;;  %v2416_v6 = vadd.f32 %v2415_v62, %v8761_v57  ;;  %v9423_v33 = vsel %vm4252_vm0, %v4259_v2, %v4263_v19  ;;  %v635_v62 = vld [vmem:[%s7804_s30 + $0xb28] sm:$0xff] }
 0x1a0   : > { %v2417_v61 = vpop.f32.mrf.mxu1  ;;  %v2770_v36 = vpop.f32.mrf.mxu0  ;;  %13165 = vst [vmem:[#allocation264_spill] sm:$0xff] %v9427_v4  ;;  %13166 = vst [vmem:[#allocation265_spill] sm:$0xff] %v9431_v63 }
 0x1a1   : > { %v4267_v58 = vrot.slane %v2767_v47, 7  ;;  %v2769_v60 = vadd.f32 %v2768_v9, %v2416_v6  ;;  %v2418_v57 = vadd.f32 %v2417_v61, %v8773_v54  ;;  %v9435_v2 = vsel %vm4252_vm0, %v4261_v42, %v4265_v17  ;;  %v618_v42 = vld [vmem:[%s7804_s30 + $0xaa0] sm:$0xff]  ;;  %v624_v9 = vld [vmem:[%s7804_s30 + $0xad0] sm:$0xff]  ;;  %v637_v61 = vld [vmem:[%s7804_s30 + $0xb38] sm:$0xff] }
 0x1a2   : > { %v2419_v59 = vpop.f32.mrf.mxu1  ;;  %v2772_v55 = vpop.f32.mrf.mxu0 }
 0x1a3   : > { %v4269_v32 = vrot.slane %v2769_v60, 7  ;;  %v2771_v3 = vadd.f32 %v2770_v36, %v2418_v57  ;;  %v2420_v56 = vadd.f32 %v2419_v59, %v8788_v52  ;;  %v9441_v6 = vsel %vm4252_vm0, %v4263_v19, %v4267_v58  ;;  %v631_v19 = vld [vmem:[%s7804_s30 + $0xb08] sm:$0xff] }
 0x1a4   : > { %13167 = vst [vmem:[#allocation266_spill] sm:$0xff] %v9441_v6  ;;  %v2423_v47 = vpop.f32.mrf.mxu1  ;;  %2662 = vmatmul.mubr.bf16.gmra.mxu1 %v9425_v13  ;;  %v2776_v54 = vpop.f32.mrf.mxu0  ;;  %3015 = vmatmul.mubr.bf16.gmra.mxu0 %v9427_v4 }
 0x1a5   : > { %v4271_v27 = vrot.slane %v2771_v3, 7  ;;  %v2773_v5 = vadd.f32 %v2772_v55, %v2420_v56  ;;  %v2424_v52 = vadd.f32 %v2423_v47, %v8801_v18  ;;  %2671 = vmatprep.mubr.bf16.mxu1 %v9429_v50  ;;  %3024 = vmatprep.mubr.bf16.mxu0 %v9431_v63  ;;  %v9455_v36 = vsel %vm4252_vm0, %v4265_v17, %v4269_v32 }
 0x1a6   : > { %13168 = vst [vmem:[#allocation267_spill] sm:$0xff] %v9455_v36  ;;  %v2425_v60 = vpop.f32.mrf.mxu1  ;;  %v2778_v57 = vpop.f32.mrf.mxu0  ;;  %v9461_v56 = vpack.c.bf16 %v622_v22, %v616_v25  ;;  %v9463_v47 = vpack.c.bf16 %v624_v9, %v618_v42  ;;  %v9465_v63 = vpack.c.bf16 %v635_v62, %v629_v41  ;;  %v9467_v17 = vpack.c.bf16 %v637_v61, %v631_v19  ;;  %v628_v9 = vld [vmem:[%s7804_s30 + $0xaf0] sm:$0xff]  ;;  %v634_v41 = vld [vmem:[%s7804_s30 + $0xb20] sm:$0xff]  ;;  %v641_v19 = vld [vmem:[%s7804_s30 + $0xb58] sm:$0xff] }
 0x1a7   : > { %v4273_v59 = vrot.slane %v2773_v5, 7  ;;  %v2777_v4 = vadd.f32 %v2776_v54, %v2424_v52  ;;  %v2426_v6 = vadd.f32 %v2425_v60, %v8815_v31  ;;  %v9459_v55 = vsel %vm4252_vm0, %v4267_v58, %v4271_v27  ;;  %v636_v62 = vld [vmem:[%s7804_s30 + $0xb30] sm:$0xff] }
 0x1a8   : > { %v2427_v18 = vpop.f32.mrf.mxu1  ;;  %v2780_v3 = vpop.f32.mrf.mxu0  ;;  %13169 = vst [vmem:[#allocation268_spill] sm:$0xff] %v9463_v47  ;;  %13170 = vst [vmem:[#allocation269_spill] sm:$0xff] %v9467_v17 }
 0x1a9   : > { %v4275_v36 = vrot.slane %v2777_v4, 7  ;;  %v2779_v54 = vadd.f32 %v2778_v57, %v2426_v6  ;;  %v2428_v31 = vadd.f32 %v2427_v18, %v8827_v24  ;;  %v9471_v58 = vsel %vm4252_vm0, %v4269_v32, %v4273_v59  ;;  %v630_v32 = vld [vmem:[%s7804_s30 + $0xb00] sm:$0xff]  ;;  %v647_v57 = vld [vmem:[%s7804_s30 + $0xb88] sm:$0xff]  ;;  %v649_v18 = vld [vmem:[%s7804_s30 + $0xb98] sm:$0xff] }
 0x1aa   : > { %v2429_v5 = vpop.f32.mrf.mxu1  ;;  %v2782_v52 = vpop.f32.mrf.mxu0 }
 0x1ab   : > { %v4277_v25 = vrot.slane %v2779_v54, 7  ;;  %v2781_v22 = vadd.f32 %v2780_v3, %v2428_v31  ;;  %v2430_v42 = vadd.f32 %v2429_v5, %v8839_v0  ;;  %v9477_v4 = vsel %vm4252_vm0, %v4271_v27, %v4275_v36  ;;  %v643_v27 = vld [vmem:[%s7804_s30 + $0xb68] sm:$0xff] }
 0x1ac   : > { %13171 = vst [vmem:[#allocation270_spill] sm:$0xff] %v9477_v4  ;;  %v2433_v6 = vpop.f32.mrf.mxu1  ;;  %2672 = vmatmul.mubr.bf16.gmra.mxu1 %v9461_v56  ;;  %v2786_v24 = vpop.f32.mrf.mxu0  ;;  %3025 = vmatmul.mubr.bf16.gmra.mxu0 %v9463_v47 }
 0x1ad   : > { %v4279_v61 = vrot.slane %v2781_v22, 7  ;;  %v2783_v60 = vadd.f32 %v2782_v52, %v2430_v42  ;;  %v2434_v0 = vadd.f32 %v2433_v6, %v8849_v53  ;;  %2681 = vmatprep.mubr.bf16.mxu1 %v9465_v63  ;;  %3034 = vmatprep.mubr.bf16.mxu0 %v9467_v17  ;;  %v9491_v3 = vsel %vm4252_vm0, %v4273_v59, %v4277_v25 }
 0x1ae   : > { %13172 = vst [vmem:[#allocation271_spill] sm:$0xff] %v9491_v3  ;;  %v2435_v54 = vpop.f32.mrf.mxu1  ;;  %v2788_v31 = vpop.f32.mrf.mxu0  ;;  %v9497_v42 = vpack.c.bf16 %v634_v41, %v628_v9  ;;  %v9499_v6 = vpack.c.bf16 %v636_v62, %v630_v32  ;;  %v9501_v17 = vpack.c.bf16 %v647_v57, %v641_v19  ;;  %v9503_v59 = vpack.c.bf16 %v649_v18, %v643_v27  ;;  %v640_v62 = vld [vmem:[%s7804_s30 + $0xb50] sm:$0xff]  ;;  %v646_v19 = vld [vmem:[%s7804_s30 + $0xb80] sm:$0xff]  ;;  %v653_v27 = vld [vmem:[%s7804_s30 + $0xbb8] sm:$0xff] }
 0x1af   : > { %v4281_v5 = vrot.slane %v2783_v60, 7  ;;  %v2787_v47 = vadd.f32 %v2786_v24, %v2434_v0  ;;  %v2436_v4 = vadd.f32 %v2435_v54, %v8863_v39  ;;  %v9495_v52 = vsel %vm4252_vm0, %v4275_v36, %v4279_v61  ;;  %v648_v57 = vld [vmem:[%s7804_s30 + $0xb90] sm:$0xff] }
 0x1b0   : > { %v2437_v53 = vpop.f32.mrf.mxu1  ;;  %v2790_v22 = vpop.f32.mrf.mxu0  ;;  %13173 = vst [vmem:[#allocation272_spill] sm:$0xff] %v9499_v6  ;;  %13174 = vst [vmem:[#allocation273_spill] sm:$0xff] %v9503_v59 }
 0x1b1   : > { %v4283_v3 = vrot.slane %v2787_v47, 7  ;;  %v2789_v24 = vadd.f32 %v2788_v31, %v2436_v4  ;;  %v2438_v39 = vadd.f32 %v2437_v53, %v8875_v23  ;;  %v9507_v36 = vsel %vm4252_vm0, %v4277_v25, %v4281_v5  ;;  %v642_v25 = vld [vmem:[%s7804_s30 + $0xb60] sm:$0xff]  ;;  %v659_v31 = vld [vmem:[%s7804_s30 + $0xbe8] sm:$0xff]  ;;  %v661_v53 = vld [vmem:[%s7804_s30 + $0xbf8] sm:$0xff] }
 0x1b2   : > { %13175 = vst [vmem:[#allocation274_spill] sm:$0xff] %v9507_v36  ;;  %v2439_v60 = vpop.f32.mrf.mxu1  ;;  %v2792_v0 = vpop.f32.mrf.mxu0 }
 0x1b3   : > { %v4285_v9 = vrot.slane %v2789_v24, 7  ;;  %v2791_v41 = vadd.f32 %v2790_v22, %v2438_v39  ;;  %v2440_v32 = vadd.f32 %v2439_v60, %v8890_v1  ;;  %v9513_v47 = vsel %vm4252_vm0, %v4279_v61, %v4283_v3  ;;  %v655_v61 = vld [vmem:[%s7804_s30 + $0xbc8] sm:$0xff] }
 0x1b4   : > { %13176 = vst [vmem:[#allocation275_spill] sm:$0xff] %v9513_v47  ;;  %v2443_v4 = vpop.f32.mrf.mxu1  ;;  %2682 = vmatmul.mubr.bf16.gmra.mxu1 %v9497_v42  ;;  %v2796_v23 = vpop.f32.mrf.mxu0  ;;  %3035 = vmatmul.mubr.bf16.gmra.mxu0 %v9499_v6 }
 0x1b5   : > { %v4287_v18 = vrot.slane %v2791_v41, 7  ;;  %v2793_v54 = vadd.f32 %v2792_v0, %v2440_v32  ;;  %v2444_v1 = vadd.f32 %v2443_v4, %v8903_v26  ;;  %2691 = vmatprep.mubr.bf16.mxu1 %v9501_v17  ;;  %3044 = vmatprep.mubr.bf16.mxu0 %v9503_v59  ;;  %v9527_v22 = vsel %vm4252_vm0, %v4281_v5, %v4285_v9 }
 0x1b6   : > { %13177 = vst [vmem:[#allocation276_spill] sm:$0xff] %v9527_v22  ;;  %v2445_v24 = vpop.f32.mrf.mxu1  ;;  %v2798_v39 = vpop.f32.mrf.mxu0  ;;  %v9533_v32 = vpack.c.bf16 %v646_v19, %v640_v62  ;;  %v9535_v4 = vpack.c.bf16 %v648_v57, %v642_v25  ;;  %v9537_v59 = vpack.c.bf16 %v659_v31, %v653_v27  ;;  %v9539_v5 = vpack.c.bf16 %v661_v53, %v655_v61  ;;  %v660_v31 = vld [vmem:[%s7804_s30 + $0xbf0] sm:$0xff] }
 0x1b7   : > { %v4289_v60 = vrot.slane %v2793_v54, 7  ;;  %v2797_v6 = vadd.f32 %v2796_v23, %v2444_v1  ;;  %v2446_v47 = vadd.f32 %v2445_v24, %v8917_v8  ;;  %v9531_v0 = vsel %vm4252_vm0, %v4283_v3, %v4287_v18 }
 0x1b8   : > { %v2447_v26 = vpop.f32.mrf.mxu1  ;;  %v2800_v41 = vpop.f32.mrf.mxu0  ;;  %13178 = vst [vmem:[#allocation277_spill] sm:$0xff] %v9539_v5 }
 0x1b9   : > { %v4291_v22 = vrot.slane %v2797_v6, 7  ;;  %v2799_v36 = vadd.f32 %v2798_v39, %v2446_v47  ;;  %v2448_v23 = vadd.f32 %v2447_v26, %v8929_v40  ;;  %v9543_v8 = vsel %vm4252_vm0, %v4285_v9, %v4289_v60  ;;  %v652_v40 = vld [vmem:[%s7804_s30 + $0xbb0] sm:$0xff] }
 0x1ba   : > { %v2449_v3 = vpop.f32.mrf.mxu1  ;;  %v2802_v54 = vpop.f32.mrf.mxu0 }
 0x1bb   : > { %v4293_v62 = vrot.slane %v2799_v36, 7  ;;  %v2801_v19 = vadd.f32 %v2800_v41, %v2448_v23  ;;  %v2450_v25 = vadd.f32 %v2449_v3, %v8941_v28  ;;  %v9547_v57 = vsel %vm4252_vm0, %v4287_v18, %v4291_v22  ;;  %v658_v36 = vld [vmem:[%s7804_s30 + $0xbe0] sm:$0xff] }
 0x1bc   : > { %v2453_v27 = vpop.f32.mrf.mxu1  ;;  %2692 = vmatmul.mubr.bf16.gmra.mxu1 %v9533_v32  ;;  %v2806_v6 = vpop.f32.mrf.mxu0  ;;  %3045 = vmatmul.mubr.bf16.gmra.mxu0 %v9535_v4  ;;  %v654_v28 = vld [vmem:[%s7804_s30 + $0xbc0] sm:$0xff]  ;;  %v9565_v3 = vpack.c.bf16 %v658_v36, %v652_v40 }
 0x1bd   : > { %v4295_v9 = vrot.slane %v2801_v19, 7  ;;  %v2803_v47 = vadd.f32 %v2802_v54, %v2450_v25  ;;  %v2454_v1 = vadd.f32 %v2453_v27, %v8951_v29  ;;  %2701 = vmatprep.mubr.bf16.mxu1 %v9537_v59  ;;  %3054 = vmatprep.mubr.bf16.mxu0 %v9539_v5  ;;  %v9559_v18 = vsel %vm4252_vm0, %v4289_v60, %v4293_v62 }
 0x1be   : > { %v2455_v61 = vpop.f32.mrf.mxu1  ;;  %v2808_v53 = vpop.f32.mrf.mxu0  ;;  %v9567_v54 = vpack.c.bf16 %v660_v31, %v654_v28 }
 0x1bf   : > { %v4297_v24 = vrot.slane %v2803_v47, 7  ;;  %v2807_v39 = vadd.f32 %v2806_v6, %v2454_v1  ;;  %v2456_v26 = vadd.f32 %v2455_v61, %v8965_v37  ;;  %v9563_v41 = vsel %vm4252_vm0, %v4291_v22, %v4295_v9 }
 0x1c0   : > { %v2457_v29 = vpop.f32.mrf.mxu1  ;;  %v2810_v23 = vpop.f32.mrf.mxu0  ;;  %13179 = vst [vmem:[#allocation278_spill] sm:$0xff] %v9567_v54 }
 0x1c1   : > { %v4299_v19 = vrot.slane %v2807_v39, 7  ;;  %v2809_v25 = vadd.f32 %v2808_v53, %v2456_v26  ;;  %v2458_v60 = vadd.f32 %v2457_v29, %v8977_v10  ;;  %v9571_v27 = vsel %vm4252_vm0, %v4293_v62, %v4297_v24 }
 0x1c2   : > { %13180 = vst [vmem:[#allocation279_spill] sm:$0xff] %v9571_v27  ;;  %v2459_v47 = vpop.f32.mrf.mxu1  ;;  %v2812_v6 = vpop.f32.mrf.mxu0 }
 0x1c3   : > { %v4301_v1 = vrot.slane %v2809_v25, 7  ;;  %v2811_v37 = vadd.f32 %v2810_v23, %v2458_v60  ;;  %v2460_v22 = vadd.f32 %v2459_v47, %v8992_v11  ;;  %v9575_v61 = vsel %vm4252_vm0, %v4295_v9, %v4299_v19 }
 0x1c4   : > { %13181 = vst [vmem:[#allocation280_spill] sm:$0xff] %v9575_v61  ;;  %v2463_v40 = vpop.f32.mrf.mxu1  ;;  %2702 = vmatmul.mubr.bf16.gmra.mxu1 %v9565_v3  ;;  %v2816_v36 = vpop.f32.mrf.mxu0  ;;  %3055 = vmatmul.mubr.bf16.gmra.mxu0 %v9567_v54 }
 0x1c5   : > { %v4303_v28 = vrot.slane %v2811_v37, 7  ;;  %v2813_v10 = vadd.f32 %v2812_v6, %v2460_v22  ;;  %v2464_v62 = vadd.f32 %v2463_v40, %v9005_v43  ;;  %3097 = vmatprep.mubr.bf16.mxu1 %v7814_v15  ;;  %3450 = vmatprep.mubr.bf16.mxu0 %v8386_v30  ;;  %v9583_v31 = vsel %vm4252_vm0, %v4297_v24, %v4301_v1  ;;  %v7642_v30 = vld [vmem:[%s12707_s1 + $0x4e8] ss:$16 sps:$4 sm:$0xff]  }
 0x1c6   : > { %13182 = vst [vmem:[#allocation281_spill] sm:$0xff] %v9583_v31  ;;  %v2465_v11 = vpop.f32.mrf.mxu1  ;;  %v2818_v9 = vpop.f32.mrf.mxu0 }
 0x1c7   : > { %v4305_v53 = vrot.slane %v2813_v10, 7  ;;  %v2817_v39 = vadd.f32 %v2816_v36, %v2464_v62  ;;  %v2466_v26 = vadd.f32 %v2465_v11, %v9019_v38  ;;  %v9587_v29 = vsel %vm4252_vm0, %v4299_v19, %v4303_v28  ;;  %v7647_v38 = vld [vmem:[%s12707_s1 + $0x4cc] ss:$16 sps:$4 sm:$0xff]  }
 0x1c8   : > { %13183 = vst [vmem:[#allocation282_spill] sm:$0xff] %v9587_v29  ;;  %v2467_v23 = vpop.f32.mrf.mxu1  ;;  %v2820_v25 = vpop.f32.mrf.mxu0 }
 0x1c9   : > { %v4307_v60 = vrot.slane %v2817_v39, 7  ;;  %v2819_v43 = vadd.f32 %v2818_v9, %v2466_v26  ;;  %v2468_v15 = vadd.f32 %v2467_v23, %v9031_v14  ;;  %v9594_v24 = vsel %vm4252_vm0, %v4301_v1, %v4305_v53 }
 0x1ca   : > { %13184 = vst [vmem:[#allocation283_spill] sm:$0xff] %v9594_v24  ;;  %v2469_v47 = vpop.f32.mrf.mxu1  ;;  %v2822_v6 = vpop.f32.mrf.mxu0 }
 0x1cb   : > { %v4309_v19 = vrot.slane %v2819_v43, 7  ;;  %v2821_v37 = vadd.f32 %v2820_v25, %v2468_v15  ;;  %v2470_v22 = vadd.f32 %v2469_v47, %v9043_v12  ;;  %v9601_v40 = vsel %vm4252_vm0, %v4303_v28, %v4307_v60  ;;  %v7645_v12 = vld [vmem:[%s12707_s1 + $0x4c8] ss:$16 sps:$4 sm:$0xff]  }
 0x1cc   : > { %13185 = vst [vmem:[#allocation284_spill] sm:$0xff] %v9601_v40  ;;  %v2473_v14 = vpop.f32.mrf.mxu1  ;;  %v2826_v36 = vpop.f32.mrf.mxu0  ;;  %3098 = vmatmul.mubr.bf16.vlgmr.msra.gmra.mxu1 %v7893_v48  ;;  %3451 = vmatmul.mubr.bf16.vlgmr.msra.gmra.mxu0 %v8402_v44  ;;  %v7650_v48 = vld [vmem:[%s12707_s1 + $0x4ac] ss:$16 sps:$4 sm:$0xff]   ;;  %v7648_v47 = vld [vmem:[%s12707_s1 + $0x4a8] ss:$16 sps:$4 sm:$0xff]  }
 0x1cd   : > { %v4311_v1 = vrot.slane %v2821_v37, 7  ;;  %v2823_v10 = vadd.f32 %v2822_v6, %v2470_v22  ;;  %v2474_v62 = vadd.f32 %v2473_v14, %v9047_v7  ;;  %3772 = vmatpush1.bf16.msra.mxu1 %v7642_v30  ;;  %3107 = vmatprep.mubr.bf16.mxu1 %v7900_v51  ;;  %v9611_v28 = vsel %vm4252_vm0, %v4305_v53, %v4309_v19  ;;  %v13190_v22 = vld [vmem:[#allocation5_spill] sm:$0xff]  ;;  %v13191_v14 = vld [vmem:[#allocation66_spill] sm:$0xff]  ;;  %v13495_v40 = vld [vmem:[#allocation63_spill] sm:$0xff] }
 0x1ce   : > { %13186 = vst [vmem:[#allocation285_spill] sm:$0xff] %v9611_v28  ;;  %v2475_v11 = vpop.f32.mrf.mxu1  ;;  %v2828_v9 = vpop.f32.mrf.mxu0  ;;  %3460 = vmatprep.mubr.bf16.mxu0 %v8409_v20  ;;  %3773 = vmatprep.subr.bf16.mxu1 %v7647_v38  ;;  %v7653_v38 = vld [vmem:[%s12707_s1 + $0x48c] ss:$16 sps:$4 sm:$0xff]  }
 0x1cf   : > { %v4313_v44 = vrot.slane %v2823_v10, 7  ;;  %v2827_v7 = vadd.f32 %v2826_v36, %v2474_v62  ;;  %v2476_v51 = vadd.f32 %v2475_v11, %v9060_v16  ;;  %v9619_v39 = vsel %vm4252_vm0, %v4307_v60, %v4311_v1  ;;  %v13192_v62 = vld [vmem:[#allocation170_spill] sm:$0xff]  ;;  %v13193_v11 = vld [vmem:[#allocation7_spill] sm:$0xff] }
 0x1d0   : > { %13187 = vst [vmem:[#allocation286_spill] sm:$0xff] %v9619_v39  ;;  %v2477_v26 = vpop.f32.mrf.mxu1  ;;  %v2830_v23 = vpop.f32.mrf.mxu0 }
 0x1d1   : > { %v4315_v53 = vrot.slane %v2827_v7, 7  ;;  %v2829_v25 = vadd.f32 %v2828_v9, %v2476_v51  ;;  %v2478_v43 = vadd.f32 %v2477_v26, %v9067_v34  ;;  %3774 = vmatpush1.bf16.msra.mxu1 %v7645_v12  ;;  %v9623_v20 = vsel %vm4252_vm0, %v4309_v19, %v4313_v44  ;;  %v7651_v7 = vld [vmem:[%s12707_s1 + $0x488] ss:$16 sps:$4 sm:$0xff]  }
 0x1d2   : > { %13188 = vst [vmem:[#allocation287_spill] sm:$0xff] %v9623_v20  ;;  %v2479_v15 = vpop.f32.mrf.mxu1  ;;  %v2832_v30 = vpop.f32.mrf.mxu0  ;;  %3775 = vmatprep.subr.bf16.mxu1 %v7650_v48  ;;  %v7700_v20 = vld [vmem:[%s12709_s3 + $0x68] sm:$0xff]  }
 0x1d3   : > { %v4317_v16 = vrot.slane %v2829_v25, 7  ;;  %v2831_v60 = vadd.f32 %v2830_v23, %v2478_v43  ;;  %v2480_v6 = vadd.f32 %v2479_v15, %v9082_v45  ;;  %v9633_v34 = vsel %vm4252_vm0, %v4311_v1, %v4315_v53  ;;  %v13194_v45 = vld [vmem:[#allocation68_spill] sm:$0xff]  ;;  %v7656_v43 = vld [vmem:[%s12707_s1 + $0x46c] ss:$16 sps:$4 sm:$0xff]  }
 0x1d4   : > { %13189 = vst [vmem:[#allocation288_spill] sm:$0xff] %v9633_v34  ;;  %v2483_v19 = vpop.f32.mrf.mxu1  ;;  %v2836_v37 = vpop.f32.mrf.mxu0  ;;  %3108 = vmatmul.mubr.bf16.gmra.mxu1 %v13190_v22  ;;  %3461 = vmatmul.mubr.bf16.gmra.mxu0 %v13191_v14  ;;  %v13196_v23 = vld [vmem:[#allocation172_spill] sm:$0xff] }
 0x1d5   : > { %v4319_v36 = vrot.slane %v2831_v60, 7  ;;  %v2833_v10 = vadd.f32 %v2832_v30, %v2480_v6  ;;  %v2484_v12 = vadd.f32 %v2483_v19, %v13192_v62  ;;  %3117 = vmatprep.mubr.bf16.mxu1 %v13193_v11  ;;  %3470 = vmatprep.mubr.bf16.mxu0 %v13194_v45  ;;  %v9641_v9 = vsel %vm4252_vm0, %v4313_v44, %v4317_v16  ;;  %v13198_v6 = vld [vmem:[#allocation174_spill] sm:$0xff]  ;;  %v7659_v11 = vld [vmem:[%s12707_s1 + $0x44c] ss:$16 sps:$4 sm:$0xff]  }
 0x1d6   : > { %13195 = vst [vmem:[#allocation5_spill] sm:$0xff] %v9641_v9  ;;  %v2485_v48 = vpop.f32.mrf.mxu1  ;;  %v2838_v1 = vpop.f32.mrf.mxu0  ;;  %3776 = vmatpush1.bf16.msra.mxu1 %v7648_v47 }
 0x1d7   : > { %v4321_v51 = vrot.slane %v2833_v10, 7  ;;  %v2837_v26 = vadd.f32 %v2836_v37, %v2484_v12  ;;  %v2486_v25 = vadd.f32 %v2485_v48, %v13196_v23  ;;  %3777 = vmatprep.subr.bf16.mxu1 %v7653_v38  ;;  %v9651_v15 = vsel %vm4252_vm0, %v4315_v53, %v4319_v36  ;;  %v7654_v38 = vld [vmem:[%s12707_s1 + $0x468] ss:$16 sps:$4 sm:$0xff]   ;;  %v13200_v53 = vld [vmem:[#allocation180_spill] sm:$0xff] }
 0x1d8   : > { %13197 = vst [vmem:[#allocation66_spill] sm:$0xff] %v9651_v15  ;;  %v2487_v44 = vpop.f32.mrf.mxu1  ;;  %v2840_v30 = vpop.f32.mrf.mxu0 }
 0x1d9   : > { %v4323_v60 = vrot.slane %v2837_v26, 7  ;;  %v2839_v47 = vadd.f32 %v2838_v1, %v2486_v25  ;;  %v2488_v19 = vadd.f32 %v2487_v44, %v13198_v6  ;;  %v9655_v22 = vsel %vm4252_vm0, %v4317_v16, %v4321_v51  ;;  %v13202_v1 = vld [vmem:[#allocation9_spill] sm:$0xff]  ;;  %v13204_v25 = vld [vmem:[#allocation182_spill] sm:$0xff] }
 0x1da   : > { %13199 = vst [vmem:[#allocation170_spill] sm:$0xff] %v9655_v22  ;;  %v2489_v37 = vpop.f32.mrf.mxu1  ;;  %v2842_v14 = vpop.f32.mrf.mxu0  ;;  %3778 = vmatpush1.bf16.msra.mxu1 %v7651_v7  ;;  %v13203_v7 = vld [vmem:[#allocation70_spill] sm:$0xff] }
 0x1db   : > { %v4325_v10 = vrot.slane %v2839_v47, 7  ;;  %v2841_v62 = vadd.f32 %v2840_v30, %v2488_v19  ;;  %v2490_v12 = vadd.f32 %v2489_v37, %v13200_v53  ;;  %3779 = vmatprep.subr.bf16.mxu1 %v7656_v43  ;;  %v9665_v45 = vsel %vm4252_vm0, %v4319_v36, %v4323_v60  ;;  %v13205_v30 = vld [vmem:[#allocation11_spill] sm:$0xff]  ;;  %v13206_v43 = vld [vmem:[#allocation72_spill] sm:$0xff] }
 0x1dc   : > { %13201 = vst [vmem:[#allocation7_spill] sm:$0xff] %v9665_v45  ;;  %v2493_v16 = vpop.f32.mrf.mxu1  ;;  %v2846_v48 = vpop.f32.mrf.mxu0  ;;  %3118 = vmatmul.mubr.bf16.gmra.mxu1 %v13202_v1  ;;  %3471 = vmatmul.mubr.bf16.gmra.mxu0 %v13203_v7  ;;  %v7657_v19 = vld [vmem:[%s12707_s1 + $0x448] ss:$16 sps:$4 sm:$0xff]   ;;  %v13274_v45 = vld [vmem:[#allocation94_spill] sm:$0xff] }
 0x1dd   : > { %v4327_v26 = vrot.slane %v2841_v62, 7  ;;  %v2843_v23 = vadd.f32 %v2842_v14, %v2490_v12  ;;  %v2494_v44 = vadd.f32 %v2493_v16, %v13204_v25  ;;  %3127 = vmatprep.mubr.bf16.mxu1 %v13205_v30  ;;  %3480 = vmatprep.mubr.bf16.mxu0 %v13206_v43  ;;  %v9673_v47 = vsel %vm4252_vm0, %v4321_v51, %v4325_v10  ;;  %v13208_v62 = vld [vmem:[#allocation184_spill] sm:$0xff]  ;;  %v7662_v12 = vld [vmem:[%s12707_s1 + $0x42c] ss:$16 sps:$4 sm:$0xff]   ;;  %v13210_v25 = vld [vmem:[#allocation186_spill] sm:$0xff] }
 0x1de   : > { %13207 = vst [vmem:[#allocation68_spill] sm:$0xff] %v9673_v47  ;;  %v2495_v6 = vpop.f32.mrf.mxu1  ;;  %v2848_v36 = vpop.f32.mrf.mxu0  ;;  %3780 = vmatpush1.bf16.msra.mxu1 %v7654_v38  ;;  %v13241_v47 = vld [vmem:[#allocation23_spill] sm:$0xff] }
 0x1df   : > { %v4329_v37 = vrot.slane %v2843_v23, 7  ;;  %v2847_v53 = vadd.f32 %v2846_v48, %v2494_v44  ;;  %v2496_v14 = vadd.f32 %v2495_v6, %v13208_v62  ;;  %3781 = vmatprep.subr.bf16.mxu1 %v7659_v11  ;;  %v9683_v16 = vsel %vm4252_vm0, %v4323_v60, %v4327_v26  ;;  %v7660_v11 = vld [vmem:[%s12707_s1 + $0x428] ss:$16 sps:$4 sm:$0xff]   ;;  %v13212_v60 = vld [vmem:[#allocation192_spill] sm:$0xff] }
 0x1e0   : > { %13209 = vst [vmem:[#allocation172_spill] sm:$0xff] %v9683_v16  ;;  %v2497_v51 = vpop.f32.mrf.mxu1  ;;  %v2850_v1 = vpop.f32.mrf.mxu0 }
 0x1e1   : > { %v4331_v7 = vrot.slane %v2847_v53, 7  ;;  %v2849_v38 = vadd.f32 %v2848_v36, %v2496_v14  ;;  %v2498_v30 = vadd.f32 %v2497_v51, %v13210_v25  ;;  %v9687_v43 = vsel %vm4252_vm0, %v4325_v10, %v4329_v37  ;;  %v7665_v36 = vld [vmem:[%s12707_s1 + $0x40c] ss:$16 sps:$4 sm:$0xff]  }
 0x1e2   : > { %13211 = vst [vmem:[#allocation174_spill] sm:$0xff] %v9687_v43  ;;  %v2499_v48 = vpop.f32.mrf.mxu1  ;;  %v2852_v23 = vpop.f32.mrf.mxu0  ;;  %3782 = vmatpush1.bf16.msra.mxu1 %v7657_v19  ;;  %v13214_v51 = vld [vmem:[#allocation13_spill] sm:$0xff]  ;;  %v13215_v19 = vld [vmem:[#allocation74_spill] sm:$0xff] }
 0x1e3   : > { %v4333_v44 = vrot.slane %v2849_v38, 7  ;;  %v2851_v6 = vadd.f32 %v2850_v1, %v2498_v30  ;;  %v2500_v62 = vadd.f32 %v2499_v48, %v13212_v60  ;;  %3783 = vmatprep.subr.bf16.mxu1 %v7662_v12  ;;  %v9697_v53 = vsel %vm4252_vm0, %v4327_v26, %v4331_v7  ;;  %v13216_v38 = vld [vmem:[#allocation194_spill] sm:$0xff]  ;;  %v13217_v30 = vld [vmem:[#allocation15_spill] sm:$0xff]  ;;  %v13218_v12 = vld [vmem:[#allocation76_spill] sm:$0xff] }
 0x1e4   : > { %13213 = vst [vmem:[#allocation180_spill] sm:$0xff] %v9697_v53  ;;  %v2503_v10 = vpop.f32.mrf.mxu1  ;;  %v2856_v14 = vpop.f32.mrf.mxu0  ;;  %3128 = vmatmul.mubr.bf16.gmra.mxu1 %v13214_v51  ;;  %3481 = vmatmul.mubr.bf16.gmra.mxu0 %v13215_v19  ;;  %v7663_v51 = vld [vmem:[%s12707_s1 + $0x408] ss:$16 sps:$4 sm:$0xff]  }
 0x1e5   : > { %v4335_v25 = vrot.slane %v2851_v6, 7  ;;  %v2853_v43 = vadd.f32 %v2852_v23, %v2500_v62  ;;  %v2504_v1 = vadd.f32 %v2503_v10, %v13216_v38  ;;  %3137 = vmatprep.mubr.bf16.mxu1 %v13217_v30  ;;  %3490 = vmatprep.mubr.bf16.mxu0 %v13218_v12  ;;  %v9705_v48 = vsel %vm4252_vm0, %v4329_v37, %v4333_v44  ;;  %v13220_v6 = vld [vmem:[#allocation196_spill] sm:$0xff]  ;;  %v7668_v62 = vld [vmem:[%s12707_s1 + $0x5ec] ss:$16 sps:$4 sm:$0xff]   ;;  %v13222_v12 = vld [vmem:[#allocation198_spill] sm:$0xff] }
 0x1e6   : > { %13219 = vst [vmem:[#allocation9_spill] sm:$0xff] %v9705_v48  ;;  %v2505_v60 = vpop.f32.mrf.mxu1  ;;  %v2858_v26 = vpop.f32.mrf.mxu0  ;;  %3784 = vmatpush1.bf16.msra.mxu1 %v7660_v11 }
 0x1e7   : > { %v4337_v53 = vrot.slane %v2853_v43, 7  ;;  %v2857_v19 = vadd.f32 %v2856_v14, %v2504_v1  ;;  %v2506_v23 = vadd.f32 %v2505_v60, %v13220_v6  ;;  %3785 = vmatprep.subr.bf16.mxu1 %v7665_v36  ;;  %v9715_v10 = vsel %vm4252_vm0, %v4331_v7, %v4335_v25  ;;  %v7666_v36 = vld [vmem:[%s12707_s1 + $0x5e8] ss:$16 sps:$4 sm:$0xff]   ;;  %v13224_v7 = vld [vmem:[#allocation204_spill] sm:$0xff] }
 0x1e8   : > { %13221 = vst [vmem:[#allocation70_spill] sm:$0xff] %v9715_v10  ;;  %v2507_v37 = vpop.f32.mrf.mxu1  ;;  %v2860_v38 = vpop.f32.mrf.mxu0 }
 0x1e9   : > { %v4339_v30 = vrot.slane %v2857_v19, 7  ;;  %v2859_v11 = vadd.f32 %v2858_v26, %v2506_v23  ;;  %v2508_v48 = vadd.f32 %v2507_v37, %v13222_v12  ;;  %v9719_v16 = vsel %vm4252_vm0, %v4333_v44, %v4337_v53  ;;  %v7671_v26 = vld [vmem:[%s12707_s1 + $0x5cc] ss:$16 sps:$4 sm:$0xff]  }
 0x1ea   : > { %13223 = vst [vmem:[#allocation182_spill] sm:$0xff] %v9719_v16  ;;  %v2509_v43 = vpop.f32.mrf.mxu1  ;;  %v2862_v14 = vpop.f32.mrf.mxu0  ;;  %3786 = vmatpush1.bf16.msra.mxu1 %v7663_v51  ;;  %v13226_v37 = vld [vmem:[#allocation17_spill] sm:$0xff]  ;;  %v13227_v51 = vld [vmem:[#allocation78_spill] sm:$0xff] }
 0x1eb   : > { %v4341_v1 = vrot.slane %v2859_v11, 7  ;;  %v2861_v60 = vadd.f32 %v2860_v38, %v2508_v48  ;;  %v2510_v6 = vadd.f32 %v2509_v43, %v13224_v7  ;;  %3787 = vmatprep.subr.bf16.mxu1 %v7668_v62  ;;  %v9729_v19 = vsel %vm4252_vm0, %v4335_v25, %v4339_v30  ;;  %v13228_v11 = vld [vmem:[#allocation206_spill] sm:$0xff]  ;;  %v13229_v38 = vld [vmem:[#allocation19_spill] sm:$0xff]  ;;  %v13230_v62 = vld [vmem:[#allocation80_spill] sm:$0xff] }
 0x1ec   : > { %13225 = vst [vmem:[#allocation11_spill] sm:$0xff] %v9729_v19  ;;  %v2513_v44 = vpop.f32.mrf.mxu1  ;;  %v2866_v23 = vpop.f32.mrf.mxu0  ;;  %3138 = vmatmul.mubr.bf16.gmra.mxu1 %v13226_v37  ;;  %3491 = vmatmul.mubr.bf16.gmra.mxu0 %v13227_v51  ;;  %v7669_v37 = vld [vmem:[%s12707_s1 + $0x5c8] ss:$16 sps:$4 sm:$0xff]  }
 0x1ed   : > { %v4343_v12 = vrot.slane %v2861_v60, 7  ;;  %v2863_v16 = vadd.f32 %v2862_v14, %v2510_v6  ;;  %v2514_v48 = vadd.f32 %v2513_v44, %v13228_v11  ;;  %3147 = vmatprep.mubr.bf16.mxu1 %v13229_v38  ;;  %3500 = vmatprep.mubr.bf16.mxu0 %v13230_v62  ;;  %v9737_v43 = vsel %vm4252_vm0, %v4337_v53, %v4341_v1  ;;  %v13232_v60 = vld [vmem:[#allocation208_spill] sm:$0xff]  ;;  %v13234_v62 = vld [vmem:[#allocation210_spill] sm:$0xff] }
 0x1ee   : > { %13231 = vst [vmem:[#allocation72_spill] sm:$0xff] %v9737_v43  ;;  %v2515_v7 = vpop.f32.mrf.mxu1  ;;  %v2868_v25 = vpop.f32.mrf.mxu0  ;;  %3788 = vmatpush2.bf16.msra.mxu1 %v7666_v36  ;;  %v7674_v36 = vld [vmem:[%s12707_s1 + $0x5ac] ss:$16 sps:$4 sm:$0xff]  }
 0x1ef   : > { %v4345_v19 = vrot.slane %v2863_v16, 7  ;;  %v2867_v51 = vadd.f32 %v2866_v23, %v2514_v48  ;;  %v2516_v14 = vadd.f32 %v2515_v7, %v13232_v60  ;;  %3789 = vmatprep.subr.bf16.mxu1 %v7671_v26  ;;  %v9744_v6 = vsel %vm4252_vm0, %v4339_v30, %v4343_v12  ;;  %v7672_v30 = vld [vmem:[%s12707_s1 + $0x5a8] ss:$16 sps:$4 sm:$0xff]   ;;  %v13236_v7 = vld [vmem:[#allocation216_spill] sm:$0xff] }
 0x1f0   : > { %13233 = vst [vmem:[#allocation184_spill] sm:$0xff] %v9744_v6  ;;  %v2517_v44 = vpop.f32.mrf.mxu1  ;;  %v2870_v11 = vpop.f32.mrf.mxu0 }
 0x1f1   : > { %v4347_v38 = vrot.slane %v2867_v51, 7  ;;  %v2869_v53 = vadd.f32 %v2868_v25, %v2516_v14  ;;  %v2518_v43 = vadd.f32 %v2517_v44, %v13234_v62  ;;  %v9751_v10 = vsel %vm4252_vm0, %v4341_v1, %v4345_v19  ;;  %v13238_v44 = vld [vmem:[#allocation21_spill] sm:$0xff]  ;;  %v13239_v1 = vld [vmem:[#allocation82_spill] sm:$0xff] }
 0x1f2   : > { %13235 = vst [vmem:[#allocation186_spill] sm:$0xff] %v9751_v10  ;;  %v2519_v16 = vpop.f32.mrf.mxu1  ;;  %v2872_v23 = vpop.f32.mrf.mxu0  ;;  %3790 = vmatpush2.bf16.msra.mxu1 %v7669_v37  ;;  %v13240_v10 = vld [vmem:[#allocation218_spill] sm:$0xff] }
 0x1f3   : > { %v4349_v26 = vrot.slane %v2869_v53, 7  ;;  %v2871_v48 = vadd.f32 %v2870_v11, %v2518_v43  ;;  %v2520_v25 = vadd.f32 %v2519_v16, %v13236_v7  ;;  %3791 = vmatprep.subr.bf16.mxu1 %v7674_v36  ;;  %v9758_v51 = vsel %vm4252_vm0, %v4343_v12, %v4347_v38  ;;  %v13242_v53 = vld [vmem:[#allocation84_spill] sm:$0xff] }
 0x1f4   : > { %13237 = vst [vmem:[#allocation192_spill] sm:$0xff] %v9758_v51  ;;  %v2523_v60 = vpop.f32.mrf.mxu1  ;;  %v2876_v14 = vpop.f32.mrf.mxu0  ;;  %3148 = vmatmul.mubr.bf16.gmra.mxu1 %v13238_v44  ;;  %3501 = vmatmul.mubr.bf16.gmra.mxu0 %v13239_v1  ;;  %v13244_v7 = vld [vmem:[#allocation220_spill] sm:$0xff] }
 0x1f5   : > { %v4351_v62 = vrot.slane %v2871_v48, 7  ;;  %v2873_v37 = vadd.f32 %v2872_v23, %v2520_v25  ;;  %v2524_v6 = vadd.f32 %v2523_v60, %v13240_v10  ;;  %3157 = vmatprep.mubr.bf16.mxu1 %v13241_v47  ;;  %3510 = vmatprep.mubr.bf16.mxu0 %v13242_v53  ;;  %v9766_v43 = vsel %vm4252_vm0, %v4345_v19, %v4349_v26  ;;  %v13246_v47 = vld [vmem:[#allocation222_spill] sm:$0xff] }
 0x1f6   : > { %13243 = vst [vmem:[#allocation13_spill] sm:$0xff] %v9766_v43  ;;  %v2525_v11 = vpop.f32.mrf.mxu1  ;;  %v2878_v12 = vpop.f32.mrf.mxu0  ;;  %3792 = vmatpush2.bf16.msra.mxu1 %v7672_v30 }
 0x1f7   : > { %v4353_v36 = vrot.slane %v2873_v37, 7  ;;  %v2877_v16 = vadd.f32 %v2876_v14, %v2524_v6  ;;  %v2526_v44 = vadd.f32 %v2525_v11, %v13244_v7  ;;  %v9770_v1 = vsel %vm4252_vm0, %v4347_v38, %v4351_v62  ;;  %v13248_v37 = vld [vmem:[#allocation228_spill] sm:$0xff]  ;;  %v13250_v7 = vld [vmem:[#allocation25_spill] sm:$0xff] }
 0x1f8   : > { %13245 = vst [vmem:[#allocation74_spill] sm:$0xff] %v9770_v1  ;;  %v2527_v23 = vpop.f32.mrf.mxu1  ;;  %v2880_v48 = vpop.f32.mrf.mxu0  ;;  %v13265_v1 = vld [vmem:[#allocation31_spill] sm:$0xff] }
 0x1f9   : > { %v4355_v10 = vrot.slane %v2877_v16, 7  ;;  %v2879_v25 = vadd.f32 %v2878_v12, %v2526_v44  ;;  %v2528_v60 = vadd.f32 %v2527_v23, %v13246_v47  ;;  %v9774_v53 = vsel %vm4252_vm0, %v4349_v26, %v4353_v36  ;;  %v13251_v16 = vld [vmem:[#allocation86_spill] sm:$0xff]  ;;  %v13253_v47 = vld [vmem:[#allocation27_spill] sm:$0xff] }
 0x1fa   : > { %13247 = vst [vmem:[#allocation194_spill] sm:$0xff] %v9774_v53  ;;  %v2529_v19 = vpop.f32.mrf.mxu1  ;;  %v2882_v43 = vpop.f32.mrf.mxu0  ;;  %v13252_v23 = vld [vmem:[#allocation230_spill] sm:$0xff]  ;;  %v13254_v53 = vld [vmem:[#allocation88_spill] sm:$0xff] }
 0x1fb   : > { %v4357_v51 = vrot.slane %v2879_v25, 7  ;;  %v2881_v30 = vadd.f32 %v2880_v48, %v2528_v60  ;;  %v2530_v6 = vadd.f32 %v2529_v19, %v13248_v37  ;;  %v9778_v14 = vsel %vm4252_vm0, %v4351_v62, %v4355_v10  ;;  %v13256_v37 = vld [vmem:[#allocation232_spill] sm:$0xff] }
 0x1fc   : > { %13249 = vst [vmem:[#allocation15_spill] sm:$0xff] %v9778_v14  ;;  %v2533_v38 = vpop.f32.mrf.mxu1  ;;  %v2886_v11 = vpop.f32.mrf.mxu0  ;;  %3158 = vmatmul.mubr.bf16.gmra.mxu1 %v13250_v7  ;;  %3511 = vmatmul.mubr.bf16.gmra.mxu0 %v13251_v16  ;;  %v13258_v16 = vld [vmem:[#allocation234_spill] sm:$0xff] }
 0x1fd   : > { %v4359_v12 = vrot.slane %v2881_v30, 7  ;;  %v2883_v44 = vadd.f32 %v2882_v43, %v2530_v6  ;;  %v2534_v26 = vadd.f32 %v2533_v38, %v13252_v23  ;;  %3167 = vmatprep.mubr.bf16.mxu1 %v13253_v47  ;;  %3520 = vmatprep.mubr.bf16.mxu0 %v13254_v53  ;;  %v9786_v48 = vsel %vm4252_vm0, %v4353_v36, %v4357_v51  ;;  %v7677_v36 = vld [vmem:[%s12707_s1 + $0x58c] ss:$16 sps:$4 sm:$0xff]  }
 0x1fe   : > { %13255 = vst [vmem:[#allocation76_spill] sm:$0xff] %v9786_v48  ;;  %v2535_v25 = vpop.f32.mrf.mxu1  ;;  %v2888_v62 = vpop.f32.mrf.mxu0  ;;  %3793 = vmatprep.subr.bf16.mxu1 %v7677_v36 }
 0x1ff   : > { %v4361_v60 = vrot.slane %v2883_v44, 7  ;;  %v2887_v19 = vadd.f32 %v2886_v11, %v2534_v26  ;;  %v2536_v14 = vadd.f32 %v2535_v25, %v13256_v37  ;;  %v9790_v7 = vsel %vm4252_vm0, %v4355_v10, %v4359_v12  ;;  %v7675_v10 = vld [vmem:[%s12707_s1 + $0x588] ss:$16 sps:$4 sm:$0xff]   ;;  %v13260_v25 = vld [vmem:[#allocation240_spill] sm:$0xff] }
 0x200   : > { %13257 = vst [vmem:[#allocation196_spill] sm:$0xff] %v9790_v7  ;;  %v2537_v30 = vpop.f32.mrf.mxu1  ;;  %v2890_v43 = vpop.f32.mrf.mxu0  ;;  %v13264_v7 = vld [vmem:[#allocation242_spill] sm:$0xff]  ;;  %3794 = vmatpush2.bf16.msra.mxu1 %v7675_v10 }
 0x201   : > { %v4363_v6 = vrot.slane %v2887_v19, 7  ;;  %v2889_v38 = vadd.f32 %v2888_v62, %v2536_v14  ;;  %v2538_v23 = vadd.f32 %v2537_v30, %v13258_v16  ;;  %v9797_v53 = vsel %vm4252_vm0, %v4357_v51, %v4361_v60  ;;  %v13262_v30 = vld [vmem:[#allocation29_spill] sm:$0xff]  ;;  %v13263_v51 = vld [vmem:[#allocation90_spill] sm:$0xff] }
 0x202   : > { %13259 = vst [vmem:[#allocation198_spill] sm:$0xff] %v9797_v53  ;;  %v2539_v44 = vpop.f32.mrf.mxu1  ;;  %v2892_v11 = vpop.f32.mrf.mxu0 }
 0x203   : > { %v4365_v26 = vrot.slane %v2889_v38, 7  ;;  %v2891_v47 = vadd.f32 %v2890_v43, %v2538_v23  ;;  %v2540_v19 = vadd.f32 %v2539_v44, %v13260_v25  ;;  %v9804_v14 = vsel %vm4252_vm0, %v4359_v12, %v4363_v6  ;;  %v13266_v38 = vld [vmem:[#allocation92_spill] sm:$0xff] }
 0x204   : > { %13261 = vst [vmem:[#allocation204_spill] sm:$0xff] %v9804_v14  ;;  %v2543_v62 = vpop.f32.mrf.mxu1  ;;  %v2896_v37 = vpop.f32.mrf.mxu0  ;;  %3168 = vmatmul.mubr.bf16.gmra.mxu1 %v13262_v30  ;;  %3521 = vmatmul.mubr.bf16.gmra.mxu0 %v13263_v51  ;;  %v13268_v25 = vld [vmem:[#allocation244_spill] sm:$0xff] }
 0x205   : > { %v4367_v16 = vrot.slane %v2891_v47, 7  ;;  %v2893_v53 = vadd.f32 %v2892_v11, %v2540_v19  ;;  %v2544_v48 = vadd.f32 %v2543_v62, %v13264_v7  ;;  %3177 = vmatprep.mubr.bf16.mxu1 %v13265_v1  ;;  %3530 = vmatprep.mubr.bf16.mxu0 %v13266_v38  ;;  %v9812_v43 = vsel %vm4252_vm0, %v4361_v60, %v4365_v26  ;;  %v13270_v1 = vld [vmem:[#allocation246_spill] sm:$0xff] }
 0x206   : > { %13267 = vst [vmem:[#allocation17_spill] sm:$0xff] %v9812_v43  ;;  %v2545_v23 = vpop.f32.mrf.mxu1  ;;  %v2898_v12 = vpop.f32.mrf.mxu0 }
 0x207   : > { %v4369_v36 = vrot.slane %v2893_v53, 7  ;;  %v2897_v44 = vadd.f32 %v2896_v37, %v2544_v48  ;;  %v2546_v30 = vadd.f32 %v2545_v23, %v13268_v25  ;;  %v9816_v11 = vsel %vm4252_vm0, %v4363_v6, %v4367_v16  ;;  %v13272_v53 = vld [vmem:[#allocation252_spill] sm:$0xff]  ;;  %v13273_v25 = vld [vmem:[#allocation33_spill] sm:$0xff] }
 0x208   : > { %v2547_v14 = vpop.f32.mrf.mxu1  ;;  %v2900_v51 = vpop.f32.mrf.mxu0  ;;  %13269 = vst [vmem:[#allocation78_spill] sm:$0xff] %v9816_v11 }
 0x209   : > { %v4371_v7 = vrot.slane %v2897_v44, 7  ;;  %v2899_v47 = vadd.f32 %v2898_v12, %v2546_v30  ;;  %v2548_v19 = vadd.f32 %v2547_v14, %v13270_v1  ;;  %v9820_v60 = vsel %vm4252_vm0, %v4365_v26, %v4369_v36  ;;  %v13276_v44 = vld [vmem:[#allocation98_spill] sm:$0xff]  ;;  %v13277_v1 = vld [vmem:[#allocation35_spill] sm:$0xff]  ;;  %v13278_v26 = vld [vmem:[#allocation96_spill] sm:$0xff] }
 0x20a   : > { %v2549_v62 = vpop.f32.mrf.mxu1  ;;  %v2902_v38 = vpop.f32.mrf.mxu0  ;;  %13271 = vst [vmem:[#allocation206_spill] sm:$0xff] %v9820_v60 }
 0x20b   : > { %v4373_v43 = vrot.slane %v2899_v47, 7  ;;  %v2901_v10 = vadd.f32 %v2900_v51, %v2548_v19  ;;  %v2550_v48 = vadd.f32 %v2549_v62, %v13272_v53  ;;  %v9826_v6 = vsel %vm4252_vm0, %v4367_v16, %v4371_v7 }
 0x20c   : > { %v2553_v37 = vpop.f32.mrf.mxu1  ;;  %v2906_v23 = vpop.f32.mrf.mxu0  ;;  %3178 = vmatmul.mubr.bf16.gmra.mxu1 %v13273_v25  ;;  %3531 = vmatmul.mubr.bf16.gmra.mxu0 %v13274_v45  ;;  %13275 = vst [vmem:[#allocation19_spill] sm:$0xff] %v9826_v6  ;;  %v13280_v25 = vld [vmem:[#allocation99_spill] sm:$0xff] }
 0x20d   : > { %v4375_v12 = vrot.slane %v2901_v10, 7  ;;  %v2903_v14 = vadd.f32 %v2902_v38, %v2550_v48  ;;  %v2554_v30 = vadd.f32 %v2553_v37, %v13276_v44  ;;  %3187 = vmatprep.mubr.bf16.mxu1 %v13277_v1  ;;  %3540 = vmatprep.mubr.bf16.mxu0 %v13278_v26  ;;  %v9832_v19 = vsel %vm4252_vm0, %v4369_v36, %v4373_v43  ;;  %v13282_v44 = vld [vmem:[#allocation100_spill] sm:$0xff] }
 0x20e   : > { %v2555_v51 = vpop.f32.mrf.mxu1  ;;  %v2908_v47 = vpop.f32.mrf.mxu0  ;;  %13279 = vst [vmem:[#allocation80_spill] sm:$0xff] %v9832_v19 }
 0x20f   : > { %v4377_v62 = vrot.slane %v2903_v14, 7  ;;  %v2907_v53 = vadd.f32 %v2906_v23, %v2554_v30  ;;  %v2556_v45 = vadd.f32 %v2555_v51, %v13280_v25  ;;  %v9836_v16 = vsel %vm4252_vm0, %v4371_v7, %v4375_v12  ;;  %v13284_v14 = vld [vmem:[#allocation105_spill] sm:$0xff] }
 0x210   : > { %13281 = vst [vmem:[#allocation208_spill] sm:$0xff] %v9836_v16  ;;  %v2557_v10 = vpop.f32.mrf.mxu1  ;;  %v2910_v38 = vpop.f32.mrf.mxu0  ;;  %v7678_v7 = vld [vmem:[%s12707_s1 + $0x568] ss:$16 sps:$4 sm:$0xff]   ;;  %v7680_v30 = vld [vmem:[%s12707_s1 + $0x56c] ss:$16 sps:$4 sm:$0xff]  }
 0x211   : > { %v4379_v48 = vrot.slane %v2907_v53, 7  ;;  %v2909_v37 = vadd.f32 %v2908_v47, %v2556_v45  ;;  %v2558_v1 = vadd.f32 %v2557_v10, %v13282_v44  ;;  %v9840_v26 = vsel %vm4252_vm0, %v4373_v43, %v4377_v62  ;;  %v13286_v53 = vld [vmem:[#allocation37_spill] sm:$0xff]  ;;  %v13290_v44 = vld [vmem:[#allocation103_spill] sm:$0xff]  ;;  %3795 = vmatprep.subr.bf16.mxu1 %v7680_v30 }
 0x212   : > { %13283 = vst [vmem:[#allocation210_spill] sm:$0xff] %v9840_v26  ;;  %v2559_v6 = vpop.f32.mrf.mxu1  ;;  %v2912_v60 = vpop.f32.mrf.mxu0  ;;  %v13287_v25 = vld [vmem:[#allocation101_spill] sm:$0xff]  ;;  %v13292_v16 = vld [vmem:[#allocation107_spill] sm:$0xff]  ;;  %3796 = vmatpush2.bf16.msra.mxu1 %v7678_v7 }
 0x213   : > { %v4381_v36 = vrot.slane %v2909_v37, 7  ;;  %v2911_v19 = vadd.f32 %v2910_v38, %v2558_v1  ;;  %v2560_v23 = vadd.f32 %v2559_v6, %v13284_v14  ;;  %v9850_v51 = vsel %vm4252_vm0, %v4375_v12, %v4379_v48  ;;  %v13288_v6 = vld [vmem:[#allocation106_spill] sm:$0xff]  ;;  %v13289_v37 = vld [vmem:[#allocation39_spill] sm:$0xff] }
 0x214   : > { %13285 = vst [vmem:[#allocation216_spill] sm:$0xff] %v9850_v51  ;;  %v2563_v47 = vpop.f32.mrf.mxu1  ;;  %v2916_v43 = vpop.f32.mrf.mxu0  ;;  %3188 = vmatmul.mubr.bf16.gmra.mxu1 %v13286_v53  ;;  %3541 = vmatmul.mubr.bf16.gmra.mxu0 %v13287_v25 }
 0x215   : > { %v4383_v45 = vrot.slane %v2911_v19, 7  ;;  %v2913_v10 = vadd.f32 %v2912_v60, %v2560_v23  ;;  %v2564_v38 = vadd.f32 %v2563_v47, %v13288_v6  ;;  %3197 = vmatprep.mubr.bf16.mxu1 %v13289_v37  ;;  %3550 = vmatprep.mubr.bf16.mxu0 %v13290_v44  ;;  %v9858_v1 = vsel %vm4252_vm0, %v4377_v62, %v4381_v36  ;;  %v13294_v6 = vld [vmem:[#allocation108_spill] sm:$0xff] }
 0x216   : > { %13291 = vst [vmem:[#allocation21_spill] sm:$0xff] %v9858_v1  ;;  %v2565_v14 = vpop.f32.mrf.mxu1  ;;  %v2918_v12 = vpop.f32.mrf.mxu0 }
 0x217   : > { %v4385_v51 = vrot.slane %v2913_v10, 7  ;;  %v2917_v26 = vadd.f32 %v2916_v43, %v2564_v38  ;;  %v2566_v53 = vadd.f32 %v2565_v14, %v13292_v16  ;;  %v9862_v19 = vsel %vm4252_vm0, %v4379_v48, %v4383_v45  ;;  %v13296_v43 = vld [vmem:[#allocation113_spill] sm:$0xff] }
 0x218   : > { %13293 = vst [vmem:[#allocation82_spill] sm:$0xff] %v9862_v19  ;;  %v2567_v60 = vpop.f32.mrf.mxu1  ;;  %v2920_v23 = vpop.f32.mrf.mxu0  ;;  %v13298_v14 = vld [vmem:[#allocation41_spill] sm:$0xff] }
 0x219   : > { %v4387_v47 = vrot.slane %v2917_v26, 7  ;;  %v2919_v25 = vadd.f32 %v2918_v12, %v2566_v53  ;;  %v2568_v37 = vadd.f32 %v2567_v60, %v13294_v6  ;;  %v9866_v62 = vsel %vm4252_vm0, %v4381_v36, %v4385_v51  ;;  %v13299_v26 = vld [vmem:[#allocation109_spill] sm:$0xff]  ;;  %v13300_v60 = vld [vmem:[#allocation114_spill] sm:$0xff]  ;;  %v13301_v6 = vld [vmem:[#allocation43_spill] sm:$0xff] }
 0x21a   : > { %13295 = vst [vmem:[#allocation218_spill] sm:$0xff] %v9866_v62  ;;  %v2569_v44 = vpop.f32.mrf.mxu1  ;;  %v2922_v1 = vpop.f32.mrf.mxu0  ;;  %v13302_v62 = vld [vmem:[#allocation111_spill] sm:$0xff] }
 0x21b   : > { %v4389_v30 = vrot.slane %v2919_v25, 7  ;;  %v2921_v10 = vadd.f32 %v2920_v23, %v2568_v37  ;;  %v2570_v38 = vadd.f32 %v2569_v44, %v13296_v43  ;;  %v9870_v16 = vsel %vm4252_vm0, %v4383_v45, %v4387_v47  ;;  %v7681_v23 = vld [vmem:[%s12707_s1 + $0x548] ss:$16 sps:$4 sm:$0xff]   ;;  %v7683_v45 = vld [vmem:[%s12707_s1 + $0x54c] ss:$16 sps:$4 sm:$0xff]  }
 0x21c   : > { %13297 = vst [vmem:[#allocation23_spill] sm:$0xff] %v9870_v16  ;;  %v2573_v48 = vpop.f32.mrf.mxu1  ;;  %v2926_v7 = vpop.f32.mrf.mxu0  ;;  %3198 = vmatmul.mubr.bf16.gmra.mxu1 %v13298_v14  ;;  %3551 = vmatmul.mubr.bf16.gmra.mxu0 %v13299_v26  ;;  %v13304_v43 = vld [vmem:[#allocation115_spill] sm:$0xff]  ;;  %v12886_v26 = vmov 0  }
 0x21d   : > { %v4391_v12 = vrot.slane %v2921_v10, 7  ;;  %v2923_v53 = vadd.f32 %v2922_v1, %v2570_v38  ;;  %v2574_v36 = vadd.f32 %v2573_v48, %v13300_v60  ;;  %3207 = vmatprep.mubr.bf16.mxu1 %v13301_v6  ;;  %3560 = vmatprep.mubr.bf16.mxu0 %v13302_v62  ;;  %v9884_v25 = vsel %vm4252_vm0, %v4385_v51, %v4389_v30  ;;  %v7684_v62 = vld [vmem:[%s12709_s3 + $0x38] sm:$0xff]  }
 0x21e   : > { %13303 = vst [vmem:[#allocation84_spill] sm:$0xff] %v9884_v25  ;;  %v2575_v37 = vpop.f32.mrf.mxu1  ;;  %v2928_v44 = vpop.f32.mrf.mxu0  ;;  %3797 = vmatprep.subr.bf16.mxu1 %v7683_v45  ;;  %5235 = vmatprep.subr.bf16.mxu0 %v12886_v26  ;;  %v13308_v25 = vld [vmem:[#allocation121_spill] sm:$0xff] }
 0x21f   : > { %v4393_v1 = vrot.slane %v2923_v53, 7  ;;  %v2927_v10 = vadd.f32 %v2926_v7, %v2574_v36  ;;  %v2576_v38 = vadd.f32 %v2575_v37, %v13304_v43  ;;  %3798 = vmatpush2.bf16.msra.mxu1 %v7681_v23  ;;  %v9892_v51 = vsel %vm4252_vm0, %v4387_v47, %v4391_v12  ;;  %v13306_v53 = vld [vmem:[#allocation116_spill] sm:$0xff]  ;;  %5236 = vmatpush1.bf16.msra.mxu0 %v7684_v62  ;;  %v13311_v62 = vld [vmem:[#allocation117_spill] sm:$0xff] }
 0x220   : > { %v2577_v48 = vpop.f32.mrf.mxu1  ;;  %v2930_v14 = vpop.f32.mrf.mxu0  ;;  %13305 = vst [vmem:[#allocation220_spill] sm:$0xff] %v9892_v51  ;;  %7273 = vset.pattern.permute.xlu0 %v12886_v26  ;;  %5237 = vmatprep.subr.bf16.mxu0 %v12886_v26  ;;  %v13313_v51 = vld [vmem:[#allocation47_spill] sm:$0xff] }
 0x221   : > { %v4395_v60 = vrot.slane %v2927_v10, 7  ;;  %v2929_v6 = vadd.f32 %v2928_v44, %v2576_v38  ;;  %v2578_v7 = vadd.f32 %v2577_v48, %v13306_v53  ;;  %v9896_v36 = vsel %vm4252_vm0, %v4389_v30, %v4393_v1  ;;  %v13310_v38 = vld [vmem:[#allocation45_spill] sm:$0xff]  ;;  %v13312_v53 = vld [vmem:[#allocation122_spill] sm:$0xff]  ;;  %v13314_v26 = vld [vmem:[#allocation119_spill] sm:$0xff] }
 0x222   : > { %13307 = vst [vmem:[#allocation222_spill] sm:$0xff] %v9896_v36  ;;  %v2579_v45 = vpop.f32.mrf.mxu1  ;;  %v2932_v37 = vpop.f32.mrf.mxu0 }
 0x223   : > { %v4397_v23 = vrot.slane %v2929_v6, 7  ;;  %v2931_v43 = vadd.f32 %v2930_v14, %v2578_v7  ;;  %v2580_v16 = vadd.f32 %v2579_v45, %v13308_v25  ;;  %v9902_v47 = vsel %vm4252_vm0, %v4391_v12, %v4395_v60  ;;  %v13316_v45 = vld [vmem:[#allocation123_spill] sm:$0xff] }
 0x224   : > { %13309 = vst [vmem:[#allocation228_spill] sm:$0xff] %v9902_v47  ;;  %v2583_v44 = vpop.f32.mrf.mxu1  ;;  %v2936_v10 = vpop.f32.mrf.mxu0  ;;  %3208 = vmatmul.mubr.bf16.gmra.mxu1 %v13310_v38  ;;  %3561 = vmatmul.mubr.bf16.gmra.mxu0 %v13311_v62  ;;  %v13318_v62 = vld [vmem:[#allocation124_spill] sm:$0xff] }
 0x225   : > { %v4399_v30 = vrot.slane %v2931_v43, 7  ;;  %v2933_v48 = vadd.f32 %v2932_v37, %v2580_v16  ;;  %v2584_v36 = vadd.f32 %v2583_v44, %v13312_v53  ;;  %3217 = vmatprep.mubr.bf16.mxu1 %v13313_v51  ;;  %3570 = vmatprep.mubr.bf16.mxu0 %v13314_v26  ;;  %v9910_v14 = vsel %vm4252_vm0, %v4393_v1, %v4397_v23 }
 0x226   : > { %13315 = vst [vmem:[#allocation25_spill] sm:$0xff] %v9910_v14  ;;  %v2585_v25 = vpop.f32.mrf.mxu1  ;;  %v2938_v12 = vpop.f32.mrf.mxu0 }
 0x227   : > { %v4401_v6 = vrot.slane %v2933_v48, 7  ;;  %v2937_v7 = vadd.f32 %v2936_v10, %v2584_v36  ;;  %v2586_v47 = vadd.f32 %v2585_v25, %v13316_v45  ;;  %v9914_v38 = vsel %vm4252_vm0, %v4395_v60, %v4399_v30  ;;  %v13320_v48 = vld [vmem:[#allocation129_spill] sm:$0xff] }
 0x228   : > { %13317 = vst [vmem:[#allocation86_spill] sm:$0xff] %v9914_v38  ;;  %v2587_v43 = vpop.f32.mrf.mxu1  ;;  %v2940_v16 = vpop.f32.mrf.mxu0  ;;  %v13322_v45 = vld [vmem:[#allocation49_spill] sm:$0xff]  ;;  %v13339_v38 = vld [vmem:[#allocation135_spill] sm:$0xff] }
 0x229   : > { %v4403_v37 = vrot.slane %v2937_v7, 7  ;;  %v2939_v44 = vadd.f32 %v2938_v12, %v2586_v47  ;;  %v2588_v51 = vadd.f32 %v2587_v43, %v13318_v62  ;;  %v9918_v26 = vsel %vm4252_vm0, %v4397_v23, %v4401_v6  ;;  %v13323_v7 = vld [vmem:[#allocation125_spill] sm:$0xff]  ;;  %v13324_v43 = vld [vmem:[#allocation130_spill] sm:$0xff]  ;;  %v13325_v62 = vld [vmem:[#allocation51_spill] sm:$0xff] }
 0x22a   : > { %13319 = vst [vmem:[#allocation230_spill] sm:$0xff] %v9918_v26  ;;  %v2589_v1 = vpop.f32.mrf.mxu1  ;;  %v2942_v53 = vpop.f32.mrf.mxu0  ;;  %v13326_v26 = vld [vmem:[#allocation127_spill] sm:$0xff] }
 0x22b   : > { %v4405_v14 = vrot.slane %v2939_v44, 7  ;;  %v2941_v19 = vadd.f32 %v2940_v16, %v2588_v51  ;;  %v2590_v36 = vadd.f32 %v2589_v1, %v13320_v48  ;;  %v9922_v10 = vsel %vm4252_vm0, %v4399_v30, %v4403_v37  ;;  %v7685_v16 = vld [vmem:[%s12707_s1 + $0x528] ss:$16 sps:$4 sm:$0xff]   ;;  %v7687_v30 = vld [vmem:[%s12707_s1 + $0x52c] ss:$16 sps:$4 sm:$0xff]  }
 0x22c   : > { %13321 = vst [vmem:[#allocation27_spill] sm:$0xff] %v9922_v10  ;;  %v2593_v60 = vpop.f32.mrf.mxu1  ;;  %v2946_v25 = vpop.f32.mrf.mxu0  ;;  %3218 = vmatmul.mubr.bf16.gmra.mxu1 %v13322_v45  ;;  %3571 = vmatmul.mubr.bf16.gmra.mxu0 %v13323_v7  ;;  %v13328_v48 = vld [vmem:[#allocation131_spill] sm:$0xff]  ;;  %v13333_v10 = vld [vmem:[#allocation137_spill] sm:$0xff] }
 0x22d   : > { %v4407_v47 = vrot.slane %v2941_v19, 7  ;;  %v2943_v12 = vadd.f32 %v2942_v53, %v2590_v36  ;;  %v2594_v23 = vadd.f32 %v2593_v60, %v13324_v43  ;;  %3227 = vmatprep.mubr.bf16.mxu1 %v13325_v62  ;;  %3580 = vmatprep.mubr.bf16.mxu0 %v13326_v26  ;;  %v9936_v44 = vsel %vm4252_vm0, %v4401_v6, %v4405_v14  ;;  %v7688_v26 = vld [vmem:[%s12709_s3 + $0x30] sm:$0xff]  }
 0x22e   : > { %13327 = vst [vmem:[#allocation88_spill] sm:$0xff] %v9936_v44  ;;  %v2595_v51 = vpop.f32.mrf.mxu1  ;;  %v2948_v19 = vpop.f32.mrf.mxu0  ;;  %3799 = vmatprep.subr.bf16.mxu1 %v7687_v30  ;;  %v13330_v62 = vld [vmem:[#allocation132_spill] sm:$0xff]  ;;  %5238 = vmatpush1.bf16.msra.mxu0 %v7688_v26  ;;  %v13332_v30 = vmov 0  }
 0x22f   : > { %v4409_v1 = vrot.slane %v2943_v12, 7  ;;  %v2947_v53 = vadd.f32 %v2946_v25, %v2594_v23  ;;  %v2596_v36 = vadd.f32 %v2595_v51, %v13328_v48  ;;  %v9943_v60 = vsel %vm4252_vm0, %v4403_v37, %v4407_v47  ;;  %3800 = vmatpush2.bf16.msra.mxu1 %v7685_v16  ;;  %5239 = vmatprep.subr.bf16.mxu0 %v13332_v30 }
 0x230   : > { %13329 = vst [vmem:[#allocation232_spill] sm:$0xff] %v9943_v60  ;;  %v2597_v45 = vpop.f32.mrf.mxu1  ;;  %v2950_v7 = vpop.f32.mrf.mxu0 }
 0x231   : > { %v4411_v43 = vrot.slane %v2947_v53, 7  ;;  %v2949_v6 = vadd.f32 %v2948_v19, %v2596_v36  ;;  %v2598_v44 = vadd.f32 %v2597_v45, %v13330_v62  ;;  %v9947_v25 = vsel %vm4252_vm0, %v4405_v14, %v4409_v1  ;;  %v13335_v19 = vld [vmem:[#allocation53_spill] sm:$0xff]  ;;  %v13337_v45 = vld [vmem:[#allocation138_spill] sm:$0xff] }
 0x232   : > { %13331 = vst [vmem:[#allocation234_spill] sm:$0xff] %v9947_v25  ;;  %v2599_v12 = vpop.f32.mrf.mxu1  ;;  %v2952_v23 = vpop.f32.mrf.mxu0  ;;  %v13336_v36 = vld [vmem:[#allocation133_spill] sm:$0xff]  ;;  %v13338_v25 = vld [vmem:[#allocation55_spill] sm:$0xff] }
 0x233   : > { %v4413_v51 = vrot.slane %v2949_v6, 7  ;;  %v2951_v48 = vadd.f32 %v2950_v7, %v2598_v44  ;;  %v2600_v37 = vadd.f32 %v2599_v12, %v13333_v10  ;;  %v9952_v60 = vsel %vm4252_vm0, %v4407_v47, %v4411_v43  ;;  %v13341_v12 = vld [vmem:[#allocation139_spill] sm:$0xff] }
 0x234   : > { %13334 = vst [vmem:[#allocation240_spill] sm:$0xff] %v9952_v60  ;;  %v2603_v16 = vpop.f32.mrf.mxu1  ;;  %v2956_v53 = vpop.f32.mrf.mxu0  ;;  %3228 = vmatmul.mubr.bf16.gmra.mxu1 %v13335_v19  ;;  %3581 = vmatmul.mubr.bf16.gmra.mxu0 %v13336_v36  ;;  %v13343_v36 = vld [vmem:[#allocation140_spill] sm:$0xff] }
 0x235   : > { %v4415_v26 = vrot.slane %v2951_v48, 7  ;;  %v2953_v14 = vadd.f32 %v2952_v23, %v2600_v37  ;;  %v2604_v62 = vadd.f32 %v2603_v16, %v13337_v45  ;;  %3237 = vmatprep.mubr.bf16.mxu1 %v13338_v25  ;;  %3590 = vmatprep.mubr.bf16.mxu0 %v13339_v38  ;;  %v9960_v44 = vsel %vm4252_vm0, %v4409_v1, %v4413_v51 }
 0x236   : > { %13340 = vst [vmem:[#allocation29_spill] sm:$0xff] %v9960_v44  ;;  %v2605_v10 = vpop.f32.mrf.mxu1  ;;  %v2958_v47 = vpop.f32.mrf.mxu0 }
 0x237   : > { %v4417_v7 = vrot.slane %v2953_v14, 7  ;;  %v2957_v6 = vadd.f32 %v2956_v53, %v2604_v62  ;;  %v2606_v60 = vadd.f32 %v2605_v10, %v13341_v12  ;;  %v9964_v19 = vsel %vm4252_vm0, %v4411_v43, %v4415_v26  ;;  %v13345_v14 = vld [vmem:[#allocation145_spill] sm:$0xff] }
 0x238   : > { %13342 = vst [vmem:[#allocation90_spill] sm:$0xff] %v9964_v19  ;;  %v2607_v48 = vpop.f32.mrf.mxu1  ;;  %v2960_v23 = vpop.f32.mrf.mxu0  ;;  %v13347_v12 = vld [vmem:[#allocation57_spill] sm:$0xff] }
 0x239   : > { %v4419_v37 = vrot.slane %v2957_v6, 7  ;;  %v2959_v16 = vadd.f32 %v2958_v47, %v2606_v60  ;;  %v2608_v25 = vadd.f32 %v2607_v48, %v13343_v36  ;;  %v9968_v38 = vsel %vm4252_vm0, %v4413_v51, %v4417_v7  ;;  %v13348_v6 = vld [vmem:[#allocation141_spill] sm:$0xff]  ;;  %v13349_v48 = vld [vmem:[#allocation146_spill] sm:$0xff]  ;;  %v13350_v36 = vld [vmem:[#allocation59_spill] sm:$0xff] }
 0x23a   : > { %13344 = vst [vmem:[#allocation242_spill] sm:$0xff] %v9968_v38  ;;  %v2609_v1 = vpop.f32.mrf.mxu1  ;;  %v2962_v45 = vpop.f32.mrf.mxu0  ;;  %v13351_v38 = vld [vmem:[#allocation143_spill] sm:$0xff] }
 0x23b   : > { %v4421_v44 = vrot.slane %v2959_v16, 7  ;;  %v2961_v11 = vadd.f32 %v2960_v23, %v2608_v25  ;;  %v2610_v53 = vadd.f32 %v2609_v1, %v13345_v14  ;;  %v9972_v62 = vsel %vm4252_vm0, %v4415_v26, %v4419_v37  ;;  %v7689_v23 = vld [vmem:[%s12707_s1 + $0x508] ss:$16 sps:$4 sm:$0xff]   ;;  %v7691_v26 = vld [vmem:[%s12707_s1 + $0x50c] ss:$16 sps:$4 sm:$0xff]  }
 0x23c   : > { %13346 = vst [vmem:[#allocation31_spill] sm:$0xff] %v9972_v62  ;;  %v2613_v43 = vpop.f32.mrf.mxu1  ;;  %v2966_v10 = vpop.f32.mrf.mxu0  ;;  %3238 = vmatmul.mubr.bf16.gmra.mxu1 %v13347_v12  ;;  %3591 = vmatmul.mubr.bf16.gmra.mxu0 %v13348_v6  ;;  %v13353_v14 = vld [vmem:[#allocation147_spill] sm:$0xff] }
 0x23d   : > { %v4423_v60 = vrot.slane %v2961_v11, 7  ;;  %v2963_v47 = vadd.f32 %v2962_v45, %v2610_v53  ;;  %v2614_v51 = vadd.f32 %v2613_v43, %v13349_v48  ;;  %3247 = vmatprep.mubr.bf16.mxu1 %v13350_v36  ;;  %3600 = vmatprep.mubr.bf16.mxu0 %v13351_v38  ;;  %v9986_v16 = vsel %vm4252_vm0, %v4417_v7, %v4421_v44  ;;  %v7692_v38 = vld [vmem:[%s12709_s3 + $0x28] sm:$0xff]   ;;  %v13355_v36 = vld [vmem:[#allocation148_spill] sm:$0xff] }
 0x23e   : > { %13352 = vst [vmem:[#allocation92_spill] sm:$0xff] %v9986_v16  ;;  %v2615_v25 = vpop.f32.mrf.mxu1  ;;  %v2968_v11 = vpop.f32.mrf.mxu0  ;;  %3801 = vmatprep.subr.bf16.mxu1 %v7691_v26  ;;  %5240 = vmatpush1.bf16.msra.mxu0 %v7692_v38  ;;  %v13363_v62 = vld [vmem:[#allocation151_spill] sm:$0xff] }
 0x23f   : > { %v4425_v1 = vrot.slane %v2963_v47, 7  ;;  %v2967_v45 = vadd.f32 %v2966_v10, %v2614_v51  ;;  %v2616_v53 = vadd.f32 %v2615_v25, %v13353_v14  ;;  %v9993_v43 = vsel %vm4252_vm0, %v4419_v37, %v4423_v60  ;;  %3802 = vmatpush2.bf16.msra.mxu1 %v7689_v23  ;;  %5241 = vmatprep.subr.bf16.mxu0 %v13332_v30  ;;  %v13357_v14 = vld [vmem:[#allocation153_spill] sm:$0xff] }
 0x240   : > { %13354 = vst [vmem:[#allocation244_spill] sm:$0xff] %v9993_v43  ;;  %v2617_v12 = vpop.f32.mrf.mxu1  ;;  %v2970_v6 = vpop.f32.mrf.mxu0 }
 0x241   : > { %v4427_v48 = vrot.slane %v2967_v45, 7  ;;  %v2969_v7 = vadd.f32 %v2968_v11, %v2616_v53  ;;  %v2618_v16 = vadd.f32 %v2617_v12, %v13355_v36  ;;  %v9997_v10 = vsel %vm4252_vm0, %v4421_v44, %v4425_v1  ;;  %v13359_v11 = vld [vmem:[#allocation61_spill] sm:$0xff]  ;;  %v13361_v12 = vld [vmem:[#allocation154_spill] sm:$0xff] }
 0x242   : > { %13356 = vst [vmem:[#allocation246_spill] sm:$0xff] %v9997_v10  ;;  %v2619_v47 = vpop.f32.mrf.mxu1  ;;  %v2972_v51 = vpop.f32.mrf.mxu0  ;;  %v13360_v53 = vld [vmem:[#allocation149_spill] sm:$0xff]  ;;  %v13362_v10 = vld [vmem:[#allocation2_spill] sm:$0xff] }
 0x243   : > { %v4429_v26 = vrot.slane %v2969_v7, 7  ;;  %v2971_v25 = vadd.f32 %v2970_v6, %v2618_v16  ;;  %v2620_v37 = vadd.f32 %v2619_v47, %v13357_v14  ;;  %v10002_v43 = vsel %vm4252_vm0, %v4423_v60, %v4427_v48  ;;  %v13365_v14 = vld [vmem:[#allocation155_spill] sm:$0xff] }
 0x244   : > { %13358 = vst [vmem:[#allocation252_spill] sm:$0xff] %v10002_v43  ;;  %v2623_v23 = vpop.f32.mrf.mxu1  ;;  %v2976_v45 = vpop.f32.mrf.mxu0  ;;  %3248 = vmatmul.mubr.bf16.gmra.mxu1 %v13359_v11  ;;  %3601 = vmatmul.mubr.bf16.gmra.mxu0 %v13360_v53  ;;  %v13367_v53 = vld [vmem:[#allocation156_spill] sm:$0xff] }
 0x245   : > { %v4431_v38 = vrot.slane %v2971_v25, 7  ;;  %v2973_v44 = vadd.f32 %v2972_v51, %v2620_v37  ;;  %v2624_v36 = vadd.f32 %v2623_v23, %v13361_v12  ;;  %3257 = vmatprep.mubr.bf16.mxu1 %v13362_v10  ;;  %3610 = vmatprep.mubr.bf16.mxu0 %v13363_v62  ;;  %v10010_v16 = vsel %vm4252_vm0, %v4425_v1, %v4429_v26 }
 0x246   : > { %13364 = vst [vmem:[#allocation33_spill] sm:$0xff] %v10010_v16  ;;  %v2625_v6 = vpop.f32.mrf.mxu1  ;;  %v2978_v60 = vpop.f32.mrf.mxu0 }
 0x247   : > { %v4433_v7 = vrot.slane %v2973_v44, 7  ;;  %v2977_v47 = vadd.f32 %v2976_v45, %v2624_v36  ;;  %v2626_v43 = vadd.f32 %v2625_v6, %v13365_v14  ;;  %v10014_v11 = vsel %vm4252_vm0, %v4427_v48, %v4431_v38  ;;  %v13369_v44 = vld [vmem:[#allocation161_spill] sm:$0xff]  ;;  %v13371_v14 = vld [vmem:[#allocation3_spill] sm:$0xff] }
 0x248   : > { %13366 = vst [vmem:[#allocation94_spill] sm:$0xff] %v10014_v11  ;;  %v2627_v25 = vpop.f32.mrf.mxu1  ;;  %v2980_v51 = vpop.f32.mrf.mxu0 }
 0x249   : > { %v4435_v37 = vrot.slane %v2977_v47, 7  ;;  %v2979_v23 = vadd.f32 %v2978_v60, %v2626_v43  ;;  %v2628_v10 = vadd.f32 %v2627_v25, %v13367_v53  ;;  %v10018_v62 = vsel %vm4252_vm0, %v4429_v26, %v4433_v7  ;;  %v13372_v47 = vld [vmem:[#allocation157_spill] sm:$0xff]  ;;  %v13373_v25 = vld [vmem:[#allocation162_spill] sm:$0xff]  ;;  %v13374_v53 = vld [vmem:[#allocation4_spill] sm:$0xff] }
 0x24a   : > { %13368 = vst [vmem:[#allocation98_spill] sm:$0xff] %v10018_v62  ;;  %v2629_v1 = vpop.f32.mrf.mxu1  ;;  %v2982_v12 = vpop.f32.mrf.mxu0  ;;  %v13375_v62 = vld [vmem:[#allocation159_spill] sm:$0xff] }
 0x24b   : > { %v4437_v16 = vrot.slane %v2979_v23, 7  ;;  %v2981_v19 = vadd.f32 %v2980_v51, %v2628_v10  ;;  %v2630_v45 = vadd.f32 %v2629_v1, %v13369_v44  ;;  %v10022_v36 = vsel %vm4252_vm0, %v4431_v38, %v4435_v37  ;;  %v13377_v44 = vld [vmem:[#allocation163_spill] sm:$0xff] }
 0x24c   : > { %13370 = vst [vmem:[#allocation35_spill] sm:$0xff] %v10022_v36  ;;  %v2633_v48 = vpop.f32.mrf.mxu1  ;;  %v2986_v6 = vpop.f32.mrf.mxu0  ;;  %3258 = vmatmul.mubr.bf16.gmra.mxu1 %v13371_v14  ;;  %3611 = vmatmul.mubr.bf16.gmra.mxu0 %v13372_v47  ;;  %v13379_v47 = vld [vmem:[#allocation164_spill] sm:$0xff] }
 0x24d   : > { %v4439_v43 = vrot.slane %v2981_v19, 7  ;;  %v2983_v60 = vadd.f32 %v2982_v12, %v2630_v45  ;;  %v2634_v26 = vadd.f32 %v2633_v48, %v13373_v25  ;;  %3267 = vmatprep.mubr.bf16.mxu1 %v13374_v53  ;;  %3620 = vmatprep.mubr.bf16.mxu0 %v13375_v62  ;;  %v10030_v51 = vsel %vm4252_vm0, %v4433_v7, %v4437_v16  ;;  %v7693_v19 = vld [vmem:[%s12709_s3 + $0x20] sm:$0xff]  }
 0x24e   : > { %13376 = vst [vmem:[#allocation96_spill] sm:$0xff] %v10030_v51  ;;  %v2635_v23 = vpop.f32.mrf.mxu1  ;;  %v2988_v38 = vpop.f32.mrf.mxu0  ;;  %5242 = vmatpush1.bf16.msra.mxu0 %v7693_v19  ;;  %v13387_v51 = vld [vmem:[#allocation167_spill] sm:$0xff] }
 0x24f   : > { %v4441_v10 = vrot.slane %v2983_v60, 7  ;;  %v2987_v1 = vadd.f32 %v2986_v6, %v2634_v26  ;;  %v2636_v36 = vadd.f32 %v2635_v23, %v13377_v44  ;;  %v10037_v12 = vsel %vm4252_vm0, %v4435_v37, %v4439_v43  ;;  %5243 = vmatprep.subr.bf16.mxu0 %v13332_v30  ;;  %v13381_v23 = vld [vmem:[#allocation169_spill] sm:$0xff] }
 0x250   : > { %13378 = vst [vmem:[#allocation99_spill] sm:$0xff] %v10037_v12  ;;  %v2637_v45 = vpop.f32.mrf.mxu1  ;;  %v2990_v48 = vpop.f32.mrf.mxu0 }
 0x251   : > { %v4443_v14 = vrot.slane %v2987_v1, 7  ;;  %v2989_v62 = vadd.f32 %v2988_v38, %v2636_v36  ;;  %v2638_v7 = vadd.f32 %v2637_v45, %v13379_v47  ;;  %v10041_v25 = vsel %vm4252_vm0, %v4437_v16, %v4441_v10  ;;  %v13383_v36 = vld [vmem:[#allocation6_spill] sm:$0xff]  ;;  %v13384_v38 = vld [vmem:[#allocation165_spill] sm:$0xff]  ;;  %v13385_v45 = vld [vmem:[#allocation171_spill] sm:$0xff] }
 0x252   : > { %13380 = vst [vmem:[#allocation100_spill] sm:$0xff] %v10041_v25  ;;  %v2639_v6 = vpop.f32.mrf.mxu1  ;;  %v2992_v60 = vpop.f32.mrf.mxu0  ;;  %v13386_v25 = vld [vmem:[#allocation8_spill] sm:$0xff] }
 0x253   : > { %v4445_v26 = vrot.slane %v2989_v62, 7  ;;  %v2991_v53 = vadd.f32 %v2990_v48, %v2638_v7  ;;  %v2640_v44 = vadd.f32 %v2639_v6, %v13381_v23  ;;  %v10046_v37 = vsel %vm4252_vm0, %v4439_v43, %v4443_v14  ;;  %v13389_v23 = vld [vmem:[#allocation173_spill] sm:$0xff] }
 0x254   : > { %13382 = vst [vmem:[#allocation105_spill] sm:$0xff] %v10046_v37  ;;  %v2643_v12 = vpop.f32.mrf.mxu1  ;;  %v2996_v1 = vpop.f32.mrf.mxu0  ;;  %3268 = vmatmul.mubr.bf16.gmra.mxu1 %v13383_v36  ;;  %3621 = vmatmul.mubr.bf16.gmra.mxu0 %v13384_v38  ;;  %v13391_v38 = vld [vmem:[#allocation175_spill] sm:$0xff] }
 0x255   : > { %v4447_v19 = vrot.slane %v2991_v53, 7  ;;  %v2993_v16 = vadd.f32 %v2992_v60, %v2640_v44  ;;  %v2644_v47 = vadd.f32 %v2643_v12, %v13385_v45  ;;  %3277 = vmatprep.mubr.bf16.mxu1 %v13386_v25  ;;  %3630 = vmatprep.mubr.bf16.mxu0 %v13387_v51  ;;  %v10054_v48 = vsel %vm4252_vm0, %v4441_v10, %v4445_v26 }
 0x256   : > { %13388 = vst [vmem:[#allocation37_spill] sm:$0xff] %v10054_v48  ;;  %v2645_v62 = vpop.f32.mrf.mxu1  ;;  %v2998_v43 = vpop.f32.mrf.mxu0 }
 0x257   : > { %v4449_v7 = vrot.slane %v2993_v16, 7  ;;  %v2997_v6 = vadd.f32 %v2996_v1, %v2644_v47  ;;  %v2646_v37 = vadd.f32 %v2645_v62, %v13389_v23  ;;  %v10058_v36 = vsel %vm4252_vm0, %v4443_v14, %v4447_v19  ;;  %v13393_v16 = vld [vmem:[#allocation181_spill] sm:$0xff]  ;;  %v13395_v23 = vld [vmem:[#allocation10_spill] sm:$0xff] }
 0x258   : > { %13390 = vst [vmem:[#allocation101_spill] sm:$0xff] %v10058_v36  ;;  %v2647_v53 = vpop.f32.mrf.mxu1  ;;  %v3000_v60 = vpop.f32.mrf.mxu0 }
 0x259   : > { %v4451_v44 = vrot.slane %v2997_v6, 7  ;;  %v2999_v12 = vadd.f32 %v2998_v43, %v2646_v37  ;;  %v2648_v25 = vadd.f32 %v2647_v53, %v13391_v38  ;;  %v10062_v51 = vsel %vm4252_vm0, %v4445_v26, %v4449_v7  ;;  %v13396_v6 = vld [vmem:[#allocation176_spill] sm:$0xff]  ;;  %v13397_v53 = vld [vmem:[#allocation183_spill] sm:$0xff] }
 0x25a   : > { %13392 = vst [vmem:[#allocation106_spill] sm:$0xff] %v10062_v51  ;;  %v2649_v10 = vpop.f32.mrf.mxu1  ;;  %v3002_v45 = vpop.f32.mrf.mxu0  ;;  %v13398_v38 = vld [vmem:[#allocation12_spill] sm:$0xff]  ;;  %v13399_v51 = vld [vmem:[#allocation178_spill] sm:$0xff] }
 0x25b   : > { %v4453_v48 = vrot.slane %v2999_v12, 7  ;;  %v3001_v11 = vadd.f32 %v3000_v60, %v2648_v25  ;;  %v2650_v1 = vadd.f32 %v2649_v10, %v13393_v16  ;;  %v10066_v47 = vsel %vm4252_vm0, %v4447_v19, %v4451_v44  ;;  %v13401_v16 = vld [vmem:[#allocation185_spill] sm:$0xff] }
 0x25c   : > { %13394 = vst [vmem:[#allocation39_spill] sm:$0xff] %v10066_v47  ;;  %v2653_v14 = vpop.f32.mrf.mxu1  ;;  %v3006_v62 = vpop.f32.mrf.mxu0  ;;  %3278 = vmatmul.mubr.bf16.gmra.mxu1 %v13395_v23  ;;  %3631 = vmatmul.mubr.bf16.gmra.mxu0 %v13396_v6  ;;  %v13403_v6 = vld [vmem:[#allocation187_spill] sm:$0xff] }
 0x25d   : > { %v4455_v37 = vrot.slane %v3001_v11, 7  ;;  %v3003_v43 = vadd.f32 %v3002_v45, %v2650_v1  ;;  %v2654_v26 = vadd.f32 %v2653_v14, %v13397_v53  ;;  %3287 = vmatprep.mubr.bf16.mxu1 %v13398_v38  ;;  %3640 = vmatprep.mubr.bf16.mxu0 %v13399_v51  ;;  %v10074_v60 = vsel %vm4252_vm0, %v4449_v7, %v4453_v48  ;;  %v7694_v11 = vld [vmem:[%s12709_s3 + $0x18] sm:$0xff]  }
 0x25e   : > { %13400 = vst [vmem:[#allocation103_spill] sm:$0xff] %v10074_v60  ;;  %v2655_v12 = vpop.f32.mrf.mxu1  ;;  %v3008_v19 = vpop.f32.mrf.mxu0  ;;  %5244 = vmatpush1.bf16.msra.mxu0 %v7694_v11  ;;  %v13411_v60 = vld [vmem:[#allocation190_spill] sm:$0xff] }
 0x25f   : > { %v4457_v25 = vrot.slane %v3003_v43, 7  ;;  %v3007_v10 = vadd.f32 %v3006_v62, %v2654_v26  ;;  %v2656_v47 = vadd.f32 %v2655_v12, %v13401_v16  ;;  %v10081_v45 = vsel %vm4252_vm0, %v4451_v44, %v4455_v37  ;;  %5245 = vmatprep.subr.bf16.mxu0 %v13332_v30  ;;  %v13405_v12 = vld [vmem:[#allocation193_spill] sm:$0xff] }
 0x260   : > { %13402 = vst [vmem:[#allocation107_spill] sm:$0xff] %v10081_v45  ;;  %v2657_v1 = vpop.f32.mrf.mxu1  ;;  %v3010_v14 = vpop.f32.mrf.mxu0 }
 0x261   : > { %v4459_v23 = vrot.slane %v3007_v10, 7  ;;  %v3009_v51 = vadd.f32 %v3008_v19, %v2656_v47  ;;  %v2658_v7 = vadd.f32 %v2657_v1, %v13403_v6  ;;  %v10085_v53 = vsel %vm4252_vm0, %v4453_v48, %v4457_v25  ;;  %v13407_v47 = vld [vmem:[#allocation14_spill] sm:$0xff]  ;;  %v13408_v19 = vld [vmem:[#allocation188_spill] sm:$0xff]  ;;  %v13409_v1 = vld [vmem:[#allocation195_spill] sm:$0xff] }
 0x262   : > { %13404 = vst [vmem:[#allocation108_spill] sm:$0xff] %v10085_v53  ;;  %v2659_v62 = vpop.f32.mrf.mxu1  ;;  %v3012_v43 = vpop.f32.mrf.mxu0  ;;  %v13410_v53 = vld [vmem:[#allocation16_spill] sm:$0xff] }
 0x263   : > { %v4461_v26 = vrot.slane %v3009_v51, 7  ;;  %v3011_v38 = vadd.f32 %v3010_v14, %v2658_v7  ;;  %v2660_v16 = vadd.f32 %v2659_v62, %v13405_v12  ;;  %v10090_v44 = vsel %vm4252_vm0, %v4455_v37, %v4459_v23  ;;  %v13413_v12 = vld [vmem:[#allocation197_spill] sm:$0xff] }
 0x264   : > { %13406 = vst [vmem:[#allocation113_spill] sm:$0xff] %v10090_v44  ;;  %v2663_v45 = vpop.f32.mrf.mxu1  ;;  %v3016_v10 = vpop.f32.mrf.mxu0  ;;  %3288 = vmatmul.mubr.bf16.gmra.mxu1 %v13407_v47  ;;  %3641 = vmatmul.mubr.bf16.gmra.mxu0 %v13408_v19  ;;  %v13415_v19 = vld [vmem:[#allocation199_spill] sm:$0xff] }
 0x265   : > { %v4463_v11 = vrot.slane %v3011_v38, 7  ;;  %v3013_v48 = vadd.f32 %v3012_v43, %v2660_v16  ;;  %v2664_v6 = vadd.f32 %v2663_v45, %v13409_v1  ;;  %3297 = vmatprep.mubr.bf16.mxu1 %v13410_v53  ;;  %3650 = vmatprep.mubr.bf16.mxu0 %v13411_v60  ;;  %v10098_v14 = vsel %vm4252_vm0, %v4457_v25, %v4461_v26 }
 0x266   : > { %13412 = vst [vmem:[#allocation41_spill] sm:$0xff] %v10098_v14  ;;  %v2665_v51 = vpop.f32.mrf.mxu1  ;;  %v3018_v37 = vpop.f32.mrf.mxu0 }
 0x267   : > { %v4465_v7 = vrot.slane %v3013_v48, 7  ;;  %v3017_v62 = vadd.f32 %v3016_v10, %v2664_v6  ;;  %v2666_v44 = vadd.f32 %v2665_v51, %v13413_v12  ;;  %v10102_v47 = vsel %vm4252_vm0, %v4459_v23, %v4463_v11  ;;  %v13417_v48 = vld [vmem:[#allocation205_spill] sm:$0xff]  ;;  %v13419_v12 = vld [vmem:[#allocation18_spill] sm:$0xff] }
 0x268   : > { %13414 = vst [vmem:[#allocation109_spill] sm:$0xff] %v10102_v47  ;;  %v2667_v38 = vpop.f32.mrf.mxu1  ;;  %v3020_v43 = vpop.f32.mrf.mxu0 }
 0x269   : > { %v4467_v16 = vrot.slane %v3017_v62, 7  ;;  %v3019_v45 = vadd.f32 %v3018_v37, %v2666_v44  ;;  %v2668_v53 = vadd.f32 %v2667_v38, %v13415_v19  ;;  %v10106_v60 = vsel %vm4252_vm0, %v4461_v26, %v4465_v7  ;;  %v13420_v62 = vld [vmem:[#allocation200_spill] sm:$0xff]  ;;  %v13421_v38 = vld [vmem:[#allocation207_spill] sm:$0xff] }
 0x26a   : > { %13416 = vst [vmem:[#allocation114_spill] sm:$0xff] %v10106_v60  ;;  %v2669_v25 = vpop.f32.mrf.mxu1  ;;  %v3022_v1 = vpop.f32.mrf.mxu0  ;;  %v13422_v19 = vld [vmem:[#allocation20_spill] sm:$0xff]  ;;  %v13423_v60 = vld [vmem:[#allocation202_spill] sm:$0xff] }
 0x26b   : > { %v4469_v14 = vrot.slane %v3019_v45, 7  ;;  %v3021_v36 = vadd.f32 %v3020_v43, %v2668_v53  ;;  %v2670_v10 = vadd.f32 %v2669_v25, %v13417_v48  ;;  %v10110_v6 = vsel %vm4252_vm0, %v4463_v11, %v4467_v16  ;;  %v13425_v48 = vld [vmem:[#allocation209_spill] sm:$0xff] }
 0x26c   : > { %13418 = vst [vmem:[#allocation43_spill] sm:$0xff] %v10110_v6  ;;  %v2673_v23 = vpop.f32.mrf.mxu1  ;;  %v3026_v51 = vpop.f32.mrf.mxu0  ;;  %3298 = vmatmul.mubr.bf16.gmra.mxu1 %v13419_v12  ;;  %3651 = vmatmul.mubr.bf16.gmra.mxu0 %v13420_v62  ;;  %v13427_v62 = vld [vmem:[#allocation211_spill] sm:$0xff] }
 0x26d   : > { %v4471_v44 = vrot.slane %v3021_v36, 7  ;;  %v3023_v37 = vadd.f32 %v3022_v1, %v2670_v10  ;;  %v2674_v26 = vadd.f32 %v2673_v23, %v13421_v38  ;;  %3307 = vmatprep.mubr.bf16.mxu1 %v13422_v19  ;;  %3660 = vmatprep.mubr.bf16.mxu0 %v13423_v60  ;;  %v10118_v43 = vsel %vm4252_vm0, %v4465_v7, %v4469_v14  ;;  %v7695_v36 = vld [vmem:[%s12709_s3 + $0x10] sm:$0xff]  }
 0x26e   : > { %13424 = vst [vmem:[#allocation111_spill] sm:$0xff] %v10118_v43  ;;  %v2675_v45 = vpop.f32.mrf.mxu1  ;;  %v3028_v11 = vpop.f32.mrf.mxu0  ;;  %5246 = vmatpush1.bf16.msra.mxu0 %v7695_v36  ;;  %v13435_v43 = vld [vmem:[#allocation214_spill] sm:$0xff] }
 0x26f   : > { %v4473_v53 = vrot.slane %v3023_v37, 7  ;;  %v3027_v25 = vadd.f32 %v3026_v51, %v2674_v26  ;;  %v2676_v6 = vadd.f32 %v2675_v45, %v13425_v48  ;;  %v10125_v1 = vsel %vm4252_vm0, %v4467_v16, %v4471_v44  ;;  %5247 = vmatprep.subr.bf16.mxu0 %v13332_v30  ;;  %v13429_v45 = vld [vmem:[#allocation217_spill] sm:$0xff] }
 0x270   : > { %13426 = vst [vmem:[#allocation115_spill] sm:$0xff] %v10125_v1  ;;  %v2677_v10 = vpop.f32.mrf.mxu1  ;;  %v3030_v23 = vpop.f32.mrf.mxu0 }
 0x271   : > { %v4475_v12 = vrot.slane %v3027_v25, 7  ;;  %v3029_v60 = vadd.f32 %v3028_v11, %v2676_v6  ;;  %v2678_v7 = vadd.f32 %v2677_v10, %v13427_v62  ;;  %v10129_v38 = vsel %vm4252_vm0, %v4469_v14, %v4473_v53  ;;  %v13431_v6 = vld [vmem:[#allocation22_spill] sm:$0xff]  ;;  %v13432_v11 = vld [vmem:[#allocation212_spill] sm:$0xff]  ;;  %v13433_v10 = vld [vmem:[#allocation219_spill] sm:$0xff] }
 0x272   : > { %13428 = vst [vmem:[#allocation116_spill] sm:$0xff] %v10129_v38  ;;  %v2679_v51 = vpop.f32.mrf.mxu1  ;;  %v3032_v37 = vpop.f32.mrf.mxu0  ;;  %v13434_v38 = vld [vmem:[#allocation24_spill] sm:$0xff] }
 0x273   : > { %v4477_v26 = vrot.slane %v3029_v60, 7  ;;  %v3031_v19 = vadd.f32 %v3030_v23, %v2678_v7  ;;  %v2680_v48 = vadd.f32 %v2679_v51, %v13429_v45  ;;  %v10134_v16 = vsel %vm4252_vm0, %v4471_v44, %v4475_v12  ;;  %v13437_v45 = vld [vmem:[#allocation221_spill] sm:$0xff] }
 0x274   : > { %13430 = vst [vmem:[#allocation121_spill] sm:$0xff] %v10134_v16  ;;  %v2683_v1 = vpop.f32.mrf.mxu1  ;;  %v3036_v25 = vpop.f32.mrf.mxu0  ;;  %3308 = vmatmul.mubr.bf16.gmra.mxu1 %v13431_v6  ;;  %3661 = vmatmul.mubr.bf16.gmra.mxu0 %v13432_v11  ;;  %v13439_v11 = vld [vmem:[#allocation223_spill] sm:$0xff] }
 0x275   : > { %v4479_v36 = vrot.slane %v3031_v19, 7  ;;  %v3033_v14 = vadd.f32 %v3032_v37, %v2680_v48  ;;  %v2684_v62 = vadd.f32 %v2683_v1, %v13433_v10  ;;  %3317 = vmatprep.mubr.bf16.mxu1 %v13434_v38  ;;  %3670 = vmatprep.mubr.bf16.mxu0 %v13435_v43  ;;  %v10142_v23 = vsel %vm4252_vm0, %v4473_v53, %v4477_v26 }
 0x276   : > { %13436 = vst [vmem:[#allocation45_spill] sm:$0xff] %v10142_v23  ;;  %v2685_v60 = vpop.f32.mrf.mxu1  ;;  %v3038_v44 = vpop.f32.mrf.mxu0 }
 0x277   : > { %v4481_v7 = vrot.slane %v3033_v14, 7  ;;  %v3037_v51 = vadd.f32 %v3036_v25, %v2684_v62  ;;  %v2686_v16 = vadd.f32 %v2685_v60, %v13437_v45  ;;  %v10146_v6 = vsel %vm4252_vm0, %v4475_v12, %v4479_v36  ;;  %v13441_v14 = vld [vmem:[#allocation229_spill] sm:$0xff]  ;;  %v13443_v45 = vld [vmem:[#allocation26_spill] sm:$0xff] }
 0x278   : > { %13438 = vst [vmem:[#allocation117_spill] sm:$0xff] %v10146_v6  ;;  %v2687_v19 = vpop.f32.mrf.mxu1  ;;  %v3040_v37 = vpop.f32.mrf.mxu0 }
 0x279   : > { %v4483_v48 = vrot.slane %v3037_v51, 7  ;;  %v3039_v1 = vadd.f32 %v3038_v44, %v2686_v16  ;;  %v2688_v38 = vadd.f32 %v2687_v19, %v13439_v11  ;;  %v10150_v43 = vsel %vm4252_vm0, %v4477_v26, %v4481_v7  ;;  %v13444_v51 = vld [vmem:[#allocation224_spill] sm:$0xff]  ;;  %v13445_v19 = vld [vmem:[#allocation231_spill] sm:$0xff] }
 0x27a   : > { %13440 = vst [vmem:[#allocation122_spill] sm:$0xff] %v10150_v43  ;;  %v2689_v53 = vpop.f32.mrf.mxu1  ;;  %v3042_v10 = vpop.f32.mrf.mxu0  ;;  %v13446_v11 = vld [vmem:[#allocation28_spill] sm:$0xff]  ;;  %v13447_v43 = vld [vmem:[#allocation226_spill] sm:$0xff] }
 0x27b   : > { %v4485_v23 = vrot.slane %v3039_v1, 7  ;;  %v3041_v47 = vadd.f32 %v3040_v37, %v2688_v38  ;;  %v2690_v25 = vadd.f32 %v2689_v53, %v13441_v14  ;;  %v10154_v62 = vsel %vm4252_vm0, %v4479_v36, %v4483_v48  ;;  %v13449_v14 = vld [vmem:[#allocation233_spill] sm:$0xff] }
 0x27c   : > { %13442 = vst [vmem:[#allocation47_spill] sm:$0xff] %v10154_v62  ;;  %v2693_v12 = vpop.f32.mrf.mxu1  ;;  %v3046_v60 = vpop.f32.mrf.mxu0  ;;  %3318 = vmatmul.mubr.bf16.gmra.mxu1 %v13443_v45  ;;  %3671 = vmatmul.mubr.bf16.gmra.mxu0 %v13444_v51  ;;  %v13451_v51 = vld [vmem:[#allocation235_spill] sm:$0xff] }
 0x27d   : > { %v4487_v16 = vrot.slane %v3041_v47, 7  ;;  %v3043_v44 = vadd.f32 %v3042_v10, %v2690_v25  ;;  %v2694_v26 = vadd.f32 %v2693_v12, %v13445_v19  ;;  %3327 = vmatprep.mubr.bf16.mxu1 %v13446_v11  ;;  %3680 = vmatprep.mubr.bf16.mxu0 %v13447_v43  ;;  %v10162_v37 = vsel %vm4252_vm0, %v4481_v7, %v4485_v23  ;;  %v7696_v47 = vld [vmem:[%s12709_s3 + $0x8] sm:$0xff]  }
 0x27e   : > { %13448 = vst [vmem:[#allocation119_spill] sm:$0xff] %v10162_v37  ;;  %v2695_v1 = vpop.f32.mrf.mxu1  ;;  %v3048_v36 = vpop.f32.mrf.mxu0  ;;  %5248 = vmatpush1.bf16.msra.mxu0 %v7696_v47  ;;  %v13459_v37 = vld [vmem:[#allocation238_spill] sm:$0xff] }
 0x27f   : > { %v4489_v38 = vrot.slane %v3043_v44, 7  ;;  %v3047_v53 = vadd.f32 %v3046_v60, %v2694_v26  ;;  %v2696_v62 = vadd.f32 %v2695_v1, %v13449_v14  ;;  %v10169_v10 = vsel %vm4252_vm0, %v4483_v48, %v4487_v16  ;;  %5249 = vmatprep.subr.bf16.mxu0 %v13332_v30  ;;  %v13453_v1 = vld [vmem:[#allocation241_spill] sm:$0xff] }
 0x280   : > { %13450 = vst [vmem:[#allocation123_spill] sm:$0xff] %v10169_v10  ;;  %v2697_v25 = vpop.f32.mrf.mxu1  ;;  %v3050_v12 = vpop.f32.mrf.mxu0 }
 0x281   : > { %v4491_v45 = vrot.slane %v3047_v53, 7  ;;  %v3049_v43 = vadd.f32 %v3048_v36, %v2696_v62  ;;  %v2698_v7 = vadd.f32 %v2697_v25, %v13451_v51  ;;  %v10173_v19 = vsel %vm4252_vm0, %v4485_v23, %v4489_v38  ;;  %v13455_v62 = vld [vmem:[#allocation30_spill] sm:$0xff]  ;;  %v13456_v36 = vld [vmem:[#allocation236_spill] sm:$0xff]  ;;  %v13457_v25 = vld [vmem:[#allocation243_spill] sm:$0xff] }
 0x282   : > { %13452 = vst [vmem:[#allocation124_spill] sm:$0xff] %v10173_v19  ;;  %v2699_v60 = vpop.f32.mrf.mxu1  ;;  %v3052_v44 = vpop.f32.mrf.mxu0  ;;  %v13458_v19 = vld [vmem:[#allocation32_spill] sm:$0xff] }
 0x283   : > { %v4493_v26 = vrot.slane %v3049_v43, 7  ;;  %v3051_v11 = vadd.f32 %v3050_v12, %v2698_v7  ;;  %v2700_v14 = vadd.f32 %v2699_v60, %v13453_v1  ;;  %v10178_v48 = vsel %vm4252_vm0, %v4487_v16, %v4491_v45  ;;  %v13461_v1 = vld [vmem:[#allocation245_spill] sm:$0xff] }
 0x284   : > { %13454 = vst [vmem:[#allocation129_spill] sm:$0xff] %v10178_v48  ;;  %v2703_v10 = vpop.f32.mrf.mxu1  ;;  %v3056_v53 = vpop.f32.mrf.mxu0  ;;  %3328 = vmatmul.mubr.bf16.gmra.mxu1 %v13455_v62  ;;  %3681 = vmatmul.mubr.bf16.gmra.mxu0 %v13456_v36  ;;  %v13463_v36 = vld [vmem:[#allocation247_spill] sm:$0xff] }
 0x285   : > { %v4495_v47 = vrot.slane %v3051_v11, 7  ;;  %v3053_v23 = vadd.f32 %v3052_v44, %v2700_v14  ;;  %v2704_v51 = vadd.f32 %v2703_v10, %v13457_v25  ;;  %3337 = vmatprep.mubr.bf16.mxu1 %v13458_v19  ;;  %3690 = vmatprep.mubr.bf16.mxu0 %v13459_v37  ;;  %v10186_v12 = vsel %vm4252_vm0, %v4489_v38, %v4493_v26 }
 0x286   : > { %13460 = vst [vmem:[#allocation49_spill] sm:$0xff] %v10186_v12  ;;  %v2705_v43 = vpop.f32.mrf.mxu1  ;;  %v3058_v16 = vpop.f32.mrf.mxu0 }
 0x287   : > { %v4497_v7 = vrot.slane %v3053_v23, 7  ;;  %v3057_v60 = vadd.f32 %v3056_v53, %v2704_v51  ;;  %v2706_v48 = vadd.f32 %v2705_v43, %v13461_v1  ;;  %v10190_v62 = vsel %vm4252_vm0, %v4491_v45, %v4495_v47  ;;  %v13466_v53 = vld [vmem:[#allocation253_spill] sm:$0xff]  ;;  %v13468_v43 = vld [vmem:[#allocation34_spill] sm:$0xff] }
 0x288   : > { %13462 = vst [vmem:[#allocation125_spill] sm:$0xff] %v10190_v62  ;;  %v2707_v11 = vpop.f32.mrf.mxu1  ;;  %v3060_v44 = vpop.f32.mrf.mxu0 }
 0x289   : > { %v4499_v14 = vrot.slane %v3057_v60, 7  ;;  %v3059_v10 = vadd.f32 %v3058_v16, %v2706_v48  ;;  %v2708_v19 = vadd.f32 %v2707_v11, %v13463_v36  ;;  %v10194_v37 = vsel %vm4252_vm0, %v4493_v26, %v4497_v7  ;;  %v13469_v48 = vld [vmem:[#allocation248_spill] sm:$0xff] }
 0x28a   : > { %13464 = vst [vmem:[#allocation130_spill] sm:$0xff] %v10194_v37  ;;  %v2709_v38 = vpop.f32.mrf.mxu1  ;;  %v3062_v25 = vpop.f32.mrf.mxu0  ;;  %v13471_v11 = vld [vmem:[#allocation36_spill] sm:$0xff] }
 0x28b   : > { %v4501_v12 = vrot.slane %v3059_v10, 7  ;;  %v10196_v6 = vadd.f32 %v3060_v44, %v2708_v19  ;;  %v2710_v23 = vadd.f32 %v2709_v38, %v13466_v53  ;;  %v10200_v51 = vsel %vm4252_vm0, %v4495_v47, %v4499_v14  ;;  %v13472_v44 = vld [vmem:[#allocation250_spill] sm:$0xff] }
 0x28c   : > { %13467 = vst [vmem:[#allocation127_spill] sm:$0xff] %v10200_v51  ;;  %v3099_v45 = vpop.f32.mrf.mxu1  ;;  %3338 = vmatmul.mubr.bf16.gmra.mxu1 %v13468_v43  ;;  %v3452_v60 = vpop.f32.mrf.mxu0  ;;  %3691 = vmatmul.mubr.bf16.gmra.mxu0 %v13469_v48 }
 0x28d   : > { %13465 = vst [vmem:[#allocation51_spill] sm:$0xff] %v10196_v6  ;;  %v12888_v16 = vrot.slane %v10196_v6, 7  ;;  %v10205_v26 = vadd.f32 %v3062_v25, %v2710_v23  ;;  %v10207_v1 = vadd.f32 %v3452_v60, %v3099_v45  ;;  %3347 = vmatprep.mubr.bf16.mxu1 %v13471_v11  ;;  %3700 = vmatprep.mubr.bf16.mxu0 %v13472_v44  ;;  %v7697_v25 = vld [vmem:[%s12709_s3] sm:$0xff]  }
 0x28e   : > { %v10212_v10 = vsel %vm4252_vm0, %v4497_v7, %v4501_v12  ;;  %v3101_v47 = vpop.f32.mrf.mxu1  ;;  %v3454_v36 = vpop.f32.mrf.mxu0  ;;  %5250 = vmatpush1.bf16.msra.mxu0 %v7697_v25  ;;  %v13478_v25 = vld [vmem:[#allocation40_spill] sm:$0xff] }
 0x28f   : > { %13470 = vst [vmem:[#allocation131_spill] sm:$0xff] %v10205_v26  ;;  %13473 = vst [vmem:[#allocation132_spill] sm:$0xff] %v10212_v10  ;;  %v12889_v19 = vrot.slane %v10205_v26, 7  ;;  %v10215_v38 = vadd.f32 %v3454_v36, %v3101_v47  ;;  %v10223_v53 = vsel %vm4252_vm0, %v4499_v14, %v12888_v16  ;;  %5251 = vmatprep.subr.bf16.mxu0 %v13332_v30  ;;  %v13476_v47 = vld [vmem:[#allocation38_spill] sm:$0xff] }
 0x290   : > { %13474 = vst [vmem:[#allocation137_spill] sm:$0xff] %v10223_v53  ;;  %v3103_v23 = vpop.f32.mrf.mxu1  ;;  %v3456_v45 = vpop.f32.mrf.mxu0  ;;  %v13477_v36 = vld [vmem:[#allocation254_spill] sm:$0xff] }
 0x291   : > { %v10225_v43 = vadd.f32 %v3456_v45, %v3103_v23  ;;  %v10230_v7 = vsel %vm4252_vm0, %v4501_v12, %v12889_v19  ;;  %v13479_v45 = vld [vmem:[#allocation256_spill] sm:$0xff] }
 0x292   : > { %13475 = vst [vmem:[#allocation53_spill] sm:$0xff] %v10230_v7  ;;  %v3105_v60 = vpop.f32.mrf.mxu1  ;;  %v3458_v48 = vpop.f32.mrf.mxu0 }
 0x293   : > { %v10233_v11 = vadd.f32 %v3458_v48, %v3105_v60 }
 0x294   : > { %v3109_v44 = vpop.f32.mrf.mxu1  ;;  %3348 = vmatmul.mubr.bf16.gmra.mxu1 %v13476_v47  ;;  %v3462_v14 = vpop.f32.mrf.mxu0  ;;  %3701 = vmatmul.mubr.bf16.gmra.mxu0 %v13477_v36  ;;  %v13480_v36 = vld [vmem:[#allocation42_spill] sm:$0xff] }
 0x295   : > { %v10237_v23 = vadd.f32 %v3462_v14, %v3109_v44  ;;  %3357 = vmatprep.mubr.bf16.mxu1 %v13478_v25  ;;  %3710 = vmatprep.mubr.bf16.mxu0 %v13479_v45  ;;  %v13481_v25 = vld [vmem:[#allocation44_spill] sm:$0xff] }
 0x296   : > { %v3111_v12 = vpop.f32.mrf.mxu1  ;;  %v3464_v16 = vpop.f32.mrf.mxu0 }
 0x297   : > { %v10241_v19 = vadd.f32 %v3464_v16, %v3111_v12 }
 0x298   : > { %v3113_v6 = vpop.f32.mrf.mxu1  ;;  %v3466_v26 = vpop.f32.mrf.mxu0 }
 0x299   : > { %v10243_v60 = vadd.f32 %v3466_v26, %v3113_v6  ;;  %v7698_v26 = vld [vmem:[%s12709_s3 + $0x78] sm:$0xff]  }
 0x29a   : > { %v3115_v48 = vpop.f32.mrf.mxu1  ;;  %v3468_v7 = vpop.f32.mrf.mxu0  ;;  %5252 = vmatpush2.bf16.msra.mxu0 %v7698_v26 }
 0x29b   : > { %v10245_v47 = vadd.f32 %v3468_v7, %v3115_v48  ;;  %5253 = vmatprep.subr.bf16.mxu0 %v13332_v30 }
 0x29c   : > { %v3119_v53 = vpop.f32.mrf.mxu1  ;;  %3358 = vmatmul.mubr.bf16.gmra.mxu1 %v13480_v36  ;;  %v3472_v44 = vpop.f32.mrf.mxu0  ;;  %3711 = vmatmul.mubr.bf16.gmra.mxu0 %v9387_v21 }
 0x29d   : > { %v10249_v14 = vadd.f32 %v3472_v44, %v3119_v53  ;;  %3367 = vmatprep.mubr.bf16.mxu1 %v13481_v25  ;;  %3720 = vmatprep.mubr.bf16.mxu0 %v9391_v49  ;;  %v13482_v44 = vld [vmem:[#allocation46_spill] sm:$0xff] }
 0x29e   : > { %v3121_v16 = vpop.f32.mrf.mxu1  ;;  %v3474_v45 = vpop.f32.mrf.mxu0 }
 0x29f   : > { %v10253_v6 = vadd.f32 %v3474_v45, %v3121_v16  ;;  %v13483_v45 = vld [vmem:[#allocation48_spill] sm:$0xff] }
 0x2a0   : > { %v3123_v7 = vpop.f32.mrf.mxu1  ;;  %v3476_v12 = vpop.f32.mrf.mxu0 }
 0x2a1   : > { %v10258_v48 = vadd.f32 %v3476_v12, %v3123_v7 }
 0x2a2   : > { %v3125_v21 = vpop.f32.mrf.mxu1  ;;  %v3478_v53 = vpop.f32.mrf.mxu0 }
 0x2a3   : > { %v10261_v36 = vadd.f32 %v3478_v53, %v3125_v21 }
 0x2a4   : > { %v3129_v49 = vpop.f32.mrf.mxu1  ;;  %3368 = vmatmul.mubr.bf16.gmra.mxu1 %v13482_v44  ;;  %v3482_v25 = vpop.f32.mrf.mxu0  ;;  %3721 = vmatmul.mubr.bf16.gmra.mxu0 %v9425_v13  ;;  %v13484_v13 = vld [vmem:[#allocation50_spill] sm:$0xff] }
 0x2a5   : > { %v10265_v16 = vadd.f32 %v3482_v25, %v3129_v49  ;;  %3377 = vmatprep.mubr.bf16.mxu1 %v13483_v45  ;;  %3730 = vmatprep.mubr.bf16.mxu0 %v9429_v50  ;;  %v13485_v50 = vld [vmem:[#allocation52_spill] sm:$0xff] }
 0x2a6   : > { %v3131_v7 = vpop.f32.mrf.mxu1  ;;  %v3484_v26 = vpop.f32.mrf.mxu0 }
 0x2a7   : > { %v10269_v12 = vadd.f32 %v3484_v26, %v3131_v7  ;;  %v13486_v26 = vld [vmem:[#allocation54_spill] sm:$0xff] }
 0x2a8   : > { %v3133_v10 = vpop.f32.mrf.mxu1  ;;  %v3486_v51 = vpop.f32.mrf.mxu0 }
 0x2a9   : > { %v10271_v21 = vadd.f32 %v3486_v51, %v3133_v10 }
 0x2aa   : > { %v3135_v53 = vpop.f32.mrf.mxu1  ;;  %v3488_v37 = vpop.f32.mrf.mxu0 }
 0x2ab   : > { %v10273_v44 = vadd.f32 %v3488_v37, %v3135_v53  ;;  %v7699_v37 = vld [vmem:[%s12709_s3 + $0x70] sm:$0xff]  }
 0x2ac   : > { %v10275_v62 = vpop.f32.mrf.mxu1  ;;  %3378 = vmatmul.mubr.bf16.gmra.mxu1 %v13484_v13  ;;  %v10278_v49 = vpop.f32.mrf.mxu0  ;;  %3731 = vmatmul.mubr.bf16.gmra.mxu0 %v9461_v56  ;;  %v13487_v13 = vld [vmem:[#allocation56_spill] sm:$0xff] }
 0x2ad   : > { %3387 = vmatprep.mubr.bf16.mxu1 %v13485_v50  ;;  %3740 = vmatprep.mubr.bf16.mxu0 %v9465_v63 }
 0x2ae   : > { %v10283_v25 = vpop.f32.mrf.mxu1  ;;  %v10285_v51 = vpop.f32.mrf.mxu0  ;;  %5254 = vmatpush2.bf16.msra.mxu0 %v7699_v37 }
 0x2af   : > { %5255 = vmatprep.subr.bf16.mxu0 %v13332_v30 }
 0x2b0   : > { %v10290_v10 = vpop.f32.mrf.mxu1  ;;  %v10292_v45 = vpop.f32.mrf.mxu0 }
 0x2b2   : > { %v10294_v7 = vpop.f32.mrf.mxu1  ;;  %v10296_v56 = vpop.f32.mrf.mxu0  ;;  %5256 = vmatpush2.bf16.msra.mxu0 %v7700_v20 }
 0x2b3   : > { %5257 = vmatprep.subr.bf16.mxu0 %v13332_v30 }
 0x2b4   : > { %v10299_v63 = vpop.f32.mrf.mxu1  ;;  %3388 = vmatmul.mubr.bf16.gmra.mxu1 %v13486_v26  ;;  %v10302_v53 = vpop.f32.mrf.mxu0  ;;  %3741 = vmatmul.mubr.bf16.gmra.mxu0 %v9497_v42  ;;  %v13488_v26 = vld [vmem:[#allocation58_spill] sm:$0xff] }
 0x2b5   : > { %3397 = vmatprep.mubr.bf16.mxu1 %v13487_v13  ;;  %3750 = vmatprep.mubr.bf16.mxu0 %v9501_v17  ;;  %v13489_v13 = vld [vmem:[#allocation60_spill] sm:$0xff] }
 0x2b6   : > { %v10307_v50 = vpop.f32.mrf.mxu1  ;;  %v10309_v37 = vpop.f32.mrf.mxu0 }
 0x2b8   : > { %v10311_v22 = vpop.f32.mrf.mxu1  ;;  %v10313_v15 = vpop.f32.mrf.mxu0 }
 0x2ba   : > { %v10315_v9 = vpop.f32.mrf.mxu1  ;;  %v10321_v42 = vpop.f32.mrf.mxu0 }
 0x2bc   : > { %v10317_v34 = vpop.f32.mrf.mxu1  ;;  %3398 = vmatmul.mubr.bf16.gmra.mxu1 %v13488_v26  ;;  %3751 = vmatmul.mubr.bf16.gmra.mxu0 %v9533_v32  ;;  %v10332_v28 = vpop.f32.mrf.mxu0 }
 0x2bd   : > { %3407 = vmatprep.mubr.bf16.mxu1 %v13489_v13  ;;  %3760 = vmatprep.mubr.bf16.mxu0 %v9537_v59  ;;  %v13493_v13 = vld [vmem:[#allocation62_spill] sm:$0xff] }
 0x2be   : > { %v10325_v17 = vpop.f32.mrf.mxu1  ;;  %v10341_v59 = vpop.f32.mrf.mxu0 }
 0x2bf   : > { %13494 = vst [vmem:[#allocation135_spill] sm:$0xff] %v10341_v59 }
 0x2c0   : > { %v10330_v39 = vpop.f32.mrf.mxu1  ;;  %v10348_v29 = vpop.f32.mrf.mxu0 }
 0x2c1   : > { %13490 = vst [vmem:[#allocation133_spill] sm:$0xff] %v10330_v39  ;;  %13498 = vst [vmem:[#allocation145_spill] sm:$0xff] %v10348_v29 }
 0x2c2   : > { %v10334_v26 = vpop.f32.mrf.mxu1 }
 0x2c3   : > { %13491 = vst [vmem:[#allocation138_spill] sm:$0xff] %v10334_v26  ;;  %v13501_v26 = vld [vmem:[#allocation64_spill] sm:$0xff] }
 0x2c4   : > { %v10337_v32 = vpop.f32.mrf.mxu1  ;;  %3408 = vmatmul.mubr.bf16.gmra.mxu1 %v13493_v13  ;;  %3761 = vmatmul.mubr.bf16.gmra.mxu0 %v9565_v3  ;;  %v13503_v13 = vld [vmem:[#allocation65_spill] sm:$0xff] }
 0x2c5   : > { %13492 = vst [vmem:[#allocation55_spill] sm:$0xff] %v10337_v32  ;;  %3803 = vmatprep.mubr.bf16.mxu1 %v13495_v40  ;;  %v10355_v32 = vpop.f32.mrf.mxu0  ;;  %v7701_v40 = vld [vmem:[%s12709_s3 + $0x60] sm:$0xff]  }
 0x2c6   : > { %v10344_v24 = vpop.f32.mrf.mxu1  ;;  %13502 = vst [vmem:[#allocation146_spill] sm:$0xff] %v10355_v32  ;;  %5258 = vmatpush2.bf16.msra.mxu0 %v7701_v40 }
 0x2c7   : > { %13496 = vst [vmem:[#allocation139_spill] sm:$0xff] %v10344_v24  ;;  %5259 = vmatprep.subr.bf16.mxu0 %v13332_v30 }
 0x2c8   : > { %v10346_v54 = vpop.f32.mrf.mxu1 }
 0x2c9   : > { %13497 = vst [vmem:[#allocation140_spill] sm:$0xff] %v10346_v54  ;;  %v10365_v54 = vpop.f32.mrf.mxu0 }
 0x2ca   : > { %v10350_v20 = vpop.f32.mrf.mxu1  ;;  %13506 = vst [vmem:[#allocation147_spill] sm:$0xff] %v10365_v54 }
 0x2cb   : > { %13499 = vst [vmem:[#allocation57_spill] sm:$0xff] %v10350_v20 }
 0x2cc   : > { %v10352_v31 = vpop.f32.mrf.mxu1  ;;  %3804 = vmatmul.mubr.bf16.vlgmr.msra.gmra.mxu1 %v13501_v26 }
 0x2cd   : > { %13500 = vst [vmem:[#allocation141_spill] sm:$0xff] %v10352_v31  ;;  %3813 = vmatprep.mubr.bf16.mxu1 %v13503_v13  ;;  %v13509_v31 = vld [vmem:[#allocation67_spill] sm:$0xff]  ;;  %v10373_v13 = vpop.f32.mrf.mxu0 }
 0x2ce   : > { %v10358_v3 = vpop.f32.mrf.mxu1  ;;  %13510 = vst [vmem:[#allocation61_spill] sm:$0xff] %v10373_v13 }
 0x2cf   : > { %13504 = vst [vmem:[#allocation59_spill] sm:$0xff] %v10358_v3  ;;  %v13511_v3 = vld [vmem:[#allocation69_spill] sm:$0xff] }
 0x2d0   : > { %v10363_v24 = vpop.f32.mrf.mxu1 }
 0x2d1   : > { %13505 = vst [vmem:[#allocation143_spill] sm:$0xff] %v10363_v24  ;;  %v10380_v24 = vpop.f32.mrf.mxu0 }
 0x2d2   : > { %v10367_v20 = vpop.f32.mrf.mxu1  ;;  %13514 = vst [vmem:[#allocation2_spill] sm:$0xff] %v10380_v24 }
 0x2d3   : > { %13507 = vst [vmem:[#allocation148_spill] sm:$0xff] %v10367_v20  ;;  %v13517_v20 = vld [vmem:[#allocation71_spill] sm:$0xff]  ;;  %v10387_v29 = vpop.f32.mrf.mxu0 }
 0x2d4   : > { %v10370_v26 = vpop.f32.mrf.mxu1  ;;  %3814 = vmatmul.mubr.bf16.gmra.mxu1 %v13509_v31  ;;  %13518 = vst [vmem:[#allocation156_spill] sm:$0xff] %v10387_v29 }
 0x2d5   : > { %13508 = vst [vmem:[#allocation153_spill] sm:$0xff] %v10370_v26  ;;  %3823 = vmatprep.mubr.bf16.mxu1 %v13511_v3  ;;  %v13519_v26 = vld [vmem:[#allocation73_spill] sm:$0xff] }
 0x2d6   : > { %v10376_v32 = vpop.f32.mrf.mxu1  ;;  %v7702_v3 = vld [vmem:[%s12709_s3 + $0x58] sm:$0xff]  }
 0x2d7   : > { %13512 = vst [vmem:[#allocation149_spill] sm:$0xff] %v10376_v32  ;;  %5260 = vmatpush2.bf16.msra.mxu0 %v7702_v3 }
 0x2d8   : > { %v10378_v61 = vpop.f32.mrf.mxu1  ;;  %5261 = vmatprep.subr.bf16.mxu0 %v13332_v30 }
 0x2d9   : > { %13513 = vst [vmem:[#allocation154_spill] sm:$0xff] %v10378_v61  ;;  %v10397_v61 = vpop.f32.mrf.mxu0 }
 0x2da   : > { %v10382_v54 = vpop.f32.mrf.mxu1  ;;  %13522 = vst [vmem:[#allocation157_spill] sm:$0xff] %v10397_v61 }
 0x2db   : > { %13515 = vst [vmem:[#allocation151_spill] sm:$0xff] %v10382_v54 }
 0x2dc   : > { %v10384_v40 = vpop.f32.mrf.mxu1  ;;  %3824 = vmatmul.mubr.bf16.gmra.mxu1 %v13517_v20 }
 0x2dd   : > { %13516 = vst [vmem:[#allocation155_spill] sm:$0xff] %v10384_v40  ;;  %3833 = vmatprep.mubr.bf16.mxu1 %v13519_v26  ;;  %v13525_v40 = vld [vmem:[#allocation75_spill] sm:$0xff]  ;;  %v10405_v26 = vpop.f32.mrf.mxu0 }
 0x2de   : > { %v10390_v31 = vpop.f32.mrf.mxu1  ;;  %13526 = vst [vmem:[#allocation159_spill] sm:$0xff] %v10405_v26 }
 0x2df   : > { %13520 = vst [vmem:[#allocation161_spill] sm:$0xff] %v10390_v31  ;;  %v13527_v31 = vld [vmem:[#allocation77_spill] sm:$0xff] }
 0x2e0   : > { %v10395_v32 = vpop.f32.mrf.mxu1 }
 0x2e1   : > { %13521 = vst [vmem:[#allocation3_spill] sm:$0xff] %v10395_v32  ;;  %v10412_v32 = vpop.f32.mrf.mxu0 }
 0x2e2   : > { %v10399_v54 = vpop.f32.mrf.mxu1  ;;  %13530 = vst [vmem:[#allocation169_spill] sm:$0xff] %v10412_v32 }
 0x2e3   : > { %13523 = vst [vmem:[#allocation162_spill] sm:$0xff] %v10399_v54  ;;  %v13533_v54 = vld [vmem:[#allocation79_spill] sm:$0xff]  ;;  %v10419_v13 = vpop.f32.mrf.mxu0 }
 0x2e4   : > { %v10402_v20 = vpop.f32.mrf.mxu1  ;;  %3834 = vmatmul.mubr.bf16.gmra.mxu1 %v13525_v40  ;;  %13534 = vst [vmem:[#allocation171_spill] sm:$0xff] %v10419_v13 }
 0x2e5   : > { %13524 = vst [vmem:[#allocation4_spill] sm:$0xff] %v10402_v20  ;;  %3843 = vmatprep.mubr.bf16.mxu1 %v13527_v31  ;;  %v13535_v20 = vld [vmem:[#allocation81_spill] sm:$0xff]  ;;  %v7703_v31 = vld [vmem:[%s12709_s3 + $0x50] sm:$0xff]  }
 0x2e6   : > { %v10408_v29 = vpop.f32.mrf.mxu1  ;;  %5262 = vmatpush2.bf16.msra.mxu0 %v7703_v31 }
 0x2e7   : > { %13528 = vst [vmem:[#allocation163_spill] sm:$0xff] %v10408_v29  ;;  %5263 = vmatprep.subr.bf16.mxu0 %v13332_v30 }
 0x2e8   : > { %v10410_v24 = vpop.f32.mrf.mxu1 }
 0x2e9   : > { %13529 = vst [vmem:[#allocation164_spill] sm:$0xff] %v10410_v24  ;;  %v10429_v24 = vpop.f32.mrf.mxu0 }
 0x2ea   : > { %v10414_v61 = vpop.f32.mrf.mxu1  ;;  %13538 = vst [vmem:[#allocation173_spill] sm:$0xff] %v10429_v24 }
 0x2eb   : > { %13531 = vst [vmem:[#allocation6_spill] sm:$0xff] %v10414_v61 }
 0x2ec   : > { %v10416_v3 = vpop.f32.mrf.mxu1  ;;  %3844 = vmatmul.mubr.bf16.gmra.mxu1 %v13533_v54 }
 0x2ed   : > { %13532 = vst [vmem:[#allocation165_spill] sm:$0xff] %v10416_v3  ;;  %3853 = vmatprep.mubr.bf16.mxu1 %v13535_v20  ;;  %v13541_v3 = vld [vmem:[#allocation83_spill] sm:$0xff]  ;;  %v10437_v20 = vpop.f32.mrf.mxu0 }
 0x2ee   : > { %v10422_v40 = vpop.f32.mrf.mxu1  ;;  %13542 = vst [vmem:[#allocation10_spill] sm:$0xff] %v10437_v20  ;;  %v13693_v20 = vld [vmem:[#allocation249_spill] sm:$0xff] }
 0x2ef   : > { %13536 = vst [vmem:[#allocation8_spill] sm:$0xff] %v10422_v40  ;;  %v13543_v40 = vld [vmem:[#allocation85_spill] sm:$0xff] }
 0x2f0   : > { %v10427_v29 = vpop.f32.mrf.mxu1 }
 0x2f1   : > { %13537 = vst [vmem:[#allocation167_spill] sm:$0xff] %v10427_v29  ;;  %v10444_v29 = vpop.f32.mrf.mxu0 }
 0x2f2   : > { %v10431_v61 = vpop.f32.mrf.mxu1  ;;  %13546 = vst [vmem:[#allocation12_spill] sm:$0xff] %v10444_v29 }
 0x2f3   : > { %13539 = vst [vmem:[#allocation175_spill] sm:$0xff] %v10431_v61  ;;  %v13549_v61 = vld [vmem:[#allocation87_spill] sm:$0xff]  ;;  %v10451_v26 = vpop.f32.mrf.mxu0 }
 0x2f4   : > { %v10434_v54 = vpop.f32.mrf.mxu1  ;;  %3854 = vmatmul.mubr.bf16.gmra.mxu1 %v13541_v3  ;;  %13550 = vst [vmem:[#allocation187_spill] sm:$0xff] %v10451_v26 }
 0x2f5   : > { %13540 = vst [vmem:[#allocation181_spill] sm:$0xff] %v10434_v54  ;;  %3863 = vmatprep.mubr.bf16.mxu1 %v13543_v40  ;;  %v13551_v54 = vld [vmem:[#allocation89_spill] sm:$0xff]  ;;  %v7704_v40 = vld [vmem:[%s12709_s3 + $0x48] sm:$0xff]  }
 0x2f6   : > { %v10440_v13 = vpop.f32.mrf.mxu1  ;;  %5264 = vmatpush2.bf16.msra.mxu0 %v7704_v40 }
 0x2f7   : > { %13544 = vst [vmem:[#allocation176_spill] sm:$0xff] %v10440_v13  ;;  %5265 = vmatprep.subr.bf16.mxu0 %v13332_v30 }
 0x2f8   : > { %v10442_v32 = vpop.f32.mrf.mxu1 }
 0x2f9   : > { %13545 = vst [vmem:[#allocation183_spill] sm:$0xff] %v10442_v32  ;;  %v10461_v32 = vpop.f32.mrf.mxu0 }
 0x2fa   : > { %v10446_v24 = vpop.f32.mrf.mxu1  ;;  %13554 = vst [vmem:[#allocation188_spill] sm:$0xff] %v10461_v32 }
 0x2fb   : > { %13547 = vst [vmem:[#allocation178_spill] sm:$0xff] %v10446_v24 }
 0x2fc   : > { %v10448_v31 = vpop.f32.mrf.mxu1  ;;  %3864 = vmatmul.mubr.bf16.gmra.mxu1 %v13549_v61 }
 0x2fd   : > { %13548 = vst [vmem:[#allocation185_spill] sm:$0xff] %v10448_v31  ;;  %3873 = vmatprep.mubr.bf16.mxu1 %v13551_v54  ;;  %v13557_v31 = vld [vmem:[#allocation91_spill] sm:$0xff]  ;;  %v10469_v54 = vpop.f32.mrf.mxu0 }
 0x2fe   : > { %v10454_v3 = vpop.f32.mrf.mxu1  ;;  %13558 = vst [vmem:[#allocation190_spill] sm:$0xff] %v10469_v54 }
 0x2ff   : > { %13552 = vst [vmem:[#allocation193_spill] sm:$0xff] %v10454_v3  ;;  %v13559_v3 = vld [vmem:[#allocation93_spill] sm:$0xff] }
 0x300   : > { %v10459_v13 = vpop.f32.mrf.mxu1 }
 0x301   : > { %13553 = vst [vmem:[#allocation14_spill] sm:$0xff] %v10459_v13  ;;  %v10476_v13 = vpop.f32.mrf.mxu0 }
 0x302   : > { %v10463_v24 = vpop.f32.mrf.mxu1  ;;  %13562 = vst [vmem:[#allocation205_spill] sm:$0xff] %v10476_v13  ;;  %v13573_v13 = vld [vmem:[#allocation102_spill] sm:$0xff] }
 0x303   : > { %13555 = vst [vmem:[#allocation195_spill] sm:$0xff] %v10463_v24  ;;  %v13565_v24 = vld [vmem:[#allocation95_spill] sm:$0xff]  ;;  %v10483_v30 = vpop.f32.mrf.mxu0 }
 0x304   : > { %v10466_v61 = vpop.f32.mrf.mxu1  ;;  %3874 = vmatmul.mubr.bf16.gmra.mxu1 %v13557_v31  ;;  %13566 = vst [vmem:[#allocation207_spill] sm:$0xff] %v10483_v30 }
 0x305   : > { %13556 = vst [vmem:[#allocation16_spill] sm:$0xff] %v10466_v61  ;;  %3883 = vmatprep.mubr.bf16.mxu1 %v13559_v3  ;;  %v13567_v61 = vld [vmem:[#allocation97_spill] sm:$0xff]  ;;  %v10490_v3 = vpop.f32.mrf.mxu0 }
 0x306   : > { %v10472_v26 = vpop.f32.mrf.mxu1  ;;  %13570 = vst [vmem:[#allocation209_spill] sm:$0xff] %v10490_v3 }
 0x307   : > { %13560 = vst [vmem:[#allocation197_spill] sm:$0xff] %v10472_v26 }
 0x308   : > { %v10474_v29 = vpop.f32.mrf.mxu1 }
 0x309   : > { %13561 = vst [vmem:[#allocation199_spill] sm:$0xff] %v10474_v29 }
 0x30a   : > { %v10478_v32 = vpop.f32.mrf.mxu1 }
 0x30b   : > { %13563 = vst [vmem:[#allocation18_spill] sm:$0xff] %v10478_v32  ;;  %v10497_v32 = vpop.f32.mrf.mxu0 }
 0x30c   : > { %v10480_v40 = vpop.f32.mrf.mxu1  ;;  %3884 = vmatmul.mubr.bf16.gmra.mxu1 %v13565_v24  ;;  %13574 = vst [vmem:[#allocation22_spill] sm:$0xff] %v10497_v32  ;;  %v7705_v24 = vld [vmem:[%s12709_s3 + $0x40] sm:$0xff]  }
 0x30d   : > { %13564 = vst [vmem:[#allocation200_spill] sm:$0xff] %v10480_v40  ;;  %3893 = vmatprep.mubr.bf16.mxu1 %v13567_v61  ;;  %v13575_v40 = vld [vmem:[#allocation104_spill] sm:$0xff]  ;;  %5266 = vmatpush2.bf16.msra.mxu0 %v7705_v24 }
 0x30e   : > { %v10486_v31 = vpop.f32.mrf.mxu1 }
 0x30f   : > { %13568 = vst [vmem:[#allocation20_spill] sm:$0xff] %v10486_v31  ;;  %v10507_v31 = vpop.f32.mrf.mxu0 }
 0x310   : > { %v10488_v54 = vpop.f32.mrf.mxu1  ;;  %13578 = vst [vmem:[#allocation24_spill] sm:$0xff] %v10507_v31  ;;  %v13589_v31 = vld [vmem:[#allocation118_spill] sm:$0xff] }
 0x311   : > { %13569 = vst [vmem:[#allocation202_spill] sm:$0xff] %v10488_v54  ;;  %v10514_v32 = vpop.f32.mrf.mxu0 }
 0x312   : > { %v10492_v26 = vpop.f32.mrf.mxu1  ;;  %13582 = vst [vmem:[#allocation223_spill] sm:$0xff] %v10514_v32 }
 0x313   : > { %13571 = vst [vmem:[#allocation211_spill] sm:$0xff] %v10492_v26 }
 0x314   : > { %v10494_v29 = vpop.f32.mrf.mxu1  ;;  %3894 = vmatmul.mubr.bf16.gmra.mxu1 %v13573_v13  ;;  %v13581_v13 = vld [vmem:[#allocation110_spill] sm:$0xff] }
 0x315   : > { %13572 = vst [vmem:[#allocation217_spill] sm:$0xff] %v10494_v29  ;;  %3903 = vmatprep.mubr.bf16.mxu1 %v13575_v40  ;;  %v13583_v40 = vld [vmem:[#allocation112_spill] sm:$0xff] }
 0x316   : > { %v10503_v61 = vpop.f32.mrf.mxu1 }
 0x317   : > { %13576 = vst [vmem:[#allocation212_spill] sm:$0xff] %v10503_v61  ;;  %v10521_v61 = vpop.f32.mrf.mxu0 }
 0x318   : > { %v10505_v54 = vpop.f32.mrf.mxu1  ;;  %13586 = vst [vmem:[#allocation224_spill] sm:$0xff] %v10521_v61  ;;  %v13597_v61 = vld [vmem:[#allocation126_spill] sm:$0xff] }
 0x319   : > { %13577 = vst [vmem:[#allocation219_spill] sm:$0xff] %v10505_v54 }
 0x31a   : > { %v10509_v26 = vpop.f32.mrf.mxu1 }
 0x31b   : > { %13579 = vst [vmem:[#allocation214_spill] sm:$0xff] %v10509_v26  ;;  %v10528_v26 = vpop.f32.mrf.mxu0 }
 0x31c   : > { %v10511_v29 = vpop.f32.mrf.mxu1  ;;  %3904 = vmatmul.mubr.bf16.gmra.mxu1 %v13581_v13  ;;  %13590 = vst [vmem:[#allocation226_spill] sm:$0xff] %v10528_v26 }
 0x31d   : > { %13580 = vst [vmem:[#allocation221_spill] sm:$0xff] %v10511_v29  ;;  %3913 = vmatprep.mubr.bf16.mxu1 %v13583_v40  ;;  %v13591_v29 = vld [vmem:[#allocation120_spill] sm:$0xff]  ;;  %v10535_v40 = vpop.f32.mrf.mxu0 }
 0x31e   : > { %v10517_v3 = vpop.f32.mrf.mxu1  ;;  %13594 = vst [vmem:[#allocation241_spill] sm:$0xff] %v10535_v40  ;;  %v13605_v40 = vld [vmem:[#allocation134_spill] sm:$0xff] }
 0x31f   : > { %13584 = vst [vmem:[#allocation229_spill] sm:$0xff] %v10517_v3 }
 0x320   : > { %v10519_v30 = vpop.f32.mrf.mxu1 }
 0x321   : > { %13585 = vst [vmem:[#allocation26_spill] sm:$0xff] %v10519_v30 }
 0x322   : > { %v10523_v24 = vpop.f32.mrf.mxu1 }
 0x323   : > { %13587 = vst [vmem:[#allocation231_spill] sm:$0xff] %v10523_v24  ;;  %v10542_v24 = vpop.f32.mrf.mxu0 }
 0x324   : > { %v10525_v54 = vpop.f32.mrf.mxu1  ;;  %3914 = vmatmul.mubr.bf16.gmra.mxu1 %v13589_v31  ;;  %13598 = vst [vmem:[#allocation243_spill] sm:$0xff] %v10542_v24 }
 0x325   : > { %13588 = vst [vmem:[#allocation28_spill] sm:$0xff] %v10525_v54  ;;  %3923 = vmatprep.mubr.bf16.mxu1 %v13591_v29  ;;  %v13599_v54 = vld [vmem:[#allocation128_spill] sm:$0xff]  ;;  %v10549_v29 = vpop.f32.mrf.mxu0 }
 0x326   : > { %v10531_v13 = vpop.f32.mrf.mxu1  ;;  %13602 = vst [vmem:[#allocation245_spill] sm:$0xff] %v10549_v29  ;;  %v13613_v29 = vld [vmem:[#allocation142_spill] sm:$0xff] }
 0x327   : > { %13592 = vst [vmem:[#allocation233_spill] sm:$0xff] %v10531_v13 }
 0x328   : > { %v10533_v32 = vpop.f32.mrf.mxu1 }
 0x329   : > { %13593 = vst [vmem:[#allocation235_spill] sm:$0xff] %v10533_v32 }
 0x32a   : > { %v10537_v3 = vpop.f32.mrf.mxu1 }
 0x32b   : > { %13595 = vst [vmem:[#allocation30_spill] sm:$0xff] %v10537_v3  ;;  %v10556_v3 = vpop.f32.mrf.mxu0 }
 0x32c   : > { %v10539_v30 = vpop.f32.mrf.mxu1  ;;  %3924 = vmatmul.mubr.bf16.gmra.mxu1 %v13597_v61  ;;  %13606 = vst [vmem:[#allocation34_spill] sm:$0xff] %v10556_v3 }
 0x32d   : > { %13596 = vst [vmem:[#allocation236_spill] sm:$0xff] %v10539_v30  ;;  %3933 = vmatprep.mubr.bf16.mxu1 %v13599_v54  ;;  %v13607_v30 = vld [vmem:[#allocation136_spill] sm:$0xff]  ;;  %v10563_v54 = vpop.f32.mrf.mxu0 }
 0x32e   : > { %v10545_v31 = vpop.f32.mrf.mxu1  ;;  %13610 = vst [vmem:[#allocation250_spill] sm:$0xff] %v10563_v54  ;;  %v13621_v54 = vld [vmem:[#allocation150_spill] sm:$0xff] }
 0x32f   : > { %13600 = vst [vmem:[#allocation32_spill] sm:$0xff] %v10545_v31 }
 0x330   : > { %v10547_v26 = vpop.f32.mrf.mxu1 }
 0x331   : > { %13601 = vst [vmem:[#allocation238_spill] sm:$0xff] %v10547_v26 }
 0x332   : > { %v10551_v13 = vpop.f32.mrf.mxu1 }
 0x333   : > { %13603 = vst [vmem:[#allocation247_spill] sm:$0xff] %v10551_v13  ;;  %v10570_v13 = vpop.f32.mrf.mxu0 }
 0x334   : > { %v10553_v32 = vpop.f32.mrf.mxu1  ;;  %3934 = vmatmul.mubr.bf16.gmra.mxu1 %v13605_v40  ;;  %13614 = vst [vmem:[#allocation40_spill] sm:$0xff] %v10570_v13 }
 0x335   : > { %13604 = vst [vmem:[#allocation253_spill] sm:$0xff] %v10553_v32  ;;  %3943 = vmatprep.mubr.bf16.mxu1 %v13607_v30  ;;  %v13615_v32 = vld [vmem:[#allocation144_spill] sm:$0xff]  ;;  %v10577_v30 = vpop.f32.mrf.mxu0 }
 0x336   : > { %v10559_v61 = vpop.f32.mrf.mxu1  ;;  %13618 = vst [vmem:[#allocation44_spill] sm:$0xff] %v10577_v30  ;;  %v13629_v30 = vld [vmem:[#allocation158_spill] sm:$0xff] }
 0x337   : > { %13608 = vst [vmem:[#allocation248_spill] sm:$0xff] %v10559_v61 }
 0x338   : > { %v10561_v24 = vpop.f32.mrf.mxu1 }
 0x339   : > { %13609 = vst [vmem:[#allocation36_spill] sm:$0xff] %v10561_v24 }
 0x33a   : > { %v10565_v31 = vpop.f32.mrf.mxu1 }
 0x33b   : > { %13611 = vst [vmem:[#allocation38_spill] sm:$0xff] %v10565_v31  ;;  %v10584_v31 = vpop.f32.mrf.mxu0 }
 0x33c   : > { %v10567_v26 = vpop.f32.mrf.mxu1  ;;  %3944 = vmatmul.mubr.bf16.gmra.mxu1 %v13613_v29  ;;  %13622 = vst [vmem:[#allocation50_spill] sm:$0xff] %v10584_v31 }
 0x33d   : > { %13612 = vst [vmem:[#allocation254_spill] sm:$0xff] %v10567_v26  ;;  %3953 = vmatprep.mubr.bf16.mxu1 %v13615_v32  ;;  %v13623_v26 = vld [vmem:[#allocation152_spill] sm:$0xff]  ;;  %v10591_v32 = vpop.f32.mrf.mxu0 }
 0x33e   : > { %v10573_v40 = vpop.f32.mrf.mxu1  ;;  %13626 = vst [vmem:[#allocation56_spill] sm:$0xff] %v10591_v32  ;;  %v13637_v32 = vld [vmem:[#allocation166_spill] sm:$0xff] }
 0x33f   : > { %13616 = vst [vmem:[#allocation256_spill] sm:$0xff] %v10573_v40 }
 0x340   : > { %v10575_v3 = vpop.f32.mrf.mxu1 }
 0x341   : > { %13617 = vst [vmem:[#allocation42_spill] sm:$0xff] %v10575_v3 }
 0x342   : > { %v10579_v61 = vpop.f32.mrf.mxu1 }
 0x343   : > { %13619 = vst [vmem:[#allocation46_spill] sm:$0xff] %v10579_v61  ;;  %v10598_v61 = vpop.f32.mrf.mxu0 }
 0x344   : > { %v10581_v24 = vpop.f32.mrf.mxu1  ;;  %3954 = vmatmul.mubr.bf16.gmra.mxu1 %v13621_v54  ;;  %13630 = vst [vmem:[#allocation62_spill] sm:$0xff] %v10598_v61 }
 0x345   : > { %13620 = vst [vmem:[#allocation48_spill] sm:$0xff] %v10581_v24  ;;  %3963 = vmatprep.mubr.bf16.mxu1 %v13623_v26  ;;  %v13631_v24 = vld [vmem:[#allocation160_spill] sm:$0xff]  ;;  %v10605_v26 = vpop.f32.mrf.mxu0 }
 0x346   : > { %v10587_v29 = vpop.f32.mrf.mxu1  ;;  %13634 = vst [vmem:[#allocation65_spill] sm:$0xff] %v10605_v26  ;;  %v13645_v26 = vld [vmem:[#allocation177_spill] sm:$0xff] }
 0x347   : > { %13624 = vst [vmem:[#allocation52_spill] sm:$0xff] %v10587_v29 }
 0x348   : > { %v10589_v13 = vpop.f32.mrf.mxu1 }
 0x349   : > { %13625 = vst [vmem:[#allocation54_spill] sm:$0xff] %v10589_v13 }
 0x34a   : > { %v10593_v40 = vpop.f32.mrf.mxu1 }
 0x34b   : > { %13627 = vst [vmem:[#allocation58_spill] sm:$0xff] %v10593_v40  ;;  %v10612_v40 = vpop.f32.mrf.mxu0 }
 0x34c   : > { %v10595_v3 = vpop.f32.mrf.mxu1  ;;  %3964 = vmatmul.mubr.bf16.gmra.mxu1 %v13629_v30  ;;  %13638 = vst [vmem:[#allocation71_spill] sm:$0xff] %v10612_v40 }
 0x34d   : > { %13628 = vst [vmem:[#allocation60_spill] sm:$0xff] %v10595_v3  ;;  %3973 = vmatprep.mubr.bf16.mxu1 %v13631_v24  ;;  %v13639_v3 = vld [vmem:[#allocation168_spill] sm:$0xff]  ;;  %v10619_v24 = vpop.f32.mrf.mxu0 }
 0x34e   : > { %v10601_v54 = vpop.f32.mrf.mxu1  ;;  %13642 = vst [vmem:[#allocation77_spill] sm:$0xff] %v10619_v24  ;;  %v13653_v24 = vld [vmem:[#allocation189_spill] sm:$0xff] }
 0x34f   : > { %13632 = vst [vmem:[#allocation63_spill] sm:$0xff] %v10601_v54 }
 0x350   : > { %v10603_v31 = vpop.f32.mrf.mxu1 }
 0x351   : > { %13633 = vst [vmem:[#allocation64_spill] sm:$0xff] %v10603_v31 }
 0x352   : > { %v10607_v29 = vpop.f32.mrf.mxu1 }
 0x353   : > { %13635 = vst [vmem:[#allocation67_spill] sm:$0xff] %v10607_v29  ;;  %v10626_v29 = vpop.f32.mrf.mxu0 }
 0x354   : > { %v10609_v13 = vpop.f32.mrf.mxu1  ;;  %3974 = vmatmul.mubr.bf16.gmra.mxu1 %v13637_v32  ;;  %13646 = vst [vmem:[#allocation83_spill] sm:$0xff] %v10626_v29 }
 0x355   : > { %13636 = vst [vmem:[#allocation69_spill] sm:$0xff] %v10609_v13  ;;  %3983 = vmatprep.mubr.bf16.mxu1 %v13639_v3  ;;  %v13647_v13 = vld [vmem:[#allocation179_spill] sm:$0xff]  ;;  %v10633_v3 = vpop.f32.mrf.mxu0 }
 0x356   : > { %v10615_v30 = vpop.f32.mrf.mxu1  ;;  %13650 = vst [vmem:[#allocation89_spill] sm:$0xff] %v10633_v3  ;;  %v13661_v3 = vld [vmem:[#allocation201_spill] sm:$0xff] }
 0x357   : > { %13640 = vst [vmem:[#allocation73_spill] sm:$0xff] %v10615_v30 }
 0x358   : > { %v10617_v61 = vpop.f32.mrf.mxu1 }
 0x359   : > { %13641 = vst [vmem:[#allocation75_spill] sm:$0xff] %v10617_v61 }
 0x35a   : > { %v10621_v54 = vpop.f32.mrf.mxu1 }
 0x35b   : > { %13643 = vst [vmem:[#allocation79_spill] sm:$0xff] %v10621_v54  ;;  %v10640_v54 = vpop.f32.mrf.mxu0 }
 0x35c   : > { %v10623_v31 = vpop.f32.mrf.mxu1  ;;  %3984 = vmatmul.mubr.bf16.gmra.mxu1 %v13645_v26  ;;  %13654 = vst [vmem:[#allocation95_spill] sm:$0xff] %v10640_v54 }
 0x35d   : > { %13644 = vst [vmem:[#allocation81_spill] sm:$0xff] %v10623_v31  ;;  %3993 = vmatprep.mubr.bf16.mxu1 %v13647_v13  ;;  %v13655_v31 = vld [vmem:[#allocation191_spill] sm:$0xff]  ;;  %v10647_v13 = vpop.f32.mrf.mxu0 }
 0x35e   : > { %v10629_v32 = vpop.f32.mrf.mxu1  ;;  %13658 = vst [vmem:[#allocation104_spill] sm:$0xff] %v10647_v13  ;;  %v13669_v13 = vld [vmem:[#allocation213_spill] sm:$0xff] }
 0x35f   : > { %13648 = vst [vmem:[#allocation85_spill] sm:$0xff] %v10629_v32 }
 0x360   : > { %v10631_v40 = vpop.f32.mrf.mxu1 }
 0x361   : > { %13649 = vst [vmem:[#allocation87_spill] sm:$0xff] %v10631_v40 }
 0x362   : > { %v10635_v30 = vpop.f32.mrf.mxu1 }
 0x363   : > { %13651 = vst [vmem:[#allocation91_spill] sm:$0xff] %v10635_v30  ;;  %v10654_v30 = vpop.f32.mrf.mxu0 }
 0x364   : > { %v10637_v61 = vpop.f32.mrf.mxu1  ;;  %3994 = vmatmul.mubr.bf16.gmra.mxu1 %v13653_v24  ;;  %13662 = vst [vmem:[#allocation118_spill] sm:$0xff] %v10654_v30 }
 0x365   : > { %13652 = vst [vmem:[#allocation93_spill] sm:$0xff] %v10637_v61  ;;  %4003 = vmatprep.mubr.bf16.mxu1 %v13655_v31  ;;  %v13663_v61 = vld [vmem:[#allocation203_spill] sm:$0xff]  ;;  %v10661_v31 = vpop.f32.mrf.mxu0 }
 0x366   : > { %v10643_v26 = vpop.f32.mrf.mxu1  ;;  %13666 = vst [vmem:[#allocation128_spill] sm:$0xff] %v10661_v31  ;;  %v13677_v31 = vld [vmem:[#allocation225_spill] sm:$0xff] }
 0x367   : > { %13656 = vst [vmem:[#allocation97_spill] sm:$0xff] %v10643_v26 }
 0x368   : > { %v10645_v29 = vpop.f32.mrf.mxu1 }
 0x369   : > { %13657 = vst [vmem:[#allocation102_spill] sm:$0xff] %v10645_v29 }
 0x36a   : > { %v10649_v32 = vpop.f32.mrf.mxu1 }
 0x36b   : > { %13659 = vst [vmem:[#allocation110_spill] sm:$0xff] %v10649_v32  ;;  %v10668_v32 = vpop.f32.mrf.mxu0 }
 0x36c   : > { %v10651_v40 = vpop.f32.mrf.mxu1  ;;  %4004 = vmatmul.mubr.bf16.gmra.mxu1 %v13661_v3  ;;  %13670 = vst [vmem:[#allocation142_spill] sm:$0xff] %v10668_v32 }
 0x36d   : > { %13660 = vst [vmem:[#allocation112_spill] sm:$0xff] %v10651_v40  ;;  %4013 = vmatprep.mubr.bf16.mxu1 %v13663_v61  ;;  %v13671_v40 = vld [vmem:[#allocation215_spill] sm:$0xff]  ;;  %v10675_v61 = vpop.f32.mrf.mxu0 }
 0x36e   : > { %v10657_v24 = vpop.f32.mrf.mxu1  ;;  %13674 = vst [vmem:[#allocation152_spill] sm:$0xff] %v10675_v61 }
 0x36f   : > { %13664 = vst [vmem:[#allocation120_spill] sm:$0xff] %v10657_v24 }
 0x370   : > { %v10659_v54 = vpop.f32.mrf.mxu1 }
 0x371   : > { %13665 = vst [vmem:[#allocation126_spill] sm:$0xff] %v10659_v54 }
 0x372   : > { %v10663_v26 = vpop.f32.mrf.mxu1 }
 0x373   : > { %13667 = vst [vmem:[#allocation134_spill] sm:$0xff] %v10663_v26  ;;  %v10682_v26 = vpop.f32.mrf.mxu0 }
 0x374   : > { %v10665_v29 = vpop.f32.mrf.mxu1  ;;  %4014 = vmatmul.mubr.bf16.gmra.mxu1 %v13669_v13  ;;  %13678 = vst [vmem:[#allocation166_spill] sm:$0xff] %v10682_v26 }
 0x375   : > { %13668 = vst [vmem:[#allocation136_spill] sm:$0xff] %v10665_v29  ;;  %4023 = vmatprep.mubr.bf16.mxu1 %v13671_v40  ;;  %v13679_v29 = vld [vmem:[#allocation227_spill] sm:$0xff]  ;;  %v10689_v40 = vpop.f32.mrf.mxu0 }
 0x376   : > { %v10671_v3 = vpop.f32.mrf.mxu1  ;;  %13682 = vst [vmem:[#allocation179_spill] sm:$0xff] %v10689_v40 }
 0x377   : > { %13672 = vst [vmem:[#allocation144_spill] sm:$0xff] %v10671_v3 }
 0x378   : > { %v10673_v30 = vpop.f32.mrf.mxu1 }
 0x379   : > { %13673 = vst [vmem:[#allocation150_spill] sm:$0xff] %v10673_v30  ;;  %v12894_v30 = vlaneseq }
 0x37a   : > { %v10677_v24 = vpop.f32.mrf.mxu1 }
 0x37b   : > { %13675 = vst [vmem:[#allocation158_spill] sm:$0xff] %v10677_v24  ;;  %v13685_v24 = vld [vmem:[#allocation237_spill] sm:$0xff] }
 0x37c   : > { %v10679_v54 = vpop.f32.mrf.mxu1  ;;  %4024 = vmatmul.mubr.bf16.gmra.mxu1 %v13677_v31  ;;  %v13687_v31 = vld [vmem:[#allocation239_spill] sm:$0xff] }
 0x37d   : > { %13676 = vst [vmem:[#allocation160_spill] sm:$0xff] %v10679_v54  ;;  %4033 = vmatprep.mubr.bf16.mxu1 %v13679_v29  ;;  %v10696_v54 = vpop.f32.mrf.mxu0  ;;  %v10702_v29 = vshrl.u32 %v12894_v30, 7 }
 0x37e   : > { %v10685_v13 = vpop.f32.mrf.mxu1  ;;  %13686 = vst [vmem:[#allocation201_spill] sm:$0xff] %v10696_v54 }
 0x37f   : > { %13680 = vst [vmem:[#allocation168_spill] sm:$0xff] %v10685_v13  ;;  %13689 = vst [vmem:[#allocation213_spill] sm:$0xff] %v10702_v29  ;;  %v13698_v5 = vsub.s32 0, %v10702_v29 }
 0x380   : > { %v10687_v32 = vpop.f32.mrf.mxu1 }
 0x381   : > { %13681 = vst [vmem:[#allocation177_spill] sm:$0xff] %v10687_v32  ;;  %v10706_v32 = vpop.f32.mrf.mxu0 }
 0x382   : > { %v10691_v3 = vpop.f32.mrf.mxu1  ;;  %13691 = vst [vmem:[#allocation225_spill] sm:$0xff] %v10706_v32 }
 0x383   : > { %13683 = vst [vmem:[#allocation189_spill] sm:$0xff] %v10691_v3 }
 0x384   : > { %v10693_v61 = vpop.f32.mrf.mxu1  ;;  %4034 = vmatmul.mubr.bf16.gmra.mxu1 %v13685_v24  ;;  %v4769_v24 = vld [vmem:[%s12708_s2] sm:$0x3] }
 0x385   : > { %13684 = vst [vmem:[#allocation191_spill] sm:$0xff] %v10693_v61  ;;  %4043 = vmatprep.mubr.bf16.mxu1 %v13687_v31  ;;  %v10715_v31 = vpop.f32.mrf.mxu0  ;;  %v10728_v27 = vrot.slane %v4769_v24, %v13698_v5 }
 0x386   : > { %v10699_v26 = vpop.f32.mrf.mxu1  ;;  %13694 = vst [vmem:[#allocation237_spill] sm:$0xff] %v10715_v31  ;;  %v13701_v31 = vld [vmem:[#allocation255_spill] sm:$0xff] }
 0x387   : > { %13688 = vst [vmem:[#allocation203_spill] sm:$0xff] %v10699_v26  ;;  %v13695_v26 = vld [vmem:[#allocation251_spill] sm:$0xff] }
 0x388   : > { %v10704_v13 = vpop.f32.mrf.mxu1 }
 0x389   : > { %13690 = vst [vmem:[#allocation215_spill] sm:$0xff] %v10704_v13  ;;  %v13696_v13 = vrot.slane %v9351_v46, 7 }
 0x38a   : > { %v10708_v40 = vpop.f32.mrf.mxu1 }
 0x38b   : > { %13692 = vst [vmem:[#allocation227_spill] sm:$0xff] %v10708_v40  ;;  %v4637_v32 = vsel %vm4252_vm0, 0.0, %v13696_v13 }
 0x38c   : > { %v3805_v61 = vpop.f32.mrf.mxu1  ;;  %4044 = vmatmul.mubr.bf16.gmra.mxu1 %v13693_v20  ;;  %v13697_v20 = vrot.slane %v9358_v35, 7 }
 0x38d   : > { %v3806_v30 = vadd.f32 %v3805_v61, %v10207_v1  ;;  %4053 = vmatprep.mubr.bf16.mxu1 %v13695_v26  ;;  %v12896_v1 = vsub.s32 1, %v10702_v29  ;;  %v10731_v26 = vpop.f32.mrf.mxu0 }
 0x38e   : > { %v3807_v40 = vpop.f32.mrf.mxu1  ;;  %v4638_v39 = vsel %vm4252_vm0, 0.0, %v13697_v20  ;;  %13699 = vst [vmem:[#allocation239_spill] sm:$0xff] %v10731_v26 }
 0x38f   : > { %v4639_v54 = vadd.f32 %v4637_v32, %v3806_v30  ;;  %v3808_v3 = vadd.f32 %v3807_v40, %v10215_v38  ;;  %v13700_v38 = vld [vmem:[#allocation258_spill] sm:$0xff]  ;;  %v10739_v20 = vrot.slane %v4769_v24, %v12896_v1  ;;  %v10742_v59 = vpop.f32.mrf.mxu0 }
 0x390   : > { %v3809_v61 = vpop.f32.mrf.mxu1  ;;  %13702 = vst [vmem:[#allocation249_spill] sm:$0xff] %v10742_v59  ;;  %v13705_v1 = vld [vmem:[#allocation262_spill] sm:$0xff] }
 0x391   : > { %v4640_v46 = vadd.f32 %v4638_v39, %v3808_v3  ;;  %v3810_v13 = vadd.f32 %v3809_v61, %v10225_v43  ;;  %v4781_v30 = vadd.f32 %v10728_v27, %v4639_v54  ;;  %v13703_v3 = vld [vmem:[#allocation261_spill] sm:$0xff]  ;;  %v10752_v26 = vpop.f32.mrf.mxu0 }
 0x392   : > { %v3811_v32 = vpop.f32.mrf.mxu1  ;;  %v13704_v61 = vld [vmem:[#allocation257_spill] sm:$0xff] }
 0x393   : > { %v4641_v40 = vadd.f32 %v13700_v38, %v3810_v13  ;;  %v3812_v35 = vadd.f32 %v3811_v32, %v10233_v11  ;;  %v4911_v13 = vmax.f32 %v4781_v30, 0.0  ;;  %v4782_v11 = vadd.f32 %v10739_v20, %v4640_v46 }
 0x394   : > { %v3815_v5 = vpop.f32.mrf.mxu1  ;;  %4054 = vmatmul.mubr.bf16.gmra.mxu1 %v13701_v31 }
 0x395   : > { %v4783_v39 = vadd.f32 %v10728_v27, %v4641_v40  ;;  %v4642_v43 = vadd.f32 %v13703_v3, %v3812_v35  ;;  %v3816_v54 = vadd.f32 %v3815_v5, %v10237_v23  ;;  %4063 = vmatprep.mubr.bf16.mxu1 %v13704_v61  ;;  %v13706_v35 = vld [vmem:[#allocation263_spill] sm:$0xff]  ;;  %v4912_v5 = vmax.f32 %v4782_v11, 0.0 }
 0x396   : > { %v3817_v32 = vpop.f32.mrf.mxu1 }
 0x397   : > { %v4913_v38 = vmax.f32 %v4783_v39, 0.0  ;;  %v4784_v24 = vadd.f32 %v10739_v20, %v4642_v43  ;;  %v4643_v29 = vadd.f32 %v13705_v1, %v3816_v54  ;;  %v3818_v31 = vadd.f32 %v3817_v32, %v10241_v19  ;;  %v13707_v54 = vld [vmem:[#allocation259_spill] sm:$0xff]  ;;  %v10760_v32 = vpop.f32.mrf.mxu0 }
 0x398   : > { %v3819_v59 = vpop.f32.mrf.mxu1 }
 0x399   : > { %v5041_v40 = vpack.c.bf16 %v4913_v38, %v4911_v13  ;;  %v4644_v3 = vadd.f32 %v13706_v35, %v3818_v31  ;;  %v3820_v23 = vadd.f32 %v3819_v59, %v10243_v60  ;;  %v4785_v30 = vadd.f32 %v10728_v27, %v4643_v29  ;;  %v13708_v59 = vld [vmem:[#allocation260_spill] sm:$0xff]  ;;  %v13709_v31 = vld [vmem:[#allocation266_spill] sm:$0xff] }
 0x39a   : > { %v3821_v46 = vpop.f32.mrf.mxu1  ;;  %v4914_v61 = vmax.f32 %v4784_v24, 0.0 }
 0x39b   : > { %v4645_v39 = vadd.f32 %v9423_v33, %v3820_v23  ;;  %v3822_v43 = vadd.f32 %v3821_v46, %v10245_v47  ;;  %v4915_v29 = vmax.f32 %v4785_v30, 0.0  ;;  %v4786_v11 = vadd.f32 %v10739_v20, %v4644_v3  ;;  %v10770_v46 = vpop.f32.mrf.mxu0 }
 0x39c   : > { %v3825_v1 = vpop.f32.mrf.mxu1  ;;  %4064 = vmatmul.mubr.bf16.gmra.mxu1 %v13707_v54  ;;  %v5042_v19 = vpack.c.bf16 %v4914_v61, %v4912_v5 }
 0x39d   : > { %v4787_v13 = vadd.f32 %v10728_v27, %v4645_v39  ;;  %v4646_v38 = vadd.f32 %v9435_v2, %v3822_v43  ;;  %v3826_v60 = vadd.f32 %v3825_v1, %v10249_v14  ;;  %4073 = vmatprep.mubr.bf16.mxu1 %v13708_v59  ;;  %v13710_v14 = vld [vmem:[#allocation267_spill] sm:$0xff]  ;;  %v4916_v39 = vmax.f32 %v4786_v11, 0.0 }
 0x39e   : > { %5267 = vmatprep.mubr.bf16.mxu0 %v5042_v19  ;;  %v3827_v33 = vpop.f32.mrf.mxu1 }
 0x39f   : > { %v4917_v47 = vmax.f32 %v4787_v13, 0.0  ;;  %v4788_v24 = vadd.f32 %v10739_v20, %v4646_v38  ;;  %v4647_v35 = vadd.f32 %v13709_v31, %v3826_v60  ;;  %v3828_v23 = vadd.f32 %v3827_v33, %v10253_v6  ;;  %5268 = vmatmul.mubr.bf16.vlgmr.msra.gmra.mxu0 %v5041_v40  ;;  %v13711_v6 = vld [vmem:[#allocation264_spill] sm:$0xff]  ;;  %v10778_v38 = vpop.f32.mrf.mxu0 }
 0x3a0   : > { %v3829_v5 = vpop.f32.mrf.mxu1 }
 0x3a1   : > { %v5043_v2 = vpack.c.bf16 %v4917_v47, %v4915_v29  ;;  %v4648_v61 = vadd.f32 %v13710_v14, %v3828_v23  ;;  %v3830_v30 = vadd.f32 %v3829_v5, %v10258_v48  ;;  %v4789_v3 = vadd.f32 %v10728_v27, %v4647_v35  ;;  %v13712_v29 = vld [vmem:[#allocation265_spill] sm:$0xff]  ;;  %v10788_v5 = vpop.f32.mrf.mxu0 }
 0x3a2   : > { %v3831_v43 = vpop.f32.mrf.mxu1  ;;  %v4918_v1 = vmax.f32 %v4788_v24, 0.0  ;;  %v13713_v24 = vld [vmem:[#allocation270_spill] sm:$0xff] }
 0x3a3   : > { %v4649_v54 = vadd.f32 %v9459_v55, %v3830_v30  ;;  %v3832_v19 = vadd.f32 %v3831_v43, %v10261_v36  ;;  %v4919_v11 = vmax.f32 %v4789_v3, 0.0  ;;  %v4790_v33 = vadd.f32 %v10739_v20, %v4648_v61 }
 0x3a4   : > { %v3835_v13 = vpop.f32.mrf.mxu1  ;;  %4074 = vmatmul.mubr.bf16.gmra.mxu1 %v13711_v6  ;;  %v5044_v40 = vpack.c.bf16 %v4918_v1, %v4916_v39  ;;  %v3493_v1 = vadd.f32 %v10278_v49, %v10275_v62  ;;  %v3495_v6 = vadd.f32 %v10285_v51, %v10283_v25  ;;  %v13718_v51 = vld [vmem:[#allocation275_spill] sm:$0xff] }
 0x3a5   : > { %v4791_v60 = vadd.f32 %v10728_v27, %v4649_v54  ;;  %v4650_v59 = vadd.f32 %v9471_v58, %v3832_v19  ;;  %v3836_v48 = vadd.f32 %v3835_v13, %v10265_v16  ;;  %4083 = vmatprep.mubr.bf16.mxu1 %v13712_v29  ;;  %v13714_v16 = vld [vmem:[#allocation271_spill] sm:$0xff]  ;;  %v4920_v39 = vmax.f32 %v4790_v33, 0.0  ;;  %v13715_v19 = vld [vmem:[#allocation268_spill] sm:$0xff]  ;;  %v13717_v29 = vld [vmem:[#allocation269_spill] sm:$0xff] }
 0x3a6   : > { %5275 = vmatprep.mubr.bf16.mxu0 %v5044_v40  ;;  %v3837_v55 = vpop.f32.mrf.mxu1 }
 0x3a7   : > { %v4921_v36 = vmax.f32 %v4791_v60, 0.0  ;;  %v4792_v47 = vadd.f32 %v10739_v20, %v4650_v59  ;;  %v4651_v31 = vadd.f32 %v13713_v24, %v3836_v48  ;;  %v3838_v35 = vadd.f32 %v3837_v55, %v10269_v12  ;;  %5276 = vmatmul.mubr.bf16.gmra.mxu0 %v5043_v2  ;;  %v13716_v60 = vld [vmem:[#allocation274_spill] sm:$0xff] }
 0x3a8   : > { %v3839_v23 = vpop.f32.mrf.mxu1 }
 0x3a9   : > { %v5045_v58 = vpack.c.bf16 %v4921_v36, %v4919_v11  ;;  %v4652_v14 = vadd.f32 %v13714_v16, %v3838_v35  ;;  %v3840_v30 = vadd.f32 %v3839_v23, %v10271_v21  ;;  %v4793_v61 = vadd.f32 %v10728_v27, %v4651_v31  ;;  %v10800_v21 = vpop.f32.mrf.mxu0 }
 0x3aa   : > { %v3841_v3 = vpop.f32.mrf.mxu1  ;;  %v4922_v43 = vmax.f32 %v4792_v47, 0.0  ;;  %v3499_v47 = vadd.f32 %v10296_v56, %v10294_v7  ;;  %v3505_v7 = vadd.f32 %v10309_v37, %v10307_v50 }
 0x3ab   : > { %v4653_v54 = vadd.f32 %v9495_v52, %v3840_v30  ;;  %v3842_v12 = vadd.f32 %v3841_v3, %v10273_v44  ;;  %v3497_v52 = vadd.f32 %v10292_v45, %v10290_v10  ;;  %v4923_v62 = vmax.f32 %v4793_v61, 0.0  ;;  %v10812_v24 = vpop.f32.mrf.mxu0  ;;  %v13719_v10 = vld [vmem:[#allocation276_spill] sm:$0xff] }
 0x3ac   : > { %v3845_v2 = vpop.f32.mrf.mxu1  ;;  %4084 = vmatmul.mubr.bf16.gmra.mxu1 %v13715_v19  ;;  %v5046_v13 = vpack.c.bf16 %v4922_v43, %v4920_v39  ;;  %v4794_v44 = vadd.f32 %v10739_v20, %v4652_v14  ;;  %v3503_v39 = vadd.f32 %v10302_v53, %v10299_v63  ;;  %v13720_v3 = vld [vmem:[#allocation272_spill] sm:$0xff]  ;;  %v13721_v63 = vld [vmem:[#allocation273_spill] sm:$0xff] }
 0x3ad   : > { %v4795_v40 = vadd.f32 %v10728_v27, %v4653_v54  ;;  %v4654_v59 = vadd.f32 %v13716_v60, %v3842_v12  ;;  %v3846_v48 = vadd.f32 %v3845_v2, %v3493_v1  ;;  %4093 = vmatprep.mubr.bf16.mxu1 %v13717_v29  ;;  %v10822_v1 = vpop.f32.mrf.mxu0  ;;  %v3509_v60 = vadd.f32 %v10321_v42, %v10315_v9  ;;  %v13722_v42 = vld [vmem:[#allocation135_spill] sm:$0xff] }
 0x3ae   : > { %5283 = vmatprep.mubr.bf16.mxu0 %v5046_v13  ;;  %v3847_v49 = vpop.f32.mrf.mxu1  ;;  %v4924_v23 = vmax.f32 %v4794_v44, 0.0 }
 0x3af   : > { %v4925_v11 = vmax.f32 %v4795_v40, 0.0  ;;  %v4796_v25 = vadd.f32 %v10739_v20, %v4654_v59  ;;  %v4655_v33 = vadd.f32 %v13718_v51, %v3846_v48  ;;  %v3848_v55 = vadd.f32 %v3847_v49, %v3495_v6  ;;  %5284 = vmatmul.mubr.bf16.gmra.mxu0 %v5045_v58  ;;  %v10834_v59 = vpop.f32.mrf.mxu0 }
 0x3b0   : > { %v3849_v36 = vpop.f32.mrf.mxu1  ;;  %v3507_v40 = vadd.f32 %v10313_v15, %v10311_v22  ;;  %v3515_v51 = vadd.f32 %v13722_v42, %v10325_v17 }
 0x3b1   : > { %v5047_v31 = vpack.c.bf16 %v4925_v11, %v4923_v62  ;;  %v4656_v45 = vadd.f32 %v13719_v10, %v3848_v55  ;;  %v3850_v35 = vadd.f32 %v3849_v36, %v3497_v52  ;;  %v4797_v16 = vadd.f32 %v10728_v27, %v4655_v33  ;;  %v10844_v33 = vpop.f32.mrf.mxu0  ;;  %v13726_v10 = vld [vmem:[#allocation145_spill] sm:$0xff] }
 0x3b2   : > { %v3851_v14 = vpop.f32.mrf.mxu1  ;;  %v4926_v30 = vmax.f32 %v4796_v25, 0.0 }
 0x3b3   : > { %v4657_v58 = vadd.f32 %v9531_v0, %v3850_v35  ;;  %v3852_v61 = vadd.f32 %v3851_v14, %v3499_v47  ;;  %v4798_v54 = vadd.f32 %v10739_v20, %v4656_v45  ;;  %v4927_v0 = vmax.f32 %v4797_v16, 0.0  ;;  %v13724_v47 = vld [vmem:[#allocation277_spill] sm:$0xff]  ;;  %v13727_v35 = vld [vmem:[#allocation280_spill] sm:$0xff] }
 0x3b4   : > { %v3855_v56 = vpop.f32.mrf.mxu1  ;;  %4094 = vmatmul.mubr.bf16.gmra.mxu1 %v13720_v3  ;;  %v5048_v43 = vpack.c.bf16 %v4926_v30, %v4924_v23  ;;  %v13730_v3 = vld [vmem:[#allocation281_spill] sm:$0xff] }
 0x3b5   : > { %v4799_v12 = vadd.f32 %v10728_v27, %v4657_v58  ;;  %v4658_v2 = vadd.f32 %v9543_v8, %v3852_v61  ;;  %v3856_v19 = vadd.f32 %v3855_v56, %v3503_v39  ;;  %4103 = vmatprep.mubr.bf16.mxu1 %v13721_v63  ;;  %v4928_v48 = vmax.f32 %v4798_v54, 0.0  ;;  %v13728_v39 = vld [vmem:[#allocation138_spill] sm:$0xff] }
 0x3b6   : > { %5291 = vmatprep.mubr.bf16.mxu0 %v5048_v43  ;;  %v3857_v53 = vpop.f32.mrf.mxu1  ;;  %v13729_v58 = vld [vmem:[#allocation146_spill] sm:$0xff] }
 0x3b7   : > { %v4929_v13 = vmax.f32 %v4799_v12, 0.0  ;;  %v4800_v50 = vadd.f32 %v10739_v20, %v4658_v2  ;;  %v4659_v37 = vadd.f32 %v9547_v57, %v3856_v19  ;;  %v3858_v6 = vadd.f32 %v3857_v53, %v3505_v7  ;;  %5292 = vmatmul.mubr.bf16.gmra.mxu0 %v5047_v31  ;;  %v10856_v7 = vpop.f32.mrf.mxu0  ;;  %v13732_v53 = vld [vmem:[#allocation147_spill] sm:$0xff] }
 0x3b8   : > { %v3859_v8 = vpop.f32.mrf.mxu1  ;;  %v3513_v57 = vadd.f32 %v10332_v28, %v10317_v34  ;;  %v3519_v61 = vadd.f32 %v13729_v58, %v13728_v39  ;;  %v13744_v39 = vld [vmem:[#allocation141_spill] sm:$0xff] }
 0x3b9   : > { %v5049_v29 = vpack.c.bf16 %v4929_v13, %v4927_v0  ;;  %v4930_v52 = vmax.f32 %v4800_v50, 0.0  ;;  %v4660_v62 = vadd.f32 %v9559_v18, %v3858_v6  ;;  %v3860_v44 = vadd.f32 %v3859_v8, %v3507_v40  ;;  %v13723_v18 = vld [vmem:[#allocation279_spill] sm:$0xff]  ;;  %v13733_v50 = vld [vmem:[#allocation282_spill] sm:$0xff]  ;;  %v13745_v58 = vld [vmem:[#allocation157_spill] sm:$0xff] }
 0x3ba   : > { %v3861_v49 = vpop.f32.mrf.mxu1  ;;  %v4801_v15 = vadd.f32 %v10728_v27, %v4659_v37  ;;  %v13731_v0 = vld [vmem:[#allocation55_spill] sm:$0xff] }
 0x3bb   : > { %v3862_v11 = vadd.f32 %v3861_v49, %v3509_v60  ;;  %v5050_v25 = vpack.c.bf16 %v4930_v52, %v4928_v48  ;;  %v4661_v22 = vadd.f32 %v9563_v41, %v3860_v44  ;;  %v4802_v28 = vadd.f32 %v10739_v20, %v4660_v62  ;;  %v13725_v41 = vld [vmem:[#allocation133_spill] sm:$0xff]  ;;  %v13734_v40 = vld [vmem:[#allocation139_spill] sm:$0xff]  ;;  %v10866_v62 = vpop.f32.mrf.mxu0 }
 0x3bc   : > { %v3865_v9 = vpop.f32.mrf.mxu1  ;;  %4104 = vmatmul.mubr.bf16.gmra.mxu1 %v9535_v4  ;;  %v3517_v45 = vadd.f32 %v13726_v10, %v13725_v41  ;;  %v4931_v16 = vmax.f32 %v4801_v15, 0.0  ;;  %v3523_v13 = vadd.f32 %v13732_v53, %v13731_v0  ;;  %v13735_v60 = vld [vmem:[#allocation61_spill] sm:$0xff] }
 0x3bd   : > { %v4662_v55 = vadd.f32 %v13723_v18, %v3862_v11  ;;  %v3866_v36 = vadd.f32 %v3865_v9, %v3513_v57  ;;  %5299 = vmatprep.mubr.bf16.mxu0 %v5050_v25  ;;  %4113 = vmatprep.mubr.bf16.mxu1 %v13724_v47  ;;  %v4803_v34 = vadd.f32 %v10728_v27, %v4661_v22  ;;  %v4932_v12 = vmax.f32 %v4802_v28, 0.0  ;;  %v13737_v57 = vld [vmem:[#allocation283_spill] sm:$0xff]  ;;  %v13740_v47 = vld [vmem:[#allocation2_spill] sm:$0xff] }
 0x3be   : > { %v3867_v31 = vpop.f32.mrf.mxu1  ;;  %v3525_v8 = vadd.f32 %v13735_v60, %v13734_v40 }
 0x3bf   : > { %v4804_v4 = vadd.f32 %v10739_v20, %v4662_v55  ;;  %v4663_v17 = vadd.f32 %v13727_v35, %v3866_v36  ;;  %v3868_v23 = vadd.f32 %v3867_v31, %v3515_v51  ;;  %5300 = vmatmul.mubr.bf16.gmra.mxu0 %v5049_v29  ;;  %v4933_v14 = vmax.f32 %v4803_v34, 0.0  ;;  %v13736_v29 = vld [vmem:[#allocation278_spill] sm:$0xff]  ;;  %v13738_v51 = vld [vmem:[#allocation284_spill] sm:$0xff]  ;;  %v13741_v34 = vld [vmem:[#allocation57_spill] sm:$0xff] }
 0x3c0   : > { %v3869_v30 = vpop.f32.mrf.mxu1  ;;  %v13739_v36 = vld [vmem:[#allocation140_spill] sm:$0xff] }
 0x3c1   : > { %v4934_v56 = vmax.f32 %v4804_v4, 0.0  ;;  %v4664_v43 = vadd.f32 %v13730_v3, %v3868_v23  ;;  %v3870_v54 = vadd.f32 %v3869_v30, %v3517_v45  ;;  %v5051_v2 = vpack.c.bf16 %v4933_v14, %v4931_v16  ;;  %v13742_v31 = vld [vmem:[#allocation156_spill] sm:$0xff]  ;;  %v10877_v45 = vpop.f32.mrf.mxu0  ;;  %v13743_v23 = vld [vmem:[#allocation285_spill] sm:$0xff] }
 0x3c2   : > { %v4805_v19 = vadd.f32 %v10728_v27, %v4663_v17  ;;  %v3871_v63 = vpop.f32.mrf.mxu1  ;;  %v3527_v28 = vadd.f32 %v13740_v47, %v13739_v36  ;;  %v3529_v41 = vadd.f32 %v13742_v31, %v13741_v34 }
 0x3c3   : > { %v4665_v37 = vadd.f32 %v13733_v50, %v3870_v54  ;;  %v3872_v6 = vadd.f32 %v3871_v63, %v3519_v61  ;;  %v5052_v52 = vpack.c.bf16 %v4934_v56, %v4932_v12  ;;  %v4806_v44 = vadd.f32 %v10739_v20, %v4664_v43  ;;  %v13746_v54 = vld [vmem:[#allocation286_spill] sm:$0xff]  ;;  %v13748_v63 = vld [vmem:[#allocation159_spill] sm:$0xff]  ;;  %v10886_v53 = vpop.f32.mrf.mxu0 }
 0x3c4   : > { %v3875_v48 = vpop.f32.mrf.mxu1  ;;  %4114 = vmatmul.mubr.bf16.gmra.mxu1 %v13736_v29  ;;  %v4935_v15 = vmax.f32 %v4805_v19, 0.0  ;;  %v3533_v61 = vadd.f32 %v13745_v58, %v13744_v39  ;;  %v13747_v19 = vld [vmem:[#allocation59_spill] sm:$0xff] }
 0x3c5   : > { %v4807_v49 = vadd.f32 %v10728_v27, %v4665_v37  ;;  %v4666_v11 = vadd.f32 %v13737_v57, %v3872_v6  ;;  %v3876_v25 = vadd.f32 %v3875_v48, %v3523_v13  ;;  %5307 = vmatprep.mubr.bf16.mxu0 %v5052_v52  ;;  %v4936_v4 = vmax.f32 %v4806_v44, 0.0  ;;  %v13749_v13 = vld [vmem:[#allocation287_spill] sm:$0xff]  ;;  %v13751_v48 = vld [vmem:[#allocation169_spill] sm:$0xff]  ;;  %v13752_v44 = vld [vmem:[#allocation288_spill] sm:$0xff] }
 0x3c6   : > { %v3877_v22 = vpop.f32.mrf.mxu1  ;;  %v3535_v0 = vadd.f32 %v13748_v63, %v13747_v19 }
 0x3c7   : > { %v4937_v9 = vmax.f32 %v4807_v49, 0.0  ;;  %v4808_v42 = vadd.f32 %v10739_v20, %v4666_v11  ;;  %v4667_v18 = vadd.f32 %v13738_v51, %v3876_v25  ;;  %v3878_v55 = vadd.f32 %v3877_v22, %v3525_v8  ;;  %5308 = vmatmul.mubr.bf16.gmra.mxu0 %v5051_v2  ;;  %v13750_v8 = vld [vmem:[#allocation143_spill] sm:$0xff]  ;;  %v13753_v22 = vld [vmem:[#allocation148_spill] sm:$0xff]  ;;  %v10897_v51 = vpop.f32.mrf.mxu0 }
 0x3c8   : > { %v3879_v10 = vpop.f32.mrf.mxu1  ;;  %v3537_v29 = vadd.f32 %v13751_v48, %v13750_v8  ;;  %v13765_v48 = vld [vmem:[#allocation151_spill] sm:$0xff] }
 0x3c9   : > { %v5053_v35 = vpack.c.bf16 %v4937_v9, %v4935_v15  ;;  %v4938_v17 = vmax.f32 %v4808_v42, 0.0  ;;  %v4668_v16 = vadd.f32 %v13743_v23, %v3878_v55  ;;  %v3880_v14 = vadd.f32 %v3879_v10, %v3527_v28  ;;  %v13754_v9 = vld [vmem:[#allocation171_spill] sm:$0xff]  ;;  %v13755_v55 = vld [vmem:[#allocation5_spill] sm:$0xff] }
 0x3ca   : > { %v3881_v30 = vpop.f32.mrf.mxu1  ;;  %v4809_v43 = vadd.f32 %v10728_v27, %v4667_v18  ;;  %v3539_v42 = vadd.f32 %v13754_v9, %v13753_v22  ;;  %v13756_v10 = vld [vmem:[#allocation153_spill] sm:$0xff] }
 0x3cb   : > { %v3882_v56 = vadd.f32 %v3881_v30, %v3529_v41  ;;  %v5054_v3 = vpack.c.bf16 %v4938_v17, %v4936_v4  ;;  %v4669_v12 = vadd.f32 %v13746_v54, %v3880_v14  ;;  %v4810_v6 = vadd.f32 %v10739_v20, %v4668_v16  ;;  %v13757_v4 = vld [vmem:[#allocation173_spill] sm:$0xff]  ;;  %v13758_v17 = vld [vmem:[#allocation66_spill] sm:$0xff] }
 0x3cc   : > { %v3885_v2 = vpop.f32.mrf.mxu1  ;;  %v4939_v11 = vmax.f32 %v4809_v43, 0.0  ;;  %v13759_v14 = vld [vmem:[#allocation149_spill] sm:$0xff]  ;;  %v13760_v30 = vld [vmem:[#allocation10_spill] sm:$0xff] }
 0x3cd   : > { %v4670_v50 = vadd.f32 %v13749_v13, %v3882_v56  ;;  %v3886_v37 = vadd.f32 %v3885_v2, %v3533_v61  ;;  %5315 = vmatprep.mubr.bf16.mxu0 %v5054_v3  ;;  %v4811_v40 = vadd.f32 %v10728_v27, %v4669_v12  ;;  %v4940_v28 = vmax.f32 %v4810_v6, 0.0  ;;  %v10906_v56 = vpop.f32.mrf.mxu0  ;;  %v13761_v54 = vld [vmem:[#allocation170_spill] sm:$0xff] }
 0x3ce   : > { %v3887_v60 = vpop.f32.mrf.mxu1  ;;  %v3545_v39 = vadd.f32 %v13760_v30, %v13759_v14 }
 0x3cf   : > { %v4812_v52 = vadd.f32 %v10739_v20, %v4670_v50  ;;  %v4671_v49 = vadd.f32 %v13752_v44, %v3886_v37  ;;  %v3888_v57 = vadd.f32 %v3887_v60, %v3535_v0  ;;  %5316 = vmatmul.mubr.bf16.gmra.mxu0 %v5053_v35  ;;  %v4941_v25 = vmax.f32 %v4811_v40, 0.0  ;;  %v13762_v50 = vld [vmem:[#allocation7_spill] sm:$0xff]  ;;  %v13763_v40 = vld [vmem:[#allocation154_spill] sm:$0xff]  ;;  %v13764_v60 = vld [vmem:[#allocation12_spill] sm:$0xff] }
 0x3d0   : > { %v3889_v15 = vpop.f32.mrf.mxu1  ;;  %v3543_v35 = vadd.f32 %v13757_v4, %v13756_v10  ;;  %v3547_v8 = vadd.f32 %v13764_v60, %v13763_v40  ;;  %v13771_v4 = vld [vmem:[#allocation161_spill] sm:$0xff]  ;;  %v13778_v40 = vld [vmem:[#allocation207_spill] sm:$0xff] }
 0x3d1   : > { %v4942_v18 = vmax.f32 %v4812_v52, 0.0  ;;  %v4672_v36 = vadd.f32 %v13755_v55, %v3888_v57  ;;  %v3890_v47 = vadd.f32 %v3889_v15, %v3537_v29  ;;  %v5055_v34 = vpack.c.bf16 %v4941_v25, %v4939_v11  ;;  %v13766_v29 = vld [vmem:[#allocation187_spill] sm:$0xff]  ;;  %v13767_v15 = vld [vmem:[#allocation68_spill] sm:$0xff] }
 0x3d2   : > { %v4813_v31 = vadd.f32 %v10728_v27, %v4671_v49  ;;  %v3891_v41 = vpop.f32.mrf.mxu1  ;;  %v3549_v52 = vadd.f32 %v13766_v29, %v13765_v48  ;;  %v10917_v49 = vpop.f32.mrf.mxu0  ;;  %v13769_v55 = vld [vmem:[#allocation188_spill] sm:$0xff]  ;;  %v13779_v29 = vld [vmem:[#allocation9_spill] sm:$0xff] }
 0x3d3   : > { %v4673_v23 = vadd.f32 %v13758_v17, %v3890_v47  ;;  %v3892_v16 = vadd.f32 %v3891_v41, %v3539_v42  ;;  %v5056_v61 = vpack.c.bf16 %v4942_v18, %v4940_v28  ;;  %v4814_v3 = vadd.f32 %v10739_v20, %v4672_v36  ;;  %v13768_v18 = vld [vmem:[#allocation155_spill] sm:$0xff] }
 0x3d4   : > { %v3895_v58 = vpop.f32.mrf.mxu1  ;;  %v4943_v19 = vmax.f32 %v4813_v31, 0.0  ;;  %v3553_v36 = vadd.f32 %v13769_v55, %v13768_v18  ;;  %v13770_v31 = vld [vmem:[#allocation172_spill] sm:$0xff]  ;;  %v13782_v18 = vld [vmem:[#allocation70_spill] sm:$0xff] }
 0x3d5   : > { %v4815_v43 = vadd.f32 %v10728_v27, %v4673_v23  ;;  %v4674_v12 = vadd.f32 %v13761_v54, %v3892_v16  ;;  %v3896_v2 = vadd.f32 %v3895_v58, %v3543_v35  ;;  %5323 = vmatprep.mubr.bf16.mxu0 %v5056_v61  ;;  %v4944_v57 = vmax.f32 %v4814_v3, 0.0  ;;  %v13772_v35 = vld [vmem:[#allocation190_spill] sm:$0xff]  ;;  %v10926_v23 = vpop.f32.mrf.mxu0  ;;  %v13775_v58 = vld [vmem:[#allocation205_spill] sm:$0xff] }
 0x3d6   : > { %v3897_v63 = vpop.f32.mrf.mxu1  ;;  %v3555_v17 = vadd.f32 %v13772_v35, %v13771_v4  ;;  %v13773_v16 = vld [vmem:[#allocation174_spill] sm:$0xff] }
 0x3d7   : > { %v4945_v0 = vmax.f32 %v4815_v43, 0.0  ;;  %v4816_v13 = vadd.f32 %v10739_v20, %v4674_v12  ;;  %v4675_v37 = vadd.f32 %v13762_v50, %v3896_v2  ;;  %v3898_v6 = vadd.f32 %v3897_v63, %v3545_v39  ;;  %5324 = vmatmul.mubr.bf16.gmra.mxu0 %v5055_v34  ;;  %v13774_v39 = vld [vmem:[#allocation3_spill] sm:$0xff]  ;;  %v13776_v2 = vld [vmem:[#allocation180_spill] sm:$0xff] }
 0x3d8   : > { %v3899_v44 = vpop.f32.mrf.mxu1  ;;  %v3557_v61 = vadd.f32 %v13775_v58, %v13774_v39 }
 0x3d9   : > { %v5057_v11 = vpack.c.bf16 %v4945_v0, %v4943_v19  ;;  %v4946_v25 = vmax.f32 %v4816_v13, 0.0  ;;  %v4676_v22 = vadd.f32 %v13767_v15, %v3898_v6  ;;  %v3900_v9 = vadd.f32 %v3899_v44, %v3547_v8  ;;  %v13777_v6 = vld [vmem:[#allocation162_spill] sm:$0xff]  ;;  %v10938_v8 = vpop.f32.mrf.mxu0 }
 0x3da   : > { %v3901_v42 = vpop.f32.mrf.mxu1  ;;  %v4817_v34 = vadd.f32 %v10728_v27, %v4675_v37  ;;  %v12899_v0 = vmov 1   ;;  %v3559_v60 = vadd.f32 %v13778_v40, %v13777_v6 }
 0x3db   : > { %v3902_v47 = vadd.f32 %v3901_v42, %v3549_v52  ;;  %v5058_v28 = vpack.c.bf16 %v4946_v25, %v4944_v57  ;;  %v4677_v41 = vadd.f32 %v13770_v31, %v3900_v9  ;;  %v4818_v3 = vadd.f32 %v10739_v20, %v4676_v22  ;;  %7274 = vset.pattern.permute.xlu1 %v12899_v0  ;;  %v13780_v22 = vld [vmem:[#allocation4_spill] sm:$0xff]  ;;  %v13781_v9 = vld [vmem:[#allocation209_spill] sm:$0xff] }
 0x3dc   : > { %v3905_v10 = vpop.f32.mrf.mxu1  ;;  %v4947_v13 = vmax.f32 %v4817_v34, 0.0  ;;  %v3563_v42 = vadd.f32 %v13781_v9, %v13780_v22  ;;  %v13881_v0 = vld [vmem:[#allocation249_spill] sm:$0xff] }
 0x3dd   : > { %v4678_v14 = vadd.f32 %v13773_v16, %v3902_v47  ;;  %v3906_v30 = vadd.f32 %v3905_v10, %v3553_v36  ;;  %5331 = vmatprep.mubr.bf16.mxu0 %v5058_v28  ;;  %v4819_v43 = vadd.f32 %v10728_v27, %v4677_v41  ;;  %v4948_v57 = vmax.f32 %v4818_v3, 0.0  ;;  %v13783_v47 = vld [vmem:[#allocation163_spill] sm:$0xff]  ;;  %v13784_v28 = vld [vmem:[#allocation22_spill] sm:$0xff]  ;;  %v10947_v10 = vpop.f32.mrf.mxu0 }
 0x3de   : > { %v3907_v54 = vpop.f32.mrf.mxu1  ;;  %v3565_v34 = vadd.f32 %v13784_v28, %v13783_v47  ;;  %v13786_v3 = vld [vmem:[#allocation11_spill] sm:$0xff]  ;;  %v13795_v47 = vld [vmem:[#allocation8_spill] sm:$0xff]  ;;  %v13796_v28 = vld [vmem:[#allocation226_spill] sm:$0xff] }
 0x3df   : > { %v4820_v12 = vadd.f32 %v10739_v20, %v4678_v14  ;;  %v4679_v19 = vadd.f32 %v13776_v2, %v3906_v30  ;;  %v3908_v63 = vadd.f32 %v3907_v54, %v3555_v17  ;;  %5332 = vmatmul.mubr.bf16.gmra.mxu0 %v5057_v11  ;;  %v4949_v50 = vmax.f32 %v4819_v43, 0.0  ;;  %v13785_v17 = vld [vmem:[#allocation182_spill] sm:$0xff]  ;;  %v13788_v2 = vld [vmem:[#allocation24_spill] sm:$0xff]  ;;  %v10958_v6 = vpop.f32.mrf.mxu0 }
 0x3e0   : > { %v3909_v37 = vpop.f32.mrf.mxu1 }
 0x3e1   : > { %v4950_v48 = vmax.f32 %v4820_v12, 0.0  ;;  %v4680_v52 = vadd.f32 %v13779_v29, %v3908_v63  ;;  %v3910_v44 = vadd.f32 %v3909_v37, %v3557_v61  ;;  %v5059_v25 = vpack.c.bf16 %v4949_v50, %v4947_v13  ;;  %v13787_v12 = vld [vmem:[#allocation164_spill] sm:$0xff]  ;;  %v13789_v63 = vld [vmem:[#allocation6_spill] sm:$0xff]  ;;  %v13790_v13 = vld [vmem:[#allocation223_spill] sm:$0xff] }
 0x3e2   : > { %v4821_v15 = vadd.f32 %v10728_v27, %v4679_v19  ;;  %v3911_v11 = vpop.f32.mrf.mxu1  ;;  %v3567_v19 = vadd.f32 %v13788_v2, %v13787_v12  ;;  %v3569_v50 = vadd.f32 %v13790_v13, %v13789_v63  ;;  %v13791_v29 = vld [vmem:[#allocation72_spill] sm:$0xff]  ;;  %v13801_v63 = vld [vmem:[#allocation175_spill] sm:$0xff] }
 0x3e3   : > { %v4681_v55 = vadd.f32 %v13782_v18, %v3910_v44  ;;  %v3912_v36 = vadd.f32 %v3911_v11, %v3559_v60  ;;  %v5060_v41 = vpack.c.bf16 %v4950_v48, %v4948_v57  ;;  %v4822_v4 = vadd.f32 %v10739_v20, %v4680_v52  ;;  %v13793_v11 = vld [vmem:[#allocation224_spill] sm:$0xff]  ;;  %v13802_v13 = vld [vmem:[#allocation243_spill] sm:$0xff] }
 0x3e4   : > { %v3915_v31 = vpop.f32.mrf.mxu1  ;;  %v4951_v30 = vmax.f32 %v4821_v15, 0.0  ;;  %v13792_v15 = vld [vmem:[#allocation165_spill] sm:$0xff]  ;;  %v13794_v18 = vld [vmem:[#allocation184_spill] sm:$0xff] }
 0x3e5   : > { %v4823_v35 = vadd.f32 %v10728_v27, %v4681_v55  ;;  %v4682_v16 = vadd.f32 %v13785_v17, %v3912_v36  ;;  %v3916_v14 = vadd.f32 %v3915_v31, %v3563_v42  ;;  %5339 = vmatprep.mubr.bf16.mxu0 %v5060_v41  ;;  %v4952_v40 = vmax.f32 %v4822_v4, 0.0  ;;  %v10967_v31 = vpop.f32.mrf.mxu0  ;;  %v13797_v41 = vld [vmem:[#allocation186_spill] sm:$0xff] }
 0x3e6   : > { %v3917_v39 = vpop.f32.mrf.mxu1  ;;  %v3573_v22 = vadd.f32 %v13793_v11, %v13792_v15 }
 0x3e7   : > { %v4953_v58 = vmax.f32 %v4823_v35, 0.0  ;;  %v4824_v61 = vadd.f32 %v10739_v20, %v4682_v16  ;;  %v4683_v43 = vadd.f32 %v13786_v3, %v3916_v14  ;;  %v3918_v54 = vadd.f32 %v3917_v39, %v3565_v34  ;;  %5340 = vmatmul.mubr.bf16.gmra.mxu0 %v5059_v25  ;;  %v13799_v39 = vld [vmem:[#allocation241_spill] sm:$0xff]  ;;  %v13800_v3 = vld [vmem:[#allocation192_spill] sm:$0xff] }
 0x3e8   : > { %v3919_v37 = vpop.f32.mrf.mxu1  ;;  %v3575_v34 = vadd.f32 %v13796_v28, %v13795_v47 }
 0x3e9   : > { %v5061_v60 = vpack.c.bf16 %v4953_v58, %v4951_v30  ;;  %v4954_v48 = vmax.f32 %v4824_v61, 0.0  ;;  %v4684_v52 = vadd.f32 %v13791_v29, %v3918_v54  ;;  %v3920_v44 = vadd.f32 %v3919_v37, %v3567_v19  ;;  %v13798_v30 = vld [vmem:[#allocation167_spill] sm:$0xff]  ;;  %v10978_v37 = vpop.f32.mrf.mxu0 }
 0x3ea   : > { %v3921_v57 = vpop.f32.mrf.mxu1  ;;  %v4825_v42 = vadd.f32 %v10728_v27, %v4683_v43  ;;  %v3577_v58 = vadd.f32 %v13799_v39, %v13798_v30 }
 0x3eb   : > { %v3922_v25 = vadd.f32 %v3921_v57, %v3569_v50  ;;  %v5062_v9 = vpack.c.bf16 %v4954_v48, %v4952_v40  ;;  %v4685_v55 = vadd.f32 %v13794_v18, %v3920_v44  ;;  %v4826_v17 = vadd.f32 %v10739_v20, %v4684_v52  ;;  %v13803_v48 = vld [vmem:[#allocation13_spill] sm:$0xff] }
 0x3ec   : > { %v3925_v36 = vpop.f32.mrf.mxu1  ;;  %v4955_v12 = vmax.f32 %v4825_v42, 0.0  ;;  %v3579_v50 = vadd.f32 %v13802_v13, %v13801_v63  ;;  %v13813_v63 = vld [vmem:[#allocation178_spill] sm:$0xff]  ;;  %v13814_v13 = vld [vmem:[#allocation40_spill] sm:$0xff] }
 0x3ed   : > { %v4686_v4 = vadd.f32 %v13797_v41, %v3922_v25  ;;  %v3926_v35 = vadd.f32 %v3925_v36, %v3573_v22  ;;  %5347 = vmatprep.mubr.bf16.mxu0 %v5062_v9  ;;  %v4827_v16 = vadd.f32 %v10728_v27, %v4685_v55  ;;  %v4956_v44 = vmax.f32 %v4826_v17, 0.0  ;;  %v13804_v22 = vld [vmem:[#allocation181_spill] sm:$0xff]  ;;  %v13806_v9 = vld [vmem:[#allocation74_spill] sm:$0xff]  ;;  %v13807_v55 = vld [vmem:[#allocation176_spill] sm:$0xff]  ;;  %v10987_v41 = vpop.f32.mrf.mxu0 }
 0x3ee   : > { %v3927_v14 = vpop.f32.mrf.mxu1  ;;  %v13805_v25 = vld [vmem:[#allocation245_spill] sm:$0xff]  ;;  %v13808_v36 = vld [vmem:[#allocation34_spill] sm:$0xff] }
 0x3ef   : > { %v4828_v61 = vadd.f32 %v10739_v20, %v4686_v4  ;;  %v4687_v43 = vadd.f32 %v13800_v3, %v3926_v35  ;;  %v3928_v54 = vadd.f32 %v3927_v14, %v3575_v34  ;;  %5348 = vmatmul.mubr.bf16.gmra.mxu0 %v5061_v60  ;;  %v4957_v2 = vmax.f32 %v4827_v16, 0.0  ;;  %v13809_v17 = vld [vmem:[#allocation194_spill] sm:$0xff]  ;;  %v13810_v3 = vld [vmem:[#allocation15_spill] sm:$0xff] }
 0x3f0   : > { %v3929_v19 = vpop.f32.mrf.mxu1  ;;  %v3583_v60 = vadd.f32 %v13805_v25, %v13804_v22  ;;  %v3585_v47 = vadd.f32 %v13808_v36, %v13807_v55  ;;  %v13818_v36 = vld [vmem:[#allocation196_spill] sm:$0xff] }
 0x3f1   : > { %v4958_v40 = vmax.f32 %v4828_v61, 0.0  ;;  %v4688_v29 = vadd.f32 %v13803_v48, %v3928_v54  ;;  %v3930_v52 = vadd.f32 %v3929_v19, %v3577_v58  ;;  %v5063_v57 = vpack.c.bf16 %v4957_v2, %v4955_v12  ;;  %v13811_v12 = vld [vmem:[#allocation183_spill] sm:$0xff]  ;;  %v13812_v2 = vld [vmem:[#allocation250_spill] sm:$0xff]  ;;  %v10998_v48 = vpop.f32.mrf.mxu0 }
 0x3f2   : > { %v4829_v15 = vadd.f32 %v10728_v27, %v4687_v43  ;;  %v3931_v11 = vpop.f32.mrf.mxu1  ;;  %v3587_v19 = vadd.f32 %v13812_v2, %v13811_v12  ;;  %v13824_v2 = vld [vmem:[#allocation204_spill] sm:$0xff] }
 0x3f3   : > { %v4689_v42 = vadd.f32 %v13806_v9, %v3930_v52  ;;  %v3932_v18 = vadd.f32 %v3931_v11, %v3579_v50  ;;  %v5064_v34 = vpack.c.bf16 %v4958_v40, %v4956_v44  ;;  %v4830_v4 = vadd.f32 %v10739_v20, %v4688_v29  ;;  %v13817_v9 = vld [vmem:[#allocation44_spill] sm:$0xff] }
 0x3f4   : > { %v3935_v28 = vpop.f32.mrf.mxu1  ;;  %v4959_v30 = vmax.f32 %v4829_v15, 0.0  ;;  %v3589_v50 = vadd.f32 %v13814_v13, %v13813_v63  ;;  %v13815_v15 = vld [vmem:[#allocation76_spill] sm:$0xff] }
 0x3f5   : > { %v4831_v35 = vadd.f32 %v10728_v27, %v4689_v42  ;;  %v4690_v16 = vadd.f32 %v13809_v17, %v3932_v18  ;;  %v3936_v14 = vadd.f32 %v3935_v28, %v3583_v60  ;;  %5355 = vmatprep.mubr.bf16.mxu0 %v5064_v34  ;;  %v4960_v29 = vmax.f32 %v4830_v4, 0.0  ;;  %v13816_v60 = vld [vmem:[#allocation185_spill] sm:$0xff]  ;;  %v11007_v4 = vpop.f32.mrf.mxu0 }
 0x3f6   : > { %v3937_v39 = vpop.f32.mrf.mxu1  ;;  %v3593_v42 = vadd.f32 %v13817_v9, %v13816_v60  ;;  %v13819_v34 = vld [vmem:[#allocation193_spill] sm:$0xff] }
 0x3f7   : > { %v4961_v58 = vmax.f32 %v4831_v35, 0.0  ;;  %v4832_v61 = vadd.f32 %v10739_v20, %v4690_v16  ;;  %v4691_v43 = vadd.f32 %v13810_v3, %v3936_v14  ;;  %v3938_v54 = vadd.f32 %v3937_v39, %v3585_v47  ;;  %5356 = vmatmul.mubr.bf16.gmra.mxu0 %v5063_v57  ;;  %v13820_v35 = vld [vmem:[#allocation50_spill] sm:$0xff] }
 0x3f8   : > { %v3939_v40 = vpop.f32.mrf.mxu1  ;;  %v3595_v17 = vadd.f32 %v13820_v35, %v13819_v34  ;;  %v13821_v16 = vld [vmem:[#allocation198_spill] sm:$0xff] }
 0x3f9   : > { %v5065_v52 = vpack.c.bf16 %v4961_v58, %v4959_v30  ;;  %v4962_v44 = vmax.f32 %v4832_v61, 0.0  ;;  %v4692_v11 = vadd.f32 %v13815_v15, %v3938_v54  ;;  %v3940_v22 = vadd.f32 %v3939_v40, %v3587_v19  ;;  %v13822_v3 = vld [vmem:[#allocation14_spill] sm:$0xff]  ;;  %v13823_v54 = vld [vmem:[#allocation56_spill] sm:$0xff] }
 0x3fa   : > { %v3941_v25 = vpop.f32.mrf.mxu1  ;;  %v4833_v55 = vadd.f32 %v10728_v27, %v4691_v43  ;;  %v3597_v43 = vadd.f32 %v13823_v54, %v13822_v3  ;;  %v13833_v54 = vld [vmem:[#allocation206_spill] sm:$0xff] }
 0x3fb   : > { %v3942_v57 = vadd.f32 %v3941_v25, %v3589_v50  ;;  %v5066_v18 = vpack.c.bf16 %v4962_v44, %v4960_v29  ;;  %v4693_v47 = vadd.f32 %v13818_v36, %v3940_v22  ;;  %v4834_v39 = vadd.f32 %v10739_v20, %v4692_v11  ;;  %v13825_v29 = vld [vmem:[#allocation195_spill] sm:$0xff]  ;;  %v13826_v44 = vld [vmem:[#allocation62_spill] sm:$0xff]  ;;  %v11018_v22 = vpop.f32.mrf.mxu0  ;;  %v13827_v25 = vld [vmem:[#allocation17_spill] sm:$0xff] }
 0x3fc   : > { %v3945_v28 = vpop.f32.mrf.mxu1  ;;  %v4963_v13 = vmax.f32 %v4833_v55, 0.0  ;;  %v3599_v15 = vadd.f32 %v13826_v44, %v13825_v29  ;;  %v13830_v55 = vld [vmem:[#allocation78_spill] sm:$0xff]  ;;  %v13835_v44 = vld [vmem:[#allocation199_spill] sm:$0xff] }
 0x3fd   : > { %v4694_v14 = vadd.f32 %v13821_v16, %v3942_v57  ;;  %v3946_v30 = vadd.f32 %v3945_v28, %v3593_v42  ;;  %5363 = vmatprep.mubr.bf16.mxu0 %v5066_v18  ;;  %v4835_v58 = vadd.f32 %v10728_v27, %v4693_v47  ;;  %v4964_v42 = vmax.f32 %v4834_v39, 0.0  ;;  %v13828_v47 = vld [vmem:[#allocation16_spill] sm:$0xff]  ;;  %v13829_v28 = vld [vmem:[#allocation65_spill] sm:$0xff]  ;;  %v13832_v16 = vld [vmem:[#allocation71_spill] sm:$0xff] }
 0x3fe   : > { %v3947_v61 = vpop.f32.mrf.mxu1 }
 0x3ff   : > { %v4836_v12 = vadd.f32 %v10739_v20, %v4694_v14  ;;  %v4695_v19 = vadd.f32 %v13824_v2, %v3946_v30  ;;  %v3948_v63 = vadd.f32 %v3947_v61, %v3595_v17  ;;  %5364 = vmatmul.mubr.bf16.gmra.mxu0 %v5065_v52  ;;  %v4965_v50 = vmax.f32 %v4835_v58, 0.0  ;;  %v13831_v17 = vld [vmem:[#allocation197_spill] sm:$0xff]  ;;  %v11027_v61 = vpop.f32.mrf.mxu0 }
 0x400   : > { %v3949_v40 = vpop.f32.mrf.mxu1  ;;  %v3603_v52 = vadd.f32 %v13829_v28, %v13828_v47  ;;  %v3605_v14 = vadd.f32 %v13832_v16, %v13831_v17  ;;  %v13840_v17 = vld [vmem:[#allocation200_spill] sm:$0xff]  ;;  %v13841_v16 = vld [vmem:[#allocation89_spill] sm:$0xff] }
 0x401   : > { %v4966_v11 = vmax.f32 %v4836_v12, 0.0  ;;  %v4696_v60 = vadd.f32 %v13827_v25, %v3948_v63  ;;  %v3950_v9 = vadd.f32 %v3949_v40, %v3597_v43  ;;  %v5067_v57 = vpack.c.bf16 %v4965_v50, %v4963_v13  ;;  %v13834_v50 = vld [vmem:[#allocation19_spill] sm:$0xff]  ;;  %v13837_v25 = vld [vmem:[#allocation18_spill] sm:$0xff] }
 0x402   : > { %v4837_v18 = vadd.f32 %v10728_v27, %v4695_v19  ;;  %v3951_v36 = vpop.f32.mrf.mxu1 }
 0x403   : > { %v4697_v34 = vadd.f32 %v13830_v55, %v3950_v9  ;;  %v3952_v35 = vadd.f32 %v3951_v36, %v3599_v15  ;;  %v5068_v58 = vpack.c.bf16 %v4966_v11, %v4964_v42  ;;  %v4838_v3 = vadd.f32 %v10739_v20, %v4696_v60  ;;  %v13836_v15 = vld [vmem:[#allocation77_spill] sm:$0xff]  ;;  %v13838_v60 = vld [vmem:[#allocation83_spill] sm:$0xff]  ;;  %v11038_v36 = vpop.f32.mrf.mxu0 }
 0x404   : > { %v3955_v30 = vpop.f32.mrf.mxu1  ;;  %v4967_v2 = vmax.f32 %v4837_v18, 0.0  ;;  %v3607_v11 = vadd.f32 %v13836_v15, %v13835_v44  ;;  %v3609_v9 = vadd.f32 %v13838_v60, %v13837_v25  ;;  %v13847_v25 = vld [vmem:[#allocation104_spill] sm:$0xff] }
 0x405   : > { %v4839_v39 = vadd.f32 %v10728_v27, %v4697_v34  ;;  %v4698_v43 = vadd.f32 %v13833_v54, %v3952_v35  ;;  %v3956_v12 = vadd.f32 %v3955_v30, %v3603_v52  ;;  %5371 = vmatprep.mubr.bf16.mxu0 %v5068_v58  ;;  %v4968_v47 = vmax.f32 %v4838_v3, 0.0  ;;  %v13839_v52 = vld [vmem:[#allocation80_spill] sm:$0xff]  ;;  %v11047_v3 = vpop.f32.mrf.mxu0 }
 0x406   : > { %v3957_v19 = vpop.f32.mrf.mxu1 }
 0x407   : > { %v4969_v63 = vmax.f32 %v4839_v39, 0.0  ;;  %v4840_v13 = vadd.f32 %v10739_v20, %v4698_v43  ;;  %v4699_v40 = vadd.f32 %v13834_v50, %v3956_v12  ;;  %v3958_v29 = vadd.f32 %v3957_v19, %v3605_v14  ;;  %5372 = vmatmul.mubr.bf16.gmra.mxu0 %v5067_v57  ;;  %v13842_v39 = vld [vmem:[#allocation208_spill] sm:$0xff]  ;;  %v13844_v19 = vld [vmem:[#allocation95_spill] sm:$0xff] }
 0x408   : > { %v3959_v42 = vpop.f32.mrf.mxu1  ;;  %v3613_v14 = vadd.f32 %v13841_v16, %v13840_v17  ;;  %v13843_v12 = vld [vmem:[#allocation20_spill] sm:$0xff]  ;;  %v13850_v17 = vld [vmem:[#allocation118_spill] sm:$0xff] }
 0x409   : > { %v5069_v18 = vpack.c.bf16 %v4969_v63, %v4967_v2  ;;  %v4970_v28 = vmax.f32 %v4840_v13, 0.0  ;;  %v4700_v55 = vadd.f32 %v13839_v52, %v3958_v29  ;;  %v3960_v34 = vadd.f32 %v3959_v42, %v3607_v11  ;;  %v13845_v2 = vld [vmem:[#allocation210_spill] sm:$0xff] }
 0x40a   : > { %v3961_v35 = vpop.f32.mrf.mxu1  ;;  %v4841_v58 = vadd.f32 %v10728_v27, %v4699_v40  ;;  %v3615_v50 = vadd.f32 %v13844_v19, %v13843_v12  ;;  %v13846_v11 = vld [vmem:[#allocation202_spill] sm:$0xff] }
 0x40b   : > { %v3962_v57 = vadd.f32 %v3961_v35, %v3609_v9  ;;  %v5070_v30 = vpack.c.bf16 %v4970_v28, %v4968_v47  ;;  %v4701_v54 = vadd.f32 %v13842_v39, %v3960_v34  ;;  %v4842_v29 = vadd.f32 %v10739_v20, %v4700_v55  ;;  %v13848_v9 = vld [vmem:[#allocation216_spill] sm:$0xff]  ;;  %v13849_v35 = vld [vmem:[#allocation211_spill] sm:$0xff] }
 0x40c   : > { %v3965_v43 = vpop.f32.mrf.mxu1  ;;  %v3617_v40 = vadd.f32 %v13847_v25, %v13846_v11  ;;  %v4971_v28 = vmax.f32 %v4841_v58, 0.0  ;;  %v3619_v16 = vadd.f32 %v13850_v17, %v13849_v35  ;;  %v13854_v58 = vld [vmem:[#allocation82_spill] sm:$0xff] }
 0x40d   : > { %v4702_v63 = vadd.f32 %v13845_v2, %v3962_v57  ;;  %v3966_v13 = vadd.f32 %v3965_v43, %v3613_v14  ;;  %5379 = vmatprep.mubr.bf16.mxu0 %v5070_v30  ;;  %v4843_v44 = vadd.f32 %v10728_v27, %v4701_v54  ;;  %v11058_v14 = vpop.f32.mrf.mxu0  ;;  %v13851_v57 = vld [vmem:[#allocation21_spill] sm:$0xff]  ;;  %v4972_v54 = vmax.f32 %v4842_v29, 0.0 }
 0x40e   : > { %v3967_v15 = vpop.f32.mrf.mxu1  ;;  %v13852_v2 = vld [vmem:[#allocation217_spill] sm:$0xff] }
 0x40f   : > { %v4844_v60 = vadd.f32 %v10739_v20, %v4702_v63  ;;  %v4703_v42 = vadd.f32 %v13848_v9, %v3966_v13  ;;  %v3968_v47 = vadd.f32 %v3967_v15, %v3615_v50  ;;  %5380 = vmatmul.mubr.bf16.gmra.mxu0 %v5069_v18  ;;  %v4973_v52 = vmax.f32 %v4843_v44, 0.0  ;;  %v13853_v50 = vld [vmem:[#allocation128_spill] sm:$0xff]  ;;  %v13856_v15 = vld [vmem:[#allocation142_spill] sm:$0xff] }
 0x410   : > { %v3969_v34 = vpop.f32.mrf.mxu1  ;;  %v3623_v18 = vadd.f32 %v13853_v50, %v13852_v2  ;;  %v13855_v44 = vld [vmem:[#allocation212_spill] sm:$0xff]  ;;  %v13861_v2 = vld [vmem:[#allocation214_spill] sm:$0xff] }
 0x411   : > { %v4974_v55 = vmax.f32 %v4844_v60, 0.0  ;;  %v4704_v30 = vadd.f32 %v13851_v57, %v3968_v47  ;;  %v3970_v39 = vadd.f32 %v3969_v34, %v3617_v40  ;;  %v5071_v43 = vpack.c.bf16 %v4973_v52, %v4971_v28  ;;  %v11067_v60 = vpop.f32.mrf.mxu0  ;;  %v13857_v47 = vld [vmem:[#allocation218_spill] sm:$0xff] }
 0x412   : > { %v4845_v12 = vadd.f32 %v10728_v27, %v4703_v42  ;;  %v3971_v19 = vpop.f32.mrf.mxu1  ;;  %v3625_v11 = vadd.f32 %v13856_v15, %v13855_v44  ;;  %v13863_v44 = vld [vmem:[#allocation84_spill] sm:$0xff] }
 0x413   : > { %v4705_v63 = vadd.f32 %v13854_v58, %v3970_v39  ;;  %v3972_v13 = vadd.f32 %v3971_v19, %v3619_v16  ;;  %v5072_v9 = vpack.c.bf16 %v4974_v55, %v4972_v54  ;;  %v4846_v40 = vadd.f32 %v10739_v20, %v4704_v30  ;;  %v13858_v16 = vld [vmem:[#allocation23_spill] sm:$0xff]  ;;  %v13860_v54 = vld [vmem:[#allocation152_spill] sm:$0xff]  ;;  %v13862_v30 = vld [vmem:[#allocation166_spill] sm:$0xff] }
 0x414   : > { %v3975_v25 = vpop.f32.mrf.mxu1  ;;  %v4975_v52 = vmax.f32 %v4845_v12, 0.0  ;;  %v13859_v55 = vld [vmem:[#allocation219_spill] sm:$0xff]  ;;  %v3629_v50 = vadd.f32 %v13862_v30, %v13861_v2  ;;  %v13868_v2 = vld [vmem:[#allocation201_spill] sm:$0xff] }
 0x415   : > { %v4847_v29 = vadd.f32 %v10728_v27, %v4705_v63  ;;  %v4706_v42 = vadd.f32 %v13857_v47, %v3972_v13  ;;  %v3976_v28 = vadd.f32 %v3975_v25, %v3623_v18  ;;  %5387 = vmatprep.mubr.bf16.mxu0 %v5072_v9  ;;  %v3627_v19 = vadd.f32 %v13860_v54, %v13859_v55  ;;  %v11078_v63 = vpop.f32.mrf.mxu0  ;;  %v13865_v47 = vld [vmem:[#allocation179_spill] sm:$0xff]  ;;  %v13867_v54 = vld [vmem:[#allocation229_spill] sm:$0xff] }
 0x416   : > { %v3977_v34 = vpop.f32.mrf.mxu1  ;;  %v4976_v18 = vmax.f32 %v4846_v40, 0.0  ;;  %v3635_v30 = vadd.f32 %v13868_v2, %v13867_v54 }
 0x417   : > { %v4977_v35 = vmax.f32 %v4847_v29, 0.0  ;;  %v4848_v17 = vadd.f32 %v10739_v20, %v4706_v42  ;;  %v4707_v57 = vadd.f32 %v13858_v16, %v3976_v28  ;;  %v3978_v39 = vadd.f32 %v3977_v34, %v3625_v11  ;;  %5388 = vmatmul.mubr.bf16.gmra.mxu0 %v5071_v43  ;;  %v13864_v29 = vld [vmem:[#allocation221_spill] sm:$0xff]  ;;  %v13866_v34 = vld [vmem:[#allocation220_spill] sm:$0xff]  ;;  %v11087_v40 = vpop.f32.mrf.mxu0 }
 0x418   : > { %v3979_v58 = vpop.f32.mrf.mxu1  ;;  %v3633_v11 = vadd.f32 %v13865_v47, %v13864_v29 }
 0x419   : > { %v5073_v12 = vpack.c.bf16 %v4977_v35, %v4975_v52  ;;  %v4978_v13 = vmax.f32 %v4848_v17, 0.0  ;;  %v4708_v15 = vadd.f32 %v13863_v44, %v3978_v39  ;;  %v3980_v25 = vadd.f32 %v3979_v58, %v3627_v19  ;;  %v13869_v52 = vld [vmem:[#allocation222_spill] sm:$0xff]  ;;  %v13872_v44 = vld [vmem:[#allocation228_spill] sm:$0xff] }
 0x41a   : > { %v3981_v9 = vpop.f32.mrf.mxu1  ;;  %v4849_v28 = vadd.f32 %v10728_v27, %v4707_v57  ;;  %v13870_v58 = vld [vmem:[#allocation26_spill] sm:$0xff] }
 0x41b   : > { %v3982_v43 = vadd.f32 %v3981_v9, %v3629_v50  ;;  %v5074_v42 = vpack.c.bf16 %v4978_v13, %v4976_v18  ;;  %v4709_v16 = vadd.f32 %v13866_v34, %v3980_v25  ;;  %v4850_v39 = vadd.f32 %v10739_v20, %v4708_v15  ;;  %v13871_v18 = vld [vmem:[#allocation225_spill] sm:$0xff] }
 0x41c   : > { %v3985_v55 = vpop.f32.mrf.mxu1  ;;  %v3637_v57 = vadd.f32 %v13871_v18, %v13870_v58  ;;  %v4979_v29 = vmax.f32 %v4849_v28, 0.0  ;;  %v13879_v28 = vld [vmem:[#allocation86_spill] sm:$0xff] }
 0x41d   : > { %v4710_v35 = vadd.f32 %v13869_v52, %v3982_v43  ;;  %v3986_v17 = vadd.f32 %v3985_v55, %v3633_v11  ;;  %5395 = vmatprep.mubr.bf16.mxu0 %v5074_v42  ;;  %v4851_v19 = vadd.f32 %v10728_v27, %v4709_v16  ;;  %v13873_v43 = vld [vmem:[#allocation231_spill] sm:$0xff]  ;;  %v13874_v11 = vld [vmem:[#allocation237_spill] sm:$0xff]  ;;  %v11098_v55 = vpop.f32.mrf.mxu0  ;;  %v4980_v52 = vmax.f32 %v4850_v39, 0.0 }
 0x41e   : > { %v3987_v50 = vpop.f32.mrf.mxu1  ;;  %v3639_v42 = vadd.f32 %v13874_v11, %v13873_v43  ;;  %13875 = vst [vmem:[#allocation251_spill] sm:$0xff] %v11098_v55  ;;  %v13876_v16 = vld [vmem:[#allocation25_spill] sm:$0xff] }
 0x41f   : > { %v4852_v13 = vadd.f32 %v10739_v20, %v4710_v35  ;;  %v4711_v25 = vadd.f32 %v13872_v44, %v3986_v17  ;;  %v3988_v9 = vadd.f32 %v3987_v50, %v3635_v30  ;;  %5396 = vmatmul.mubr.bf16.gmra.mxu0 %v5073_v12  ;;  %v4981_v47 = vmax.f32 %v4851_v19, 0.0  ;;  %v13877_v17 = vld [vmem:[#allocation28_spill] sm:$0xff]  ;;  %v13878_v30 = vld [vmem:[#allocation239_spill] sm:$0xff]  ;;  %v13880_v44 = vld [vmem:[#allocation233_spill] sm:$0xff] }
 0x420   : > { %v3989_v34 = vpop.f32.mrf.mxu1  ;;  %v3643_v12 = vadd.f32 %v13878_v30, %v13877_v17  ;;  %v3645_v43 = vadd.f32 %v13881_v0, %v13880_v44  ;;  %v13885_v17 = vld [vmem:[#allocation30_spill] sm:$0xff] }
 0x421   : > { %v4982_v15 = vmax.f32 %v4852_v13, 0.0  ;;  %v4712_v54 = vadd.f32 %v13876_v16, %v3988_v9  ;;  %v3990_v2 = vadd.f32 %v3989_v34, %v3637_v57  ;;  %v5075_v58 = vpack.c.bf16 %v4981_v47, %v4979_v29  ;;  %v11107_v13 = vpop.f32.mrf.mxu0  ;;  %v13882_v9 = vld [vmem:[#allocation230_spill] sm:$0xff] }
 0x422   : > { %v4853_v35 = vadd.f32 %v10728_v27, %v4711_v25  ;;  %v3991_v18 = vpop.f32.mrf.mxu1 }
 0x423   : > { %v4713_v19 = vadd.f32 %v13879_v28, %v3990_v2  ;;  %v3992_v50 = vadd.f32 %v3991_v18, %v3639_v42  ;;  %v5076_v55 = vpack.c.bf16 %v4982_v15, %v4980_v52  ;;  %v4854_v57 = vadd.f32 %v10739_v20, %v4712_v54  ;;  %v13883_v2 = vld [vmem:[#allocation27_spill] sm:$0xff]  ;;  %v11118_v28 = vpop.f32.mrf.mxu0 }
 0x424   : > { %v3995_v11 = vpop.f32.mrf.mxu1  ;;  %v4983_v47 = vmax.f32 %v4853_v35, 0.0  ;;  %v13884_v15 = vld [vmem:[#allocation235_spill] sm:$0xff]  ;;  %v3649_v54 = vadd.f32 %v10760_v32, %v13885_v17 }
 0x425   : > { %v4855_v39 = vadd.f32 %v10728_v27, %v4713_v19  ;;  %v4714_v25 = vadd.f32 %v13882_v9, %v3992_v50  ;;  %v3996_v29 = vadd.f32 %v3995_v11, %v3643_v12  ;;  %5403 = vmatprep.mubr.bf16.mxu0 %v5076_v55  ;;  %v3647_v52 = vadd.f32 %v10752_v26, %v13884_v15  ;;  %v13886_v19 = vld [vmem:[#allocation88_spill] sm:$0xff] }
 0x426   : > { %v3997_v34 = vpop.f32.mrf.mxu1  ;;  %v4984_v12 = vmax.f32 %v4854_v57, 0.0  ;;  %v11127_v57 = vpop.f32.mrf.mxu0 }
 0x427   : > { %v4985_v16 = vmax.f32 %v4855_v39, 0.0  ;;  %v4856_v42 = vadd.f32 %v10739_v20, %v4714_v25  ;;  %v4715_v18 = vadd.f32 %v13883_v2, %v3996_v29  ;;  %v3998_v0 = vadd.f32 %v3997_v34, %v3645_v43  ;;  %5404 = vmatmul.mubr.bf16.gmra.mxu0 %v5075_v58  ;;  %v13887_v39 = vld [vmem:[#allocation236_spill] sm:$0xff] }
 0x428   : > { %v3999_v30 = vpop.f32.mrf.mxu1  ;;  %v3653_v43 = vadd.f32 %v10770_v46, %v13887_v39  ;;  %v13888_v25 = vld [vmem:[#allocation232_spill] sm:$0xff]  ;;  %v11138_v39 = vpop.f32.mrf.mxu0 }
 0x429   : > { %v5077_v35 = vpack.c.bf16 %v4985_v16, %v4983_v47  ;;  %v4986_v55 = vmax.f32 %v4856_v42, 0.0  ;;  %v4716_v50 = vadd.f32 %v13886_v19, %v3998_v0  ;;  %v4000_v44 = vadd.f32 %v3999_v30, %v3647_v52  ;;  %v13889_v34 = vld [vmem:[#allocation32_spill] sm:$0xff]  ;;  %v13890_v47 = vld [vmem:[#allocation234_spill] sm:$0xff] }
 0x42a   : > { %v4001_v11 = vpop.f32.mrf.mxu1  ;;  %v4857_v26 = vadd.f32 %v10728_v27, %v4715_v18  ;;  %v3655_v2 = vadd.f32 %v10778_v38, %v13889_v34  ;;  %v13891_v52 = vld [vmem:[#allocation238_spill] sm:$0xff]  ;;  %v13895_v34 = vld [vmem:[#allocation253_spill] sm:$0xff] }
 0x42b   : > { %v4002_v58 = vadd.f32 %v4001_v11, %v3649_v54  ;;  %v5078_v9 = vpack.c.bf16 %v4986_v55, %v4984_v12  ;;  %v4717_v29 = vadd.f32 %v13888_v25, %v4000_v44  ;;  %v4858_v0 = vadd.f32 %v10739_v20, %v4716_v50  ;;  %v13892_v54 = vld [vmem:[#allocation240_spill] sm:$0xff]  ;;  %v13893_v44 = vld [vmem:[#allocation247_spill] sm:$0xff] }
 0x42c   : > { %v4005_v32 = vpop.f32.mrf.mxu1  ;;  %v3657_v18 = vadd.f32 %v10788_v5, %v13891_v52  ;;  %v4987_v38 = vmax.f32 %v4857_v26, 0.0  ;;  %v3659_v11 = vadd.f32 %v10800_v21, %v13893_v44  ;;  %v13896_v26 = vld [vmem:[#allocation90_spill] sm:$0xff]  ;;  %v13900_v44 = vld [vmem:[#allocation36_spill] sm:$0xff] }
 0x42d   : > { %v4718_v16 = vadd.f32 %v13890_v47, %v4002_v58  ;;  %v4006_v42 = vadd.f32 %v4005_v32, %v3653_v43  ;;  %5411 = vmatprep.mubr.bf16.mxu0 %v5078_v9  ;;  %v4859_v46 = vadd.f32 %v10728_v27, %v4717_v29  ;;  %v13894_v43 = vld [vmem:[#allocation29_spill] sm:$0xff]  ;;  %v4988_v25 = vmax.f32 %v4858_v0, 0.0 }
 0x42e   : > { %v4007_v15 = vpop.f32.mrf.mxu1 }
 0x42f   : > { %v4860_v17 = vadd.f32 %v10739_v20, %v4718_v16  ;;  %v4719_v30 = vadd.f32 %v13892_v54, %v4006_v42  ;;  %v4008_v12 = vadd.f32 %v4007_v15, %v3655_v2  ;;  %5412 = vmatmul.mubr.bf16.gmra.mxu0 %v5077_v35  ;;  %v4989_v55 = vmax.f32 %v4859_v46, 0.0  ;;  %v13897_v16 = vld [vmem:[#allocation248_spill] sm:$0xff]  ;;  %v11147_v15 = vpop.f32.mrf.mxu0 }
 0x430   : > { %v4009_v19 = vpop.f32.mrf.mxu1  ;;  %v3663_v35 = vadd.f32 %v10812_v24, %v13895_v34  ;;  %v3665_v21 = vadd.f32 %v10822_v1, %v13897_v16  ;;  %v13902_v34 = vld [vmem:[#allocation92_spill] sm:$0xff] }
 0x431   : > { %v4990_v50 = vmax.f32 %v4860_v17, 0.0  ;;  %v4720_v58 = vadd.f32 %v13894_v43, %v4008_v12  ;;  %v4010_v9 = vadd.f32 %v4009_v19, %v3657_v18  ;;  %v5079_v5 = vpack.c.bf16 %v4989_v55, %v4987_v38  ;;  %v13898_v18 = vld [vmem:[#allocation242_spill] sm:$0xff]  ;;  %v13899_v55 = vld [vmem:[#allocation31_spill] sm:$0xff] }
 0x432   : > { %v4861_v29 = vadd.f32 %v10728_v27, %v4719_v30  ;;  %v4011_v32 = vpop.f32.mrf.mxu1 }
 0x433   : > { %v4721_v2 = vadd.f32 %v13896_v26, %v4010_v9  ;;  %v4012_v47 = vadd.f32 %v4011_v32, %v3659_v11  ;;  %v5080_v46 = vpack.c.bf16 %v4990_v50, %v4988_v25  ;;  %v4862_v52 = vadd.f32 %v10739_v20, %v4720_v58  ;;  %v13901_v50 = vld [vmem:[#allocation38_spill] sm:$0xff]  ;;  %v11158_v9 = vpop.f32.mrf.mxu0 }
 0x434   : > { %v4015_v42 = vpop.f32.mrf.mxu1  ;;  %v4991_v30 = vmax.f32 %v4861_v29, 0.0  ;;  %v3667_v11 = vadd.f32 %v10834_v59, %v13900_v44  ;;  %v3669_v43 = vadd.f32 %v10844_v33, %v13901_v50 }
 0x435   : > { %v4863_v0 = vadd.f32 %v10728_v27, %v4721_v2  ;;  %v4722_v17 = vadd.f32 %v13898_v18, %v4012_v47  ;;  %v4016_v54 = vadd.f32 %v4015_v42, %v3663_v35  ;;  %5419 = vmatprep.mubr.bf16.mxu0 %v5080_v46  ;;  %v4992_v25 = vmax.f32 %v4862_v52, 0.0  ;;  %v13903_v47 = vld [vmem:[#allocation254_spill] sm:$0xff]  ;;  %v13904_v42 = vld [vmem:[#allocation244_spill] sm:$0xff]  ;;  %v11167_v52 = vpop.f32.mrf.mxu0 }
 0x436   : > { %v4017_v24 = vpop.f32.mrf.mxu1  ;;  %v3673_v16 = vadd.f32 %v10856_v7, %v13903_v47 }
 0x437   : > { %v4993_v12 = vmax.f32 %v4863_v0, 0.0  ;;  %v4864_v38 = vadd.f32 %v10739_v20, %v4722_v17  ;;  %v4723_v19 = vadd.f32 %v13899_v55, %v4016_v54  ;;  %v4018_v1 = vadd.f32 %v4017_v24, %v3665_v21  ;;  %5420 = vmatmul.mubr.bf16.gmra.mxu0 %v5079_v5  ;;  %v13905_v0 = vld [vmem:[#allocation256_spill] sm:$0xff]  ;;  %v13906_v17 = vld [vmem:[#allocation246_spill] sm:$0xff] }
 0x438   : > { %v4019_v58 = vpop.f32.mrf.mxu1  ;;  %v3675_v18 = vadd.f32 %v10866_v62, %v13905_v0 }
 0x439   : > { %v5081_v29 = vpack.c.bf16 %v4993_v12, %v4991_v30  ;;  %v4994_v32 = vmax.f32 %v4864_v38, 0.0  ;;  %v4724_v35 = vadd.f32 %v13902_v34, %v4018_v1  ;;  %v4020_v26 = vadd.f32 %v4019_v58, %v3667_v11  ;;  %v13907_v38 = vld [vmem:[#allocation42_spill] sm:$0xff]  ;;  %v13908_v1 = vld [vmem:[#allocation252_spill] sm:$0xff] }
 0x43a   : > { %v4021_v2 = vpop.f32.mrf.mxu1  ;;  %v4865_v59 = vadd.f32 %v10728_v27, %v4723_v19  ;;  %v3677_v55 = vadd.f32 %v10877_v45, %v13907_v38  ;;  %v13909_v58 = vld [vmem:[#allocation46_spill] sm:$0xff] }
 0x43b   : > { %v4022_v5 = vadd.f32 %v4021_v2, %v3669_v43  ;;  %v5082_v21 = vpack.c.bf16 %v4994_v32, %v4992_v25  ;;  %v4725_v46 = vadd.f32 %v13904_v42, %v4020_v26  ;;  %v4866_v24 = vadd.f32 %v10739_v20, %v4724_v35  ;;  %v11178_v32 = vpop.f32.mrf.mxu0  ;;  %v13910_v35 = vld [vmem:[#allocation33_spill] sm:$0xff] }
 0x43c   : > { %v4025_v33 = vpop.f32.mrf.mxu1  ;;  %v4995_v62 = vmax.f32 %v4865_v59, 0.0  ;;  %v3679_v25 = vadd.f32 %v10886_v53, %v13909_v58  ;;  %v13912_v59 = vld [vmem:[#allocation94_spill] sm:$0xff] }
 0x43d   : > { %v4726_v54 = vadd.f32 %v13906_v17, %v4022_v5  ;;  %v4026_v30 = vadd.f32 %v4025_v33, %v3673_v16  ;;  %5427 = vmatprep.mubr.bf16.mxu0 %v5082_v21  ;;  %v4867_v7 = vadd.f32 %v10728_v27, %v4725_v46  ;;  %v4996_v47 = vmax.f32 %v4866_v24, 0.0  ;;  %v13911_v21 = vld [vmem:[#allocation48_spill] sm:$0xff]  ;;  %v11187_v17 = vpop.f32.mrf.mxu0  ;;  %v13914_v24 = vld [vmem:[#allocation98_spill] sm:$0xff] }
 0x43e   : > { %v4027_v12 = vpop.f32.mrf.mxu1  ;;  %v13913_v33 = vld [vmem:[#allocation52_spill] sm:$0xff] }
 0x43f   : > { %v4868_v19 = vadd.f32 %v10739_v20, %v4726_v54  ;;  %v4727_v44 = vadd.f32 %v13908_v1, %v4026_v30  ;;  %v4028_v11 = vadd.f32 %v4027_v12, %v3675_v18  ;;  %5428 = vmatmul.mubr.bf16.gmra.mxu0 %v5081_v29  ;;  %v4997_v50 = vmax.f32 %v4867_v7, 0.0  ;;  %v13915_v1 = vld [vmem:[#allocation35_spill] sm:$0xff] }
 0x440   : > { %v4029_v43 = vpop.f32.mrf.mxu1  ;;  %v3683_v29 = vadd.f32 %v10897_v51, %v13911_v21  ;;  %v3685_v53 = vadd.f32 %v10906_v56, %v13913_v33  ;;  %v13919_v21 = vld [vmem:[#allocation60_spill] sm:$0xff]  ;;  %v13921_v33 = vld [vmem:[#allocation63_spill] sm:$0xff] }
 0x441   : > { %v4998_v34 = vmax.f32 %v4868_v19, 0.0  ;;  %v4728_v26 = vadd.f32 %v13910_v35, %v4028_v11  ;;  %v4030_v2 = vadd.f32 %v4029_v43, %v3677_v55  ;;  %v5083_v45 = vpack.c.bf16 %v4997_v50, %v4995_v62  ;;  %v13916_v11 = vld [vmem:[#allocation54_spill] sm:$0xff] }
 0x442   : > { %v4869_v16 = vadd.f32 %v10728_v27, %v4727_v44  ;;  %v4031_v5 = vpop.f32.mrf.mxu1  ;;  %v3687_v62 = vadd.f32 %v10917_v49, %v13916_v11  ;;  %v13917_v50 = vld [vmem:[#allocation58_spill] sm:$0xff]  ;;  %v13925_v11 = vld [vmem:[#allocation67_spill] sm:$0xff] }
 0x443   : > { %v4729_v42 = vadd.f32 %v13912_v59, %v4030_v2  ;;  %v4032_v46 = vadd.f32 %v4031_v5, %v3679_v25  ;;  %v5084_v18 = vpack.c.bf16 %v4998_v34, %v4996_v47  ;;  %v4870_v54 = vadd.f32 %v10739_v20, %v4728_v26  ;;  %v11198_v25 = vpop.f32.mrf.mxu0  ;;  %v13918_v2 = vld [vmem:[#allocation96_spill] sm:$0xff] }
 0x444   : > { %v4035_v0 = vpop.f32.mrf.mxu1  ;;  %v4999_v38 = vmax.f32 %v4869_v16, 0.0  ;;  %v3689_v43 = vadd.f32 %v10926_v23, %v13917_v50 }
 0x445   : > { %v4871_v30 = vadd.f32 %v10728_v27, %v4729_v42  ;;  %v4730_v7 = vadd.f32 %v13914_v24, %v4032_v46  ;;  %v4036_v12 = vadd.f32 %v4035_v0, %v3683_v29  ;;  %5435 = vmatprep.mubr.bf16.mxu0 %v5084_v18  ;;  %v5000_v34 = vmax.f32 %v4870_v54, 0.0  ;;  %v13920_v42 = vld [vmem:[#allocation99_spill] sm:$0xff]  ;;  %v11207_v0 = vpop.f32.mrf.mxu0  ;;  %v13922_v18 = vld [vmem:[#allocation100_spill] sm:$0xff] }
 0x446   : > { %v4037_v51 = vpop.f32.mrf.mxu1  ;;  %v3693_v29 = vadd.f32 %v10938_v8, %v13919_v21  ;;  %v13928_v21 = vld [vmem:[#allocation101_spill] sm:$0xff] }
 0x447   : > { %v5001_v55 = vmax.f32 %v4871_v30, 0.0  ;;  %v4872_v19 = vadd.f32 %v10739_v20, %v4730_v7  ;;  %v4731_v44 = vadd.f32 %v13915_v1, %v4036_v12  ;;  %v4038_v56 = vadd.f32 %v4037_v51, %v3685_v53  ;;  %5436 = vmatmul.mubr.bf16.gmra.mxu0 %v5083_v45  ;;  %v13923_v12 = vld [vmem:[#allocation64_spill] sm:$0xff]  ;;  %v11218_v50 = vpop.f32.mrf.mxu0 }
 0x448   : > { %v4039_v58 = vpop.f32.mrf.mxu1  ;;  %v3695_v53 = vadd.f32 %v10947_v10, %v13921_v33 }
 0x449   : > { %v5085_v35 = vpack.c.bf16 %v5001_v55, %v4999_v38  ;;  %v5002_v26 = vmax.f32 %v4872_v19, 0.0  ;;  %v4732_v47 = vadd.f32 %v13918_v2, %v4038_v56  ;;  %v4040_v16 = vadd.f32 %v4039_v58, %v3687_v62  ;;  %v13924_v55 = vld [vmem:[#allocation105_spill] sm:$0xff] }
 0x44a   : > { %v4041_v5 = vpop.f32.mrf.mxu1  ;;  %v4873_v49 = vadd.f32 %v10728_v27, %v4731_v44  ;;  %v3697_v38 = vadd.f32 %v10958_v6, %v13923_v12  ;;  %v3699_v62 = vadd.f32 %v10967_v31, %v13925_v11  ;;  %v13926_v58 = vld [vmem:[#allocation37_spill] sm:$0xff] }
 0x44b   : > { %v4042_v45 = vadd.f32 %v4041_v5, %v3689_v43  ;;  %v5086_v59 = vpack.c.bf16 %v5002_v26, %v5000_v34  ;;  %v4733_v46 = vadd.f32 %v13920_v42, %v4040_v16  ;;  %v4874_v24 = vadd.f32 %v10739_v20, %v4732_v47  ;;  %v13927_v5 = vld [vmem:[#allocation69_spill] sm:$0xff] }
 0x44c   : > { %v4045_v23 = vpop.f32.mrf.mxu1  ;;  %v5003_v10 = vmax.f32 %v4873_v49, 0.0 }
 0x44d   : > { %v4734_v54 = vadd.f32 %v13922_v18, %v4042_v45  ;;  %v4046_v30 = vadd.f32 %v4045_v23, %v3693_v29  ;;  %5443 = vmatprep.mubr.bf16.mxu0 %v5086_v59  ;;  %v4875_v8 = vadd.f32 %v10728_v27, %v4733_v46  ;;  %v5004_v2 = vmax.f32 %v4874_v24, 0.0  ;;  %v13929_v59 = vld [vmem:[#allocation73_spill] sm:$0xff]  ;;  %v11227_v46 = vpop.f32.mrf.mxu0 }
 0x44e   : > { %v4047_v7 = vpop.f32.mrf.mxu1  ;;  %v3705_v31 = vadd.f32 %v10987_v41, %v13929_v59 }
 0x44f   : > { %v4876_v51 = vadd.f32 %v10739_v20, %v4734_v54  ;;  %v4735_v19 = vadd.f32 %v13924_v55, %v4046_v30  ;;  %v4048_v1 = vadd.f32 %v4047_v7, %v3695_v53  ;;  %5444 = vmatmul.mubr.bf16.gmra.mxu0 %v5085_v35  ;;  %v5005_v44 = vmax.f32 %v4875_v8, 0.0  ;;  %v13930_v53 = vld [vmem:[#allocation106_spill] sm:$0xff]  ;;  %v13931_v7 = vld [vmem:[#allocation39_spill] sm:$0xff] }
 0x450   : > { %v4049_v56 = vpop.f32.mrf.mxu1  ;;  %v3703_v35 = vadd.f32 %v10978_v37, %v13927_v5  ;;  %v13933_v55 = vld [vmem:[#allocation79_spill] sm:$0xff] }
 0x451   : > { %v5006_v43 = vmax.f32 %v4876_v51, 0.0  ;;  %v4736_v34 = vadd.f32 %v13926_v58, %v4048_v1  ;;  %v4050_v26 = vadd.f32 %v4049_v56, %v3697_v38  ;;  %v5087_v6 = vpack.c.bf16 %v5005_v44, %v5003_v10  ;;  %v13932_v38 = vld [vmem:[#allocation75_spill] sm:$0xff]  ;;  %v11238_v10 = vpop.f32.mrf.mxu0 }
 0x452   : > { %v4877_v47 = vadd.f32 %v10728_v27, %v4735_v19  ;;  %v4051_v16 = vpop.f32.mrf.mxu1  ;;  %v3707_v51 = vadd.f32 %v10998_v48, %v13932_v38  ;;  %v3709_v19 = vadd.f32 %v11007_v4, %v13933_v55  ;;  %v13942_v38 = vld [vmem:[#allocation41_spill] sm:$0xff] }
 0x453   : > { %v4737_v29 = vadd.f32 %v13928_v21, %v4050_v26  ;;  %v4052_v45 = vadd.f32 %v4051_v16, %v3699_v62  ;;  %v5088_v42 = vpack.c.bf16 %v5006_v43, %v5004_v2  ;;  %v4878_v23 = vadd.f32 %v10739_v20, %v4736_v34  ;;  %v13934_v62 = vld [vmem:[#allocation103_spill] sm:$0xff]  ;;  %v13935_v26 = vld [vmem:[#allocation81_spill] sm:$0xff] }
 0x454   : > { %v4055_v49 = vpop.f32.mrf.mxu1  ;;  %v5007_v30 = vmax.f32 %v4877_v47, 0.0  ;;  %v3713_v2 = vadd.f32 %v11018_v22, %v13935_v26  ;;  %v13936_v16 = vld [vmem:[#allocation107_spill] sm:$0xff] }
 0x455   : > { %v4879_v33 = vadd.f32 %v10728_v27, %v4737_v29  ;;  %v4738_v18 = vadd.f32 %v13930_v53, %v4052_v45  ;;  %v4056_v54 = vadd.f32 %v4055_v49, %v3703_v35  ;;  %5451 = vmatprep.mubr.bf16.mxu0 %v5088_v42  ;;  %v5008_v44 = vmax.f32 %v4878_v23, 0.0  ;;  %v13937_v35 = vld [vmem:[#allocation85_spill] sm:$0xff]  ;;  %v11247_v29 = vpop.f32.mrf.mxu0  ;;  %v13938_v45 = vld [vmem:[#allocation108_spill] sm:$0xff]  ;;  %v13939_v23 = vld [vmem:[#allocation87_spill] sm:$0xff] }
 0x456   : > { %v4057_v37 = vpop.f32.mrf.mxu1  ;;  %v3715_v21 = vadd.f32 %v11027_v61, %v13937_v35 }
 0x457   : > { %v5009_v24 = vmax.f32 %v4879_v33, 0.0  ;;  %v4880_v8 = vadd.f32 %v10739_v20, %v4738_v18  ;;  %v4739_v12 = vadd.f32 %v13931_v7, %v4056_v54  ;;  %v4058_v41 = vadd.f32 %v4057_v37, %v3705_v31  ;;  %5452 = vmatmul.mubr.bf16.gmra.mxu0 %v5087_v6  ;;  %v13940_v18 = vld [vmem:[#allocation113_spill] sm:$0xff]  ;;  %v13941_v7 = vld [vmem:[#allocation91_spill] sm:$0xff] }
 0x458   : > { %v4059_v1 = vpop.f32.mrf.mxu1  ;;  %v3717_v33 = vadd.f32 %v11038_v36, %v13939_v23 }
 0x459   : > { %v5089_v56 = vpack.c.bf16 %v5009_v24, %v5007_v30  ;;  %v5010_v11 = vmax.f32 %v4880_v8, 0.0  ;;  %v4740_v43 = vadd.f32 %v13934_v62, %v4058_v41  ;;  %v4060_v58 = vadd.f32 %v4059_v1, %v3707_v51  ;;  %v13943_v62 = vld [vmem:[#allocation93_spill] sm:$0xff] }
 0x45a   : > { %v4061_v34 = vpop.f32.mrf.mxu1  ;;  %v4881_v48 = vadd.f32 %v10728_v27, %v4739_v12  ;;  %v3719_v12 = vadd.f32 %v11047_v3, %v13941_v7  ;;  %v13952_v7 = vld [vmem:[#allocation111_spill] sm:$0xff] }
 0x45b   : > { %v4062_v6 = vadd.f32 %v4061_v34, %v3709_v19  ;;  %v5090_v47 = vpack.c.bf16 %v5010_v11, %v5008_v44  ;;  %v4741_v5 = vadd.f32 %v13936_v16, %v4060_v58  ;;  %v4882_v49 = vadd.f32 %v10739_v20, %v4740_v43  ;;  %v13944_v43 = vld [vmem:[#allocation109_spill] sm:$0xff] }
 0x45c   : > { %v4065_v4 = vpop.f32.mrf.mxu1  ;;  %v5011_v37 = vmax.f32 %v4881_v48, 0.0  ;;  %v13946_v48 = vmov 0  }
 0x45d   : > { %v4742_v59 = vadd.f32 %v13938_v45, %v4062_v6  ;;  %v4066_v31 = vadd.f32 %v4065_v4, %v3713_v2  ;;  %5459 = vmatprep.mubr.bf16.mxu0 %v5090_v47  ;;  %v4883_v22 = vadd.f32 %v10728_v27, %v4741_v5  ;;  %v5012_v19 = vmax.f32 %v4882_v49, 0.0  ;;  %v13945_v2 = vld [vmem:[#allocation97_spill] sm:$0xff]  ;;  %v13947_v4 = vld [vmem:[#allocation114_spill] sm:$0xff] }
 0x45e   : > { %v4067_v42 = vpop.f32.mrf.mxu1  ;;  %v3725_v3 = vadd.f32 %v11067_v60, %v13945_v2  ;;  %v13948_v60 = vld [vmem:[#allocation43_spill] sm:$0xff] }
 0x45f   : > { %v4884_v53 = vadd.f32 %v10739_v20, %v4742_v59  ;;  %v4743_v54 = vadd.f32 %v13940_v18, %v4066_v31  ;;  %v4068_v30 = vadd.f32 %v4067_v42, %v3715_v21  ;;  %v5269_v61 = vpop.f32.mrf.mxu0  ;;  %5460 = vmatmul.mubr.bf16.gmra.mxu0 %v5089_v56  ;;  %v5013_v24 = vmax.f32 %v4883_v22, 0.0  ;;  %v13950_v18 = vld [vmem:[#allocation110_spill] sm:$0xff] }
 0x460   : > { %6389 = vperm.xlu1 %7274, %v5269_v61   ;;  %5663 = vperm.xlu0 %7273, %v5269_v61   ;;  %v4069_v8 = vpop.f32.mrf.mxu1  ;;  %v3723_v56 = vadd.f32 %v11058_v14, %v13943_v62 }
 0x461   : > { %v5014_v41 = vmax.f32 %v4884_v53, 0.0  ;;  %v4744_v51 = vadd.f32 %v13942_v38, %v4068_v30  ;;  %v4070_v55 = vadd.f32 %v4069_v8, %v3717_v33  ;;  %v5271_v36 = vpop.f32.mrf.mxu0  ;;  %v5091_v1 = vpack.c.bf16 %v5013_v24, %v5011_v37  ;;  %v13949_v33 = vld [vmem:[#allocation102_spill] sm:$0xff] }
 0x462   : > { %v4885_v44 = vadd.f32 %v10728_v27, %v4743_v54  ;;  %v4071_v11 = vpop.f32.mrf.mxu1  ;;  %v3727_v53 = vadd.f32 %v11078_v63, %v13949_v33  ;;  %v3729_v54 = vadd.f32 %v11087_v40, %v13950_v18  ;;  %v13951_v30 = vmov 1   ;;  %v13954_v36 = vld [vmem:[#allocation251_spill] sm:$0xff] }
 0x463   : > { %v4745_v58 = vadd.f32 %v13944_v43, %v4070_v55  ;;  %v4072_v34 = vadd.f32 %v4071_v11, %v3719_v12  ;;  %v5272_v26 = vpop.f32.mrf.mxu0  ;;  %v5092_v47 = vpack.c.bf16 %v5014_v41, %v5012_v19  ;;  %v4886_v16 = vadd.f32 %v10739_v20, %v4744_v51  ;;  %v13953_v55 = vld [vmem:[#allocation112_spill] sm:$0xff]  ;;  %v13955_v11 = vld [vmem:[#allocation115_spill] sm:$0xff] }
 0x464   : > { %5668 = vperm.xlu0 %7273, %v5272_v26   ;;  %v4075_v6 = vpop.f32.mrf.mxu1  ;;  %7276 = vset.pattern.permute.xlu1 %v13946_v48  ;;  %v5015_v45 = vmax.f32 %v4885_v44, 0.0  ;;  %v3733_v19 = vadd.f32 %v13954_v36, %v13953_v55  ;;  %v13956_v43 = vld [vmem:[#allocation120_spill] sm:$0xff] }
 0x465   : > { %v4887_v5 = vadd.f32 %v10728_v27, %v4745_v58  ;;  %v4746_v35 = vadd.f32 %v13947_v4, %v4072_v34  ;;  %v4076_v21 = vadd.f32 %v4075_v6, %v3723_v56  ;;  %v5274_v14 = vpop.f32.mrf.mxu0  ;;  %5467 = vmatprep.mubr.bf16.mxu0 %v5092_v47  ;;  %v5016_v37 = vmax.f32 %v4886_v16, 0.0  ;;  %v13957_v34 = vld [vmem:[#allocation116_spill] sm:$0xff] }
 0x466   : > { %v4077_v59 = vpop.f32.mrf.mxu1  ;;  %v3735_v58 = vadd.f32 %v11107_v13, %v13956_v43 }
 0x467   : > { %v5017_v31 = vmax.f32 %v4887_v5, 0.0  ;;  %v4888_v49 = vadd.f32 %v10739_v20, %v4746_v35  ;;  %v4747_v22 = vadd.f32 %v13948_v60, %v4076_v21  ;;  %v4078_v42 = vadd.f32 %v4077_v59, %v3725_v3  ;;  %v5277_v23 = vpop.f32.mrf.mxu0  ;;  %5468 = vmatmul.mubr.bf16.gmra.mxu0 %v5091_v1  ;;  %v13958_v5 = vld [vmem:[#allocation126_spill] sm:$0xff]  ;;  %v13959_v21 = vld [vmem:[#allocation121_spill] sm:$0xff] }
 0x468   : > { %7275 = vset.pattern.permute.xlu0 %v13951_v30  ;;  %5673 = vperm.xlu1 %7276, %v5277_v23   ;;  %v4079_v61 = vpop.f32.mrf.mxu1  ;;  %v3737_v4 = vadd.f32 %v11118_v28, %v13958_v5  ;;  %v13960_v60 = vld [vmem:[#allocation134_spill] sm:$0xff] }
 0x469   : > { %v5093_v24 = vpack.c.bf16 %v5017_v31, %v5015_v45  ;;  %v5018_v8 = vmax.f32 %v4888_v49, 0.0  ;;  %v4748_v12 = vadd.f32 %v13952_v7, %v4078_v42  ;;  %6393 = vperm.xlu0 %7275, %v5272_v26   ;;  %v5279_v41 = vpop.f32.mrf.mxu0  ;;  %v4080_v38 = vadd.f32 %v4079_v61, %v3727_v53  ;;  %v13963_v7 = vld [vmem:[#allocation117_spill] sm:$0xff] }
 0x46a   : > { %v4081_v51 = vpop.f32.mrf.mxu1  ;;  %v4889_v40 = vadd.f32 %v10728_v27, %v4747_v22  ;;  %v3739_v22 = vadd.f32 %v11127_v57, %v13960_v60 }
 0x46b   : > { %v4082_v63 = vadd.f32 %v4081_v51, %v3729_v54  ;;  %v5280_v1 = vpop.f32.mrf.mxu0  ;;  %v5094_v44 = vpack.c.bf16 %v5018_v8, %v5016_v37  ;;  %v4749_v62 = vadd.f32 %v13955_v11, %v4080_v38  ;;  %v4890_v6 = vadd.f32 %v10739_v20, %v4748_v12  ;;  %v13964_v38 = vld [vmem:[#allocation144_spill] sm:$0xff] }
 0x46c   : > { %7277 = vset.pattern.permute.xlu1 %v13951_v30  ;;  %v4085_v56 = vpop.f32.mrf.mxu1  ;;  %v5019_v59 = vmax.f32 %v4889_v40, 0.0  ;;  %v3745_v51 = vadd.f32 %v11147_v15, %v13964_v38  ;;  %v13975_v38 = vld [vmem:[#allocation129_spill] sm:$0xff] }
 0x46d   : > { %v4750_v26 = vadd.f32 %v13957_v34, %v4082_v63  ;;  %v4086_v2 = vadd.f32 %v4085_v56, %v3733_v19  ;;  %6397 = vperm.xlu1 %7277, %v5277_v23   ;;  %v5282_v3 = vpop.f32.mrf.mxu0  ;;  %5475 = vmatprep.mubr.bf16.mxu0 %v5094_v44  ;;  %v4891_v47 = vadd.f32 %v10728_v27, %v4749_v62  ;;  %v13961_v23 = vld [vmem:[#allocation45_spill] sm:$0xff]  ;;  %v5020_v18 = vmax.f32 %v4890_v6, 0.0  ;;  %v13965_v44 = vld [vmem:[#allocation122_spill] sm:$0xff] }
 0x46e   : > { %v4087_v16 = vpop.f32.mrf.mxu1  ;;  %7280 = vset.pattern.permute.xlu0 %v13946_v48  ;;  %v13967_v3 = vld [vmem:[#allocation150_spill] sm:$0xff] }
 0x46f   : > { %v4892_v35 = vadd.f32 %v10739_v20, %v4750_v26  ;;  %v4751_v13 = vadd.f32 %v13959_v21, %v4086_v2  ;;  %v4088_v14 = vadd.f32 %v4087_v16, %v3735_v58  ;;  %v5285_v45 = vpop.f32.mrf.mxu0  ;;  %5476 = vmatmul.mubr.bf16.gmra.mxu0 %v5093_v24  ;;  %v5021_v31 = vmax.f32 %v4891_v47, 0.0  ;;  %v13962_v24 = vld [vmem:[#allocation136_spill] sm:$0xff]  ;;  %v13966_v58 = vld [vmem:[#allocation47_spill] sm:$0xff]  ;;  %v13968_v47 = vld [vmem:[#allocation158_spill] sm:$0xff] }
 0x470   : > { %5683 = vperm.xlu0 %7280, %v5285_v45   ;;  %v4089_v49 = vpop.f32.mrf.mxu1  ;;  %v3743_v8 = vadd.f32 %v11138_v39, %v13962_v24  ;;  %v3747_v6 = vadd.f32 %v11158_v9, %v13967_v3  ;;  %v3749_v16 = vadd.f32 %v11167_v52, %v13968_v47  ;;  %v13979_v3 = vld [vmem:[#allocation125_spill] sm:$0xff] }
 0x471   : > { %v5022_v42 = vmax.f32 %v4892_v35, 0.0  ;;  %v4752_v33 = vadd.f32 %v13961_v23, %v4088_v14  ;;  %v4090_v53 = vadd.f32 %v4089_v49, %v3737_v4  ;;  %7278 = vset.pattern.permute.xlu1 %v13946_v48  ;;  %v5287_v28 = vpop.f32.mrf.mxu0  ;;  %v5095_v54 = vpack.c.bf16 %v5021_v31, %v5019_v59  ;;  %v13970_v31 = vld [vmem:[#allocation160_spill] sm:$0xff] }
 0x472   : > { %v4893_v61 = vadd.f32 %v10728_v27, %v4751_v13  ;;  %5678 = vperm.xlu1 %7278, %v5280_v1   ;;  %v4091_v37 = vpop.f32.mrf.mxu1  ;;  %v13969_v13 = vld [vmem:[#allocation119_spill] sm:$0xff]  ;;  %v3753_v49 = vadd.f32 %v11178_v32, %v13970_v31 }
 0x473   : > { %v4753_v12 = vadd.f32 %v13963_v7, %v4090_v53  ;;  %v4092_v41 = vadd.f32 %v4091_v37, %v3739_v22  ;;  %v11300_v57 = vpop.f32.mrf.mxu0  ;;  %v5096_v36 = vpack.c.bf16 %v5022_v42, %v5020_v18  ;;  %v4894_v19 = vadd.f32 %v10739_v20, %v4752_v33  ;;  %v13971_v42 = vld [vmem:[#allocation123_spill] sm:$0xff]  ;;  %v13972_v53 = vld [vmem:[#allocation168_spill] sm:$0xff]  ;;  %v13974_v37 = vld [vmem:[#allocation177_spill] sm:$0xff] }
 0x474   : > { %7281 = vset.pattern.permute.xlu0 %v13951_v30  ;;  %v4095_v55 = vpop.f32.mrf.mxu1  ;;  %v5023_v62 = vmax.f32 %v4893_v61, 0.0  ;;  %v3755_v28 = vadd.f32 %v11187_v17, %v13972_v53  ;;  %v13973_v18 = vld [vmem:[#allocation124_spill] sm:$0xff]  ;;  %v3757_v24 = vadd.f32 %v11198_v25, %v13974_v37 }
 0x475   : > { %v4895_v63 = vadd.f32 %v10728_v27, %v4753_v12  ;;  %v4754_v40 = vadd.f32 %v13965_v44, %v4092_v41  ;;  %v4096_v11 = vadd.f32 %v4095_v55, %v3743_v8  ;;  %6405 = vperm.xlu0 %7281, %v5285_v45   ;;  %v5290_v39 = vpop.f32.mrf.mxu0  ;;  %5483 = vmatprep.mubr.bf16.mxu0 %v5096_v36  ;;  %v5024_v4 = vmax.f32 %v4894_v19, 0.0 }
 0x476   : > { %7279 = vset.pattern.permute.xlu1 %v13951_v30  ;;  %v4097_v56 = vpop.f32.mrf.mxu1 }
 0x477   : > { %v5025_v43 = vmax.f32 %v4895_v63, 0.0  ;;  %v4896_v15 = vadd.f32 %v10739_v20, %v4754_v40  ;;  %v4755_v34 = vadd.f32 %v13966_v58, %v4096_v11  ;;  %v4098_v26 = vadd.f32 %v4097_v56, %v3745_v51  ;;  %6401 = vperm.xlu1 %7279, %v5280_v1   ;;  %v5293_v2 = vpop.f32.mrf.mxu0  ;;  %5484 = vmatmul.mubr.bf16.gmra.mxu0 %v5095_v54  ;;  %v13976_v63 = vld [vmem:[#allocation189_spill] sm:$0xff] }
 0x478   : > { %v4099_v5 = vpop.f32.mrf.mxu1  ;;  %v3759_v44 = vadd.f32 %v11207_v0, %v13976_v63  ;;  %v13977_v11 = vld [vmem:[#allocation49_spill] sm:$0xff] }
 0x479   : > { %v5097_v35 = vpack.c.bf16 %v5025_v43, %v5023_v62  ;;  %v5026_v21 = vmax.f32 %v4896_v15, 0.0  ;;  %v4756_v14 = vadd.f32 %v13969_v13, %v4098_v26  ;;  %7284 = vset.pattern.permute.xlu0 %v13946_v48  ;;  %v5295_v45 = vpop.f32.mrf.mxu0  ;;  %v4100_v59 = vadd.f32 %v4099_v5, %v3747_v6  ;;  %v13978_v26 = vld [vmem:[#allocation191_spill] sm:$0xff]  ;;  %v13981_v13 = vld [vmem:[#allocation130_spill] sm:$0xff] }
 0x47a   : > { %5693 = vperm.xlu0 %7284, %v5293_v2   ;;  %v4101_v1 = vpop.f32.mrf.mxu1  ;;  %v4897_v22 = vadd.f32 %v10728_v27, %v4755_v34 }
 0x47b   : > { %v4102_v60 = vadd.f32 %v4101_v1, %v3749_v16  ;;  %7282 = vset.pattern.permute.xlu1 %v13946_v48  ;;  %v11320_v9 = vpop.f32.mrf.mxu0  ;;  %v5098_v52 = vpack.c.bf16 %v5026_v21, %v5024_v4  ;;  %v4757_v23 = vadd.f32 %v13971_v42, %v4100_v59  ;;  %v4898_v8 = vadd.f32 %v10739_v20, %v4756_v14  ;;  %v13980_v16 = vld [vmem:[#allocation203_spill] sm:$0xff] }
 0x47c   : > { %5688 = vperm.xlu1 %7282, %v11300_v57   ;;  %v4105_v33 = vpop.f32.mrf.mxu1  ;;  %v5027_v36 = vmax.f32 %v4897_v22, 0.0  ;;  %v3765_v5 = vadd.f32 %v11227_v46, %v13980_v16  ;;  %v13983_v42 = vld [vmem:[#allocation215_spill] sm:$0xff] }
 0x47d   : > { %v4758_v54 = vadd.f32 %v13973_v18, %v4102_v60  ;;  %v4106_v61 = vadd.f32 %v4105_v33, %v3753_v49  ;;  %v5298_v32 = vpop.f32.mrf.mxu0  ;;  %5491 = vmatprep.mubr.bf16.mxu0 %v5098_v52  ;;  %v4899_v7 = vadd.f32 %v10728_v27, %v4757_v23  ;;  %v5028_v43 = vmax.f32 %v4898_v8, 0.0  ;;  %v13982_v49 = vld [vmem:[#allocation127_spill] sm:$0xff] }
 0x47e   : > { %7285 = vset.pattern.permute.xlu0 %v13951_v30  ;;  %v4107_v12 = vpop.f32.mrf.mxu1  ;;  %v3767_v23 = vadd.f32 %v11238_v10, %v13983_v42  ;;  %v13984_v33 = vld [vmem:[#allocation227_spill] sm:$0xff]  ;;  %v13985_v32 = vld [vmem:[#allocation132_spill] sm:$0xff] }
 0x47f   : > { %v4900_v41 = vadd.f32 %v10739_v20, %v4758_v54  ;;  %v4759_v51 = vadd.f32 %v13975_v38, %v4106_v61  ;;  %v4108_v17 = vadd.f32 %v4107_v12, %v3755_v28  ;;  %6413 = vperm.xlu0 %7285, %v5293_v2   ;;  %v5301_v55 = vpop.f32.mrf.mxu0  ;;  %5492 = vmatmul.mubr.bf16.gmra.mxu0 %v5097_v35  ;;  %v5029_v19 = vmax.f32 %v4899_v7, 0.0  ;;  %v13986_v38 = vld [vmem:[#allocation137_spill] sm:$0xff] }
 0x480   : > { %7283 = vset.pattern.permute.xlu1 %v13951_v30  ;;  %v4109_v25 = vpop.f32.mrf.mxu1  ;;  %v3763_v2 = vadd.f32 %v11218_v50, %v13978_v26  ;;  %v3769_v53 = vadd.f32 %v11247_v29, %v13984_v33 }
 0x481   : > { %v5030_v40 = vmax.f32 %v4900_v41, 0.0  ;;  %v4760_v39 = vadd.f32 %v13977_v11, %v4108_v17  ;;  %v4110_v62 = vadd.f32 %v4109_v25, %v3757_v24  ;;  %6409 = vperm.xlu1 %7283, %v11300_v57   ;;  %v5303_v56 = vpop.f32.mrf.mxu0  ;;  %v5099_v15 = vpack.c.bf16 %v5029_v19, %v5027_v36  ;;  %v13987_v36 = vld [vmem:[#allocation53_spill] sm:$0xff]  ;;  %v13988_v25 = vld [vmem:[#allocation131_spill] sm:$0xff] }
 0x482   : > { %v4901_v58 = vadd.f32 %v10728_v27, %v4759_v51  ;;  %v4111_v34 = vpop.f32.mrf.mxu1  ;;  %v13989_v63 = vrot.slane %v13988_v25, 7 }
 0x483   : > { %v4761_v6 = vadd.f32 %v13979_v3, %v4110_v62  ;;  %v4112_v47 = vadd.f32 %v4111_v34, %v3759_v44  ;;  %7288 = vset.pattern.permute.xlu0 %v13946_v48  ;;  %v11345_v0 = vpop.f32.mrf.mxu0  ;;  %v5100_v4 = vpack.c.bf16 %v5030_v40, %v5028_v43  ;;  %v4902_v35 = vadd.f32 %v10739_v20, %v4760_v39 }
 0x484   : > { %5703 = vperm.xlu0 %7288, %v5301_v55   ;;  %v4115_v57 = vpop.f32.mrf.mxu1  ;;  %v5031_v59 = vmax.f32 %v4901_v58, 0.0  ;;  %v4910_v44 = vadd.f32 %v10739_v20, %v13989_v63 }
 0x485   : > { %v4903_v21 = vadd.f32 %v10728_v27, %v4761_v6  ;;  %v4762_v14 = vadd.f32 %v13981_v13, %v4112_v47  ;;  %v4116_v50 = vadd.f32 %v4115_v57, %v3763_v2  ;;  %7286 = vset.pattern.permute.xlu1 %v13946_v48  ;;  %v5306_v45 = vpop.f32.mrf.mxu0  ;;  %5499 = vmatprep.mubr.bf16.mxu0 %v5100_v4  ;;  %v5032_v18 = vmax.f32 %v4902_v35, 0.0 }
 0x486   : > { %5698 = vperm.xlu1 %7286, %v11320_v9   ;;  %v4117_v1 = vpop.f32.mrf.mxu1  ;;  %v5040_v34 = vmax.f32 %v4910_v44, 0.0 }
 0x487   : > { %v5033_v31 = vmax.f32 %v4903_v21, 0.0  ;;  %v4904_v46 = vadd.f32 %v10739_v20, %v4762_v14  ;;  %v4763_v60 = vadd.f32 %v13982_v49, %v4116_v50  ;;  %v4118_v52 = vadd.f32 %v4117_v1, %v3765_v5  ;;  %v5309_v22 = vpop.f32.mrf.mxu0  ;;  %5500 = vmatmul.mubr.bf16.gmra.mxu0 %v5099_v15 }
 0x488   : > { %7289 = vset.pattern.permute.xlu0 %v13951_v30  ;;  %v4119_v28 = vpop.f32.mrf.mxu1  ;;  %v5106_v16 = vpack.c.bf16 %v5040_v34, %v5040_v34 }
 0x489   : > { %v5101_v54 = vpack.c.bf16 %v5033_v31, %v5031_v59  ;;  %v5034_v61 = vmax.f32 %v4904_v46, 0.0  ;;  %v4764_v37 = vadd.f32 %v13985_v32, %v4118_v52  ;;  %6421 = vperm.xlu0 %7289, %v5301_v55   ;;  %v5311_v24 = vpop.f32.mrf.mxu0  ;;  %v4120_v8 = vadd.f32 %v4119_v28, %v3767_v23 }
 0x48a   : > { %7287 = vset.pattern.permute.xlu1 %v13951_v30  ;;  %v4121_v7 = vpop.f32.mrf.mxu1  ;;  %v4905_v29 = vadd.f32 %v10728_v27, %v4763_v60 }
 0x48b   : > { %v4122_v12 = vadd.f32 %v4121_v7, %v3769_v53  ;;  %6417 = vperm.xlu1 %7287, %v11320_v9   ;;  %v5312_v10 = vpop.f32.mrf.mxu0  ;;  %v5102_v41 = vpack.c.bf16 %v5034_v61, %v5032_v18  ;;  %v4765_v51 = vadd.f32 %v13986_v38, %v4120_v8  ;;  %v4906_v17 = vadd.f32 %v10739_v20, %v4764_v37 }
 0x48c   : > { %v5035_v39 = vmax.f32 %v4905_v29, 0.0 }
 0x48d   : > { %v4766_v19 = vadd.f32 %v13987_v36, %v4122_v12  ;;  %7292 = vset.pattern.permute.xlu0 %v13946_v48  ;;  %v5314_v55 = vpop.f32.mrf.mxu0  ;;  %5507 = vmatprep.mubr.bf16.mxu0 %v5102_v41  ;;  %v4907_v9 = vadd.f32 %v10728_v27, %v4765_v51  ;;  %v5036_v56 = vmax.f32 %v4906_v17, 0.0 }
 0x48e   : > { %5713 = vperm.xlu0 %7292, %v5309_v22  }
 0x48f   : > { %v4908_v40 = vadd.f32 %v10739_v20, %v4766_v19  ;;  %7290 = vset.pattern.permute.xlu1 %v13946_v48  ;;  %v5317_v11 = vpop.f32.mrf.mxu0  ;;  %5508 = vmatmul.mubr.bf16.gmra.mxu0 %v5101_v54  ;;  %v5037_v62 = vmax.f32 %v4907_v9, 0.0  ;;  %v13990_v20 = vld [vmem:[#allocation51_spill] sm:$0xff] }
 0x490   : > { %5708 = vperm.xlu1 %7290, %v11345_v0   ;;  %v13991_v3 = vrot.slane %v13990_v20, 7 }
 0x491   : > { %v5038_v43 = vmax.f32 %v4908_v40, 0.0  ;;  %v5319_v15 = vpop.f32.mrf.mxu0  ;;  %v5103_v58 = vpack.c.bf16 %v5037_v62, %v5035_v39 }
 0x492   : > { %7293 = vset.pattern.permute.xlu0 %v13951_v30  ;;  %v4909_v6 = vadd.f32 %v10728_v27, %v13991_v3 }
 0x493   : > { %6429 = vperm.xlu0 %7293, %v5309_v22   ;;  %v5320_v26 = vpop.f32.mrf.mxu0  ;;  %v5104_v2 = vpack.c.bf16 %v5038_v43, %v5036_v56 }
 0x494   : > { %7291 = vset.pattern.permute.xlu1 %v13951_v30  ;;  %v5039_v57 = vmax.f32 %v4909_v6, 0.0 }
 0x495   : > { %6425 = vperm.xlu1 %7291, %v11345_v0   ;;  %v5322_v47 = vpop.f32.mrf.mxu0  ;;  %5515 = vmatprep.mubr.bf16.mxu0 %v5104_v2 }
 0x496   : > { %v5105_v27 = vpack.c.bf16 %v5039_v57, %v5039_v57 }
 0x497   : > { %7296 = vset.pattern.permute.xlu0 %v13946_v48  ;;  %v5325_v5 = vpop.f32.mrf.mxu0  ;;  %5516 = vmatmul.mubr.bf16.gmra.mxu0 %v5103_v58 }
 0x498   : > { %5723 = vperm.xlu0 %7296, %v5317_v11   ;;  %5523 = vmatprep.mubr.bf16.mxu0 %v5106_v16 }
 0x499   : > { %7294 = vset.pattern.permute.xlu1 %v13946_v48  ;;  %v5327_v4 = vpop.f32.mrf.mxu0 }
 0x49a   : > { %5718 = vperm.xlu1 %7294, %v5312_v10  }
 0x49b   : > { %v5328_v35 = vpop.f32.mrf.mxu0 }
 0x49c   : > { %7297 = vset.pattern.permute.xlu0 %v13951_v30 }
 0x49d   : > { %6437 = vperm.xlu0 %7297, %v5317_v11   ;;  %v5330_v0 = vpop.f32.mrf.mxu0 }
 0x49e   : > { %7295 = vset.pattern.permute.xlu1 %v13951_v30 }
 0x49f   : > { %6433 = vperm.xlu1 %7295, %v5312_v10   ;;  %v5333_v21 = vpop.f32.mrf.mxu0  ;;  %5524 = vmatmul.mubr.bf16.gmra.mxu0 %v5105_v27 }
 0x4a1   : > { %7300 = vset.pattern.permute.xlu0 %v13946_v48  ;;  %v5335_v13 = vpop.f32.mrf.mxu0 }
 0x4a2   : > { %5733 = vperm.xlu0 %7300, %v5325_v5  }
 0x4a3   : > { %7298 = vset.pattern.permute.xlu1 %v13946_v48  ;;  %v5336_v14 = vpop.f32.mrf.mxu0 }
 0x4a4   : > { %5728 = vperm.xlu1 %7298, %v5320_v26  }
 0x4a5   : > { %v5338_v50 = vpop.f32.mrf.mxu0 }
 0x4a6   : > { %7301 = vset.pattern.permute.xlu0 %v13951_v30  ;;  %v5534_v50 = vld [vmem:[%s12710_s4 + $0x18] sm:$0xff] }
 0x4a7   : > { %6445 = vperm.xlu0 %7301, %v5325_v5   ;;  %v5341_v45 = vpop.f32.mrf.mxu0 }
 0x4a8   : > { %7299 = vset.pattern.permute.xlu1 %v13951_v30 }
 0x4a9   : > { %6441 = vperm.xlu1 %7299, %v5320_v26   ;;  %v5343_v59 = vpop.f32.mrf.mxu0 }
 0x4aa   : > { %v6258_v59 = vld [vmem:[%s12711_s5] sm:$0xff] }
 0x4ab   : > { %7304 = vset.pattern.permute.xlu0 %v13946_v48  ;;  %v5344_v1 = vpop.f32.mrf.mxu0 }
 0x4ac   : > { %5743 = vperm.xlu0 %7304, %v5333_v21  }
 0x4ad   : > { %7302 = vset.pattern.permute.xlu1 %v13946_v48  ;;  %v5346_v31 = vpop.f32.mrf.mxu0 }
 0x4ae   : > { %5738 = vperm.xlu1 %7302, %v5328_v35   ;;  %v6260_v31 = vld [vmem:[%s12711_s5 + $0x10] sm:$0xff] }
 0x4af   : > { %v5349_v46 = vpop.f32.mrf.mxu0 }
 0x4b0   : > { %7305 = vset.pattern.permute.xlu0 %v13951_v30 }
 0x4b1   : > { %6453 = vperm.xlu0 %7305, %v5333_v21   ;;  %v5351_v49 = vpop.f32.mrf.mxu0 }
 0x4b2   : > { %7303 = vset.pattern.permute.xlu1 %v13951_v30 }
 0x4b3   : > { %6449 = vperm.xlu1 %7303, %v5328_v35   ;;  %v5352_v60 = vpop.f32.mrf.mxu0 }
 0x4b5   : > { %7308 = vset.pattern.permute.xlu0 %v13946_v48  ;;  %v5354_v52 = vpop.f32.mrf.mxu0 }
 0x4b6   : > { %5753 = vperm.xlu0 %7308, %v5341_v45   ;;  %v5535_v52 = vld [vmem:[%s12710_s4 + $0x20] sm:$0xff] }
 0x4b7   : > { %7306 = vset.pattern.permute.xlu1 %v13946_v48  ;;  %v5357_v22 = vpop.f32.mrf.mxu0 }
 0x4b8   : > { %5748 = vperm.xlu1 %7306, %v5336_v14  }
 0x4b9   : > { %v5359_v42 = vpop.f32.mrf.mxu0 }
 0x4ba   : > { %7309 = vset.pattern.permute.xlu0 %v13951_v30  ;;  %v6259_v42 = vld [vmem:[%s12711_s5 + $0x8] sm:$0xff] }
 0x4bb   : > { %6461 = vperm.xlu0 %7309, %v5341_v45   ;;  %v5360_v23 = vpop.f32.mrf.mxu0 }
 0x4bc   : > { %7307 = vset.pattern.permute.xlu1 %v13951_v30 }
 0x4bd   : > { %6457 = vperm.xlu1 %7307, %v5336_v14   ;;  %v5362_v33 = vpop.f32.mrf.mxu0  ;;  %v5533_v14 = vld [vmem:[%s12710_s4 + $0x10] sm:$0xff] }
 0x4bf   : > { %7312 = vset.pattern.permute.xlu0 %v13946_v48  ;;  %v5365_v53 = vpop.f32.mrf.mxu0 }
 0x4c0   : > { %5763 = vperm.xlu0 %7312, %v5349_v46  }
 0x4c1   : > { %7310 = vset.pattern.permute.xlu1 %v13946_v48  ;;  %v5367_v28 = vpop.f32.mrf.mxu0 }
 0x4c2   : > { %5758 = vperm.xlu1 %7310, %v5344_v1   ;;  %v6263_v28 = vld [vmem:[%s12711_s5 + $0x28] sm:$0xff] }
 0x4c3   : > { %v5368_v18 = vpop.f32.mrf.mxu0 }
 0x4c4   : > { %7313 = vset.pattern.permute.xlu0 %v13951_v30 }
 0x4c5   : > { %6469 = vperm.xlu0 %7313, %v5349_v46   ;;  %v5370_v54 = vpop.f32.mrf.mxu0  ;;  %v6261_v46 = vld [vmem:[%s12711_s5 + $0x18] sm:$0xff] }
 0x4c6   : > { %7311 = vset.pattern.permute.xlu1 %v13951_v30 }
 0x4c7   : > { %6465 = vperm.xlu1 %7311, %v5344_v1   ;;  %v5373_v61 = vpop.f32.mrf.mxu0  ;;  %v5531_v1 = vld [vmem:[%s12710_s4] sm:$0xff] }
 0x4c9   : > { %7316 = vset.pattern.permute.xlu0 %v13946_v48  ;;  %v5375_v32 = vpop.f32.mrf.mxu0 }
 0x4ca   : > { %5773 = vperm.xlu0 %7316, %v5357_v22  }
 0x4cb   : > { %7314 = vset.pattern.permute.xlu1 %v13946_v48  ;;  %v5376_v37 = vpop.f32.mrf.mxu0 }
 0x4cc   : > { %5768 = vperm.xlu1 %7314, %v5352_v60  }
 0x4cd   : > { %v5378_v24 = vpop.f32.mrf.mxu0 }
 0x4ce   : > { %7317 = vset.pattern.permute.xlu0 %v13951_v30  ;;  %v5538_v24 = vld [vmem:[%s12710_s4 + $0x38] sm:$0xff] }
 0x4cf   : > { %6477 = vperm.xlu0 %7317, %v5357_v22   ;;  %v5381_v8 = vpop.f32.mrf.mxu0  ;;  %v5536_v22 = vld [vmem:[%s12710_s4 + $0x28] sm:$0xff] }
 0x4d0   : > { %7315 = vset.pattern.permute.xlu1 %v13951_v30 }
 0x4d1   : > { %6473 = vperm.xlu1 %7315, %v5352_v60   ;;  %v5383_v7 = vpop.f32.mrf.mxu0  ;;  %v5532_v60 = vld [vmem:[%s12710_s4 + $0x8] sm:$0xff] }
 0x4d3   : > { %7320 = vset.pattern.permute.xlu0 %v13946_v48  ;;  %v5384_v12 = vpop.f32.mrf.mxu0 }
 0x4d4   : > { %5783 = vperm.xlu0 %7320, %v5365_v53  }
 0x4d5   : > { %7318 = vset.pattern.permute.xlu1 %v13946_v48  ;;  %v5386_v10 = vpop.f32.mrf.mxu0 }
 0x4d6   : > { %5778 = vperm.xlu1 %7318, %v5360_v23  }
 0x4d7   : > { %v5389_v41 = vpop.f32.mrf.mxu0 }
 0x4d8   : > { %7321 = vset.pattern.permute.xlu0 %v13951_v30 }
 0x4d9   : > { %6485 = vperm.xlu0 %7321, %v5365_v53   ;;  %v5391_v29 = vpop.f32.mrf.mxu0  ;;  %v6262_v53 = vld [vmem:[%s12711_s5 + $0x20] sm:$0xff] }
 0x4da   : > { %7319 = vset.pattern.permute.xlu1 %v13951_v30  ;;  %v6265_v29 = vld [vmem:[%s12711_s5 + $0x38] sm:$0xff] }
 0x4db   : > { %v11410_v38 = vpop.permute.xlu0 %5663  ;;  %6481 = vperm.xlu1 %7319, %v5360_v23   ;;  %v11412_v51 = vpop.f32.mrf.mxu0 }
 0x4dc   : > { %v11415_v36 = vpop.permute.xlu1 %6389  ;;  %v5987_v7 = vmul.f32 %v11410_v38, %v5532_v60 }
 0x4dd   : > { %7324 = vset.pattern.permute.xlu0 %v13946_v48  ;;  %v5394_v17 = vpop.f32.mrf.mxu0 }
 0x4de   : > { %5793 = vperm.xlu0 %7324, %v5373_v61  }
 0x4df   : > { %7322 = vset.pattern.permute.xlu1 %v13946_v48  ;;  %v5397_v19 = vpop.f32.mrf.mxu0  ;;  %v11418_v55 = vpop.permute.xlu0 %5668 }
 0x4e0   : > { %5788 = vperm.xlu1 %7322, %v5368_v18   ;;  %v5988_v23 = vmul.f32 %v11418_v55, %v5533_v14  ;;  %v5989_v33 = vmul.f32 %v11418_v55, %v5534_v50  ;;  %v5539_v50 = vld [vmem:[%s12710_s4 + $0x40] sm:$0xff] }
 0x4e1   : > { %v5399_v25 = vpop.f32.mrf.mxu0 }
 0x4e2   : > { %7325 = vset.pattern.permute.xlu0 %v13951_v30 }
 0x4e3   : > { %v11421_v63 = vpop.permute.xlu1 %5673  ;;  %6493 = vperm.xlu0 %7325, %v5373_v61   ;;  %v11423_v44 = vpop.f32.mrf.mxu0 }
 0x4e4   : > { %7323 = vset.pattern.permute.xlu1 %v13951_v30  ;;  %v11426_v40 = vpop.permute.xlu0 %6393  ;;  %v5991_v10 = vmul.f32 %v11421_v63, %v5536_v22 }
 0x4e5   : > { %6489 = vperm.xlu1 %7323, %v5368_v18   ;;  %v5402_v9 = vpop.f32.mrf.mxu0  ;;  %v6650_v61 = vmul.f32 %v11426_v40, %v6260_v31  ;;  %v6651_v32 = vmul.f32 %v11426_v40, %v6261_v46  ;;  %v5541_v46 = vld [vmem:[%s12710_s4 + $0x50] sm:$0xff] }
 0x4e6   : > { %v6187_v9 = vadd.f32 %v5989_v33, %v5987_v7  ;;  %v6269_v33 = vld [vmem:[%s12711_s5 + $0x58] sm:$0xff] }
 0x4e7   : > { %7328 = vset.pattern.permute.xlu0 %v13946_v48  ;;  %v11429_v11 = vpop.f32.mrf.mxu0 }
 0x4e8   : > { %v11431_v39 = vpop.permute.xlu1 %6397  ;;  %5803 = vperm.xlu0 %7328, %v5381_v8   ;;  %v6188_v14 = vadd.f32 %v6187_v9, %v5991_v10 }
 0x4e9   : > { %7326 = vset.pattern.permute.xlu1 %v13946_v48  ;;  %v5407_v62 = vpop.f32.mrf.mxu0  ;;  %v6652_v55 = vmul.f32 %v11431_v39, %v6262_v53  ;;  %v6653_v25 = vmul.f32 %v11431_v39, %v6263_v28 }
 0x4ea   : > { %5798 = vperm.xlu1 %7326, %v5376_v37  }
 0x4eb   : > { %v11434_v56 = vpop.permute.xlu0 %5683  ;;  %v11436_v43 = vpop.f32.mrf.mxu0 }
 0x4ec   : > { %7329 = vset.pattern.permute.xlu0 %v13951_v30 }
 0x4ed   : > { %v11439_v15 = vpop.permute.xlu1 %5678  ;;  %6501 = vperm.xlu0 %7329, %v5381_v8   ;;  %v5410_v58 = vpop.f32.mrf.mxu0  ;;  %v5986_v8 = vmul.f32 %v11410_v38, %v5531_v1  ;;  %v6649_v38 = vmul.f32 %v11415_v36, %v6259_v42  ;;  %v6267_v42 = vld [vmem:[%s12711_s5 + $0x48] sm:$0xff] }
 0x4ee   : > { %7327 = vset.pattern.permute.xlu1 %v13951_v30  ;;  %v5993_v62 = vmul.f32 %v11439_v15, %v5538_v24 }
 0x4ef   : > { %6497 = vperm.xlu1 %7327, %v5376_v37   ;;  %v11442_v34 = vpop.f32.mrf.mxu0  ;;  %v5537_v37 = vld [vmem:[%s12710_s4 + $0x30] sm:$0xff] }
 0x4f0   : > { %v11444_v26 = vpop.permute.xlu0 %6405  ;;  %v5992_v40 = vmul.f32 %v11439_v15, %v5537_v37  ;;  %v5540_v15 = vld [vmem:[%s12710_s4 + $0x48] sm:$0xff]  ;;  %v6189_v22 = vadd.f32 %v6188_v14, %v5993_v62 }
 0x4f1   : > { %7332 = vset.pattern.permute.xlu0 %v13946_v48  ;;  %v5415_v2 = vpop.f32.mrf.mxu0  ;;  %v6657_v10 = vmul.f32 %v11444_v26, %v6267_v42  ;;  %v6271_v62 = vld [vmem:[%s12711_s5 + $0x68] sm:$0xff] }
 0x4f2   : > { %v11447_v20 = vpop.permute.xlu1 %6401  ;;  %5813 = vperm.xlu0 %7332, %v5389_v41  }
 0x4f3   : > { %7330 = vset.pattern.permute.xlu1 %v13946_v48  ;;  %v11450_v3 = vpop.f32.mrf.mxu0 }
 0x4f4   : > { %5808 = vperm.xlu1 %7330, %v5384_v12  }
 0x4f5   : > { %v11452_v6 = vpop.permute.xlu0 %5693  ;;  %v5418_v47 = vpop.f32.mrf.mxu0 }
 0x4f6   : > { %7333 = vset.pattern.permute.xlu0 %v13951_v30  ;;  %v6849_v47 = vadd.f32 %v6651_v32, %v6649_v38  ;;  %v5995_v32 = vmul.f32 %v11434_v56, %v5540_v15 }
 0x4f7   : > { %v11455_v16 = vpop.permute.xlu1 %5688  ;;  %6509 = vperm.xlu0 %7333, %v5389_v41   ;;  %v11457_v5 = vpop.f32.mrf.mxu0  ;;  %v6264_v41 = vld [vmem:[%s12711_s5 + $0x30] sm:$0xff] }
 0x4f8   : > { %7331 = vset.pattern.permute.xlu1 %v13951_v30  ;;  %v6850_v31 = vadd.f32 %v6849_v47, %v6653_v25  ;;  %v5996_v37 = vmul.f32 %v11455_v16, %v5541_v46  ;;  %v5545_v25 = vld [vmem:[%s12710_s4 + $0x70] sm:$0xff]  ;;  %v6273_v47 = vld [vmem:[%s12711_s5 + $0x78] sm:$0xff] }
 0x4f9   : > { %6505 = vperm.xlu1 %7331, %v5384_v12   ;;  %v5423_v57 = vpop.f32.mrf.mxu0  ;;  %v5990_v12 = vmul.f32 %v11421_v63, %v5535_v52  ;;  %v6116_v63 = vadd.f32 %v5988_v23, %v5986_v8  ;;  %v6268_v23 = vld [vmem:[%s12711_s5 + $0x50] sm:$0xff] }
 0x4fa   : > { %v11460_v4 = vpop.permute.xlu0 %6413  ;;  %v6655_v57 = vmul.f32 %v11447_v20, %v6265_v29 }
 0x4fb   : > { %7336 = vset.pattern.permute.xlu0 %v13946_v48  ;;  %v11463_v35 = vpop.f32.mrf.mxu0  ;;  %v6117_v39 = vadd.f32 %v6116_v63, %v5990_v12  ;;  %v5546_v63 = vld [vmem:[%s12710_s4 + $0x78] sm:$0xff]  ;;  %v6661_v46 = vmul.f32 %v11460_v4, %v6271_v62 }
 0x4fc   : > { %v11465_v27 = vpop.permute.xlu1 %6409  ;;  %5823 = vperm.xlu0 %7336, %v5397_v19  }
 0x4fd   : > { %7334 = vset.pattern.permute.xlu1 %v13946_v48  ;;  %v5426_v0 = vpop.f32.mrf.mxu0  ;;  %v6118_v52 = vadd.f32 %v6117_v39, %v5992_v40  ;;  %v6659_v29 = vmul.f32 %v11465_v27, %v6269_v33 }
 0x4fe   : > { %5818 = vperm.xlu1 %7334, %v11412_v51  }
 0x4ff   : > { %v11469_v21 = vpop.permute.xlu0 %5703  ;;  %v11471_v13 = vpop.f32.mrf.mxu0 }
 0x500   : > { %7337 = vset.pattern.permute.xlu0 %v13951_v30 }
 0x501   : > { %v11480_v45 = vpop.permute.xlu1 %5698  ;;  %6517 = vperm.xlu0 %7337, %v5397_v19   ;;  %v5431_v49 = vpop.f32.mrf.mxu0  ;;  %v6648_v19 = vmul.f32 %v11415_v36, %v6258_v59  ;;  %v6654_v36 = vmul.f32 %v11447_v20, %v6264_v41  ;;  %v6266_v20 = vld [vmem:[%s12711_s5 + $0x40] sm:$0xff]  ;;  %v6658_v41 = vmul.f32 %v11465_v27, %v6268_v23 }
 0x502   : > { %7335 = vset.pattern.permute.xlu1 %v13951_v30  ;;  %v5542_v49 = vld [vmem:[%s12710_s4 + $0x58] sm:$0xff]  ;;  %v6656_v12 = vmul.f32 %v11444_v26, %v6266_v20  ;;  %v6270_v26 = vld [vmem:[%s12711_s5 + $0x60] sm:$0xff] }
 0x503   : > { %6513 = vperm.xlu1 %7335, %v11412_v51   ;;  %v11516_v18 = vpop.f32.mrf.mxu0  ;;  %v6778_v2 = vadd.f32 %v6650_v61, %v6648_v19  ;;  %v5994_v61 = vmul.f32 %v11434_v56, %v5539_v50  ;;  %v5997_v24 = vmul.f32 %v11455_v16, %v5542_v49  ;;  %v5544_v56 = vld [vmem:[%s12710_s4 + $0x68] sm:$0xff]  ;;  %v6660_v20 = vmul.f32 %v11460_v4, %v6270_v26  ;;  %v6274_v4 = vld [vmem:[%s12711_s5 + $0x80] sm:$0xff] }
 0x504   : > { %v11518_v54 = vpop.permute.xlu0 %6421  ;;  %v5999_v15 = vmul.f32 %v11452_v6, %v5544_v56 }
 0x505   : > { %7340 = vset.pattern.permute.xlu0 %v13946_v48  ;;  %v5434_v51 = vpop.f32.mrf.mxu0  ;;  %v6779_v1 = vadd.f32 %v6778_v2, %v6652_v55  ;;  %v6119_v16 = vadd.f32 %v6118_v52, %v5994_v61  ;;  %v6272_v2 = vld [vmem:[%s12711_s5 + $0x70] sm:$0xff] }
 0x506   : > { %v11539_v17 = vpop.permute.xlu1 %6417  ;;  %5833 = vperm.xlu0 %7340, %v11429_v11   ;;  %v6190_v51 = vadd.f32 %v6189_v22, %v5995_v32 }
 0x507   : > { %7338 = vset.pattern.permute.xlu1 %v13946_v48  ;;  %v11549_v58 = vpop.f32.mrf.mxu0  ;;  %v6780_v28 = vadd.f32 %v6779_v1, %v6654_v36  ;;  %v6120_v9 = vadd.f32 %v6119_v16, %v5996_v37  ;;  %v6001_v1 = vmul.f32 %v11480_v45, %v5546_v63  ;;  %v6662_v49 = vmul.f32 %v11539_v17, %v6272_v2  ;;  %v6275_v37 = vld [vmem:[%s12711_s5 + $0x88] sm:$0xff] }
 0x508   : > { %5828 = vperm.xlu1 %7338, %v11423_v44   ;;  %v6191_v40 = vadd.f32 %v6190_v51, %v5997_v24  ;;  %v6663_v52 = vmul.f32 %v11539_v17, %v6273_v47  ;;  %v6276_v24 = vld [vmem:[%s12711_s5 + $0x90] sm:$0xff] }
 0x509   : > { %v11554_v0 = vpop.permute.xlu0 %5713  ;;  %v5439_v59 = vpop.f32.mrf.mxu0  ;;  %v6781_v27 = vadd.f32 %v6780_v28, %v6656_v12  ;;  %v5553_v47 = vld [vmem:[%s12710_s4 + $0xb0] sm:$0xff] }
 0x50a   : > { %7341 = vset.pattern.permute.xlu0 %v13951_v30  ;;  %v6000_v59 = vmul.f32 %v11480_v45, %v5545_v25  ;;  %v5548_v45 = vld [vmem:[%s12710_s4 + $0x88] sm:$0xff]  ;;  %v6192_v23 = vadd.f32 %v6191_v40, %v5999_v15 }
 0x50b   : > { %v11572_v60 = vpop.permute.xlu1 %5708  ;;  %6525 = vperm.xlu0 %7341, %v11429_v11   ;;  %v11584_v53 = vpop.f32.mrf.mxu0  ;;  %v6851_v11 = vadd.f32 %v6850_v31, %v6655_v57  ;;  %v6782_v57 = vadd.f32 %v6781_v27, %v6658_v41  ;;  %v6664_v27 = vmul.f32 %v11518_v54, %v6274_v4  ;;  %v6279_v15 = vld [vmem:[%s12711_s5 + $0xa8] sm:$0xff] }
 0x50c   : > { %7339 = vset.pattern.permute.xlu1 %v13951_v30  ;;  %v6193_v32 = vadd.f32 %v6192_v23, %v6001_v1  ;;  %v6281_v1 = vld [vmem:[%s12711_s5 + $0xb8] sm:$0xff] }
 0x50d   : > { %6521 = vperm.xlu1 %7339, %v11423_v44   ;;  %v5442_v8 = vpop.f32.mrf.mxu0  ;;  %v5543_v44 = vld [vmem:[%s12710_s4 + $0x60] sm:$0xff]  ;;  %v6852_v55 = vadd.f32 %v6851_v11, %v6657_v10  ;;  %v6783_v17 = vadd.f32 %v6782_v57, %v6660_v20  ;;  %v5550_v11 = vld [vmem:[%s12710_s4 + $0x98] sm:$0xff] }
 0x50e   : > { %v11592_v7 = vpop.permute.xlu0 %6429  ;;  %v5998_v50 = vmul.f32 %v11452_v6, %v5543_v44  ;;  %v5547_v6 = vld [vmem:[%s12710_s4 + $0x80] sm:$0xff]  ;;  %v6277_v8 = vld [vmem:[%s12711_s5 + $0x98] sm:$0xff]  ;;  %v6003_v44 = vmul.f32 %v11469_v21, %v5548_v45  ;;  %v6005_v16 = vmul.f32 %v11572_v60, %v5550_v11 }
 0x50f   : > { %7344 = vset.pattern.permute.xlu0 %v13946_v48  ;;  %v11605_v19 = vpop.f32.mrf.mxu0  ;;  %v6853_v39 = vadd.f32 %v6852_v55, %v6659_v29  ;;  %v6784_v41 = vadd.f32 %v6783_v17, %v6662_v49  ;;  %v6002_v29 = vmul.f32 %v11469_v21, %v5547_v6  ;;  %v6665_v55 = vmul.f32 %v11518_v54, %v6275_v37  ;;  %v5551_v21 = vld [vmem:[%s12710_s4 + $0xa0] sm:$0xff] }
 0x510   : > { %v6426_v38 = vpop.permute.xlu1 %6425  ;;  %5843 = vperm.xlu0 %7344, %v11442_v34   ;;  %v6121_v42 = vadd.f32 %v6120_v9, %v5998_v50  ;;  %v6194_v40 = vadd.f32 %v6193_v32, %v6003_v44  ;;  %v6278_v54 = vld [vmem:[%s12711_s5 + $0xa0] sm:$0xff]  ;;  %v6006_v6 = vmul.f32 %v11554_v0, %v5551_v21  ;;  %v6669_v17 = vmul.f32 %v11592_v7, %v6279_v15 }
 0x511   : > { %7342 = vset.pattern.permute.xlu1 %v13946_v48  ;;  %v5447_v36 = vpop.f32.mrf.mxu0  ;;  %v6854_v28 = vadd.f32 %v6853_v39, %v6661_v46  ;;  %v6666_v25 = vmul.f32 %v6426_v38, %v6276_v24  ;;  %v6667_v63 = vmul.f32 %v6426_v38, %v6277_v8  ;;  %v6785_v38 = vadd.f32 %v6784_v41, %v6664_v27  ;;  %v5558_v8 = vld [vmem:[%s12710_s4 + $0xd8] sm:$0xff] }
 0x512   : > { %5838 = vperm.xlu1 %7342, %v11436_v43   ;;  %v6122_v61 = vadd.f32 %v6121_v42, %v6000_v59  ;;  %v5554_v36 = vld [vmem:[%s12710_s4 + $0xb8] sm:$0xff]  ;;  %v6195_v50 = vadd.f32 %v6194_v40, %v6005_v16  ;;  %v6280_v59 = vld [vmem:[%s12711_s5 + $0xb0] sm:$0xff]  ;;  %v6668_v4 = vmul.f32 %v11592_v7, %v6278_v54  ;;  %v6282_v7 = vld [vmem:[%s12711_s5 + $0xc0] sm:$0xff] }
 0x513   : > { %v11628_v14 = vpop.permute.xlu0 %5723  ;;  %v11634_v31 = vpop.f32.mrf.mxu0  ;;  %v6786_v46 = vadd.f32 %v6785_v38, %v6666_v25  ;;  %v6285_v16 = vld [vmem:[%s12711_s5 + $0xd8] sm:$0xff] }
 0x514   : > { %7345 = vset.pattern.permute.xlu0 %v13951_v30  ;;  %v6123_v9 = vadd.f32 %v6122_v61, %v6002_v29  ;;  %v6283_v29 = vld [vmem:[%s12711_s5 + $0xc8] sm:$0xff] }
 0x515   : > { %v5719_v22 = vpop.permute.xlu1 %5718  ;;  %6533 = vperm.xlu0 %7345, %v11442_v34   ;;  %v5450_v33 = vpop.f32.mrf.mxu0  ;;  %v5549_v34 = vld [vmem:[%s12710_s4 + $0x90] sm:$0xff]  ;;  %v6787_v37 = vadd.f32 %v6786_v46, %v6668_v4 }
 0x516   : > { %7343 = vset.pattern.permute.xlu1 %v13951_v30  ;;  %v6004_v56 = vmul.f32 %v11572_v60, %v5549_v34  ;;  %v5552_v60 = vld [vmem:[%s12710_s4 + $0xa8] sm:$0xff]  ;;  %v6008_v42 = vmul.f32 %v5719_v22, %v5553_v47  ;;  %v6009_v23 = vmul.f32 %v5719_v22, %v5554_v36  ;;  %v5559_v47 = vld [vmem:[%s12710_s4 + $0xe0] sm:$0xff] }
 0x517   : > { %6529 = vperm.xlu1 %7343, %v11436_v43   ;;  %v11668_v12 = vpop.f32.mrf.mxu0  ;;  %v6855_v43 = vadd.f32 %v6854_v28, %v6663_v52  ;;  %v6007_v45 = vmul.f32 %v11554_v0, %v5552_v60  ;;  %v5556_v0 = vld [vmem:[%s12710_s4 + $0xc8] sm:$0xff] }
 0x518   : > { %v11670_v10 = vpop.permute.xlu0 %6437  ;;  %v6124_v39 = vadd.f32 %v6123_v9, %v6004_v56  ;;  %v6284_v56 = vld [vmem:[%s12711_s5 + $0xd0] sm:$0xff]  ;;  %v6011_v25 = vmul.f32 %v11628_v14, %v5556_v0 }
 0x519   : > { %7348 = vset.pattern.permute.xlu0 %v13946_v48  ;;  %v5455_v51 = vpop.f32.mrf.mxu0  ;;  %v6856_v2 = vadd.f32 %v6855_v43, %v6665_v55  ;;  %v6196_v11 = vadd.f32 %v6195_v50, %v6007_v45  ;;  %v6672_v9 = vmul.f32 %v11670_v10, %v6282_v7  ;;  %v6673_v40 = vmul.f32 %v11670_v10, %v6283_v29  ;;  %v5561_v10 = vld [vmem:[%s12710_s4 + $0xf0] sm:$0xff] }
 0x51a   : > { %v6434_v26 = vpop.permute.xlu1 %6433  ;;  %5853 = vperm.xlu0 %7348, %v11457_v5   ;;  %v6125_v22 = vadd.f32 %v6124_v39, %v6006_v6  ;;  %v6287_v6 = vld [vmem:[%s12711_s5 + $0xe8] sm:$0xff]  ;;  %v6288_v0 = vld [vmem:[%s12711_s5 + $0xf0] sm:$0xff] }
 0x51b   : > { %7346 = vset.pattern.permute.xlu1 %v13946_v48  ;;  %v11687_v62 = vpop.f32.mrf.mxu0  ;;  %v6857_v49 = vadd.f32 %v6856_v2, %v6667_v63  ;;  %v6670_v28 = vmul.f32 %v6434_v26, %v6280_v59  ;;  %v6671_v34 = vmul.f32 %v6434_v26, %v6281_v1  ;;  %v6197_v43 = vadd.f32 %v6196_v11, %v6009_v23  ;;  %v5562_v1 = vld [vmem:[%s12710_s4 + $0xf8] sm:$0xff] }
 0x51c   : > { %5848 = vperm.xlu1 %7346, %v11450_v3   ;;  %v6126_v41 = vadd.f32 %v6125_v22, %v6008_v42  ;;  %v6289_v22 = vld [vmem:[%s12711_s5 + $0xf8] sm:$0xff] }
 0x51d   : > { %v11699_v57 = vpop.permute.xlu0 %5733  ;;  %v5458_v20 = vpop.f32.mrf.mxu0  ;;  %v6858_v24 = vadd.f32 %v6857_v49, %v6669_v17  ;;  %v6788_v26 = vadd.f32 %v6787_v37, %v6670_v28  ;;  %v6198_v39 = vadd.f32 %v6197_v43, %v6011_v25  ;;  %v6291_v37 = vld [vmem:[%s12711_s5 + $0x108] sm:$0xff] }
 0x51e   : > { %7349 = vset.pattern.permute.xlu0 %v13951_v30  ;;  %v6014_v4 = vmul.f32 %v11699_v57, %v5559_v47  ;;  %v5567_v47 = vld [vmem:[%s12710_s4 + $0x120] sm:$0xff] }
 0x51f   : > { %v5729_v52 = vpop.permute.xlu1 %5728  ;;  %6541 = vperm.xlu0 %7349, %v11457_v5   ;;  %v11714_v33 = vpop.f32.mrf.mxu0  ;;  %v5555_v5 = vld [vmem:[%s12710_s4 + $0xc0] sm:$0xff]  ;;  %v6859_v27 = vadd.f32 %v6858_v24, %v6671_v34  ;;  %v6789_v15 = vadd.f32 %v6788_v26, %v6672_v9  ;;  %v5566_v9 = vld [vmem:[%s12710_s4 + $0x118] sm:$0xff] }
 0x520   : > { %7347 = vset.pattern.permute.xlu1 %v13951_v30  ;;  %v6010_v55 = vmul.f32 %v11628_v14, %v5555_v5  ;;  %v6013_v21 = vmul.f32 %v5729_v52, %v5558_v8  ;;  %v5560_v14 = vld [vmem:[%s12710_s4 + $0xe8] sm:$0xff] }
 0x521   : > { %6537 = vperm.xlu1 %7347, %v11450_v3   ;;  %v5463_v61 = vpop.f32.mrf.mxu0  ;;  %v5557_v3 = vld [vmem:[%s12710_s4 + $0xd0] sm:$0xff]  ;;  %v6860_v59 = vadd.f32 %v6859_v27, %v6673_v40  ;;  %v5564_v8 = vld [vmem:[%s12710_s4 + $0x108] sm:$0xff] }
 0x522   : > { %v6446_v32 = vpop.permute.xlu0 %6445  ;;  %v6012_v63 = vmul.f32 %v5729_v52, %v5557_v3  ;;  %v6127_v36 = vadd.f32 %v6126_v41, %v6010_v55  ;;  %v6199_v49 = vadd.f32 %v6198_v39, %v6013_v21  ;;  %v6286_v52 = vld [vmem:[%s12711_s5 + $0xe0] sm:$0xff] }
 0x523   : > { %7352 = vset.pattern.permute.xlu0 %v13946_v48  ;;  %v11739_v44 = vpop.f32.mrf.mxu0  ;;  %v6676_v11 = vmul.f32 %v6446_v32, %v6286_v52  ;;  %v6677_v61 = vmul.f32 %v6446_v32, %v6287_v6  ;;  %v5563_v32 = vld [vmem:[%s12710_s4 + $0x100] sm:$0xff] }
 0x524   : > { %v6442_v51 = vpop.permute.xlu1 %6441  ;;  %5863 = vperm.xlu0 %7352, %v11471_v13   ;;  %v6128_v46 = vadd.f32 %v6127_v36, %v6012_v63  ;;  %v5568_v36 = vld [vmem:[%s12710_s4 + $0x128] sm:$0xff] }
 0x525   : > { %7350 = vset.pattern.permute.xlu1 %v13946_v48  ;;  %v5466_v60 = vpop.f32.mrf.mxu0  ;;  %v6674_v54 = vmul.f32 %v6442_v51, %v6284_v56  ;;  %v6675_v38 = vmul.f32 %v6442_v51, %v6285_v16 }
 0x526   : > { %5858 = vperm.xlu1 %7350, %v11463_v35   ;;  %v5565_v60 = vld [vmem:[%s12710_s4 + $0x110] sm:$0xff] }
 0x527   : > { %v5744_v2 = vpop.permute.xlu0 %5743  ;;  %v11757_v50 = vpop.f32.mrf.mxu0  ;;  %v6790_v42 = vadd.f32 %v6789_v15, %v6674_v54  ;;  %v6861_v23 = vadd.f32 %v6860_v59, %v6675_v38 }
 0x528   : > { %7353 = vset.pattern.permute.xlu0 %v13951_v30  ;;  %v6018_v40 = vmul.f32 %v5744_v2, %v5563_v32  ;;  %v6019_v54 = vmul.f32 %v5744_v2, %v5564_v8  ;;  %v5571_v8 = vld [vmem:[%s12710_s4 + $0x140] sm:$0xff] }
 0x529   : > { %v5739_v20 = vpop.permute.xlu1 %5738  ;;  %6549 = vperm.xlu0 %7353, %v11471_v13   ;;  %v5471_v45 = vpop.f32.mrf.mxu0  ;;  %v6015_v13 = vmul.f32 %v11699_v57, %v5560_v14  ;;  %v6290_v57 = vld [vmem:[%s12711_s5 + $0x100] sm:$0xff]  ;;  %v6791_v41 = vadd.f32 %v6790_v42, %v6676_v11  ;;  %v6862_v43 = vadd.f32 %v6861_v23, %v6677_v61  ;;  %v6293_v23 = vld [vmem:[%s12711_s5 + $0x118] sm:$0xff] }
 0x52a   : > { %7351 = vset.pattern.permute.xlu1 %v13951_v30  ;;  %v6016_v17 = vmul.f32 %v5739_v20, %v5561_v10  ;;  %v6017_v28 = vmul.f32 %v5739_v20, %v5562_v1 }
 0x52b   : > { %6545 = vperm.xlu1 %7351, %v11463_v35   ;;  %v11780_v34 = vpop.f32.mrf.mxu0  ;;  %v6129_v35 = vadd.f32 %v6128_v46, %v6014_v4  ;;  %v6200_v7 = vadd.f32 %v6199_v49, %v6015_v13  ;;  %v6295_v4 = vld [vmem:[%s12711_s5 + $0x128] sm:$0xff] }
 0x52c   : > { %v6454_v5 = vpop.permute.xlu0 %6453 }
 0x52d   : > { %7356 = vset.pattern.permute.xlu0 %v13946_v48  ;;  %v5474_v24 = vpop.f32.mrf.mxu0  ;;  %v6130_v16 = vadd.f32 %v6129_v35, %v6016_v17  ;;  %v6201_v51 = vadd.f32 %v6200_v7, %v6017_v28  ;;  %v6680_v27 = vmul.f32 %v6454_v5, %v6290_v57  ;;  %v6681_v55 = vmul.f32 %v6454_v5, %v6291_v37 }
 0x52e   : > { %v6450_v3 = vpop.permute.xlu1 %6449  ;;  %5873 = vperm.xlu0 %7356, %v11549_v58   ;;  %v5569_v24 = vld [vmem:[%s12710_s4 + $0x130] sm:$0xff] }
 0x52f   : > { %v6678_v29 = vmul.f32 %v6450_v3, %v6288_v0  ;;  %v6679_v56 = vmul.f32 %v6450_v3, %v6289_v22  ;;  %7354 = vset.pattern.permute.xlu1 %v13946_v48  ;;  %v11803_v26 = vpop.f32.mrf.mxu0  ;;  %v6131_v59 = vadd.f32 %v6130_v16, %v6018_v40  ;;  %v6202_v10 = vadd.f32 %v6201_v51, %v6019_v54  ;;  %v5570_v3 = vld [vmem:[%s12710_s4 + $0x138] sm:$0xff]  ;;  %v6299_v54 = vld [vmem:[%s12711_s5 + $0x148] sm:$0xff] }
 0x530   : > { %5868 = vperm.xlu1 %7354, %v11516_v18   ;;  %v6297_v40 = vld [vmem:[%s12711_s5 + $0x138] sm:$0xff] }
 0x531   : > { %v6792_v25 = vadd.f32 %v6791_v41, %v6678_v29  ;;  %v6863_v63 = vadd.f32 %v6862_v43, %v6679_v56  ;;  %v5754_v21 = vpop.permute.xlu0 %5753  ;;  %v5479_v38 = vpop.f32.mrf.mxu0  ;;  %v5572_v41 = vld [vmem:[%s12710_s4 + $0x148] sm:$0xff] }
 0x532   : > { %7357 = vset.pattern.permute.xlu0 %v13951_v30  ;;  %v6022_v46 = vmul.f32 %v5754_v21, %v5567_v47  ;;  %v6023_v49 = vmul.f32 %v5754_v21, %v5568_v36 }
 0x533   : > { %v5749_v39 = vpop.permute.xlu1 %5748  ;;  %6557 = vperm.xlu0 %7357, %v11549_v58   ;;  %v6793_v14 = vadd.f32 %v6792_v25, %v6680_v27  ;;  %v6864_v15 = vadd.f32 %v6863_v63, %v6681_v55  ;;  %v11820_v20 = vpop.f32.mrf.mxu0  ;;  %v6292_v58 = vld [vmem:[%s12711_s5 + $0x110] sm:$0xff] }
 0x534   : > { %v6020_v1 = vmul.f32 %v5749_v39, %v5565_v60  ;;  %v6021_v2 = vmul.f32 %v5749_v39, %v5566_v9  ;;  %7355 = vset.pattern.permute.xlu1 %v13951_v30 }
 0x535   : > { %6553 = vperm.xlu1 %7355, %v11516_v18   ;;  %v5482_v45 = vpop.f32.mrf.mxu0  ;;  %v6294_v18 = vld [vmem:[%s12711_s5 + $0x120] sm:$0xff] }
 0x536   : > { %v6132_v52 = vadd.f32 %v6131_v59, %v6020_v1  ;;  %v6203_v6 = vadd.f32 %v6202_v10, %v6021_v2  ;;  %v6462_v42 = vpop.permute.xlu0 %6461 }
 0x537   : > { %7360 = vset.pattern.permute.xlu0 %v13946_v48  ;;  %v11837_v13 = vpop.f32.mrf.mxu0  ;;  %v6684_v61 = vmul.f32 %v6462_v42, %v6294_v18  ;;  %v6685_v35 = vmul.f32 %v6462_v42, %v6295_v4  ;;  %v5575_v42 = vld [vmem:[%s12710_s4 + $0x160] sm:$0xff] }
 0x538   : > { %v6458_v17 = vpop.permute.xlu1 %6457  ;;  %5883 = vperm.xlu0 %7360, %v11605_v19   ;;  %v6133_v28 = vadd.f32 %v6132_v52, %v6022_v46  ;;  %v6204_v5 = vadd.f32 %v6203_v6, %v6023_v49  ;;  %v5573_v52 = vld [vmem:[%s12710_s4 + $0x150] sm:$0xff]  ;;  %v5574_v6 = vld [vmem:[%s12710_s4 + $0x158] sm:$0xff] }
 0x539   : > { %v6682_v0 = vmul.f32 %v6458_v17, %v6292_v58  ;;  %v6683_v22 = vmul.f32 %v6458_v17, %v6293_v23  ;;  %7358 = vset.pattern.permute.xlu1 %v13946_v48  ;;  %v5487_v11 = vpop.f32.mrf.mxu0  ;;  %v5576_v58 = vld [vmem:[%s12710_s4 + $0x168] sm:$0xff] }
 0x53a   : > { %5878 = vperm.xlu1 %7358, %v11584_v53  }
 0x53b   : > { %v6794_v7 = vadd.f32 %v6793_v14, %v6682_v0  ;;  %v6865_v57 = vadd.f32 %v6864_v15, %v6683_v22  ;;  %v5764_v37 = vpop.permute.xlu0 %5763  ;;  %v11848_v32 = vpop.f32.mrf.mxu0 }
 0x53c   : > { %7361 = vset.pattern.permute.xlu0 %v13951_v30  ;;  %v6026_v55 = vmul.f32 %v5764_v37, %v5571_v8  ;;  %v6027_v25 = vmul.f32 %v5764_v37, %v5572_v41  ;;  %v6303_v37 = vld [vmem:[%s12711_s5 + $0x168] sm:$0xff] }
 0x53d   : > { %v5759_v43 = vpop.permute.xlu1 %5758  ;;  %6565 = vperm.xlu0 %7361, %v11605_v19   ;;  %v6795_v29 = vadd.f32 %v6794_v7, %v6684_v61  ;;  %v6866_v56 = vadd.f32 %v6865_v57, %v6685_v35  ;;  %v5490_v27 = vpop.f32.mrf.mxu0  ;;  %v6296_v19 = vld [vmem:[%s12711_s5 + $0x130] sm:$0xff]  ;;  %v6301_v57 = vld [vmem:[%s12711_s5 + $0x158] sm:$0xff] }
 0x53e   : > { %v6024_v16 = vmul.f32 %v5759_v43, %v5569_v24  ;;  %v6025_v51 = vmul.f32 %v5759_v43, %v5570_v3  ;;  %7359 = vset.pattern.permute.xlu1 %v13951_v30 }
 0x53f   : > { %6561 = vperm.xlu1 %7359, %v11584_v53   ;;  %v11860_v60 = vpop.f32.mrf.mxu0  ;;  %v6298_v53 = vld [vmem:[%s12711_s5 + $0x140] sm:$0xff] }
 0x540   : > { %v6134_v63 = vadd.f32 %v6133_v28, %v6024_v16  ;;  %v6205_v21 = vadd.f32 %v6204_v5, %v6025_v51  ;;  %v6470_v9 = vpop.permute.xlu0 %6469 }
 0x541   : > { %7364 = vset.pattern.permute.xlu0 %v13946_v48  ;;  %v5495_v38 = vpop.f32.mrf.mxu0  ;;  %v6688_v10 = vmul.f32 %v6470_v9, %v6298_v53  ;;  %v6689_v1 = vmul.f32 %v6470_v9, %v6299_v54 }
 0x542   : > { %v6466_v47 = vpop.permute.xlu1 %6465  ;;  %5893 = vperm.xlu0 %7364, %v11668_v12   ;;  %v6135_v36 = vadd.f32 %v6134_v63, %v6026_v55  ;;  %v6206_v39 = vadd.f32 %v6205_v21, %v6027_v25  ;;  %v5577_v63 = vld [vmem:[%s12710_s4 + $0x170] sm:$0xff]  ;;  %v5578_v21 = vld [vmem:[%s12710_s4 + $0x178] sm:$0xff] }
 0x543   : > { %v6686_v14 = vmul.f32 %v6466_v47, %v6296_v19  ;;  %v6687_v15 = vmul.f32 %v6466_v47, %v6297_v40  ;;  %7362 = vset.pattern.permute.xlu1 %v13946_v48  ;;  %v11877_v59 = vpop.f32.mrf.mxu0  ;;  %v5579_v19 = vld [vmem:[%s12710_s4 + $0x180] sm:$0xff]  ;;  %v5580_v40 = vld [vmem:[%s12710_s4 + $0x188] sm:$0xff] }
 0x544   : > { %5888 = vperm.xlu1 %7362, %v11634_v31  }
 0x545   : > { %v6796_v2 = vadd.f32 %v6795_v29, %v6686_v14  ;;  %v6867_v46 = vadd.f32 %v6866_v56, %v6687_v15  ;;  %v5774_v49 = vpop.permute.xlu0 %5773  ;;  %v5498_v45 = vpop.f32.mrf.mxu0 }
 0x546   : > { %7365 = vset.pattern.permute.xlu0 %v13951_v30  ;;  %v6030_v0 = vmul.f32 %v5774_v49, %v5575_v42  ;;  %v6031_v22 = vmul.f32 %v5774_v49, %v5576_v58  ;;  %v6305_v49 = vld [vmem:[%s12711_s5 + $0x178] sm:$0xff] }
 0x547   : > { %v5769_v23 = vpop.permute.xlu1 %5768  ;;  %6573 = vperm.xlu0 %7365, %v11668_v12   ;;  %v6797_v18 = vadd.f32 %v6796_v2, %v6688_v10  ;;  %v6868_v4 = vadd.f32 %v6867_v46, %v6689_v1  ;;  %v11894_v5 = vpop.f32.mrf.mxu0  ;;  %v6300_v12 = vld [vmem:[%s12711_s5 + $0x150] sm:$0xff] }
 0x548   : > { %v6028_v17 = vmul.f32 %v5769_v23, %v5573_v52  ;;  %v6029_v28 = vmul.f32 %v5769_v23, %v5574_v6  ;;  %7363 = vset.pattern.permute.xlu1 %v13951_v30  ;;  %v6307_v52 = vld [vmem:[%s12711_s5 + $0x188] sm:$0xff] }
 0x549   : > { %6569 = vperm.xlu1 %7363, %v11634_v31   ;;  %v5503_v35 = vpop.f32.mrf.mxu0  ;;  %v6302_v31 = vld [vmem:[%s12711_s5 + $0x160] sm:$0xff] }
 0x54a   : > { %v6136_v11 = vadd.f32 %v6135_v36, %v6028_v17  ;;  %v6207_v61 = vadd.f32 %v6206_v39, %v6029_v28  ;;  %v6478_v7 = vpop.permute.xlu0 %6477  ;;  %v5582_v35 = vld [vmem:[%s12710_s4 + $0x198] sm:$0xff] }
 0x54b   : > { %7368 = vset.pattern.permute.xlu0 %v13946_v48  ;;  %v11911_v24 = vpop.f32.mrf.mxu0  ;;  %v6692_v16 = vmul.f32 %v6478_v7, %v6302_v31  ;;  %v6693_v51 = vmul.f32 %v6478_v7, %v6303_v37 }
 0x54c   : > { %v6474_v3 = vpop.permute.xlu1 %6473  ;;  %5903 = vperm.xlu0 %7368, %v11714_v33   ;;  %v6137_v8 = vadd.f32 %v6136_v11, %v6030_v0  ;;  %v6208_v41 = vadd.f32 %v6207_v61, %v6031_v22  ;;  %v5581_v61 = vld [vmem:[%s12710_s4 + $0x190] sm:$0xff] }
 0x54d   : > { %v6690_v43 = vmul.f32 %v6474_v3, %v6300_v12  ;;  %v6691_v29 = vmul.f32 %v6474_v3, %v6301_v57  ;;  %7366 = vset.pattern.permute.xlu1 %v13946_v48  ;;  %v5506_v56 = vpop.f32.mrf.mxu0  ;;  %v5583_v12 = vld [vmem:[%s12710_s4 + $0x1a0] sm:$0xff]  ;;  %v5584_v57 = vld [vmem:[%s12710_s4 + $0x1a8] sm:$0xff] }
 0x54e   : > { %5898 = vperm.xlu1 %7366, %v11687_v62  }
 0x54f   : > { %v6798_v27 = vadd.f32 %v6797_v18, %v6690_v43  ;;  %v6869_v55 = vadd.f32 %v6868_v4, %v6691_v29  ;;  %v5784_v25 = vpop.permute.xlu0 %5783  ;;  %v11922_v9 = vpop.f32.mrf.mxu0 }
 0x550   : > { %7369 = vset.pattern.permute.xlu0 %v13951_v30  ;;  %v6034_v14 = vmul.f32 %v5784_v25, %v5579_v19  ;;  %v6035_v15 = vmul.f32 %v5784_v25, %v5580_v40  ;;  %v6309_v25 = vld [vmem:[%s12711_s5 + $0x198] sm:$0xff] }
 0x551   : > { %v5779_v53 = vpop.permute.xlu1 %5778  ;;  %6581 = vperm.xlu0 %7369, %v11714_v33   ;;  %v6799_v54 = vadd.f32 %v6798_v27, %v6692_v16  ;;  %v6870_v38 = vadd.f32 %v6869_v55, %v6693_v51  ;;  %v5511_v39 = vpop.f32.mrf.mxu0  ;;  %v6304_v33 = vld [vmem:[%s12711_s5 + $0x170] sm:$0xff] }
 0x552   : > { %v6032_v47 = vmul.f32 %v5779_v53, %v5577_v63  ;;  %v6033_v36 = vmul.f32 %v5779_v53, %v5578_v21  ;;  %7367 = vset.pattern.permute.xlu1 %v13951_v30  ;;  %v6311_v63 = vld [vmem:[%s12711_s5 + $0x1a8] sm:$0xff] }
 0x553   : > { %6577 = vperm.xlu1 %7367, %v11687_v62   ;;  %v11934_v2 = vpop.f32.mrf.mxu0  ;;  %v6306_v62 = vld [vmem:[%s12711_s5 + $0x180] sm:$0xff] }
 0x554   : > { %v6138_v10 = vadd.f32 %v6137_v8, %v6032_v47  ;;  %v6209_v1 = vadd.f32 %v6208_v41, %v6033_v36  ;;  %v6486_v46 = vpop.permute.xlu0 %6485 }
 0x555   : > { %7372 = vset.pattern.permute.xlu0 %v13946_v48  ;;  %v5514_v6 = vpop.f32.mrf.mxu0  ;;  %v6696_v17 = vmul.f32 %v6486_v46, %v6306_v62  ;;  %v6697_v28 = vmul.f32 %v6486_v46, %v6307_v52  ;;  %v5586_v46 = vld [vmem:[%s12710_s4 + $0x1b8] sm:$0xff]  ;;  %v5588_v62 = vld [vmem:[%s12710_s4 + $0x1c8] sm:$0xff] }
 0x556   : > { %v6482_v45 = vpop.permute.xlu1 %6481  ;;  %5913 = vperm.xlu0 %7372, %v11757_v50   ;;  %v6139_v42 = vadd.f32 %v6138_v10, %v6034_v14  ;;  %v6210_v58 = vadd.f32 %v6209_v1, %v6035_v15  ;;  %v5585_v1 = vld [vmem:[%s12710_s4 + $0x1b0] sm:$0xff] }
 0x557   : > { %v6694_v23 = vmul.f32 %v6482_v45, %v6304_v33  ;;  %v6695_v18 = vmul.f32 %v6482_v45, %v6305_v49  ;;  %7370 = vset.pattern.permute.xlu1 %v13946_v48  ;;  %v11951_v4 = vpop.f32.mrf.mxu0  ;;  %v5587_v49 = vld [vmem:[%s12710_s4 + $0x1c0] sm:$0xff] }
 0x558   : > { %5908 = vperm.xlu1 %7370, %v11739_v44  }
 0x559   : > { %v6800_v0 = vadd.f32 %v6799_v54, %v6694_v23  ;;  %v6871_v22 = vadd.f32 %v6870_v38, %v6695_v18  ;;  %v5794_v11 = vpop.permute.xlu0 %5793  ;;  %v5519_v7 = vpop.f32.mrf.mxu0 }
 0x55a   : > { %7373 = vset.pattern.permute.xlu0 %v13951_v30  ;;  %v6038_v29 = vmul.f32 %v5794_v11, %v5583_v12  ;;  %v6039_v56 = vmul.f32 %v5794_v11, %v5584_v57  ;;  %v6312_v11 = vld [vmem:[%s12711_s5 + $0x1b0] sm:$0xff] }
 0x55b   : > { %v5789_v31 = vpop.permute.xlu1 %5788  ;;  %6589 = vperm.xlu0 %7373, %v11757_v50   ;;  %v6801_v37 = vadd.f32 %v6800_v0, %v6696_v17  ;;  %v6872_v3 = vadd.f32 %v6871_v22, %v6697_v28  ;;  %v11968_v43 = vpop.f32.mrf.mxu0  ;;  %v6308_v50 = vld [vmem:[%s12711_s5 + $0x190] sm:$0xff] }
 0x55c   : > { %v6036_v8 = vmul.f32 %v5789_v31, %v5581_v61  ;;  %v6037_v41 = vmul.f32 %v5789_v31, %v5582_v35  ;;  %7371 = vset.pattern.permute.xlu1 %v13951_v30  ;;  %v6314_v61 = vld [vmem:[%s12711_s5 + $0x1c0] sm:$0xff] }
 0x55d   : > { %6585 = vperm.xlu1 %7371, %v11739_v44   ;;  %v5522_v27 = vpop.f32.mrf.mxu0  ;;  %v6310_v44 = vld [vmem:[%s12711_s5 + $0x1a0] sm:$0xff] }
 0x55e   : > { %v6140_v16 = vadd.f32 %v6139_v42, %v6036_v8  ;;  %v6211_v51 = vadd.f32 %v6210_v58, %v6037_v41  ;;  %v6494_v55 = vpop.permute.xlu0 %6493  ;;  %v5592_v27 = vld [vmem:[%s12710_s4 + $0x1e8] sm:$0xff] }
 0x55f   : > { %7376 = vset.pattern.permute.xlu0 %v13946_v48  ;;  %v11985_v21 = vpop.f32.mrf.mxu0  ;;  %v6700_v36 = vmul.f32 %v6494_v55, %v6310_v44  ;;  %v6701_v39 = vmul.f32 %v6494_v55, %v6311_v63 }
 0x560   : > { %v6490_v19 = vpop.permute.xlu1 %6489  ;;  %5923 = vperm.xlu0 %7376, %v11803_v26   ;;  %v6141_v40 = vadd.f32 %v6140_v16, %v6038_v29  ;;  %v6212_v53 = vadd.f32 %v6211_v51, %v6039_v56  ;;  %v5589_v56 = vld [vmem:[%s12710_s4 + $0x1d0] sm:$0xff]  ;;  %v5590_v16 = vld [vmem:[%s12710_s4 + $0x1d8] sm:$0xff]  ;;  %v5591_v51 = vld [vmem:[%s12710_s4 + $0x1e0] sm:$0xff] }
 0x561   : > { %v6698_v54 = vmul.f32 %v6490_v19, %v6308_v50  ;;  %v6699_v38 = vmul.f32 %v6490_v19, %v6309_v25  ;;  %7374 = vset.pattern.permute.xlu1 %v13946_v48  ;;  %v5527_v47 = vpop.f32.mrf.mxu0 }
 0x562   : > { %5918 = vperm.xlu1 %7374, %v11780_v34   ;;  %v6316_v47 = vld [vmem:[%s12711_s5 + $0x1d0] sm:$0xff] }
 0x563   : > { %v6802_v14 = vadd.f32 %v6801_v37, %v6698_v54  ;;  %v6873_v15 = vadd.f32 %v6872_v3, %v6699_v38  ;;  %v5804_v10 = vpop.permute.xlu0 %5803  ;;  %v5528_v33 = vpop.f32.mrf.mxu0 }
 0x564   : > { %7377 = vset.pattern.permute.xlu0 %v13951_v30  ;;  %v6042_v18 = vmul.f32 %v5804_v10, %v5587_v49  ;;  %v6043_v17 = vmul.f32 %v5804_v10, %v5588_v62 }
 0x565   : > { %v5799_v52 = vpop.permute.xlu1 %5798  ;;  %6597 = vperm.xlu0 %7377, %v11803_v26   ;;  %v6803_v6 = vadd.f32 %v6802_v14, %v6700_v36  ;;  %v6874_v45 = vadd.f32 %v6873_v15, %v6701_v39  ;;  %v5529_v23 = vpop.f32.mrf.mxu0  ;;  %v6313_v26 = vld [vmem:[%s12711_s5 + $0x1b8] sm:$0xff]  ;;  %v6318_v36 = vld [vmem:[%s12711_s5 + $0x1e0] sm:$0xff] }
 0x566   : > { %v6040_v42 = vmul.f32 %v5799_v52, %v5585_v1  ;;  %v6041_v58 = vmul.f32 %v5799_v52, %v5586_v46  ;;  %7375 = vset.pattern.permute.xlu1 %v13951_v30 }
 0x567   : > { %6593 = vperm.xlu1 %7375, %v11780_v34   ;;  %v6315_v34 = vld [vmem:[%s12711_s5 + $0x1c8] sm:$0xff] }
 0x568   : > { %v6142_v28 = vadd.f32 %v6141_v40, %v6040_v42  ;;  %v6213_v0 = vadd.f32 %v6212_v53, %v6041_v58  ;;  %v6502_v22 = vpop.permute.xlu0 %6501  ;;  %v5595_v42 = vld [vmem:[%s12710_s4 + $0x200] sm:$0xff]  ;;  %v5596_v58 = vld [vmem:[%s12710_s4 + $0x208] sm:$0xff] }
 0x569   : > { %7380 = vset.pattern.permute.xlu0 %v13946_v48  ;;  %v6704_v37 = vmul.f32 %v6502_v22, %v6314_v61  ;;  %v6705_v3 = vmul.f32 %v6502_v22, %v6315_v34 }
 0x56a   : > { %v6498_v35 = vpop.permute.xlu1 %6497  ;;  %5933 = vperm.xlu0 %7380, %v11837_v13   ;;  %v6143_v7 = vadd.f32 %v6142_v28, %v6042_v18  ;;  %v6214_v12 = vadd.f32 %v6213_v0, %v6043_v17 }
 0x56b   : > { %v6702_v57 = vmul.f32 %v6498_v35, %v6312_v11  ;;  %v6703_v31 = vmul.f32 %v6498_v35, %v6313_v26  ;;  %7378 = vset.pattern.permute.xlu1 %v13946_v48  ;;  %v6320_v35 = vld [vmem:[%s12711_s5 + $0x1f0] sm:$0xff] }
 0x56c   : > { %5928 = vperm.xlu1 %7378, %v11820_v20  }
 0x56d   : > { %v6804_v8 = vadd.f32 %v6803_v6, %v6702_v57  ;;  %v6875_v41 = vadd.f32 %v6874_v45, %v6703_v31  ;;  %v5814_v29 = vpop.permute.xlu0 %5813  ;;  %v5593_v6 = vld [vmem:[%s12710_s4 + $0x1f0] sm:$0xff]  ;;  %v5594_v45 = vld [vmem:[%s12710_s4 + $0x1f8] sm:$0xff] }
 0x56e   : > { %7381 = vset.pattern.permute.xlu0 %v13951_v30  ;;  %v6046_v19 = vmul.f32 %v5814_v29, %v5591_v51  ;;  %v6047_v40 = vmul.f32 %v5814_v29, %v5592_v27  ;;  %v5597_v51 = vld [vmem:[%s12710_s4 + $0x210] sm:$0xff]  ;;  %v5598_v27 = vld [vmem:[%s12710_s4 + $0x218] sm:$0xff] }
 0x56f   : > { %v5809_v55 = vpop.permute.xlu1 %5808  ;;  %6605 = vperm.xlu0 %7381, %v11837_v13   ;;  %v6805_v50 = vadd.f32 %v6804_v8, %v6704_v37  ;;  %v6876_v25 = vadd.f32 %v6875_v41, %v6705_v3  ;;  %v6317_v13 = vld [vmem:[%s12711_s5 + $0x1d8] sm:$0xff] }
 0x570   : > { %v6044_v44 = vmul.f32 %v5809_v55, %v5589_v56  ;;  %v6045_v63 = vmul.f32 %v5809_v55, %v5590_v16  ;;  %7379 = vset.pattern.permute.xlu1 %v13951_v30  ;;  %v5599_v55 = vld [vmem:[%s12710_s4 + $0x220] sm:$0xff] }
 0x571   : > { %6601 = vperm.xlu1 %7379, %v11820_v20   ;;  %v6319_v20 = vld [vmem:[%s12711_s5 + $0x1e8] sm:$0xff] }
 0x572   : > { %v6144_v53 = vadd.f32 %v6143_v7, %v6044_v44  ;;  %v6215_v54 = vadd.f32 %v6214_v12, %v6045_v63  ;;  %v6510_v38 = vpop.permute.xlu0 %6509  ;;  %v6322_v7 = vld [vmem:[%s12711_s5 + $0x200] sm:$0xff] }
 0x573   : > { %7384 = vset.pattern.permute.xlu0 %v13946_v48  ;;  %v6708_v46 = vmul.f32 %v6510_v38, %v6318_v36  ;;  %v6709_v33 = vmul.f32 %v6510_v38, %v6319_v20 }
 0x574   : > { %v6506_v39 = vpop.permute.xlu1 %6505  ;;  %5943 = vperm.xlu0 %7384, %v11860_v60   ;;  %v6145_v14 = vadd.f32 %v6144_v53, %v6046_v19  ;;  %v6216_v15 = vadd.f32 %v6215_v54, %v6047_v40 }
 0x575   : > { %v6706_v10 = vmul.f32 %v6506_v39, %v6316_v47  ;;  %v6707_v1 = vmul.f32 %v6506_v39, %v6317_v13  ;;  %7382 = vset.pattern.permute.xlu1 %v13946_v48 }
 0x576   : > { %5938 = vperm.xlu1 %7382, %v11848_v32  }
 0x577   : > { %v6806_v49 = vadd.f32 %v6805_v50, %v6706_v10  ;;  %v6877_v62 = vadd.f32 %v6876_v25, %v6707_v1  ;;  %v5824_v52 = vpop.permute.xlu0 %5823  ;;  %v5600_v50 = vld [vmem:[%s12710_s4 + $0x228] sm:$0xff] }
 0x578   : > { %7385 = vset.pattern.permute.xlu0 %v13951_v30  ;;  %v6050_v22 = vmul.f32 %v5824_v52, %v5595_v42  ;;  %v6051_v11 = vmul.f32 %v5824_v52, %v5596_v58  ;;  %v6324_v58 = vld [vmem:[%s12711_s5 + $0x210] sm:$0xff] }
 0x579   : > { %v5819_v23 = vpop.permute.xlu1 %5818  ;;  %6613 = vperm.xlu0 %7385, %v11860_v60   ;;  %v6807_v18 = vadd.f32 %v6806_v49, %v6708_v46  ;;  %v6878_v17 = vadd.f32 %v6877_v62, %v6709_v33  ;;  %v6321_v60 = vld [vmem:[%s12711_s5 + $0x1f8] sm:$0xff] }
 0x57a   : > { %v6048_v28 = vmul.f32 %v5819_v23, %v5593_v6  ;;  %v6049_v0 = vmul.f32 %v5819_v23, %v5594_v45  ;;  %7383 = vset.pattern.permute.xlu1 %v13951_v30  ;;  %v6325_v23 = vld [vmem:[%s12711_s5 + $0x218] sm:$0xff] }
 0x57b   : > { %6609 = vperm.xlu1 %7383, %v11848_v32   ;;  %v6323_v32 = vld [vmem:[%s12711_s5 + $0x208] sm:$0xff] }
 0x57c   : > { %v6146_v26 = vadd.f32 %v6145_v14, %v6048_v28  ;;  %v6217_v61 = vadd.f32 %v6216_v15, %v6049_v0  ;;  %v6518_v34 = vpop.permute.xlu0 %6517 }
 0x57d   : > { %7388 = vset.pattern.permute.xlu0 %v13946_v48  ;;  %v6712_v8 = vmul.f32 %v6518_v34, %v6322_v7  ;;  %v6713_v41 = vmul.f32 %v6518_v34, %v6323_v32  ;;  %v6326_v34 = vld [vmem:[%s12711_s5 + $0x220] sm:$0xff]  ;;  %v6328_v7 = vld [vmem:[%s12711_s5 + $0x230] sm:$0xff]  ;;  %v6329_v32 = vld [vmem:[%s12711_s5 + $0x238] sm:$0xff] }
 0x57e   : > { %v6514_v12 = vpop.permute.xlu1 %6513  ;;  %5953 = vperm.xlu0 %7388, %v11894_v5   ;;  %v6147_v57 = vadd.f32 %v6146_v26, %v6050_v22  ;;  %v6218_v31 = vadd.f32 %v6217_v61, %v6051_v11 }
 0x57f   : > { %v6710_v37 = vmul.f32 %v6514_v12, %v6320_v35  ;;  %v6711_v3 = vmul.f32 %v6514_v12, %v6321_v60  ;;  %7386 = vset.pattern.permute.xlu1 %v13946_v48  ;;  %v6327_v35 = vld [vmem:[%s12711_s5 + $0x228] sm:$0xff]  ;;  %v5603_v60 = vld [vmem:[%s12710_s4 + $0x240] sm:$0xff] }
 0x580   : > { %5948 = vperm.xlu1 %7386, %v11877_v59  }
 0x581   : > { %v6808_v29 = vadd.f32 %v6807_v18, %v6710_v37  ;;  %v6879_v56 = vadd.f32 %v6878_v17, %v6711_v3  ;;  %v5834_v16 = vpop.permute.xlu0 %5833  ;;  %v5601_v18 = vld [vmem:[%s12710_s4 + $0x230] sm:$0xff]  ;;  %v5602_v17 = vld [vmem:[%s12710_s4 + $0x238] sm:$0xff] }
 0x582   : > { %7389 = vset.pattern.permute.xlu0 %v13951_v30  ;;  %v6054_v53 = vmul.f32 %v5834_v16, %v5599_v55  ;;  %v6055_v54 = vmul.f32 %v5834_v16, %v5600_v50  ;;  %v5605_v37 = vld [vmem:[%s12710_s4 + $0x250] sm:$0xff]  ;;  %v5606_v3 = vld [vmem:[%s12710_s4 + $0x258] sm:$0xff] }
 0x583   : > { %v5829_v25 = vpop.permute.xlu1 %5828  ;;  %6621 = vperm.xlu0 %7389, %v11894_v5   ;;  %v12100_v44 = vadd.f32 %v6808_v29, %v6712_v8  ;;  %v12102_v63 = vadd.f32 %v6879_v56, %v6713_v41 }
 0x584   : > { %v6052_v19 = vmul.f32 %v5829_v25, %v5597_v51  ;;  %v6053_v40 = vmul.f32 %v5829_v25, %v5598_v27  ;;  %7387 = vset.pattern.permute.xlu1 %v13951_v30 }
 0x585   : > { %6617 = vperm.xlu1 %7387, %v11877_v59  }
 0x586   : > { %v6148_v38 = vadd.f32 %v6147_v57, %v6052_v19  ;;  %v6219_v47 = vadd.f32 %v6218_v31, %v6053_v40  ;;  %v12106_v13 = vpop.permute.xlu0 %6525  ;;  %v5604_v31 = vld [vmem:[%s12710_s4 + $0x248] sm:$0xff]  ;;  %v6330_v19 = vld [vmem:[%s12711_s5 + $0x240] sm:$0xff] }
 0x587   : > { %7392 = vset.pattern.permute.xlu0 %v13946_v48  ;;  %v6716_v56 = vmul.f32 %v12106_v13, %v6326_v34  ;;  %v6717_v16 = vmul.f32 %v12106_v13, %v6327_v35  ;;  %v6331_v40 = vld [vmem:[%s12711_s5 + $0x248] sm:$0xff] }
 0x588   : > { %v6522_v36 = vpop.permute.xlu1 %6521  ;;  %5963 = vperm.xlu0 %7392, %v11922_v9   ;;  %v12110_v5 = vadd.f32 %v6148_v38, %v6054_v53  ;;  %v12112_v20 = vadd.f32 %v6219_v47, %v6055_v54  ;;  %v5607_v38 = vld [vmem:[%s12710_s4 + $0x260] sm:$0xff] }
 0x589   : > { %7390 = vset.pattern.permute.xlu1 %v13946_v48  ;;  %v6714_v0 = vmul.f32 %v6522_v36, %v6324_v58  ;;  %v6715_v22 = vmul.f32 %v6522_v36, %v6325_v23  ;;  %v6332_v36 = vld [vmem:[%s12711_s5 + $0x250] sm:$0xff]  ;;  %v5610_v58 = vld [vmem:[%s12710_s4 + $0x278] sm:$0xff] }
 0x58a   : > { %5958 = vperm.xlu1 %7390, %v11911_v24  }
 0x58b   : > { %v12116_v59 = vpop.permute.xlu0 %5843  ;;  %v6810_v12 = vadd.f32 %v12100_v44, %v6714_v0  ;;  %v6881_v57 = vadd.f32 %v12102_v63, %v6715_v22 }
 0x58c   : > { %7393 = vset.pattern.permute.xlu0 %v13951_v30  ;;  %v6058_v50 = vmul.f32 %v12116_v59, %v5603_v60  ;;  %v6059_v25 = vmul.f32 %v12116_v59, %v5604_v31 }
 0x58d   : > { %v5839_v39 = vpop.permute.xlu1 %5838  ;;  %6629 = vperm.xlu0 %7393, %v11922_v9   ;;  %v6811_v53 = vadd.f32 %v6810_v12, %v6716_v56  ;;  %v6882_v54 = vadd.f32 %v6881_v57, %v6717_v16  ;;  %v5612_v56 = vld [vmem:[%s12710_s4 + $0x288] sm:$0xff]  ;;  %v5613_v16 = vld [vmem:[%s12710_s4 + $0x290] sm:$0xff] }
 0x58e   : > { %7391 = vset.pattern.permute.xlu1 %v13951_v30  ;;  %v6056_v11 = vmul.f32 %v5839_v39, %v5601_v18  ;;  %v6057_v26 = vmul.f32 %v5839_v39, %v5602_v17 }
 0x58f   : > { %6625 = vperm.xlu1 %7391, %v11911_v24  }
 0x590   : > { %v12122_v14 = vpop.permute.xlu0 %6533  ;;  %v6150_v41 = vadd.f32 %v12110_v5, %v6056_v11  ;;  %v6221_v29 = vadd.f32 %v12112_v20, %v6057_v26  ;;  %v6333_v5 = vld [vmem:[%s12711_s5 + $0x258] sm:$0xff] }
 0x591   : > { %7396 = vset.pattern.permute.xlu0 %v13946_v48  ;;  %v6720_v0 = vmul.f32 %v12122_v14, %v6330_v19  ;;  %v6721_v22 = vmul.f32 %v12122_v14, %v6331_v40  ;;  %v6335_v14 = vld [vmem:[%s12711_s5 + $0x268] sm:$0xff] }
 0x592   : > { %v6530_v15 = vpop.permute.xlu1 %6529  ;;  %5973 = vperm.xlu0 %7396, %v11951_v4   ;;  %v6151_v47 = vadd.f32 %v6150_v41, %v6058_v50  ;;  %v6222_v13 = vadd.f32 %v6221_v29, %v6059_v25 }
 0x593   : > { %7394 = vset.pattern.permute.xlu1 %v13946_v48  ;;  %v6718_v51 = vmul.f32 %v6530_v15, %v6328_v7  ;;  %v6719_v27 = vmul.f32 %v6530_v15, %v6329_v32  ;;  %v5608_v15 = vld [vmem:[%s12710_s4 + $0x268] sm:$0xff]  ;;  %v6334_v32 = vld [vmem:[%s12711_s5 + $0x260] sm:$0xff] }
 0x594   : > { %5968 = vperm.xlu1 %7394, %v11934_v2  }
 0x595   : > { %v12128_v10 = vpop.permute.xlu0 %5853  ;;  %v6812_v59 = vadd.f32 %v6811_v53, %v6718_v51  ;;  %v6883_v39 = vadd.f32 %v6882_v54, %v6719_v27  ;;  %v5614_v51 = vld [vmem:[%s12710_s4 + $0x298] sm:$0xff] }
 0x596   : > { %7397 = vset.pattern.permute.xlu0 %v13951_v30  ;;  %v6062_v34 = vmul.f32 %v12128_v10, %v5607_v38  ;;  %v6063_v35 = vmul.f32 %v12128_v10, %v5608_v15  ;;  %v5611_v10 = vld [vmem:[%s12710_s4 + $0x280] sm:$0xff]  ;;  %v6341_v15 = vld [vmem:[%s12711_s5 + $0x298] sm:$0xff] }
 0x597   : > { %v5849_v9 = vpop.permute.xlu1 %5848  ;;  %6637 = vperm.xlu0 %7397, %v11951_v4   ;;  %v6813_v12 = vadd.f32 %v6812_v59, %v6720_v0  ;;  %v6884_v57 = vadd.f32 %v6883_v39, %v6721_v22  ;;  %v5617_v0 = vld [vmem:[%s12710_s4 + $0x2b0] sm:$0xff]  ;;  %v5618_v22 = vld [vmem:[%s12710_s4 + $0x2b8] sm:$0xff] }
 0x598   : > { %7395 = vset.pattern.permute.xlu1 %v13951_v30  ;;  %v6060_v44 = vmul.f32 %v5849_v9, %v5605_v37  ;;  %v6061_v63 = vmul.f32 %v5849_v9, %v5606_v3  ;;  %v5609_v9 = vld [vmem:[%s12710_s4 + $0x270] sm:$0xff]  ;;  %v6337_v3 = vld [vmem:[%s12711_s5 + $0x278] sm:$0xff] }
 0x599   : > { %6633 = vperm.xlu1 %7395, %v11934_v2  }
 0x59a   : > { %v12134_v24 = vpop.permute.xlu0 %6541  ;;  %v6152_v23 = vadd.f32 %v6151_v47, %v6060_v44  ;;  %v6223_v18 = vadd.f32 %v6222_v13, %v6061_v63 }
 0x59b   : > { %7399 = vset.pattern.permute.xlu0 %v13946_v48  ;;  %v6724_v44 = vmul.f32 %v12134_v24, %v6334_v32  ;;  %v6725_v63 = vmul.f32 %v12134_v24, %v6335_v14  ;;  %v6339_v24 = vld [vmem:[%s12711_s5 + $0x288] sm:$0xff] }
 0x59c   : > { %v12137_v1 = vpop.permute.xlu1 %6537  ;;  %5983 = vperm.xlu0 %7399, %v11985_v21   ;;  %v6224_v37 = vadd.f32 %v6223_v18, %v6063_v35  ;;  %v5616_v18 = vld [vmem:[%s12710_s4 + $0x2a8] sm:$0xff] }
 0x59d   : > { %7398 = vset.pattern.permute.xlu1 %v13946_v48  ;;  %v6722_v11 = vmul.f32 %v12137_v1, %v6332_v36  ;;  %v6723_v26 = vmul.f32 %v12137_v1, %v6333_v5  ;;  %v6153_v1 = vadd.f32 %v6152_v23, %v6062_v34  ;;  %v6338_v36 = vld [vmem:[%s12711_s5 + $0x280] sm:$0xff] }
 0x59e   : > { %5978 = vperm.xlu1 %7398, %v11968_v43  }
 0x59f   : > { %v12142_v46 = vpop.permute.xlu0 %5863  ;;  %v6814_v41 = vadd.f32 %v6813_v12, %v6722_v11  ;;  %v6885_v29 = vadd.f32 %v6884_v57, %v6723_v26 }
 0x5a0   : > { %7401 = vset.pattern.permute.xlu0 %v13951_v30  ;;  %v6066_v53 = vmul.f32 %v12142_v46, %v5611_v10  ;;  %v6067_v54 = vmul.f32 %v12142_v46, %v5612_v56  ;;  %v5615_v46 = vld [vmem:[%s12710_s4 + $0x2a0] sm:$0xff] }
 0x5a1   : > { %v12145_v4 = vpop.permute.xlu1 %5858  ;;  %6645 = vperm.xlu0 %7401, %v11985_v21   ;;  %v6815_v5 = vadd.f32 %v6814_v41, %v6724_v44 }
 0x5a2   : > { %7400 = vset.pattern.permute.xlu1 %v13951_v30  ;;  %v6064_v60 = vmul.f32 %v12145_v4, %v5609_v9  ;;  %v6065_v7 = vmul.f32 %v12145_v4, %v5610_v58  ;;  %v6336_v4 = vld [vmem:[%s12711_s5 + $0x270] sm:$0xff] }
 0x5a3   : > { %6641 = vperm.xlu1 %7400, %v11968_v43  }
 0x5a4   : > { %v12150_v2 = vpop.permute.xlu0 %6549  ;;  %v6154_v50 = vadd.f32 %v6153_v1, %v6064_v60  ;;  %v6225_v25 = vadd.f32 %v6224_v37, %v6065_v7  ;;  %v6342_v1 = vld [vmem:[%s12711_s5 + $0x2a0] sm:$0xff] }
 0x5a5   : > { %v6728_v34 = vmul.f32 %v12150_v2, %v6338_v36  ;;  %v6729_v35 = vmul.f32 %v12150_v2, %v6339_v24  ;;  %v6343_v2 = vld [vmem:[%s12711_s5 + $0x2a8] sm:$0xff] }
 0x5a6   : > { %v12152_v33 = vpop.permute.xlu1 %6545  ;;  %v6155_v59 = vadd.f32 %v6154_v50, %v6066_v53  ;;  %v6226_v39 = vadd.f32 %v6225_v25, %v6067_v54  ;;  %v5621_v50 = vld [vmem:[%s12710_s4 + $0x2d0] sm:$0xff]  ;;  %v5622_v25 = vld [vmem:[%s12710_s4 + $0x2d8] sm:$0xff] }
 0x5a7   : > { %v6726_v19 = vmul.f32 %v12152_v33, %v6336_v4  ;;  %v6727_v40 = vmul.f32 %v12152_v33, %v6337_v3  ;;  %v6886_v33 = vadd.f32 %v6885_v29, %v6725_v63  ;;  %v6345_v29 = vld [vmem:[%s12711_s5 + $0x2b8] sm:$0xff] }
 0x5a9   : > { %v12154_v49 = vpop.permute.xlu0 %5873  ;;  %v6816_v58 = vadd.f32 %v6815_v5, %v6726_v19  ;;  %v6887_v23 = vadd.f32 %v6886_v33, %v6727_v40 }
 0x5aa   : > { %v6070_v14 = vmul.f32 %v12154_v49, %v5615_v46  ;;  %v6071_v12 = vmul.f32 %v12154_v49, %v5616_v18  ;;  %v5619_v49 = vld [vmem:[%s12710_s4 + $0x2c0] sm:$0xff]  ;;  %v5624_v18 = vld [vmem:[%s12710_s4 + $0x2e8] sm:$0xff] }
 0x5ab   : > { %v12156_v48 = vpop.permute.xlu1 %5868  ;;  %v6817_v37 = vadd.f32 %v6816_v58, %v6728_v34  ;;  %v6346_v46 = vld [vmem:[%s12711_s5 + $0x2c0] sm:$0xff] }
 0x5ac   : > { %v6068_v38 = vmul.f32 %v12156_v48, %v5613_v16  ;;  %v6069_v47 = vmul.f32 %v12156_v48, %v5614_v51  ;;  %v6340_v48 = vld [vmem:[%s12711_s5 + $0x290] sm:$0xff]  ;;  %v5620_v51 = vld [vmem:[%s12710_s4 + $0x2c8] sm:$0xff] }
 0x5ae   : > { %v12158_v62 = vpop.permute.xlu0 %6557  ;;  %v6156_v11 = vadd.f32 %v6155_v59, %v6068_v38  ;;  %v6227_v26 = vadd.f32 %v6226_v39, %v6069_v47 }
 0x5af   : > { %v6732_v40 = vmul.f32 %v12158_v62, %v6342_v1  ;;  %v6733_v53 = vmul.f32 %v12158_v62, %v6343_v2  ;;  %v6347_v62 = vld [vmem:[%s12711_s5 + $0x2c8] sm:$0xff] }
 0x5b0   : > { %v12160_v52 = vpop.permute.xlu1 %6553  ;;  %v6157_v3 = vadd.f32 %v6156_v11, %v6070_v14  ;;  %v6228_v41 = vadd.f32 %v6227_v26, %v6071_v12 }
 0x5b1   : > { %v6730_v60 = vmul.f32 %v12160_v52, %v6340_v48  ;;  %v6731_v7 = vmul.f32 %v12160_v52, %v6341_v15  ;;  %v6888_v52 = vadd.f32 %v6887_v23, %v6729_v35  ;;  %v6349_v15 = vld [vmem:[%s12711_s5 + $0x2d8] sm:$0xff] }
 0x5b3   : > { %v12162_v6 = vpop.permute.xlu0 %5883  ;;  %v6818_v56 = vadd.f32 %v6817_v37, %v6730_v60  ;;  %v6889_v16 = vadd.f32 %v6888_v52, %v6731_v7  ;;  %v6350_v37 = vld [vmem:[%s12711_s5 + $0x2e0] sm:$0xff] }
 0x5b4   : > { %v6074_v47 = vmul.f32 %v12162_v6, %v5619_v49  ;;  %v6075_v36 = vmul.f32 %v12162_v6, %v5620_v51  ;;  %v5623_v6 = vld [vmem:[%s12710_s4 + $0x2e0] sm:$0xff]  ;;  %v5629_v51 = vld [vmem:[%s12710_s4 + $0x310] sm:$0xff] }
 0x5b5   : > { %v12164_v45 = vpop.permute.xlu1 %5878  ;;  %v6819_v59 = vadd.f32 %v6818_v56, %v6732_v40  ;;  %v5627_v49 = vld [vmem:[%s12710_s4 + $0x300] sm:$0xff] }
 0x5b6   : > { %v6072_v57 = vmul.f32 %v12164_v45, %v5617_v0  ;;  %v6073_v10 = vmul.f32 %v12164_v45, %v5618_v22  ;;  %v6344_v45 = vld [vmem:[%s12711_s5 + $0x2b0] sm:$0xff]  ;;  %v5626_v22 = vld [vmem:[%s12710_s4 + $0x2f8] sm:$0xff] }
 0x5b7   : > { %v5625_v0 = vld [vmem:[%s12710_s4 + $0x2f0] sm:$0xff] }
 0x5b8   : > { %v12166_v21 = vpop.permute.xlu0 %6565  ;;  %v6158_v44 = vadd.f32 %v6157_v3, %v6072_v57  ;;  %v6229_v63 = vadd.f32 %v6228_v41, %v6073_v10  ;;  %v6353_v41 = vld [vmem:[%s12711_s5 + $0x2f8] sm:$0xff] }
 0x5b9   : > { %v6736_v35 = vmul.f32 %v12166_v21, %v6346_v46  ;;  %v6737_v60 = vmul.f32 %v12166_v21, %v6347_v62  ;;  %v6351_v21 = vld [vmem:[%s12711_s5 + $0x2e8] sm:$0xff]  ;;  %v6354_v46 = vld [vmem:[%s12711_s5 + $0x300] sm:$0xff] }
 0x5ba   : > { %v12168_v30 = vpop.permute.xlu1 %6561  ;;  %v6159_v39 = vadd.f32 %v6158_v44, %v6074_v47  ;;  %v6230_v48 = vadd.f32 %v6229_v63, %v6075_v36 }
 0x5bb   : > { %v6734_v54 = vmul.f32 %v12168_v30, %v6344_v45  ;;  %v6735_v38 = vmul.f32 %v12168_v30, %v6345_v29  ;;  %v6890_v30 = vadd.f32 %v6889_v16, %v6733_v53  ;;  %v5628_v16 = vld [vmem:[%s12710_s4 + $0x308] sm:$0xff] }
 0x5bd   : > { %v12170_v43 = vpop.permute.xlu0 %5893  ;;  %v6820_v58 = vadd.f32 %v6819_v59, %v6734_v54  ;;  %v6891_v23 = vadd.f32 %v6890_v30, %v6735_v38 }
 0x5be   : > { %v6078_v57 = vmul.f32 %v12170_v43, %v5623_v6  ;;  %v6079_v10 = vmul.f32 %v12170_v43, %v5624_v18 }
 0x5bf   : > { %v12172_v42 = vpop.permute.xlu1 %5888  ;;  %v6821_v52 = vadd.f32 %v6820_v58, %v6736_v35  ;;  %v5633_v58 = vld [vmem:[%s12710_s4 + $0x330] sm:$0xff] }
 0x5c0   : > { %v6076_v24 = vmul.f32 %v12172_v42, %v5621_v50  ;;  %v6077_v5 = vmul.f32 %v12172_v42, %v5622_v25  ;;  %v6348_v42 = vld [vmem:[%s12711_s5 + $0x2d0] sm:$0xff]  ;;  %v5630_v50 = vld [vmem:[%s12710_s4 + $0x318] sm:$0xff] }
 0x5c2   : > { %v12186_v28 = vpop.permute.xlu0 %6573  ;;  %v6160_v26 = vadd.f32 %v6159_v39, %v6076_v24  ;;  %v6231_v34 = vadd.f32 %v6230_v48, %v6077_v5  ;;  %v6357_v39 = vld [vmem:[%s12711_s5 + $0x318] sm:$0xff] }
 0x5c3   : > { %v6740_v40 = vmul.f32 %v12186_v28, %v6350_v37  ;;  %v6741_v53 = vmul.f32 %v12186_v28, %v6351_v21  ;;  %v6355_v28 = vld [vmem:[%s12711_s5 + $0x308] sm:$0xff] }
 0x5c4   : > { %v12188_v61 = vpop.permute.xlu1 %6569  ;;  %v6161_v3 = vadd.f32 %v6160_v26, %v6078_v57  ;;  %v6232_v43 = vadd.f32 %v6231_v34, %v6079_v10 }
 0x5c5   : > { %v6738_v7 = vmul.f32 %v12188_v61, %v6348_v42  ;;  %v6739_v14 = vmul.f32 %v12188_v61, %v6349_v15  ;;  %v6892_v61 = vadd.f32 %v6891_v23, %v6737_v60  ;;  %v5632_v15 = vld [vmem:[%s12710_s4 + $0x328] sm:$0xff]  ;;  %v5634_v23 = vld [vmem:[%s12710_s4 + $0x338] sm:$0xff] }
 0x5c7   : > { %v12216_v8 = vpop.permute.xlu0 %5903  ;;  %v6822_v29 = vadd.f32 %v6821_v52, %v6738_v7  ;;  %v6893_v56 = vadd.f32 %v6892_v61, %v6739_v14  ;;  %v6361_v61 = vld [vmem:[%s12711_s5 + $0x338] sm:$0xff] }
 0x5c8   : > { %v6082_v47 = vmul.f32 %v12216_v8, %v5627_v49  ;;  %v6083_v36 = vmul.f32 %v12216_v8, %v5628_v16  ;;  %v5631_v8 = vld [vmem:[%s12710_s4 + $0x320] sm:$0xff] }
 0x5c9   : > { %v12222_v55 = vpop.permute.xlu1 %5898  ;;  %v6823_v62 = vadd.f32 %v6822_v29, %v6740_v40  ;;  %v6894_v59 = vadd.f32 %v6893_v56, %v6741_v53  ;;  %v5638_v29 = vld [vmem:[%s12710_s4 + $0x358] sm:$0xff] }
 0x5ca   : > { %v6080_v1 = vmul.f32 %v12222_v55, %v5625_v0  ;;  %v6081_v2 = vmul.f32 %v12222_v55, %v5626_v22  ;;  %v6352_v55 = vld [vmem:[%s12711_s5 + $0x2f0] sm:$0xff] }
 0x5cc   : > { %v12241_v20 = vpop.permute.xlu0 %6581  ;;  %v6162_v25 = vadd.f32 %v6161_v3, %v6080_v1  ;;  %v6233_v44 = vadd.f32 %v6232_v43, %v6081_v2  ;;  %v6358_v2 = vld [vmem:[%s12711_s5 + $0x320] sm:$0xff] }
 0x5cd   : > { %v6744_v26 = vmul.f32 %v12241_v20, %v6354_v46  ;;  %v6745_v34 = vmul.f32 %v12241_v20, %v6355_v28  ;;  %v6359_v20 = vld [vmem:[%s12711_s5 + $0x328] sm:$0xff]  ;;  %v5639_v46 = vld [vmem:[%s12710_s4 + $0x360] sm:$0xff] }
 0x5ce   : > { %v12252_v17 = vpop.permute.xlu1 %6577  ;;  %v6234_v6 = vadd.f32 %v6233_v44, %v6083_v36  ;;  %v6362_v36 = vld [vmem:[%s12711_s5 + $0x340] sm:$0xff] }
 0x5cf   : > { %v6742_v54 = vmul.f32 %v12252_v17, %v6352_v55  ;;  %v6743_v38 = vmul.f32 %v12252_v17, %v6353_v41  ;;  %v6163_v17 = vadd.f32 %v6162_v25, %v6082_v47  ;;  %v5636_v55 = vld [vmem:[%s12710_s4 + $0x348] sm:$0xff]  ;;  %v5637_v41 = vld [vmem:[%s12710_s4 + $0x350] sm:$0xff] }
 0x5d1   : > { %v12268_v31 = vpop.permute.xlu0 %5913  ;;  %v6824_v48 = vadd.f32 %v6823_v62, %v6742_v54  ;;  %v6895_v42 = vadd.f32 %v6894_v59, %v6743_v38  ;;  %v6365_v62 = vld [vmem:[%s12711_s5 + $0x358] sm:$0xff] }
 0x5d2   : > { %v6086_v7 = vmul.f32 %v12268_v31, %v5631_v8  ;;  %v6087_v14 = vmul.f32 %v12268_v31, %v5632_v15  ;;  %v5635_v31 = vld [vmem:[%s12710_s4 + $0x340] sm:$0xff] }
 0x5d3   : > { %v12288_v27 = vpop.permute.xlu1 %5908  ;;  %v6825_v37 = vadd.f32 %v6824_v48, %v6744_v26 }
 0x5d4   : > { %v6084_v24 = vmul.f32 %v12288_v27, %v5629_v51  ;;  %v6085_v5 = vmul.f32 %v12288_v27, %v5630_v50  ;;  %v6356_v27 = vld [vmem:[%s12711_s5 + $0x310] sm:$0xff] }
 0x5d6   : > { %v12298_v13 = vpop.permute.xlu0 %6589  ;;  %v6164_v0 = vadd.f32 %v6163_v17, %v6084_v24  ;;  %v6235_v22 = vadd.f32 %v6234_v6, %v6085_v5  ;;  %v5640_v17 = vld [vmem:[%s12710_s4 + $0x368] sm:$0xff]  ;;  %v5641_v6 = vld [vmem:[%s12710_s4 + $0x370] sm:$0xff] }
 0x5d7   : > { %v6748_v51 = vmul.f32 %v12298_v13, %v6358_v2  ;;  %v6749_v50 = vmul.f32 %v12298_v13, %v6359_v20  ;;  %v6363_v13 = vld [vmem:[%s12711_s5 + $0x348] sm:$0xff]  ;;  %v6369_v2 = vld [vmem:[%s12711_s5 + $0x378] sm:$0xff] }
 0x5d8   : > { %v12315_v9 = vpop.permute.xlu1 %6585  ;;  %v6165_v21 = vadd.f32 %v6164_v0, %v6086_v7  ;;  %v6236_v52 = vadd.f32 %v6235_v22, %v6087_v14  ;;  %v6366_v7 = vld [vmem:[%s12711_s5 + $0x360] sm:$0xff] }
 0x5d9   : > { %v6746_v35 = vmul.f32 %v12315_v9, %v6356_v27  ;;  %v6747_v60 = vmul.f32 %v12315_v9, %v6357_v39  ;;  %v6896_v9 = vadd.f32 %v6895_v42, %v6745_v34  ;;  %v5642_v27 = vld [vmem:[%s12710_s4 + $0x378] sm:$0xff] }
 0x5db   : > { %v12330_v32 = vpop.permute.xlu0 %5923  ;;  %v6826_v3 = vadd.f32 %v6825_v37, %v6746_v35  ;;  %v6897_v43 = vadd.f32 %v6896_v9, %v6747_v60  ;;  %v5644_v9 = vld [vmem:[%s12710_s4 + $0x388] sm:$0xff] }
 0x5dc   : > { %v6090_v53 = vmul.f32 %v12330_v32, %v5635_v31  ;;  %v6091_v54 = vmul.f32 %v12330_v32, %v5636_v55  ;;  %v5645_v31 = vld [vmem:[%s12710_s4 + $0x390] sm:$0xff] }
 0x5dd   : > { %v12342_v4 = vpop.permute.xlu1 %5918  ;;  %v6827_v24 = vadd.f32 %v6826_v3, %v6748_v51 }
 0x5de   : > { %v6088_v57 = vmul.f32 %v12342_v4, %v5633_v58  ;;  %v6089_v10 = vmul.f32 %v12342_v4, %v5634_v23  ;;  %v6360_v4 = vld [vmem:[%s12711_s5 + $0x330] sm:$0xff] }
 0x5e0   : > { %v12362_v19 = vpop.permute.xlu0 %6597  ;;  %v6166_v56 = vadd.f32 %v6165_v21, %v6088_v57  ;;  %v6237_v16 = vadd.f32 %v6236_v52, %v6089_v10  ;;  %v5646_v21 = vld [vmem:[%s12710_s4 + $0x398] sm:$0xff] }
 0x5e1   : > { %v6752_v15 = vmul.f32 %v12362_v19, %v6362_v36  ;;  %v6753_v58 = vmul.f32 %v12362_v19, %v6363_v13  ;;  %v6367_v19 = vld [vmem:[%s12711_s5 + $0x368] sm:$0xff] }
 0x5e2   : > { %v12372_v33 = vpop.permute.xlu1 %6593  ;;  %v6167_v32 = vadd.f32 %v6166_v56, %v6090_v53  ;;  %v6238_v28 = vadd.f32 %v6237_v16, %v6091_v54 }
 0x5e3   : > { %v6750_v25 = vmul.f32 %v12372_v33, %v6360_v4  ;;  %v6751_v44 = vmul.f32 %v12372_v33, %v6361_v61  ;;  %v6898_v33 = vadd.f32 %v6897_v43, %v6749_v50 }
 0x5e5   : > { %v12398_v11 = vpop.permute.xlu0 %5933  ;;  %v6828_v59 = vadd.f32 %v6827_v24, %v6750_v25  ;;  %v6899_v8 = vadd.f32 %v6898_v33, %v6751_v44  ;;  %v6370_v25 = vld [vmem:[%s12711_s5 + $0x380] sm:$0xff]  ;;  %v6371_v44 = vld [vmem:[%s12711_s5 + $0x388] sm:$0xff] }
 0x5e6   : > { %v6094_v22 = vmul.f32 %v12398_v11, %v5639_v46  ;;  %v6095_v26 = vmul.f32 %v12398_v11, %v5640_v17  ;;  %v5648_v33 = vld [vmem:[%s12710_s4 + $0x3a8] sm:$0xff]  ;;  %v5650_v46 = vld [vmem:[%s12710_s4 + $0x3b8] sm:$0xff] }
 0x5e7   : > { %v12404_v12 = vpop.permute.xlu1 %5928  ;;  %v6829_v14 = vadd.f32 %v6828_v59, %v6752_v15  ;;  %v6900_v57 = vadd.f32 %v6899_v8, %v6753_v58  ;;  %v6374_v15 = vld [vmem:[%s12711_s5 + $0x3a0] sm:$0xff]  ;;  %v6375_v58 = vld [vmem:[%s12711_s5 + $0x3a8] sm:$0xff] }
 0x5e8   : > { %v6092_v38 = vmul.f32 %v12404_v12, %v5637_v41  ;;  %v6093_v47 = vmul.f32 %v12404_v12, %v5638_v29  ;;  %v6364_v12 = vld [vmem:[%s12711_s5 + $0x350] sm:$0xff] }
 0x5ea   : > { %v12425_v45 = vpop.permute.xlu0 %6605  ;;  %v6168_v39 = vadd.f32 %v6167_v32, %v6092_v38  ;;  %v6239_v48 = vadd.f32 %v6238_v28, %v6093_v47  ;;  %v6373_v47 = vld [vmem:[%s12711_s5 + $0x398] sm:$0xff] }
 0x5eb   : > { %v6756_v3 = vmul.f32 %v12425_v45, %v6366_v7  ;;  %v6757_v43 = vmul.f32 %v12425_v45, %v6367_v19  ;;  %v5652_v19 = vld [vmem:[%s12710_s4 + $0x3c8] sm:$0xff] }
 0x5ec   : > { %v12436_v63 = vpop.permute.xlu1 %6601  ;;  %v6169_v11 = vadd.f32 %v6168_v39, %v6094_v22  ;;  %v6240_v10 = vadd.f32 %v6239_v48, %v6095_v26 }
 0x5ed   : > { %v6754_v23 = vmul.f32 %v12436_v63, %v6364_v12  ;;  %v6755_v0 = vmul.f32 %v12436_v63, %v6365_v62  ;;  %v5643_v63 = vld [vmem:[%s12710_s4 + $0x380] sm:$0xff] }
 0x5ef   : > { %v12452_v30 = vpop.permute.xlu0 %5943  ;;  %v6830_v20 = vadd.f32 %v6829_v14, %v6754_v23  ;;  %v6901_v37 = vadd.f32 %v6900_v57, %v6755_v0  ;;  %v5653_v14 = vld [vmem:[%s12710_s4 + $0x3d0] sm:$0xff]  ;;  %v5654_v57 = vld [vmem:[%s12710_s4 + $0x3d8] sm:$0xff] }
 0x5f0   : > { %v6098_v56 = vmul.f32 %v12452_v30, %v5643_v63  ;;  %v6099_v16 = vmul.f32 %v12452_v30, %v5644_v9  ;;  %v6372_v30 = vld [vmem:[%s12711_s5 + $0x390] sm:$0xff] }
 0x5f1   : > { %v12472_v18 = vpop.permute.xlu1 %5938  ;;  %v6831_v45 = vadd.f32 %v6830_v20, %v6756_v3  ;;  %v6902_v53 = vadd.f32 %v6901_v37, %v6757_v43  ;;  %v6378_v3 = vld [vmem:[%s12711_s5 + $0x3c0] sm:$0xff] }
 0x5f2   : > { %v6096_v34 = vmul.f32 %v12472_v18, %v5641_v6  ;;  %v6097_v35 = vmul.f32 %v12472_v18, %v5642_v27  ;;  %v6368_v18 = vld [vmem:[%s12711_s5 + $0x370] sm:$0xff] }
 0x5f4   : > { %v12482_v1 = vpop.permute.xlu0 %6613  ;;  %v6170_v4 = vadd.f32 %v6169_v11, %v6096_v34  ;;  %v6241_v61 = vadd.f32 %v6240_v10, %v6097_v35  ;;  %v6377_v35 = vld [vmem:[%s12711_s5 + $0x3b8] sm:$0xff] }
 0x5f5   : > { %v6760_v62 = vmul.f32 %v12482_v1, %v6370_v25  ;;  %v6761_v59 = vmul.f32 %v12482_v1, %v6371_v44  ;;  %v5651_v1 = vld [vmem:[%s12710_s4 + $0x3c0] sm:$0xff]  ;;  %v5656_v44 = vld [vmem:[%s12710_s4 + $0x3e8] sm:$0xff] }
 0x5f6   : > { %v12499_v49 = vpop.permute.xlu1 %6609  ;;  %v6171_v54 = vadd.f32 %v6170_v4, %v6098_v56  ;;  %v6242_v38 = vadd.f32 %v6241_v61, %v6099_v16  ;;  %v5655_v25 = vld [vmem:[%s12710_s4 + $0x3e0] sm:$0xff] }
 0x5f7   : > { %v6758_v55 = vmul.f32 %v12499_v49, %v6368_v18  ;;  %v6759_v41 = vmul.f32 %v12499_v49, %v6369_v2  ;;  %v5647_v49 = vld [vmem:[%s12710_s4 + $0x3a0] sm:$0xff] }
 0x5f9   : > { %v12514_v40 = vpop.permute.xlu0 %5953  ;;  %v6832_v13 = vadd.f32 %v6831_v45, %v6758_v55  ;;  %v6903_v24 = vadd.f32 %v6902_v53, %v6759_v41  ;;  %v6379_v41 = vld [vmem:[%s12711_s5 + $0x3c8] sm:$0xff] }
 0x5fa   : > { %v6102_v6 = vmul.f32 %v12514_v40, %v5647_v49  ;;  %v6103_v27 = vmul.f32 %v12514_v40, %v5648_v33  ;;  %v6376_v40 = vld [vmem:[%s12711_s5 + $0x3b0] sm:$0xff]  ;;  %v5659_v49 = vld [vmem:[%s12710_s4 + $0x400] sm:$0x1] }
 0x5fb   : > { %v5949_v5 = vpop.permute.xlu1 %5948  ;;  %v6833_v23 = vadd.f32 %v6832_v13, %v6760_v62  ;;  %v6904_v0 = vadd.f32 %v6903_v24, %v6761_v59  ;;  %v5657_v33 = vld [vmem:[%s12710_s4 + $0x3f0] sm:$0xff] }
 0x5fc   : > { %v6100_v51 = vmul.f32 %v5949_v5, %v5645_v31  ;;  %v6101_v50 = vmul.f32 %v5949_v5, %v5646_v21  ;;  %v5649_v5 = vld [vmem:[%s12710_s4 + $0x3b0] sm:$0xff] }
 0x5fe   : > { %v12544_v42 = vpop.permute.xlu0 %6621  ;;  %v6172_v32 = vadd.f32 %v6171_v54, %v6100_v51  ;;  %v6243_v28 = vadd.f32 %v6242_v38, %v6101_v50  ;;  %v5660_v54 = vld [vmem:[%s12710_s4 + $0x408] sm:$0x1] }
 0x5ff   : > { %v6764_v18 = vmul.f32 %v12544_v42, %v6374_v15  ;;  %v6765_v2 = vmul.f32 %v12544_v42, %v6375_v58  ;;  %v6380_v42 = vld [vmem:[%s12711_s5 + $0x3d0] sm:$0xff] }
 0x600   : > { %v6618_v60 = vpop.permute.xlu1 %6617  ;;  %v6173_v26 = vadd.f32 %v6172_v32, %v6102_v6  ;;  %v6244_v34 = vadd.f32 %v6243_v28, %v6103_v27 }
 0x601   : > { %v6762_v8 = vmul.f32 %v6618_v60, %v6372_v30  ;;  %v6763_v17 = vmul.f32 %v6618_v60, %v6373_v47 }
 0x603   : > { %v5964_v52 = vpop.permute.xlu0 %5963  ;;  %v6834_v60 = vadd.f32 %v6833_v23, %v6762_v8  ;;  %v6905_v7 = vadd.f32 %v6904_v0, %v6763_v17  ;;  %v6383_v17 = vld [vmem:[%s12711_s5 + $0x3e8] sm:$0xff]  ;;  %v6386_v23 = vld [vmem:[%s12711_s5 + $0x400] sm:$0x1] }
 0x604   : > { %v6106_v9 = vmul.f32 %v5964_v52, %v5651_v1  ;;  %v6107_v31 = vmul.f32 %v5964_v52, %v5652_v19  ;;  %v6381_v52 = vld [vmem:[%s12711_s5 + $0x3d8] sm:$0xff]  ;;  %v6387_v0 = vld [vmem:[%s12711_s5 + $0x408] sm:$0x1] }
 0x605   : > { %v5959_v29 = vpop.permute.xlu1 %5958  ;;  %v6835_v43 = vadd.f32 %v6834_v60, %v6764_v18  ;;  %v6906_v55 = vadd.f32 %v6905_v7, %v6765_v2 }
 0x606   : > { %v6104_v39 = vmul.f32 %v5959_v29, %v5649_v5  ;;  %v6105_v48 = vmul.f32 %v5959_v29, %v5650_v46  ;;  %v5658_v5 = vld [vmem:[%s12710_s4 + $0x3f8] sm:$0xff] }
 0x608   : > { %v6630_v36 = vpop.permute.xlu0 %6629  ;;  %v6174_v11 = vadd.f32 %v6173_v26, %v6104_v39  ;;  %v6245_v10 = vadd.f32 %v6244_v34, %v6105_v48  ;;  %v6384_v34 = vld [vmem:[%s12711_s5 + $0x3f0] sm:$0xff] }
 0x609   : > { %v6768_v38 = vmul.f32 %v6630_v36, %v6378_v3  ;;  %v6769_v30 = vmul.f32 %v6630_v36, %v6379_v41  ;;  %v6382_v36 = vld [vmem:[%s12711_s5 + $0x3e0] sm:$0xff] }
 0x60a   : > { %v6626_v12 = vpop.permute.xlu1 %6625  ;;  %v6175_v29 = vadd.f32 %v6174_v11, %v6106_v9  ;;  %v6246_v56 = vadd.f32 %v6245_v10, %v6107_v31 }
 0x60b   : > { %v6766_v20 = vmul.f32 %v6626_v12, %v6376_v40  ;;  %v6767_v37 = vmul.f32 %v6626_v12, %v6377_v35  ;;  %v6385_v40 = vld [vmem:[%s12711_s5 + $0x3f8] sm:$0xff] }
 0x60d   : > { %v5974_v22 = vpop.permute.xlu0 %5973  ;;  %v6836_v51 = vadd.f32 %v6835_v43, %v6766_v20  ;;  %v6907_v50 = vadd.f32 %v6906_v55, %v6767_v37 }
 0x60e   : > { %v6110_v46 = vmul.f32 %v5974_v22, %v5655_v25  ;;  %v6111_v32 = vmul.f32 %v5974_v22, %v5656_v44 }
 0x60f   : > { %v5969_v63 = vpop.permute.xlu1 %5968  ;;  %v6837_v28 = vadd.f32 %v6836_v51, %v6768_v38  ;;  %v6908_v12 = vadd.f32 %v6907_v50, %v6769_v30 }
 0x610   : > { %v6108_v21 = vmul.f32 %v5969_v63, %v5653_v14  ;;  %v6109_v4 = vmul.f32 %v5969_v63, %v5654_v57 }
 0x612   : > { %v6638_v61 = vpop.permute.xlu0 %6637  ;;  %v6176_v45 = vadd.f32 %v6175_v29, %v6108_v21  ;;  %v6247_v53 = vadd.f32 %v6246_v56, %v6109_v4 }
 0x613   : > { %v6772_v35 = vmul.f32 %v6638_v61, %v6382_v36  ;;  %v6773_v60 = vmul.f32 %v6638_v61, %v6383_v17 }
 0x614   : > { %v6634_v16 = vpop.permute.xlu1 %6633  ;;  %v6177_v6 = vadd.f32 %v6176_v45, %v6110_v46  ;;  %v6248_v27 = vadd.f32 %v6247_v53, %v6111_v32  ;;  %v13992_v46 = vld [vmem:[#allocation213_spill] sm:$0xff] }
 0x615   : > { %v6770_v47 = vmul.f32 %v6634_v16, %v6380_v42  ;;  %v6771_v13 = vmul.f32 %v6634_v16, %v6381_v52  ;;  %v13993_v32 = vsub.s32 0, %v13992_v46 }
 0x617   : > { %v5984_v24 = vpop.permute.xlu0 %5983  ;;  %v6838_v15 = vadd.f32 %v6837_v28, %v6770_v47  ;;  %v6909_v58 = vadd.f32 %v6908_v12, %v6771_v13  ;;  %v6922_v47 = vld [vmem:[%s12712_s6] sm:$0x3]  ;;  %v13994_v12 = vsub.s32 1, %v13992_v46 }
 0x618   : > { %v6114_v62 = vmul.f32 %v5984_v24, %v5659_v49  ;;  %v6115_v59 = vmul.f32 %v5984_v24, %v5660_v54  ;;  %v7716_v49 = vmov 1966171168   ;;  %v6927_v28 = vrot.slane %v6922_v47, %v13993_v32 }
 0x619   : > { %v5979_v8 = vpop.permute.xlu1 %5978  ;;  %v6839_v18 = vadd.f32 %v6838_v15, %v6772_v35  ;;  %v6910_v2 = vadd.f32 %v6909_v58, %v6773_v60  ;;  %v6940_v54 = vunpack.c.l.s4 %v7716_v49 }
 0x61a   : > { %v6112_v39 = vmul.f32 %v5979_v8, %v5657_v33  ;;  %v6113_v48 = vmul.f32 %v5979_v8, %v5658_v5  ;;  %v6179_v7 = vsel %vm4252_vm0, %v6114_v62, 0.0  ;;  %v6250_v19 = vsel %vm4252_vm0, %v6115_v59, 0.0 }
 0x61b   : > { %v6931_v62 = vrot.slane %v6922_v47, %v13994_v12  ;;  %v6941_v59 = vunpack.c.0.s8 %v6940_v54 }
 0x61c   : > { %v6178_v22 = vadd.f32 %v6177_v6, %v6112_v39  ;;  %v6249_v1 = vadd.f32 %v6248_v27, %v6113_v48  ;;  %v6646_v26 = vpop.permute.xlu0 %6645 }
 0x61d   : > { %v6776_v63 = vmul.f32 %v6646_v26, %v6386_v23  ;;  %v6777_v11 = vmul.f32 %v6646_v26, %v6387_v0  ;;  %v6944_v48 = vsub.s32 %v6941_v59, %v13992_v46 }
 0x61e   : > { %v6180_v14 = vadd.f32 %v6179_v7, %v6178_v22  ;;  %v6251_v57 = vadd.f32 %v6250_v19, %v6249_v1  ;;  %v6642_v10 = vpop.permute.xlu1 %6641  ;;  %v13995_v22 = vlaneseq }
 0x61f   : > { %v6774_v20 = vmul.f32 %v6642_v10, %v6384_v34  ;;  %v6775_v37 = vmul.f32 %v6642_v10, %v6385_v40  ;;  %v6841_v61 = vsel %vm4252_vm0, %v6776_v63, 0.0  ;;  %v6912_v55 = vsel %vm4252_vm0, %v6777_v11, 0.0 }
 0x620   : > { %v6181_v9 = vrot.slane %v6180_v14, 4  ;;  %v6252_v31 = vrot.slane %v6251_v57, 4  ;;  %vm6956_vm1 = vcmp.lt.s32.totalorder %v13995_v22, 256 }
 0x621   : > { %v6840_v21 = vadd.f32 %v6839_v18, %v6774_v20  ;;  %v6911_v4 = vadd.f32 %v6910_v2, %v6775_v37 }
 0x622   : > { %v6182_v3 = vadd.f32 %v6181_v9, %v6180_v14  ;;  %v6253_v43 = vadd.f32 %v6252_v31, %v6251_v57 }
 0x623   : > { %v6842_v41 = vadd.f32 %v6841_v61, %v6840_v21  ;;  %v6913_v29 = vadd.f32 %v6912_v55, %v6911_v4 }
 0x624   : > { %v6183_v56 = vrot.slane %v6182_v3, 2  ;;  %v6254_v42 = vrot.slane %v6253_v43, 2 }
 0x625   : > { %v6843_v52 = vrot.slane %v6842_v41, 4  ;;  %v6914_v16 = vrot.slane %v6913_v29, 4 }
 0x626   : > { %v6184_v51 = vadd.f32 %v6183_v56, %v6182_v3  ;;  %v6255_v50 = vadd.f32 %v6254_v42, %v6253_v43 }
 0x627   : > { %v6844_v25 = vadd.f32 %v6843_v52, %v6842_v41  ;;  %v6915_v44 = vadd.f32 %v6914_v16, %v6913_v29 }
 0x628   : > { %v6185_v38 = vrot.slane %v6184_v51, 1  ;;  %v6256_v30 = vrot.slane %v6255_v50, 1 }
 0x629   : > { %v6845_v45 = vrot.slane %v6844_v25, 2  ;;  %v6916_v53 = vrot.slane %v6915_v44, 2 }
 0x62a   : > { %v6186_v8 = vadd.f32 %v6185_v38, %v6184_v51  ;;  %v6257_v36 = vadd.f32 %v6256_v30, %v6255_v50 }
 0x62b   : > { %v6846_v13 = vadd.f32 %v6845_v45, %v6844_v25  ;;  %v6917_v24 = vadd.f32 %v6916_v53, %v6915_v44 }
 0x62d   : > { %v6847_v33 = vrot.slane %v6846_v13, 1  ;;  %v6918_v5 = vrot.slane %v6917_v24, 1 }
 0x62f   : > { %v6848_v17 = vadd.f32 %v6847_v33, %v6846_v13  ;;  %v6919_v6 = vadd.f32 %v6918_v5, %v6917_v24 }
 0x631   : > { %v6920_v27 = vadd.f32 %v6848_v17, %v6186_v8  ;;  %v6921_v39 = vadd.f32 %v6919_v6, %v6257_v36 }
 0x633   : > { %v6934_v15 = vadd.f32 %v6927_v28, %v6920_v27  ;;  %v6935_v58 = vadd.f32 %v6931_v62, %v6921_v39 }
 0x635   : > { %v6938_v23 = vcombine.low %v6934_v15, %v6935_v58 }
 0x637   : > { %v6945_v0 = vrot.slane %v6938_v23, %v6944_v48 }
 0x639   : > { %v6952_v1 = vrot.slane %v6945_v0, %v6944_v48 }
 0x63b   : > { %6958 = vst.msk [vmem:[%s276_s19] sm:$0x3] %vm6956_vm1, %v6952_v1 }
 0x63c PF: > { %s17_s24 = sadd.s32 1, %s7712_s24  }
 0x63d   : > { %p14_p4 = scmp.ge.s32.totalorder %s17_s24, 4  }
 0x63f   :  { %16 = sbr.rel (!%p14_p4) target bundleno = 1 (0x1), region = 78 }

</bundles_post_ra>
